<compile_context>
chip_gen: v7x
topology: tpu7x:2x2x1
jax: 0.10.0
libtpu: 0.0.40
codegen_flags: <defaults>
</compile_context>

<pallas_src>
import functools

import numpy as np

import jax
import jax.numpy as jnp
from jax import lax
from jax.experimental import pallas as pl
from jax.experimental.pallas import tpu as pltpu


# ----------------------------------------------------------------------------
# Static model dimensions (small synthetic config consistent with the module)
# ----------------------------------------------------------------------------
VOCAB_SIZE = 16
EMBED_DIM = 8
IMG = 16                    # input image (B, 3, 16, 16), NCHW
C_IN = 3
K = 3
C1 = 8                      # conv1 out channels
H1 = IMG - K + 1            # 14 (valid conv)
P1 = H1 // 2                # 7  (2x2 max-pool)
C2 = 16                     # conv2 out channels
H2 = P1 - K + 1             # 5
P2 = H2 // 2                # 2
HIDDEN_DIM = C2 * P2 * P2   # 64  (ImageEncoder flatten == question GRU hidden)
DEC_HIDDEN = 2 * HIDDEN_DIM  # 128

# Lane-space sizes used by the folded image encoder.
N1 = H1 * H1 * C1           # 1568 : conv1 output lanes, index (i*H1 + j)*C1 + c
N1J = N1 - C1               # 1560 : after j-direction slice-max
N1P = N1J - H1 * C1         # 1448 : after i-direction slice-max
N2 = H2 * H2 * C2           # 400  : conv2 output lanes, index (i*H2 + j)*C2 + c
N2J = N2 - C2               # 384
N2P = N2J - H2 * C2         # 304


# ----------------------------------------------------------------------------
# Fused forward kernel (single pallas_call, no grid)
# ----------------------------------------------------------------------------
def _fused_vqa_kernel(
    x_ref, qids_ref, dids_ref,
    a1_ref, b1_ref, a2_ref, b2_ref, sel_ref,
    mq_ref, wqh_ref, bqn_ref,
    md_ref, wdh_ref, bdn_ref,
    ow_ref, ob_ref,
    logits_ref, hlast_ref,
    hseq_ref,
    *, batch, tq, td):
    f32 = jnp.float32

    # ---------------- Image encoder: conv1+pool -> conv2+pool -> flatten ----
    x = x_ref[...]                                                    # (B, 768)
    y1 = jnp.dot(x, a1_ref[...], preferred_element_type=f32) + b1_ref[...]
    y1 = jnp.maximum(y1, 0.0)                                         # (B, N1)
    # 2x2 max-pool: max with (j+1) neighbour lanes, then (i+1) neighbour lanes.
    zj = jnp.maximum(y1[:, :N1J], y1[:, C1:])
    zp = jnp.maximum(zj[:, :N1P], zj[:, H1 * C1:])                    # (B, N1P)
    y2 = jnp.dot(zp, a2_ref[...], preferred_element_type=f32) + b2_ref[...]
    y2 = jnp.maximum(y2, 0.0)                                         # (B, N2)
    zj2 = jnp.maximum(y2[:, :N2J], y2[:, C2:])
    zp2 = jnp.maximum(zj2[:, :N2P], zj2[:, H2 * C2:])                 # (B, N2P)
    # Flatten selection (PyTorch (C,H,W) order), drops the garbage lanes.
    h_img = jnp.dot(zp2, sel_ref[...], preferred_element_type=f32)    # (B, 64)

    # ---------------- Question encoder GRU (h0 = image hidden) --------------
    q_oh = (qids_ref[...] ==
            lax.broadcasted_iota(jnp.int32, (tq * batch, VOCAB_SIZE), 1)
            ).astype(f32)                                             # (Tq*B, V)
    # Hoisted input projection: embedding + W_ih + input biases folded in mq.
    gq = [jnp.dot(q_oh, mq_ref[g], preferred_element_type=f32)
          for g in range(3)]                                          # (Tq*B, 64)
    h = h_img
    for t in range(tq):                                # fully unrolled (Tq=6)
        lo = t * batch
        gh_r = jnp.dot(h, wqh_ref[0], preferred_element_type=f32)
        gh_z = jnp.dot(h, wqh_ref[1], preferred_element_type=f32)
        gh_n = jnp.dot(h, wqh_ref[2], preferred_element_type=f32) + bqn_ref[...]
        r = jax.nn.sigmoid(gq[0][lo:lo + batch, :] + gh_r)
        z = jax.nn.sigmoid(gq[1][lo:lo + batch, :] + gh_z)
        n = jnp.tanh(gq[2][lo:lo + batch, :] + r * gh_n)
        h = (1.0 - z) * n + z * h
    q_h = h                                                           # (B, 64)

    # ---------------- Decoder GRU + fused output projection ------------------
    d_oh = (dids_ref[...] ==
            lax.broadcasted_iota(jnp.int32, (td * batch, VOCAB_SIZE), 1)
            ).astype(f32)                                             # (Td*B, V)
    gd = [jnp.dot(d_oh, md_ref[g], preferred_element_type=f32)
          for g in range(3)]                                          # (Td*B, 128)
    h = jnp.concatenate([h_img, q_h], axis=-1)                        # (B, 128)
    for t in range(td):                                # fully unrolled (Td=8)
        lo = t * batch
        gh_r = jnp.dot(h, wdh_ref[0], preferred_element_type=f32)
        gh_z = jnp.dot(h, wdh_ref[1], preferred_element_type=f32)
        gh_n = jnp.dot(h, wdh_ref[2], preferred_element_type=f32) + bdn_ref[...]
        r = jax.nn.sigmoid(gd[0][lo:lo + batch, :] + gh_r)
        z = jax.nn.sigmoid(gd[1][lo:lo + batch, :] + gh_z)
        n = jnp.tanh(gd[2][lo:lo + batch, :] + r * gh_n)
        h = (1.0 - z) * n + z * h
        hseq_ref[lo:lo + batch, :] = h
    hlast_ref[...] = h

    # Single batched (Td*B, H) @ (H, V) output projection for all timesteps.
    logits_ref[...] = (
        jnp.dot(hseq_ref[...], ow_ref[...], preferred_element_type=f32)
        + ob_ref[...]
    )


# ----------------------------------------------------------------------------
# Parameters (PyTorch layouts) + init-time folding into kernel operand layouts
# ----------------------------------------------------------------------------
def init_params(key):
    """Synthetic, deterministic PyTorch-layout parameters."""
    ks = jax.random.split(key, 16)
    s = 0.1

    def rnd(k, shape):
        return (s * jax.random.normal(k, shape)).astype(jnp.float32)

    p = {}
    # ImageEncoder: Conv2d(3, 8, 3) ; Conv2d(8, 16, 3)  (valid, stride 1)
    p["conv1_w"] = rnd(ks[0], (C1, C_IN, K, K))
    p["conv1_b"] = rnd(ks[1], (C1,))
    p["conv2_w"] = rnd(ks[2], (C2, C1, K, K))
    p["conv2_b"] = rnd(ks[3], (C2,))
    # QuestionEncoder: Embedding(V, E) + GRU(E, H=64), gate order [r|z|n]
    p["q_emb"] = rnd(ks[4], (VOCAB_SIZE, EMBED_DIM))
    p["q_w_ih"] = rnd(ks[5], (3 * HIDDEN_DIM, EMBED_DIM))
    p["q_w_hh"] = rnd(ks[6], (3 * HIDDEN_DIM, HIDDEN_DIM))
    p["q_b_ih"] = rnd(ks[7], (3 * HIDDEN_DIM,))
    p["q_b_hh"] = rnd(ks[8], (3 * HIDDEN_DIM,))
    # VQADecoder: Embedding(V, E) + GRU(E, H=128) + Linear(128, V)
    p["d_emb"] = rnd(ks[9], (VOCAB_SIZE, EMBED_DIM))
    p["d_w_ih"] = rnd(ks[10], (3 * DEC_HIDDEN, EMBED_DIM))
    p["d_w_hh"] = rnd(ks[11], (3 * DEC_HIDDEN, DEC_HIDDEN))
    p["d_b_ih"] = rnd(ks[12], (3 * DEC_HIDDEN,))
    p["d_b_hh"] = rnd(ks[13], (3 * DEC_HIDDEN,))
    p["out_w"] = rnd(ks[14], (VOCAB_SIZE, DEC_HIDDEN))
    p["out_b"] = rnd(ks[15], (VOCAB_SIZE,))
    return p


def _fold_conv1(w1, b1):
    """conv1 as a (C_in*H*W, H1*H1*C1) matmul on the NCHW-flattened image."""
    a1 = np.zeros((C_IN * IMG * IMG, N1), np.float32)
    oi, oj = np.meshgrid(np.arange(H1), np.arange(H1), indexing="ij")
    for co in range(C1):
        cols = ((oi * H1 + oj) * C1 + co).ravel()
        for ci in range(C_IN):
            for di in range(K):
                for dj in range(K):
                    rows = (ci * IMG * IMG + (oi + di) * IMG + (oj + dj)).ravel()
                    a1[rows, cols] += w1[co, ci, di, dj]
    b1f = np.tile(b1, H1 * H1)[None, :].astype(np.float32)
    return a1, b1f


def _fold_conv2(w2, b2):
    """conv2 as a matmul over the post-pool1 lane space (zero rows kill the
    pooling garbage lanes): pool1[b, ci, ip, jp] lives at lane
    ((2*ip)*H1 + 2*jp)*C1 + ci."""
    a2 = np.zeros((N1P, N2), np.float32)
    oi, oj = np.meshgrid(np.arange(H2), np.arange(H2), indexing="ij")
    for co in range(C2):
        cols = ((oi * H2 + oj) * C2 + co).ravel()
        for ci in range(C1):
            for di in range(K):
                for dj in range(K):
                    rows = (((2 * (oi + di)) * H1 + 2 * (oj + dj)) * C1
                            + ci).ravel()
                    a2[rows, cols] += w2[co, ci, di, dj]
    b2f = np.tile(b2, H2 * H2)[None, :].astype(np.float32)
    return a2, b2f


def _fold_flatten_select():
    """Selects the 2x2x16 pooled outputs out of the post-pool2 lane space and
    reorders them into PyTorch's (C, H, W) flatten order."""
    sel = np.zeros((N2P, HIDDEN_DIM), np.float32)
    for co in range(C2):
        for i3 in range(P2):
            for j3 in range(P2):
                row = ((2 * i3) * H2 + 2 * j3) * C2 + co
                col = co * P2 * P2 + i3 * P2 + j3
                sel[row, col] = 1.0
    return sel


def _fold_gru(emb, w_ih, w_hh, b_ih, b_hh, hid):
    """Per-gate folded GRU weights (PyTorch gate order r, z, n).

      M[g]   = emb @ W_ig.T + b_ig (+ b_hg for g in {r, z})   : (V, H)
      Whh[g] = W_hg.T                                         : (H, H)
      bhn    = b_hn                                           : (1, H)

    Per step:  r = sigmoid(onehot@M[0] + h@Whh[0])
               z = sigmoid(onehot@M[1] + h@Whh[1])
               n = tanh   (onehot@M[2] + r * (h@Whh[2] + bhn))
               h = (1 - z) * n + z * h          (identical to nn.GRU)
    """
    ms, whs = [], []
    for g in range(3):
        sl = slice(g * hid, (g + 1) * hid)
        m = emb @ w_ih[sl, :].T + b_ih[sl][None, :]
        if g < 2:                  # r, z: hidden bias is purely additive
            m = m + b_hh[sl][None, :]
        ms.append(m.astype(np.float32))
        whs.append(w_hh[sl, :].T.astype(np.float32))
    bhn = b_hh[2 * hid:3 * hid][None, :].astype(np.float32)
    return np.stack(ms), np.stack(whs), bhn


def fold_params(p):
    """Init-time (host) reformatting of PyTorch-layout parameters into the
    lane-dense matmul operands used by the fused kernel. Purely a weight
    re-layout; forward semantics unchanged."""
    pn = {k: np.asarray(v) for k, v in p.items()}
    a1, b1f = _fold_conv1(pn["conv1_w"], pn["conv1_b"])
    a2, b2f = _fold_conv2(pn["conv2_w"], pn["conv2_b"])
    sel = _fold_flatten_select()
    mq, wqh, bqn = _fold_gru(pn["q_emb"], pn["q_w_ih"], pn["q_w_hh"],
                             pn["q_b_ih"], pn["q_b_hh"], HIDDEN_DIM)
    md, wdh, bdn = _fold_gru(pn["d_emb"], pn["d_w_ih"], pn["d_w_hh"],
                             pn["d_b_ih"], pn["d_b_hh"], DEC_HIDDEN)
    f = {
        "a1": a1, "b1": b1f, "a2": a2, "b2": b2f, "sel": sel,
        "mq": mq, "wqh": wqh, "bqn": bqn,
        "md": md, "wdh": wdh, "bdn": bdn,
        "ow": pn["out_w"].T.astype(np.float32),
        "ob": pn["out_b"][None, :].astype(np.float32),
    }
    return {k: jnp.asarray(v) for k, v in f.items()}


# ----------------------------------------------------------------------------
# Forward wrapper (single pallas_call)
# ----------------------------------------------------------------------------
def vqa_forward(folded, image, word_seqs, seq_lengths, question_seqs,
                question_length):
    """Eval-mode forward: returns (output (B, k, vocab), hidden (1, B, 2H))."""
    # TODO(synk): seq_lengths / question_length only drive pack_padded_sequence
    # in training mode; the eval-mode forward ignores them (as in PyTorch).
    del seq_lengths, question_length

    batch = image.shape[0]
    tq = question_seqs.shape[1]
    td = word_seqs.shape[1]

    x_flat = image.reshape(batch, C_IN * IMG * IMG).astype(jnp.float32)
    q_ids = jnp.transpose(question_seqs).reshape(tq * batch, 1).astype(jnp.int32)
    d_ids = jnp.transpose(word_seqs).reshape(td * batch, 1).astype(jnp.int32)

    kernel = functools.partial(_fused_vqa_kernel, batch=batch, tq=tq, td=td)

    def vspec():
        return pl.BlockSpec(memory_space=pltpu.MemorySpace.VMEM)

    logits_flat, h_last = pl.pallas_call(
        kernel,
        out_shape=(
            jax.ShapeDtypeStruct((td * batch, VOCAB_SIZE), jnp.float32),
            jax.ShapeDtypeStruct((batch, DEC_HIDDEN), jnp.float32),
        ),
        in_specs=[vspec() for _ in range(16)],
        out_specs=(vspec(), vspec()),
        scratch_shapes=[pltpu.VMEM((td * batch, DEC_HIDDEN), jnp.float32)],
    )(x_flat, q_ids, d_ids,
      folded["a1"], folded["b1"], folded["a2"], folded["b2"], folded["sel"],
      folded["mq"], folded["wqh"], folded["bqn"],
      folded["md"], folded["wdh"], folded["bdn"],
      folded["ow"], folded["ob"])

    output = jnp.transpose(logits_flat.reshape(td, batch, VOCAB_SIZE),
                           (1, 0, 2))                                 # (B,k,V)
    hidden = h_last[None, :, :]                                       # (1,B,2H)
    return output, hidden


# ----------------------------------------------------------------------------
# Main
# ----------------------------------------------------------------------------
if __name__ == "__main__":
    key = jax.random.PRNGKey(0)
    kp, ki, kw, kq = jax.random.split(key, 4)

    params = init_params(kp)
    folded = fold_params(params)

    B = 2
    image = jax.random.normal(ki, (B, C_IN, IMG, IMG), dtype=jnp.float32)  # NCHW
    word_seqs = jax.random.randint(kw, (B, 8), 0, VOCAB_SIZE, dtype=jnp.int32)
    question_seqs = jax.random.randint(kq, (B, 6), 0, VOCAB_SIZE,
                                       dtype=jnp.int32)
    seq_lengths = jnp.full((B,), 8, dtype=jnp.int32)
    question_length = jnp.full((B,), 6, dtype=jnp.int32)

    fwd = jax.jit(vqa_forward)
    output, hidden = fwd(folded, image, word_seqs, seq_lengths, question_seqs,
                         question_length)
    jax.block_until_ready((output, hidden))

    assert output.shape == (B, 8, VOCAB_SIZE)
    assert hidden.shape == (1, B, DEC_HIDDEN)
    print("KERNEL_OK")
</pallas_src>

<mosaic_0001>
module attributes {stable_mosaic.version = 11 : i64} {
  func.func @_fused_vqa_kernel(%arg0: memref<2x768xf32, #tpu.memory_space<vmem>>, %arg1: memref<12x1xi32, #tpu.memory_space<vmem>>, %arg2: memref<16x1xi32, #tpu.memory_space<vmem>>, %arg3: memref<768x1568xf32, #tpu.memory_space<vmem>>, %arg4: memref<1x1568xf32, #tpu.memory_space<vmem>>, %arg5: memref<1448x400xf32, #tpu.memory_space<vmem>>, %arg6: memref<1x400xf32, #tpu.memory_space<vmem>>, %arg7: memref<304x64xf32, #tpu.memory_space<vmem>>, %arg8: memref<3x16x64xf32, #tpu.memory_space<vmem>>, %arg9: memref<3x64x64xf32, #tpu.memory_space<vmem>>, %arg10: memref<1x64xf32, #tpu.memory_space<vmem>>, %arg11: memref<3x16x128xf32, #tpu.memory_space<vmem>>, %arg12: memref<3x128x128xf32, #tpu.memory_space<vmem>>, %arg13: memref<1x128xf32, #tpu.memory_space<vmem>>, %arg14: memref<128x16xf32, #tpu.memory_space<vmem>>, %arg15: memref<1x16xf32, #tpu.memory_space<vmem>>, %arg16: memref<16x16xf32, #tpu.memory_space<vmem>>, %arg17: memref<2x128xf32, #tpu.memory_space<vmem>>, %arg18: memref<16x128xf32, #tpu.memory_space<vmem>>) attributes {dimension_semantics = [], scalar_prefetch = 0 : i64, scratch_operands = 1 : i64, tpu.core_type = #tpu.core_type<tc>} {
    %c0 = arith.constant 0 : index
    %c0_0 = arith.constant 0 : index
    %0 = vector.load %arg0[%c0, %c0_0] : memref<2x768xf32, #tpu.memory_space<vmem>>, vector<2x768xf32>
    %c0_1 = arith.constant 0 : index
    %c0_2 = arith.constant 0 : index
    %1 = vector.load %arg3[%c0_1, %c0_2] : memref<768x1568xf32, #tpu.memory_space<vmem>>, vector<768x1568xf32>
    %cst = arith.constant dense<0.000000e+00> : vector<2x1568xf32>
    %2 = tpu.matmul %0, %1, %cst {dimension_numbers = #tpu.dot_dimension_numbers<[1], [0], [0], [1], [0, 0, 1, 1], [], []>} : vector<2x768xf32>, vector<768x1568xf32>, vector<2x1568xf32> -> vector<2x1568xf32>
    %c0_3 = arith.constant 0 : index
    %c0_4 = arith.constant 0 : index
    %3 = vector.load %arg4[%c0_3, %c0_4] : memref<1x1568xf32, #tpu.memory_space<vmem>>, vector<1x1568xf32>
    %4 = vector.broadcast %3 : vector<1x1568xf32> to vector<2x1568xf32>
    %5 = arith.addf %2, %4 : vector<2x1568xf32>
    %cst_5 = arith.constant 0.000000e+00 : f32
    %6 = vector.broadcast %cst_5 : f32 to vector<2x1568xf32>
    %7 = arith.maximumf %5, %6 : vector<2x1568xf32>
    %8 = vector.extract_strided_slice %7 {offsets = [0, 0], sizes = [2, 1560], strides = [1, 1]} : vector<2x1568xf32> to vector<2x1560xf32>
    %9 = vector.extract_strided_slice %7 {offsets = [0, 8], sizes = [2, 1560], strides = [1, 1]} : vector<2x1568xf32> to vector<2x1560xf32>
    %10 = arith.maximumf %8, %9 : vector<2x1560xf32>
    %11 = vector.extract_strided_slice %10 {offsets = [0, 0], sizes = [2, 1448], strides = [1, 1]} : vector<2x1560xf32> to vector<2x1448xf32>
    %12 = vector.extract_strided_slice %10 {offsets = [0, 112], sizes = [2, 1448], strides = [1, 1]} : vector<2x1560xf32> to vector<2x1448xf32>
    %13 = arith.maximumf %11, %12 : vector<2x1448xf32>
    %c0_6 = arith.constant 0 : index
    %c0_7 = arith.constant 0 : index
    %14 = vector.load %arg5[%c0_6, %c0_7] : memref<1448x400xf32, #tpu.memory_space<vmem>>, vector<1448x400xf32>
    %cst_8 = arith.constant dense<0.000000e+00> : vector<2x400xf32>
    %15 = tpu.matmul %13, %14, %cst_8 {dimension_numbers = #tpu.dot_dimension_numbers<[1], [0], [0], [1], [0, 0, 1, 1], [], []>} : vector<2x1448xf32>, vector<1448x400xf32>, vector<2x400xf32> -> vector<2x400xf32>
    %c0_9 = arith.constant 0 : index
    %c0_10 = arith.constant 0 : index
    %16 = vector.load %arg6[%c0_9, %c0_10] : memref<1x400xf32, #tpu.memory_space<vmem>>, vector<1x400xf32>
    %17 = vector.broadcast %16 : vector<1x400xf32> to vector<2x400xf32>
    %18 = arith.addf %15, %17 : vector<2x400xf32>
    %cst_11 = arith.constant 0.000000e+00 : f32
    %19 = vector.broadcast %cst_11 : f32 to vector<2x400xf32>
    %20 = arith.maximumf %18, %19 : vector<2x400xf32>
    %21 = vector.extract_strided_slice %20 {offsets = [0, 0], sizes = [2, 384], strides = [1, 1]} : vector<2x400xf32> to vector<2x384xf32>
    %22 = vector.extract_strided_slice %20 {offsets = [0, 16], sizes = [2, 384], strides = [1, 1]} : vector<2x400xf32> to vector<2x384xf32>
    %23 = arith.maximumf %21, %22 : vector<2x384xf32>
    %24 = vector.extract_strided_slice %23 {offsets = [0, 0], sizes = [2, 304], strides = [1, 1]} : vector<2x384xf32> to vector<2x304xf32>
    %25 = vector.extract_strided_slice %23 {offsets = [0, 80], sizes = [2, 304], strides = [1, 1]} : vector<2x384xf32> to vector<2x304xf32>
    %26 = arith.maximumf %24, %25 : vector<2x304xf32>
    %c0_12 = arith.constant 0 : index
    %c0_13 = arith.constant 0 : index
    %27 = vector.load %arg7[%c0_12, %c0_13] : memref<304x64xf32, #tpu.memory_space<vmem>>, vector<304x64xf32>
    %cst_14 = arith.constant dense<0.000000e+00> : vector<2x64xf32>
    %28 = tpu.matmul %26, %27, %cst_14 {dimension_numbers = #tpu.dot_dimension_numbers<[1], [0], [0], [1], [0, 0, 1, 1], [], []>} : vector<2x304xf32>, vector<304x64xf32>, vector<2x64xf32> -> vector<2x64xf32>
    %c0_15 = arith.constant 0 : index
    %c0_16 = arith.constant 0 : index
    %29 = vector.load %arg1[%c0_15, %c0_16] : memref<12x1xi32, #tpu.memory_space<vmem>>, vector<12x1xi32>
    %30 = tpu.iota {dimensions = array<i32: 1>} : vector<12x16xi32>
    %31 = vector.broadcast %29 : vector<12x1xi32> to vector<12x16xi32>
    %32 = arith.cmpi eq, %31, %30 : vector<12x16xi32>
    %33 = arith.extui %32 : vector<12x16xi1> to vector<12x16xi32>
    %34 = arith.sitofp %33 : vector<12x16xi32> to vector<12x16xf32>
    %c0_17 = arith.constant 0 : index
    %c0_18 = arith.constant 0 : index
    %c0_19 = arith.constant 0 : index
    %35 = vector.load %arg8[%c0_17, %c0_18, %c0_19] : memref<3x16x64xf32, #tpu.memory_space<vmem>>, vector<1x16x64xf32>
    %36 = vector.shape_cast %35 : vector<1x16x64xf32> to vector<16x64xf32>
    %cst_20 = arith.constant dense<0.000000e+00> : vector<12x64xf32>
    %37 = tpu.matmul %34, %36, %cst_20 {dimension_numbers = #tpu.dot_dimension_numbers<[1], [0], [0], [1], [0, 0, 1, 1], [], []>} : vector<12x16xf32>, vector<16x64xf32>, vector<12x64xf32> -> vector<12x64xf32>
    %c1 = arith.constant 1 : index
    %c0_21 = arith.constant 0 : index
    %c0_22 = arith.constant 0 : index
    %38 = vector.load %arg8[%c1, %c0_21, %c0_22] : memref<3x16x64xf32, #tpu.memory_space<vmem>>, vector<1x16x64xf32>
    %39 = vector.shape_cast %38 : vector<1x16x64xf32> to vector<16x64xf32>
    %cst_23 = arith.constant dense<0.000000e+00> : vector<12x64xf32>
    %40 = tpu.matmul %34, %39, %cst_23 {dimension_numbers = #tpu.dot_dimension_numbers<[1], [0], [0], [1], [0, 0, 1, 1], [], []>} : vector<12x16xf32>, vector<16x64xf32>, vector<12x64xf32> -> vector<12x64xf32>
    %c2 = arith.constant 2 : index
    %c0_24 = arith.constant 0 : index
    %c0_25 = arith.constant 0 : index
    %41 = vector.load %arg8[%c2, %c0_24, %c0_25] : memref<3x16x64xf32, #tpu.memory_space<vmem>>, vector<1x16x64xf32>
    %42 = vector.shape_cast %41 : vector<1x16x64xf32> to vector<16x64xf32>
    %cst_26 = arith.constant dense<0.000000e+00> : vector<12x64xf32>
    %43 = tpu.matmul %34, %42, %cst_26 {dimension_numbers = #tpu.dot_dimension_numbers<[1], [0], [0], [1], [0, 0, 1, 1], [], []>} : vector<12x16xf32>, vector<16x64xf32>, vector<12x64xf32> -> vector<12x64xf32>
    %c0_27 = arith.constant 0 : index
    %c0_28 = arith.constant 0 : index
    %c0_29 = arith.constant 0 : index
    %44 = vector.load %arg9[%c0_27, %c0_28, %c0_29] : memref<3x64x64xf32, #tpu.memory_space<vmem>>, vector<1x64x64xf32>
    %45 = vector.shape_cast %44 : vector<1x64x64xf32> to vector<64x64xf32>
    %cst_30 = arith.constant dense<0.000000e+00> : vector<2x64xf32>
    %46 = tpu.matmul %28, %45, %cst_30 {dimension_numbers = #tpu.dot_dimension_numbers<[1], [0], [0], [1], [0, 0, 1, 1], [], []>} : vector<2x64xf32>, vector<64x64xf32>, vector<2x64xf32> -> vector<2x64xf32>
    %c1_31 = arith.constant 1 : index
    %c0_32 = arith.constant 0 : index
    %c0_33 = arith.constant 0 : index
    %47 = vector.load %arg9[%c1_31, %c0_32, %c0_33] : memref<3x64x64xf32, #tpu.memory_space<vmem>>, vector<1x64x64xf32>
    %48 = vector.shape_cast %47 : vector<1x64x64xf32> to vector<64x64xf32>
    %cst_34 = arith.constant dense<0.000000e+00> : vector<2x64xf32>
    %49 = tpu.matmul %28, %48, %cst_34 {dimension_numbers = #tpu.dot_dimension_numbers<[1], [0], [0], [1], [0, 0, 1, 1], [], []>} : vector<2x64xf32>, vector<64x64xf32>, vector<2x64xf32> -> vector<2x64xf32>
    %c2_35 = arith.constant 2 : index
    %c0_36 = arith.constant 0 : index
    %c0_37 = arith.constant 0 : index
    %50 = vector.load %arg9[%c2_35, %c0_36, %c0_37] : memref<3x64x64xf32, #tpu.memory_space<vmem>>, vector<1x64x64xf32>
    %51 = vector.shape_cast %50 : vector<1x64x64xf32> to vector<64x64xf32>
    %cst_38 = arith.constant dense<0.000000e+00> : vector<2x64xf32>
    %52 = tpu.matmul %28, %51, %cst_38 {dimension_numbers = #tpu.dot_dimension_numbers<[1], [0], [0], [1], [0, 0, 1, 1], [], []>} : vector<2x64xf32>, vector<64x64xf32>, vector<2x64xf32> -> vector<2x64xf32>
    %c0_39 = arith.constant 0 : index
    %c0_40 = arith.constant 0 : index
    %53 = vector.load %arg10[%c0_39, %c0_40] : memref<1x64xf32, #tpu.memory_space<vmem>>, vector<1x64xf32>
    %54 = vector.broadcast %53 : vector<1x64xf32> to vector<2x64xf32>
    %55 = arith.addf %52, %54 : vector<2x64xf32>
    %56 = vector.extract_strided_slice %37 {offsets = [0, 0], sizes = [2, 64], strides = [1, 1]} : vector<12x64xf32> to vector<2x64xf32>
    %57 = arith.addf %56, %46 : vector<2x64xf32>
    %58 = arith.negf %57 : vector<2x64xf32>
    %59 = math.exp %58 : vector<2x64xf32>
    %cst_41 = arith.constant 1.000000e+00 : f32
    %60 = vector.broadcast %cst_41 : f32 to vector<2x64xf32>
    %61 = arith.addf %60, %59 : vector<2x64xf32>
    %62 = arith.divf %60, %61 : vector<2x64xf32>
    %63 = vector.extract_strided_slice %40 {offsets = [0, 0], sizes = [2, 64], strides = [1, 1]} : vector<12x64xf32> to vector<2x64xf32>
    %64 = arith.addf %63, %49 : vector<2x64xf32>
    %65 = arith.negf %64 : vector<2x64xf32>
    %66 = math.exp %65 : vector<2x64xf32>
    %cst_42 = arith.constant 1.000000e+00 : f32
    %67 = vector.broadcast %cst_42 : f32 to vector<2x64xf32>
    %68 = arith.addf %67, %66 : vector<2x64xf32>
    %69 = arith.divf %67, %68 : vector<2x64xf32>
    %70 = vector.extract_strided_slice %43 {offsets = [0, 0], sizes = [2, 64], strides = [1, 1]} : vector<12x64xf32> to vector<2x64xf32>
    %71 = arith.mulf %62, %55 : vector<2x64xf32>
    %72 = arith.addf %70, %71 : vector<2x64xf32>
    %73 = math.tanh %72 : vector<2x64xf32>
    %cst_43 = arith.constant 1.000000e+00 : f32
    %74 = vector.broadcast %cst_43 : f32 to vector<2x64xf32>
    %75 = arith.subf %74, %69 : vector<2x64xf32>
    %76 = arith.mulf %75, %73 : vector<2x64xf32>
    %77 = arith.mulf %69, %28 : vector<2x64xf32>
    %78 = arith.addf %76, %77 : vector<2x64xf32>
    %c0_44 = arith.constant 0 : index
    %c0_45 = arith.constant 0 : index
    %c0_46 = arith.constant 0 : index
    %79 = vector.load %arg9[%c0_44, %c0_45, %c0_46] : memref<3x64x64xf32, #tpu.memory_space<vmem>>, vector<1x64x64xf32>
    %80 = vector.shape_cast %79 : vector<1x64x64xf32> to vector<64x64xf32>
    %cst_47 = arith.constant dense<0.000000e+00> : vector<2x64xf32>
    %81 = tpu.matmul %78, %80, %cst_47 {dimension_numbers = #tpu.dot_dimension_numbers<[1], [0], [0], [1], [0, 0, 1, 1], [], []>} : vector<2x64xf32>, vector<64x64xf32>, vector<2x64xf32> -> vector<2x64xf32>
    %c1_48 = arith.constant 1 : index
    %c0_49 = arith.constant 0 : index
    %c0_50 = arith.constant 0 : index
    %82 = vector.load %arg9[%c1_48, %c0_49, %c0_50] : memref<3x64x64xf32, #tpu.memory_space<vmem>>, vector<1x64x64xf32>
    %83 = vector.shape_cast %82 : vector<1x64x64xf32> to vector<64x64xf32>
    %cst_51 = arith.constant dense<0.000000e+00> : vector<2x64xf32>
    %84 = tpu.matmul %78, %83, %cst_51 {dimension_numbers = #tpu.dot_dimension_numbers<[1], [0], [0], [1], [0, 0, 1, 1], [], []>} : vector<2x64xf32>, vector<64x64xf32>, vector<2x64xf32> -> vector<2x64xf32>
    %c2_52 = arith.constant 2 : index
    %c0_53 = arith.constant 0 : index
    %c0_54 = arith.constant 0 : index
    %85 = vector.load %arg9[%c2_52, %c0_53, %c0_54] : memref<3x64x64xf32, #tpu.memory_space<vmem>>, vector<1x64x64xf32>
    %86 = vector.shape_cast %85 : vector<1x64x64xf32> to vector<64x64xf32>
    %cst_55 = arith.constant dense<0.000000e+00> : vector<2x64xf32>
    %87 = tpu.matmul %78, %86, %cst_55 {dimension_numbers = #tpu.dot_dimension_numbers<[1], [0], [0], [1], [0, 0, 1, 1], [], []>} : vector<2x64xf32>, vector<64x64xf32>, vector<2x64xf32> -> vector<2x64xf32>
    %c0_56 = arith.constant 0 : index
    %c0_57 = arith.constant 0 : index
    %88 = vector.load %arg10[%c0_56, %c0_57] : memref<1x64xf32, #tpu.memory_space<vmem>>, vector<1x64xf32>
    %89 = vector.broadcast %88 : vector<1x64xf32> to vector<2x64xf32>
    %90 = arith.addf %87, %89 : vector<2x64xf32>
    %91 = vector.extract_strided_slice %37 {offsets = [2, 0], sizes = [2, 64], strides = [1, 1]} : vector<12x64xf32> to vector<2x64xf32>
    %92 = arith.addf %91, %81 : vector<2x64xf32>
    %93 = arith.negf %92 : vector<2x64xf32>
    %94 = math.exp %93 : vector<2x64xf32>
    %cst_58 = arith.constant 1.000000e+00 : f32
    %95 = vector.broadcast %cst_58 : f32 to vector<2x64xf32>
    %96 = arith.addf %95, %94 : vector<2x64xf32>
    %97 = arith.divf %95, %96 : vector<2x64xf32>
    %98 = vector.extract_strided_slice %40 {offsets = [2, 0], sizes = [2, 64], strides = [1, 1]} : vector<12x64xf32> to vector<2x64xf32>
    %99 = arith.addf %98, %84 : vector<2x64xf32>
    %100 = arith.negf %99 : vector<2x64xf32>
    %101 = math.exp %100 : vector<2x64xf32>
    %cst_59 = arith.constant 1.000000e+00 : f32
    %102 = vector.broadcast %cst_59 : f32 to vector<2x64xf32>
    %103 = arith.addf %102, %101 : vector<2x64xf32>
    %104 = arith.divf %102, %103 : vector<2x64xf32>
    %105 = vector.extract_strided_slice %43 {offsets = [2, 0], sizes = [2, 64], strides = [1, 1]} : vector<12x64xf32> to vector<2x64xf32>
    %106 = arith.mulf %97, %90 : vector<2x64xf32>
    %107 = arith.addf %105, %106 : vector<2x64xf32>
    %108 = math.tanh %107 : vector<2x64xf32>
    %cst_60 = arith.constant 1.000000e+00 : f32
    %109 = vector.broadcast %cst_60 : f32 to vector<2x64xf32>
    %110 = arith.subf %109, %104 : vector<2x64xf32>
    %111 = arith.mulf %110, %108 : vector<2x64xf32>
    %112 = arith.mulf %104, %78 : vector<2x64xf32>
    %113 = arith.addf %111, %112 : vector<2x64xf32>
    %c0_61 = arith.constant 0 : index
    %c0_62 = arith.constant 0 : index
    %c0_63 = arith.constant 0 : index
    %114 = vector.load %arg9[%c0_61, %c0_62, %c0_63] : memref<3x64x64xf32, #tpu.memory_space<vmem>>, vector<1x64x64xf32>
    %115 = vector.shape_cast %114 : vector<1x64x64xf32> to vector<64x64xf32>
    %cst_64 = arith.constant dense<0.000000e+00> : vector<2x64xf32>
    %116 = tpu.matmul %113, %115, %cst_64 {dimension_numbers = #tpu.dot_dimension_numbers<[1], [0], [0], [1], [0, 0, 1, 1], [], []>} : vector<2x64xf32>, vector<64x64xf32>, vector<2x64xf32> -> vector<2x64xf32>
    %c1_65 = arith.constant 1 : index
    %c0_66 = arith.constant 0 : index
    %c0_67 = arith.constant 0 : index
    %117 = vector.load %arg9[%c1_65, %c0_66, %c0_67] : memref<3x64x64xf32, #tpu.memory_space<vmem>>, vector<1x64x64xf32>
    %118 = vector.shape_cast %117 : vector<1x64x64xf32> to vector<64x64xf32>
    %cst_68 = arith.constant dense<0.000000e+00> : vector<2x64xf32>
    %119 = tpu.matmul %113, %118, %cst_68 {dimension_numbers = #tpu.dot_dimension_numbers<[1], [0], [0], [1], [0, 0, 1, 1], [], []>} : vector<2x64xf32>, vector<64x64xf32>, vector<2x64xf32> -> vector<2x64xf32>
    %c2_69 = arith.constant 2 : index
    %c0_70 = arith.constant 0 : index
    %c0_71 = arith.constant 0 : index
    %120 = vector.load %arg9[%c2_69, %c0_70, %c0_71] : memref<3x64x64xf32, #tpu.memory_space<vmem>>, vector<1x64x64xf32>
    %121 = vector.shape_cast %120 : vector<1x64x64xf32> to vector<64x64xf32>
    %cst_72 = arith.constant dense<0.000000e+00> : vector<2x64xf32>
    %122 = tpu.matmul %113, %121, %cst_72 {dimension_numbers = #tpu.dot_dimension_numbers<[1], [0], [0], [1], [0, 0, 1, 1], [], []>} : vector<2x64xf32>, vector<64x64xf32>, vector<2x64xf32> -> vector<2x64xf32>
    %c0_73 = arith.constant 0 : index
    %c0_74 = arith.constant 0 : index
    %123 = vector.load %arg10[%c0_73, %c0_74] : memref<1x64xf32, #tpu.memory_space<vmem>>, vector<1x64xf32>
    %124 = vector.broadcast %123 : vector<1x64xf32> to vector<2x64xf32>
    %125 = arith.addf %122, %124 : vector<2x64xf32>
    %126 = vector.extract_strided_slice %37 {offsets = [4, 0], sizes = [2, 64], strides = [1, 1]} : vector<12x64xf32> to vector<2x64xf32>
    %127 = arith.addf %126, %116 : vector<2x64xf32>
    %128 = arith.negf %127 : vector<2x64xf32>
    %129 = math.exp %128 : vector<2x64xf32>
    %cst_75 = arith.constant 1.000000e+00 : f32
    %130 = vector.broadcast %cst_75 : f32 to vector<2x64xf32>
    %131 = arith.addf %130, %129 : vector<2x64xf32>
    %132 = arith.divf %130, %131 : vector<2x64xf32>
    %133 = vector.extract_strided_slice %40 {offsets = [4, 0], sizes = [2, 64], strides = [1, 1]} : vector<12x64xf32> to vector<2x64xf32>
    %134 = arith.addf %133, %119 : vector<2x64xf32>
    %135 = arith.negf %134 : vector<2x64xf32>
    %136 = math.exp %135 : vector<2x64xf32>
    %cst_76 = arith.constant 1.000000e+00 : f32
    %137 = vector.broadcast %cst_76 : f32 to vector<2x64xf32>
    %138 = arith.addf %137, %136 : vector<2x64xf32>
    %139 = arith.divf %137, %138 : vector<2x64xf32>
    %140 = vector.extract_strided_slice %43 {offsets = [4, 0], sizes = [2, 64], strides = [1, 1]} : vector<12x64xf32> to vector<2x64xf32>
    %141 = arith.mulf %132, %125 : vector<2x64xf32>
    %142 = arith.addf %140, %141 : vector<2x64xf32>
    %143 = math.tanh %142 : vector<2x64xf32>
    %cst_77 = arith.constant 1.000000e+00 : f32
    %144 = vector.broadcast %cst_77 : f32 to vector<2x64xf32>
    %145 = arith.subf %144, %139 : vector<2x64xf32>
    %146 = arith.mulf %145, %143 : vector<2x64xf32>
    %147 = arith.mulf %139, %113 : vector<2x64xf32>
    %148 = arith.addf %146, %147 : vector<2x64xf32>
    %c0_78 = arith.constant 0 : index
    %c0_79 = arith.constant 0 : index
    %c0_80 = arith.constant 0 : index
    %149 = vector.load %arg9[%c0_78, %c0_79, %c0_80] : memref<3x64x64xf32, #tpu.memory_space<vmem>>, vector<1x64x64xf32>
    %150 = vector.shape_cast %149 : vector<1x64x64xf32> to vector<64x64xf32>
    %cst_81 = arith.constant dense<0.000000e+00> : vector<2x64xf32>
    %151 = tpu.matmul %148, %150, %cst_81 {dimension_numbers = #tpu.dot_dimension_numbers<[1], [0], [0], [1], [0, 0, 1, 1], [], []>} : vector<2x64xf32>, vector<64x64xf32>, vector<2x64xf32> -> vector<2x64xf32>
    %c1_82 = arith.constant 1 : index
    %c0_83 = arith.constant 0 : index
    %c0_84 = arith.constant 0 : index
    %152 = vector.load %arg9[%c1_82, %c0_83, %c0_84] : memref<3x64x64xf32, #tpu.memory_space<vmem>>, vector<1x64x64xf32>
    %153 = vector.shape_cast %152 : vector<1x64x64xf32> to vector<64x64xf32>
    %cst_85 = arith.constant dense<0.000000e+00> : vector<2x64xf32>
    %154 = tpu.matmul %148, %153, %cst_85 {dimension_numbers = #tpu.dot_dimension_numbers<[1], [0], [0], [1], [0, 0, 1, 1], [], []>} : vector<2x64xf32>, vector<64x64xf32>, vector<2x64xf32> -> vector<2x64xf32>
    %c2_86 = arith.constant 2 : index
    %c0_87 = arith.constant 0 : index
    %c0_88 = arith.constant 0 : index
    %155 = vector.load %arg9[%c2_86, %c0_87, %c0_88] : memref<3x64x64xf32, #tpu.memory_space<vmem>>, vector<1x64x64xf32>
    %156 = vector.shape_cast %155 : vector<1x64x64xf32> to vector<64x64xf32>
    %cst_89 = arith.constant dense<0.000000e+00> : vector<2x64xf32>
    %157 = tpu.matmul %148, %156, %cst_89 {dimension_numbers = #tpu.dot_dimension_numbers<[1], [0], [0], [1], [0, 0, 1, 1], [], []>} : vector<2x64xf32>, vector<64x64xf32>, vector<2x64xf32> -> vector<2x64xf32>
    %c0_90 = arith.constant 0 : index
    %c0_91 = arith.constant 0 : index
    %158 = vector.load %arg10[%c0_90, %c0_91] : memref<1x64xf32, #tpu.memory_space<vmem>>, vector<1x64xf32>
    %159 = vector.broadcast %158 : vector<1x64xf32> to vector<2x64xf32>
    %160 = arith.addf %157, %159 : vector<2x64xf32>
    %161 = vector.extract_strided_slice %37 {offsets = [6, 0], sizes = [2, 64], strides = [1, 1]} : vector<12x64xf32> to vector<2x64xf32>
    %162 = arith.addf %161, %151 : vector<2x64xf32>
    %163 = arith.negf %162 : vector<2x64xf32>
    %164 = math.exp %163 : vector<2x64xf32>
    %cst_92 = arith.constant 1.000000e+00 : f32
    %165 = vector.broadcast %cst_92 : f32 to vector<2x64xf32>
    %166 = arith.addf %165, %164 : vector<2x64xf32>
    %167 = arith.divf %165, %166 : vector<2x64xf32>
    %168 = vector.extract_strided_slice %40 {offsets = [6, 0], sizes = [2, 64], strides = [1, 1]} : vector<12x64xf32> to vector<2x64xf32>
    %169 = arith.addf %168, %154 : vector<2x64xf32>
    %170 = arith.negf %169 : vector<2x64xf32>
    %171 = math.exp %170 : vector<2x64xf32>
    %cst_93 = arith.constant 1.000000e+00 : f32
    %172 = vector.broadcast %cst_93 : f32 to vector<2x64xf32>
    %173 = arith.addf %172, %171 : vector<2x64xf32>
    %174 = arith.divf %172, %173 : vector<2x64xf32>
    %175 = vector.extract_strided_slice %43 {offsets = [6, 0], sizes = [2, 64], strides = [1, 1]} : vector<12x64xf32> to vector<2x64xf32>
    %176 = arith.mulf %167, %160 : vector<2x64xf32>
    %177 = arith.addf %175, %176 : vector<2x64xf32>
    %178 = math.tanh %177 : vector<2x64xf32>
    %cst_94 = arith.constant 1.000000e+00 : f32
    %179 = vector.broadcast %cst_94 : f32 to vector<2x64xf32>
    %180 = arith.subf %179, %174 : vector<2x64xf32>
    %181 = arith.mulf %180, %178 : vector<2x64xf32>
    %182 = arith.mulf %174, %148 : vector<2x64xf32>
    %183 = arith.addf %181, %182 : vector<2x64xf32>
    %c0_95 = arith.constant 0 : index
    %c0_96 = arith.constant 0 : index
    %c0_97 = arith.constant 0 : index
    %184 = vector.load %arg9[%c0_95, %c0_96, %c0_97] : memref<3x64x64xf32, #tpu.memory_space<vmem>>, vector<1x64x64xf32>
    %185 = vector.shape_cast %184 : vector<1x64x64xf32> to vector<64x64xf32>
    %cst_98 = arith.constant dense<0.000000e+00> : vector<2x64xf32>
    %186 = tpu.matmul %183, %185, %cst_98 {dimension_numbers = #tpu.dot_dimension_numbers<[1], [0], [0], [1], [0, 0, 1, 1], [], []>} : vector<2x64xf32>, vector<64x64xf32>, vector<2x64xf32> -> vector<2x64xf32>
    %c1_99 = arith.constant 1 : index
    %c0_100 = arith.constant 0 : index
    %c0_101 = arith.constant 0 : index
    %187 = vector.load %arg9[%c1_99, %c0_100, %c0_101] : memref<3x64x64xf32, #tpu.memory_space<vmem>>, vector<1x64x64xf32>
    %188 = vector.shape_cast %187 : vector<1x64x64xf32> to vector<64x64xf32>
    %cst_102 = arith.constant dense<0.000000e+00> : vector<2x64xf32>
    %189 = tpu.matmul %183, %188, %cst_102 {dimension_numbers = #tpu.dot_dimension_numbers<[1], [0], [0], [1], [0, 0, 1, 1], [], []>} : vector<2x64xf32>, vector<64x64xf32>, vector<2x64xf32> -> vector<2x64xf32>
    %c2_103 = arith.constant 2 : index
    %c0_104 = arith.constant 0 : index
    %c0_105 = arith.constant 0 : index
    %190 = vector.load %arg9[%c2_103, %c0_104, %c0_105] : memref<3x64x64xf32, #tpu.memory_space<vmem>>, vector<1x64x64xf32>
    %191 = vector.shape_cast %190 : vector<1x64x64xf32> to vector<64x64xf32>
    %cst_106 = arith.constant dense<0.000000e+00> : vector<2x64xf32>
    %192 = tpu.matmul %183, %191, %cst_106 {dimension_numbers = #tpu.dot_dimension_numbers<[1], [0], [0], [1], [0, 0, 1, 1], [], []>} : vector<2x64xf32>, vector<64x64xf32>, vector<2x64xf32> -> vector<2x64xf32>
    %c0_107 = arith.constant 0 : index
    %c0_108 = arith.constant 0 : index
    %193 = vector.load %arg10[%c0_107, %c0_108] : memref<1x64xf32, #tpu.memory_space<vmem>>, vector<1x64xf32>
    %194 = vector.broadcast %193 : vector<1x64xf32> to vector<2x64xf32>
    %195 = arith.addf %192, %194 : vector<2x64xf32>
    %196 = vector.extract_strided_slice %37 {offsets = [8, 0], sizes = [2, 64], strides = [1, 1]} : vector<12x64xf32> to vector<2x64xf32>
    %197 = arith.addf %196, %186 : vector<2x64xf32>
    %198 = arith.negf %197 : vector<2x64xf32>
    %199 = math.exp %198 : vector<2x64xf32>
    %cst_109 = arith.constant 1.000000e+00 : f32
    %200 = vector.broadcast %cst_109 : f32 to vector<2x64xf32>
    %201 = arith.addf %200, %199 : vector<2x64xf32>
    %202 = arith.divf %200, %201 : vector<2x64xf32>
    %203 = vector.extract_strided_slice %40 {offsets = [8, 0], sizes = [2, 64], strides = [1, 1]} : vector<12x64xf32> to vector<2x64xf32>
    %204 = arith.addf %203, %189 : vector<2x64xf32>
    %205 = arith.negf %204 : vector<2x64xf32>
    %206 = math.exp %205 : vector<2x64xf32>
    %cst_110 = arith.constant 1.000000e+00 : f32
    %207 = vector.broadcast %cst_110 : f32 to vector<2x64xf32>
    %208 = arith.addf %207, %206 : vector<2x64xf32>
    %209 = arith.divf %207, %208 : vector<2x64xf32>
    %210 = vector.extract_strided_slice %43 {offsets = [8, 0], sizes = [2, 64], strides = [1, 1]} : vector<12x64xf32> to vector<2x64xf32>
    %211 = arith.mulf %202, %195 : vector<2x64xf32>
    %212 = arith.addf %210, %211 : vector<2x64xf32>
    %213 = math.tanh %212 : vector<2x64xf32>
    %cst_111 = arith.constant 1.000000e+00 : f32
    %214 = vector.broadcast %cst_111 : f32 to vector<2x64xf32>
    %215 = arith.subf %214, %209 : vector<2x64xf32>
    %216 = arith.mulf %215, %213 : vector<2x64xf32>
    %217 = arith.mulf %209, %183 : vector<2x64xf32>
    %218 = arith.addf %216, %217 : vector<2x64xf32>
    %c0_112 = arith.constant 0 : index
    %c0_113 = arith.constant 0 : index
    %c0_114 = arith.constant 0 : index
    %219 = vector.load %arg9[%c0_112, %c0_113, %c0_114] : memref<3x64x64xf32, #tpu.memory_space<vmem>>, vector<1x64x64xf32>
    %220 = vector.shape_cast %219 : vector<1x64x64xf32> to vector<64x64xf32>
    %cst_115 = arith.constant dense<0.000000e+00> : vector<2x64xf32>
    %221 = tpu.matmul %218, %220, %cst_115 {dimension_numbers = #tpu.dot_dimension_numbers<[1], [0], [0], [1], [0, 0, 1, 1], [], []>} : vector<2x64xf32>, vector<64x64xf32>, vector<2x64xf32> -> vector<2x64xf32>
    %c1_116 = arith.constant 1 : index
    %c0_117 = arith.constant 0 : index
    %c0_118 = arith.constant 0 : index
    %222 = vector.load %arg9[%c1_116, %c0_117, %c0_118] : memref<3x64x64xf32, #tpu.memory_space<vmem>>, vector<1x64x64xf32>
    %223 = vector.shape_cast %222 : vector<1x64x64xf32> to vector<64x64xf32>
    %cst_119 = arith.constant dense<0.000000e+00> : vector<2x64xf32>
    %224 = tpu.matmul %218, %223, %cst_119 {dimension_numbers = #tpu.dot_dimension_numbers<[1], [0], [0], [1], [0, 0, 1, 1], [], []>} : vector<2x64xf32>, vector<64x64xf32>, vector<2x64xf32> -> vector<2x64xf32>
    %c2_120 = arith.constant 2 : index
    %c0_121 = arith.constant 0 : index
    %c0_122 = arith.constant 0 : index
    %225 = vector.load %arg9[%c2_120, %c0_121, %c0_122] : memref<3x64x64xf32, #tpu.memory_space<vmem>>, vector<1x64x64xf32>
    %226 = vector.shape_cast %225 : vector<1x64x64xf32> to vector<64x64xf32>
    %cst_123 = arith.constant dense<0.000000e+00> : vector<2x64xf32>
    %227 = tpu.matmul %218, %226, %cst_123 {dimension_numbers = #tpu.dot_dimension_numbers<[1], [0], [0], [1], [0, 0, 1, 1], [], []>} : vector<2x64xf32>, vector<64x64xf32>, vector<2x64xf32> -> vector<2x64xf32>
    %c0_124 = arith.constant 0 : index
    %c0_125 = arith.constant 0 : index
    %228 = vector.load %arg10[%c0_124, %c0_125] : memref<1x64xf32, #tpu.memory_space<vmem>>, vector<1x64xf32>
    %229 = vector.broadcast %228 : vector<1x64xf32> to vector<2x64xf32>
    %230 = arith.addf %227, %229 : vector<2x64xf32>
    %231 = vector.extract_strided_slice %37 {offsets = [10, 0], sizes = [2, 64], strides = [1, 1]} : vector<12x64xf32> to vector<2x64xf32>
    %232 = arith.addf %231, %221 : vector<2x64xf32>
    %233 = arith.negf %232 : vector<2x64xf32>
    %234 = math.exp %233 : vector<2x64xf32>
    %cst_126 = arith.constant 1.000000e+00 : f32
    %235 = vector.broadcast %cst_126 : f32 to vector<2x64xf32>
    %236 = arith.addf %235, %234 : vector<2x64xf32>
    %237 = arith.divf %235, %236 : vector<2x64xf32>
    %238 = vector.extract_strided_slice %40 {offsets = [10, 0], sizes = [2, 64], strides = [1, 1]} : vector<12x64xf32> to vector<2x64xf32>
    %239 = arith.addf %238, %224 : vector<2x64xf32>
    %240 = arith.negf %239 : vector<2x64xf32>
    %241 = math.exp %240 : vector<2x64xf32>
    %cst_127 = arith.constant 1.000000e+00 : f32
    %242 = vector.broadcast %cst_127 : f32 to vector<2x64xf32>
    %243 = arith.addf %242, %241 : vector<2x64xf32>
    %244 = arith.divf %242, %243 : vector<2x64xf32>
    %245 = vector.extract_strided_slice %43 {offsets = [10, 0], sizes = [2, 64], strides = [1, 1]} : vector<12x64xf32> to vector<2x64xf32>
    %246 = arith.mulf %237, %230 : vector<2x64xf32>
    %247 = arith.addf %245, %246 : vector<2x64xf32>
    %248 = math.tanh %247 : vector<2x64xf32>
    %cst_128 = arith.constant 1.000000e+00 : f32
    %249 = vector.broadcast %cst_128 : f32 to vector<2x64xf32>
    %250 = arith.subf %249, %244 : vector<2x64xf32>
    %251 = arith.mulf %250, %248 : vector<2x64xf32>
    %252 = arith.mulf %244, %218 : vector<2x64xf32>
    %253 = arith.addf %251, %252 : vector<2x64xf32>
    %c0_129 = arith.constant 0 : index
    %c0_130 = arith.constant 0 : index
    %254 = vector.load %arg2[%c0_129, %c0_130] : memref<16x1xi32, #tpu.memory_space<vmem>>, vector<16x1xi32>
    %255 = tpu.iota {dimensions = array<i32: 1>} : vector<16x16xi32>
    %256 = vector.broadcast %254 : vector<16x1xi32> to vector<16x16xi32>
    %257 = arith.cmpi eq, %256, %255 : vector<16x16xi32>
    %258 = arith.extui %257 : vector<16x16xi1> to vector<16x16xi32>
    %259 = arith.sitofp %258 : vector<16x16xi32> to vector<16x16xf32>
    %c0_131 = arith.constant 0 : index
    %c0_132 = arith.constant 0 : index
    %c0_133 = arith.constant 0 : index
    %260 = vector.load %arg11[%c0_131, %c0_132, %c0_133] : memref<3x16x128xf32, #tpu.memory_space<vmem>>, vector<1x16x128xf32>
    %261 = vector.shape_cast %260 : vector<1x16x128xf32> to vector<16x128xf32>
    %cst_134 = arith.constant dense<0.000000e+00> : vector<16x128xf32>
    %262 = tpu.matmul %259, %261, %cst_134 {dimension_numbers = #tpu.dot_dimension_numbers<[1], [0], [0], [1], [0, 0, 1, 1], [], []>} : vector<16x16xf32>, vector<16x128xf32>, vector<16x128xf32> -> vector<16x128xf32>
    %c1_135 = arith.constant 1 : index
    %c0_136 = arith.constant 0 : index
    %c0_137 = arith.constant 0 : index
    %263 = vector.load %arg11[%c1_135, %c0_136, %c0_137] : memref<3x16x128xf32, #tpu.memory_space<vmem>>, vector<1x16x128xf32>
    %264 = vector.shape_cast %263 : vector<1x16x128xf32> to vector<16x128xf32>
    %cst_138 = arith.constant dense<0.000000e+00> : vector<16x128xf32>
    %265 = tpu.matmul %259, %264, %cst_138 {dimension_numbers = #tpu.dot_dimension_numbers<[1], [0], [0], [1], [0, 0, 1, 1], [], []>} : vector<16x16xf32>, vector<16x128xf32>, vector<16x128xf32> -> vector<16x128xf32>
    %c2_139 = arith.constant 2 : index
    %c0_140 = arith.constant 0 : index
    %c0_141 = arith.constant 0 : index
    %266 = vector.load %arg11[%c2_139, %c0_140, %c0_141] : memref<3x16x128xf32, #tpu.memory_space<vmem>>, vector<1x16x128xf32>
    %267 = vector.shape_cast %266 : vector<1x16x128xf32> to vector<16x128xf32>
    %cst_142 = arith.constant dense<0.000000e+00> : vector<16x128xf32>
    %268 = tpu.matmul %259, %267, %cst_142 {dimension_numbers = #tpu.dot_dimension_numbers<[1], [0], [0], [1], [0, 0, 1, 1], [], []>} : vector<16x16xf32>, vector<16x128xf32>, vector<16x128xf32> -> vector<16x128xf32>
    %269 = tpu.concatenate %28, %253 in 1 : vector<2x64xf32>, vector<2x64xf32> -> vector<2x128xf32>
    %c0_143 = arith.constant 0 : index
    %c0_144 = arith.constant 0 : index
    %c0_145 = arith.constant 0 : index
    %270 = vector.load %arg12[%c0_143, %c0_144, %c0_145] : memref<3x128x128xf32, #tpu.memory_space<vmem>>, vector<1x128x128xf32>
    %271 = vector.shape_cast %270 : vector<1x128x128xf32> to vector<128x128xf32>
    %cst_146 = arith.constant dense<0.000000e+00> : vector<2x128xf32>
    %272 = tpu.matmul %269, %271, %cst_146 {dimension_numbers = #tpu.dot_dimension_numbers<[1], [0], [0], [1], [0, 0, 1, 1], [], []>} : vector<2x128xf32>, vector<128x128xf32>, vector<2x128xf32> -> vector<2x128xf32>
    %c1_147 = arith.constant 1 : index
    %c0_148 = arith.constant 0 : index
    %c0_149 = arith.constant 0 : index
    %273 = vector.load %arg12[%c1_147, %c0_148, %c0_149] : memref<3x128x128xf32, #tpu.memory_space<vmem>>, vector<1x128x128xf32>
    %274 = vector.shape_cast %273 : vector<1x128x128xf32> to vector<128x128xf32>
    %cst_150 = arith.constant dense<0.000000e+00> : vector<2x128xf32>
    %275 = tpu.matmul %269, %274, %cst_150 {dimension_numbers = #tpu.dot_dimension_numbers<[1], [0], [0], [1], [0, 0, 1, 1], [], []>} : vector<2x128xf32>, vector<128x128xf32>, vector<2x128xf32> -> vector<2x128xf32>
    %c2_151 = arith.constant 2 : index
    %c0_152 = arith.constant 0 : index
    %c0_153 = arith.constant 0 : index
    %276 = vector.load %arg12[%c2_151, %c0_152, %c0_153] : memref<3x128x128xf32, #tpu.memory_space<vmem>>, vector<1x128x128xf32>
    %277 = vector.shape_cast %276 : vector<1x128x128xf32> to vector<128x128xf32>
    %cst_154 = arith.constant dense<0.000000e+00> : vector<2x128xf32>
    %278 = tpu.matmul %269, %277, %cst_154 {dimension_numbers = #tpu.dot_dimension_numbers<[1], [0], [0], [1], [0, 0, 1, 1], [], []>} : vector<2x128xf32>, vector<128x128xf32>, vector<2x128xf32> -> vector<2x128xf32>
    %c0_155 = arith.constant 0 : index
    %c0_156 = arith.constant 0 : index
    %279 = vector.load %arg13[%c0_155, %c0_156] : memref<1x128xf32, #tpu.memory_space<vmem>>, vector<1x128xf32>
    %280 = vector.broadcast %279 : vector<1x128xf32> to vector<2x128xf32>
    %281 = arith.addf %278, %280 : vector<2x128xf32>
    %282 = vector.extract_strided_slice %262 {offsets = [0, 0], sizes = [2, 128], strides = [1, 1]} : vector<16x128xf32> to vector<2x128xf32>
    %283 = arith.addf %282, %272 : vector<2x128xf32>
    %284 = arith.negf %283 : vector<2x128xf32>
    %285 = math.exp %284 : vector<2x128xf32>
    %cst_157 = arith.constant 1.000000e+00 : f32
    %286 = vector.broadcast %cst_157 : f32 to vector<2x128xf32>
    %287 = arith.addf %286, %285 : vector<2x128xf32>
    %288 = arith.divf %286, %287 : vector<2x128xf32>
    %289 = vector.extract_strided_slice %265 {offsets = [0, 0], sizes = [2, 128], strides = [1, 1]} : vector<16x128xf32> to vector<2x128xf32>
    %290 = arith.addf %289, %275 : vector<2x128xf32>
    %291 = arith.negf %290 : vector<2x128xf32>
    %292 = math.exp %291 : vector<2x128xf32>
    %cst_158 = arith.constant 1.000000e+00 : f32
    %293 = vector.broadcast %cst_158 : f32 to vector<2x128xf32>
    %294 = arith.addf %293, %292 : vector<2x128xf32>
    %295 = arith.divf %293, %294 : vector<2x128xf32>
    %296 = vector.extract_strided_slice %268 {offsets = [0, 0], sizes = [2, 128], strides = [1, 1]} : vector<16x128xf32> to vector<2x128xf32>
    %297 = arith.mulf %288, %281 : vector<2x128xf32>
    %298 = arith.addf %296, %297 : vector<2x128xf32>
    %299 = math.tanh %298 : vector<2x128xf32>
    %cst_159 = arith.constant 1.000000e+00 : f32
    %300 = vector.broadcast %cst_159 : f32 to vector<2x128xf32>
    %301 = arith.subf %300, %295 : vector<2x128xf32>
    %302 = arith.mulf %301, %299 : vector<2x128xf32>
    %303 = arith.mulf %295, %269 : vector<2x128xf32>
    %304 = arith.addf %302, %303 : vector<2x128xf32>
    %c0_160 = arith.constant 0 : index
    %c0_161 = arith.constant 0 : index
    %305 = vector.load %arg18[%c0_160, %c0_161] : memref<16x128xf32, #tpu.memory_space<vmem>>, vector<2x128xf32>
    tpu.vector_store %arg18[%c0_160, %c0_161], %304 {strides = array<i32>} : memref<16x128xf32, #tpu.memory_space<vmem>>, vector<2x128xf32>,
    %c0_162 = arith.constant 0 : index
    %c0_163 = arith.constant 0 : index
    %c0_164 = arith.constant 0 : index
    %306 = vector.load %arg12[%c0_162, %c0_163, %c0_164] : memref<3x128x128xf32, #tpu.memory_space<vmem>>, vector<1x128x128xf32>
    %307 = vector.shape_cast %306 : vector<1x128x128xf32> to vector<128x128xf32>
    %cst_165 = arith.constant dense<0.000000e+00> : vector<2x128xf32>
    %308 = tpu.matmul %304, %307, %cst_165 {dimension_numbers = #tpu.dot_dimension_numbers<[1], [0], [0], [1], [0, 0, 1, 1], [], []>} : vector<2x128xf32>, vector<128x128xf32>, vector<2x128xf32> -> vector<2x128xf32>
    %c1_166 = arith.constant 1 : index
    %c0_167 = arith.constant 0 : index
    %c0_168 = arith.constant 0 : index
    %309 = vector.load %arg12[%c1_166, %c0_167, %c0_168] : memref<3x128x128xf32, #tpu.memory_space<vmem>>, vector<1x128x128xf32>
    %310 = vector.shape_cast %309 : vector<1x128x128xf32> to vector<128x128xf32>
    %cst_169 = arith.constant dense<0.000000e+00> : vector<2x128xf32>
    %311 = tpu.matmul %304, %310, %cst_169 {dimension_numbers = #tpu.dot_dimension_numbers<[1], [0], [0], [1], [0, 0, 1, 1], [], []>} : vector<2x128xf32>, vector<128x128xf32>, vector<2x128xf32> -> vector<2x128xf32>
    %c2_170 = arith.constant 2 : index
    %c0_171 = arith.constant 0 : index
    %c0_172 = arith.constant 0 : index
    %312 = vector.load %arg12[%c2_170, %c0_171, %c0_172] : memref<3x128x128xf32, #tpu.memory_space<vmem>>, vector<1x128x128xf32>
    %313 = vector.shape_cast %312 : vector<1x128x128xf32> to vector<128x128xf32>
    %cst_173 = arith.constant dense<0.000000e+00> : vector<2x128xf32>
    %314 = tpu.matmul %304, %313, %cst_173 {dimension_numbers = #tpu.dot_dimension_numbers<[1], [0], [0], [1], [0, 0, 1, 1], [], []>} : vector<2x128xf32>, vector<128x128xf32>, vector<2x128xf32> -> vector<2x128xf32>
    %c0_174 = arith.constant 0 : index
    %c0_175 = arith.constant 0 : index
    %315 = vector.load %arg13[%c0_174, %c0_175] : memref<1x128xf32, #tpu.memory_space<vmem>>, vector<1x128xf32>
    %316 = vector.broadcast %315 : vector<1x128xf32> to vector<2x128xf32>
    %317 = arith.addf %314, %316 : vector<2x128xf32>
    %318 = vector.extract_strided_slice %262 {offsets = [2, 0], sizes = [2, 128], strides = [1, 1]} : vector<16x128xf32> to vector<2x128xf32>
    %319 = arith.addf %318, %308 : vector<2x128xf32>
    %320 = arith.negf %319 : vector<2x128xf32>
    %321 = math.exp %320 : vector<2x128xf32>
    %cst_176 = arith.constant 1.000000e+00 : f32
    %322 = vector.broadcast %cst_176 : f32 to vector<2x128xf32>
    %323 = arith.addf %322, %321 : vector<2x128xf32>
    %324 = arith.divf %322, %323 : vector<2x128xf32>
    %325 = vector.extract_strided_slice %265 {offsets = [2, 0], sizes = [2, 128], strides = [1, 1]} : vector<16x128xf32> to vector<2x128xf32>
    %326 = arith.addf %325, %311 : vector<2x128xf32>
    %327 = arith.negf %326 : vector<2x128xf32>
    %328 = math.exp %327 : vector<2x128xf32>
    %cst_177 = arith.constant 1.000000e+00 : f32
    %329 = vector.broadcast %cst_177 : f32 to vector<2x128xf32>
    %330 = arith.addf %329, %328 : vector<2x128xf32>
    %331 = arith.divf %329, %330 : vector<2x128xf32>
    %332 = vector.extract_strided_slice %268 {offsets = [2, 0], sizes = [2, 128], strides = [1, 1]} : vector<16x128xf32> to vector<2x128xf32>
    %333 = arith.mulf %324, %317 : vector<2x128xf32>
    %334 = arith.addf %332, %333 : vector<2x128xf32>
    %335 = math.tanh %334 : vector<2x128xf32>
    %cst_178 = arith.constant 1.000000e+00 : f32
    %336 = vector.broadcast %cst_178 : f32 to vector<2x128xf32>
    %337 = arith.subf %336, %331 : vector<2x128xf32>
    %338 = arith.mulf %337, %335 : vector<2x128xf32>
    %339 = arith.mulf %331, %304 : vector<2x128xf32>
    %340 = arith.addf %338, %339 : vector<2x128xf32>
    %c2_179 = arith.constant 2 : index
    %c0_180 = arith.constant 0 : index
    %341 = vector.load %arg18[%c2_179, %c0_180] : memref<16x128xf32, #tpu.memory_space<vmem>>, vector<2x128xf32>
    tpu.vector_store %arg18[%c2_179, %c0_180], %340 {strides = array<i32>} : memref<16x128xf32, #tpu.memory_space<vmem>>, vector<2x128xf32>,
    %c0_181 = arith.constant 0 : index
    %c0_182 = arith.constant 0 : index
    %c0_183 = arith.constant 0 : index
    %342 = vector.load %arg12[%c0_181, %c0_182, %c0_183] : memref<3x128x128xf32, #tpu.memory_space<vmem>>, vector<1x128x128xf32>
    %343 = vector.shape_cast %342 : vector<1x128x128xf32> to vector<128x128xf32>
    %cst_184 = arith.constant dense<0.000000e+00> : vector<2x128xf32>
    %344 = tpu.matmul %340, %343, %cst_184 {dimension_numbers = #tpu.dot_dimension_numbers<[1], [0], [0], [1], [0, 0, 1, 1], [], []>} : vector<2x128xf32>, vector<128x128xf32>, vector<2x128xf32> -> vector<2x128xf32>
    %c1_185 = arith.constant 1 : index
    %c0_186 = arith.constant 0 : index
    %c0_187 = arith.constant 0 : index
    %345 = vector.load %arg12[%c1_185, %c0_186, %c0_187] : memref<3x128x128xf32, #tpu.memory_space<vmem>>, vector<1x128x128xf32>
    %346 = vector.shape_cast %345 : vector<1x128x128xf32> to vector<128x128xf32>
    %cst_188 = arith.constant dense<0.000000e+00> : vector<2x128xf32>
    %347 = tpu.matmul %340, %346, %cst_188 {dimension_numbers = #tpu.dot_dimension_numbers<[1], [0], [0], [1], [0, 0, 1, 1], [], []>} : vector<2x128xf32>, vector<128x128xf32>, vector<2x128xf32> -> vector<2x128xf32>
    %c2_189 = arith.constant 2 : index
    %c0_190 = arith.constant 0 : index
    %c0_191 = arith.constant 0 : index
    %348 = vector.load %arg12[%c2_189, %c0_190, %c0_191] : memref<3x128x128xf32, #tpu.memory_space<vmem>>, vector<1x128x128xf32>
    %349 = vector.shape_cast %348 : vector<1x128x128xf32> to vector<128x128xf32>
    %cst_192 = arith.constant dense<0.000000e+00> : vector<2x128xf32>
    %350 = tpu.matmul %340, %349, %cst_192 {dimension_numbers = #tpu.dot_dimension_numbers<[1], [0], [0], [1], [0, 0, 1, 1], [], []>} : vector<2x128xf32>, vector<128x128xf32>, vector<2x128xf32> -> vector<2x128xf32>
    %c0_193 = arith.constant 0 : index
    %c0_194 = arith.constant 0 : index
    %351 = vector.load %arg13[%c0_193, %c0_194] : memref<1x128xf32, #tpu.memory_space<vmem>>, vector<1x128xf32>
    %352 = vector.broadcast %351 : vector<1x128xf32> to vector<2x128xf32>
    %353 = arith.addf %350, %352 : vector<2x128xf32>
    %354 = vector.extract_strided_slice %262 {offsets = [4, 0], sizes = [2, 128], strides = [1, 1]} : vector<16x128xf32> to vector<2x128xf32>
    %355 = arith.addf %354, %344 : vector<2x128xf32>
    %356 = arith.negf %355 : vector<2x128xf32>
    %357 = math.exp %356 : vector<2x128xf32>
    %cst_195 = arith.constant 1.000000e+00 : f32
    %358 = vector.broadcast %cst_195 : f32 to vector<2x128xf32>
    %359 = arith.addf %358, %357 : vector<2x128xf32>
    %360 = arith.divf %358, %359 : vector<2x128xf32>
    %361 = vector.extract_strided_slice %265 {offsets = [4, 0], sizes = [2, 128], strides = [1, 1]} : vector<16x128xf32> to vector<2x128xf32>
    %362 = arith.addf %361, %347 : vector<2x128xf32>
    %363 = arith.negf %362 : vector<2x128xf32>
    %364 = math.exp %363 : vector<2x128xf32>
    %cst_196 = arith.constant 1.000000e+00 : f32
    %365 = vector.broadcast %cst_196 : f32 to vector<2x128xf32>
    %366 = arith.addf %365, %364 : vector<2x128xf32>
    %367 = arith.divf %365, %366 : vector<2x128xf32>
    %368 = vector.extract_strided_slice %268 {offsets = [4, 0], sizes = [2, 128], strides = [1, 1]} : vector<16x128xf32> to vector<2x128xf32>
    %369 = arith.mulf %360, %353 : vector<2x128xf32>
    %370 = arith.addf %368, %369 : vector<2x128xf32>
    %371 = math.tanh %370 : vector<2x128xf32>
    %cst_197 = arith.constant 1.000000e+00 : f32
    %372 = vector.broadcast %cst_197 : f32 to vector<2x128xf32>
    %373 = arith.subf %372, %367 : vector<2x128xf32>
    %374 = arith.mulf %373, %371 : vector<2x128xf32>
    %375 = arith.mulf %367, %340 : vector<2x128xf32>
    %376 = arith.addf %374, %375 : vector<2x128xf32>
    %c4 = arith.constant 4 : index
    %c0_198 = arith.constant 0 : index
    %377 = vector.load %arg18[%c4, %c0_198] : memref<16x128xf32, #tpu.memory_space<vmem>>, vector<2x128xf32>
    tpu.vector_store %arg18[%c4, %c0_198], %376 {strides = array<i32>} : memref<16x128xf32, #tpu.memory_space<vmem>>, vector<2x128xf32>,
    %c0_199 = arith.constant 0 : index
    %c0_200 = arith.constant 0 : index
    %c0_201 = arith.constant 0 : index
    %378 = vector.load %arg12[%c0_199, %c0_200, %c0_201] : memref<3x128x128xf32, #tpu.memory_space<vmem>>, vector<1x128x128xf32>
    %379 = vector.shape_cast %378 : vector<1x128x128xf32> to vector<128x128xf32>
    %cst_202 = arith.constant dense<0.000000e+00> : vector<2x128xf32>
    %380 = tpu.matmul %376, %379, %cst_202 {dimension_numbers = #tpu.dot_dimension_numbers<[1], [0], [0], [1], [0, 0, 1, 1], [], []>} : vector<2x128xf32>, vector<128x128xf32>, vector<2x128xf32> -> vector<2x128xf32>
    %c1_203 = arith.constant 1 : index
    %c0_204 = arith.constant 0 : index
    %c0_205 = arith.constant 0 : index
    %381 = vector.load %arg12[%c1_203, %c0_204, %c0_205] : memref<3x128x128xf32, #tpu.memory_space<vmem>>, vector<1x128x128xf32>
    %382 = vector.shape_cast %381 : vector<1x128x128xf32> to vector<128x128xf32>
    %cst_206 = arith.constant dense<0.000000e+00> : vector<2x128xf32>
    %383 = tpu.matmul %376, %382, %cst_206 {dimension_numbers = #tpu.dot_dimension_numbers<[1], [0], [0], [1], [0, 0, 1, 1], [], []>} : vector<2x128xf32>, vector<128x128xf32>, vector<2x128xf32> -> vector<2x128xf32>
    %c2_207 = arith.constant 2 : index
    %c0_208 = arith.constant 0 : index
    %c0_209 = arith.constant 0 : index
    %384 = vector.load %arg12[%c2_207, %c0_208, %c0_209] : memref<3x128x128xf32, #tpu.memory_space<vmem>>, vector<1x128x128xf32>
    %385 = vector.shape_cast %384 : vector<1x128x128xf32> to vector<128x128xf32>
    %cst_210 = arith.constant dense<0.000000e+00> : vector<2x128xf32>
    %386 = tpu.matmul %376, %385, %cst_210 {dimension_numbers = #tpu.dot_dimension_numbers<[1], [0], [0], [1], [0, 0, 1, 1], [], []>} : vector<2x128xf32>, vector<128x128xf32>, vector<2x128xf32> -> vector<2x128xf32>
    %c0_211 = arith.constant 0 : index
    %c0_212 = arith.constant 0 : index
    %387 = vector.load %arg13[%c0_211, %c0_212] : memref<1x128xf32, #tpu.memory_space<vmem>>, vector<1x128xf32>
    %388 = vector.broadcast %387 : vector<1x128xf32> to vector<2x128xf32>
    %389 = arith.addf %386, %388 : vector<2x128xf32>
    %390 = vector.extract_strided_slice %262 {offsets = [6, 0], sizes = [2, 128], strides = [1, 1]} : vector<16x128xf32> to vector<2x128xf32>
    %391 = arith.addf %390, %380 : vector<2x128xf32>
    %392 = arith.negf %391 : vector<2x128xf32>
    %393 = math.exp %392 : vector<2x128xf32>
    %cst_213 = arith.constant 1.000000e+00 : f32
    %394 = vector.broadcast %cst_213 : f32 to vector<2x128xf32>
    %395 = arith.addf %394, %393 : vector<2x128xf32>
    %396 = arith.divf %394, %395 : vector<2x128xf32>
    %397 = vector.extract_strided_slice %265 {offsets = [6, 0], sizes = [2, 128], strides = [1, 1]} : vector<16x128xf32> to vector<2x128xf32>
    %398 = arith.addf %397, %383 : vector<2x128xf32>
    %399 = arith.negf %398 : vector<2x128xf32>
    %400 = math.exp %399 : vector<2x128xf32>
    %cst_214 = arith.constant 1.000000e+00 : f32
    %401 = vector.broadcast %cst_214 : f32 to vector<2x128xf32>
    %402 = arith.addf %401, %400 : vector<2x128xf32>
    %403 = arith.divf %401, %402 : vector<2x128xf32>
    %404 = vector.extract_strided_slice %268 {offsets = [6, 0], sizes = [2, 128], strides = [1, 1]} : vector<16x128xf32> to vector<2x128xf32>
    %405 = arith.mulf %396, %389 : vector<2x128xf32>
    %406 = arith.addf %404, %405 : vector<2x128xf32>
    %407 = math.tanh %406 : vector<2x128xf32>
    %cst_215 = arith.constant 1.000000e+00 : f32
    %408 = vector.broadcast %cst_215 : f32 to vector<2x128xf32>
    %409 = arith.subf %408, %403 : vector<2x128xf32>
    %410 = arith.mulf %409, %407 : vector<2x128xf32>
    %411 = arith.mulf %403, %376 : vector<2x128xf32>
    %412 = arith.addf %410, %411 : vector<2x128xf32>
    %c6 = arith.constant 6 : index
    %c0_216 = arith.constant 0 : index
    %413 = vector.load %arg18[%c6, %c0_216] : memref<16x128xf32, #tpu.memory_space<vmem>>, vector<2x128xf32>
    tpu.vector_store %arg18[%c6, %c0_216], %412 {strides = array<i32>} : memref<16x128xf32, #tpu.memory_space<vmem>>, vector<2x128xf32>,
    %c0_217 = arith.constant 0 : index
    %c0_218 = arith.constant 0 : index
    %c0_219 = arith.constant 0 : index
    %414 = vector.load %arg12[%c0_217, %c0_218, %c0_219] : memref<3x128x128xf32, #tpu.memory_space<vmem>>, vector<1x128x128xf32>
    %415 = vector.shape_cast %414 : vector<1x128x128xf32> to vector<128x128xf32>
    %cst_220 = arith.constant dense<0.000000e+00> : vector<2x128xf32>
    %416 = tpu.matmul %412, %415, %cst_220 {dimension_numbers = #tpu.dot_dimension_numbers<[1], [0], [0], [1], [0, 0, 1, 1], [], []>} : vector<2x128xf32>, vector<128x128xf32>, vector<2x128xf32> -> vector<2x128xf32>
    %c1_221 = arith.constant 1 : index
    %c0_222 = arith.constant 0 : index
    %c0_223 = arith.constant 0 : index
    %417 = vector.load %arg12[%c1_221, %c0_222, %c0_223] : memref<3x128x128xf32, #tpu.memory_space<vmem>>, vector<1x128x128xf32>
    %418 = vector.shape_cast %417 : vector<1x128x128xf32> to vector<128x128xf32>
    %cst_224 = arith.constant dense<0.000000e+00> : vector<2x128xf32>
    %419 = tpu.matmul %412, %418, %cst_224 {dimension_numbers = #tpu.dot_dimension_numbers<[1], [0], [0], [1], [0, 0, 1, 1], [], []>} : vector<2x128xf32>, vector<128x128xf32>, vector<2x128xf32> -> vector<2x128xf32>
    %c2_225 = arith.constant 2 : index
    %c0_226 = arith.constant 0 : index
    %c0_227 = arith.constant 0 : index
    %420 = vector.load %arg12[%c2_225, %c0_226, %c0_227] : memref<3x128x128xf32, #tpu.memory_space<vmem>>, vector<1x128x128xf32>
    %421 = vector.shape_cast %420 : vector<1x128x128xf32> to vector<128x128xf32>
    %cst_228 = arith.constant dense<0.000000e+00> : vector<2x128xf32>
    %422 = tpu.matmul %412, %421, %cst_228 {dimension_numbers = #tpu.dot_dimension_numbers<[1], [0], [0], [1], [0, 0, 1, 1], [], []>} : vector<2x128xf32>, vector<128x128xf32>, vector<2x128xf32> -> vector<2x128xf32>
    %c0_229 = arith.constant 0 : index
    %c0_230 = arith.constant 0 : index
    %423 = vector.load %arg13[%c0_229, %c0_230] : memref<1x128xf32, #tpu.memory_space<vmem>>, vector<1x128xf32>
    %424 = vector.broadcast %423 : vector<1x128xf32> to vector<2x128xf32>
    %425 = arith.addf %422, %424 : vector<2x128xf32>
    %426 = vector.extract_strided_slice %262 {offsets = [8, 0], sizes = [2, 128], strides = [1, 1]} : vector<16x128xf32> to vector<2x128xf32>
    %427 = arith.addf %426, %416 : vector<2x128xf32>
    %428 = arith.negf %427 : vector<2x128xf32>
    %429 = math.exp %428 : vector<2x128xf32>
    %cst_231 = arith.constant 1.000000e+00 : f32
    %430 = vector.broadcast %cst_231 : f32 to vector<2x128xf32>
    %431 = arith.addf %430, %429 : vector<2x128xf32>
    %432 = arith.divf %430, %431 : vector<2x128xf32>
    %433 = vector.extract_strided_slice %265 {offsets = [8, 0], sizes = [2, 128], strides = [1, 1]} : vector<16x128xf32> to vector<2x128xf32>
    %434 = arith.addf %433, %419 : vector<2x128xf32>
    %435 = arith.negf %434 : vector<2x128xf32>
    %436 = math.exp %435 : vector<2x128xf32>
    %cst_232 = arith.constant 1.000000e+00 : f32
    %437 = vector.broadcast %cst_232 : f32 to vector<2x128xf32>
    %438 = arith.addf %437, %436 : vector<2x128xf32>
    %439 = arith.divf %437, %438 : vector<2x128xf32>
    %440 = vector.extract_strided_slice %268 {offsets = [8, 0], sizes = [2, 128], strides = [1, 1]} : vector<16x128xf32> to vector<2x128xf32>
    %441 = arith.mulf %432, %425 : vector<2x128xf32>
    %442 = arith.addf %440, %441 : vector<2x128xf32>
    %443 = math.tanh %442 : vector<2x128xf32>
    %cst_233 = arith.constant 1.000000e+00 : f32
    %444 = vector.broadcast %cst_233 : f32 to vector<2x128xf32>
    %445 = arith.subf %444, %439 : vector<2x128xf32>
    %446 = arith.mulf %445, %443 : vector<2x128xf32>
    %447 = arith.mulf %439, %412 : vector<2x128xf32>
    %448 = arith.addf %446, %447 : vector<2x128xf32>
    %c8 = arith.constant 8 : index
    %c0_234 = arith.constant 0 : index
    %449 = vector.load %arg18[%c8, %c0_234] : memref<16x128xf32, #tpu.memory_space<vmem>>, vector<2x128xf32>
    tpu.vector_store %arg18[%c8, %c0_234], %448 {strides = array<i32>} : memref<16x128xf32, #tpu.memory_space<vmem>>, vector<2x128xf32>,
    %c0_235 = arith.constant 0 : index
    %c0_236 = arith.constant 0 : index
    %c0_237 = arith.constant 0 : index
    %450 = vector.load %arg12[%c0_235, %c0_236, %c0_237] : memref<3x128x128xf32, #tpu.memory_space<vmem>>, vector<1x128x128xf32>
    %451 = vector.shape_cast %450 : vector<1x128x128xf32> to vector<128x128xf32>
    %cst_238 = arith.constant dense<0.000000e+00> : vector<2x128xf32>
    %452 = tpu.matmul %448, %451, %cst_238 {dimension_numbers = #tpu.dot_dimension_numbers<[1], [0], [0], [1], [0, 0, 1, 1], [], []>} : vector<2x128xf32>, vector<128x128xf32>, vector<2x128xf32> -> vector<2x128xf32>
    %c1_239 = arith.constant 1 : index
    %c0_240 = arith.constant 0 : index
    %c0_241 = arith.constant 0 : index
    %453 = vector.load %arg12[%c1_239, %c0_240, %c0_241] : memref<3x128x128xf32, #tpu.memory_space<vmem>>, vector<1x128x128xf32>
    %454 = vector.shape_cast %453 : vector<1x128x128xf32> to vector<128x128xf32>
    %cst_242 = arith.constant dense<0.000000e+00> : vector<2x128xf32>
    %455 = tpu.matmul %448, %454, %cst_242 {dimension_numbers = #tpu.dot_dimension_numbers<[1], [0], [0], [1], [0, 0, 1, 1], [], []>} : vector<2x128xf32>, vector<128x128xf32>, vector<2x128xf32> -> vector<2x128xf32>
    %c2_243 = arith.constant 2 : index
    %c0_244 = arith.constant 0 : index
    %c0_245 = arith.constant 0 : index
    %456 = vector.load %arg12[%c2_243, %c0_244, %c0_245] : memref<3x128x128xf32, #tpu.memory_space<vmem>>, vector<1x128x128xf32>
    %457 = vector.shape_cast %456 : vector<1x128x128xf32> to vector<128x128xf32>
    %cst_246 = arith.constant dense<0.000000e+00> : vector<2x128xf32>
    %458 = tpu.matmul %448, %457, %cst_246 {dimension_numbers = #tpu.dot_dimension_numbers<[1], [0], [0], [1], [0, 0, 1, 1], [], []>} : vector<2x128xf32>, vector<128x128xf32>, vector<2x128xf32> -> vector<2x128xf32>
    %c0_247 = arith.constant 0 : index
    %c0_248 = arith.constant 0 : index
    %459 = vector.load %arg13[%c0_247, %c0_248] : memref<1x128xf32, #tpu.memory_space<vmem>>, vector<1x128xf32>
    %460 = vector.broadcast %459 : vector<1x128xf32> to vector<2x128xf32>
    %461 = arith.addf %458, %460 : vector<2x128xf32>
    %462 = vector.extract_strided_slice %262 {offsets = [10, 0], sizes = [2, 128], strides = [1, 1]} : vector<16x128xf32> to vector<2x128xf32>
    %463 = arith.addf %462, %452 : vector<2x128xf32>
    %464 = arith.negf %463 : vector<2x128xf32>
    %465 = math.exp %464 : vector<2x128xf32>
    %cst_249 = arith.constant 1.000000e+00 : f32
    %466 = vector.broadcast %cst_249 : f32 to vector<2x128xf32>
    %467 = arith.addf %466, %465 : vector<2x128xf32>
    %468 = arith.divf %466, %467 : vector<2x128xf32>
    %469 = vector.extract_strided_slice %265 {offsets = [10, 0], sizes = [2, 128], strides = [1, 1]} : vector<16x128xf32> to vector<2x128xf32>
    %470 = arith.addf %469, %455 : vector<2x128xf32>
    %471 = arith.negf %470 : vector<2x128xf32>
    %472 = math.exp %471 : vector<2x128xf32>
    %cst_250 = arith.constant 1.000000e+00 : f32
    %473 = vector.broadcast %cst_250 : f32 to vector<2x128xf32>
    %474 = arith.addf %473, %472 : vector<2x128xf32>
    %475 = arith.divf %473, %474 : vector<2x128xf32>
    %476 = vector.extract_strided_slice %268 {offsets = [10, 0], sizes = [2, 128], strides = [1, 1]} : vector<16x128xf32> to vector<2x128xf32>
    %477 = arith.mulf %468, %461 : vector<2x128xf32>
    %478 = arith.addf %476, %477 : vector<2x128xf32>
    %479 = math.tanh %478 : vector<2x128xf32>
    %cst_251 = arith.constant 1.000000e+00 : f32
    %480 = vector.broadcast %cst_251 : f32 to vector<2x128xf32>
    %481 = arith.subf %480, %475 : vector<2x128xf32>
    %482 = arith.mulf %481, %479 : vector<2x128xf32>
    %483 = arith.mulf %475, %448 : vector<2x128xf32>
    %484 = arith.addf %482, %483 : vector<2x128xf32>
    %c10 = arith.constant 10 : index
    %c0_252 = arith.constant 0 : index
    %485 = vector.load %arg18[%c10, %c0_252] : memref<16x128xf32, #tpu.memory_space<vmem>>, vector<2x128xf32>
    tpu.vector_store %arg18[%c10, %c0_252], %484 {strides = array<i32>} : memref<16x128xf32, #tpu.memory_space<vmem>>, vector<2x128xf32>,
    %c0_253 = arith.constant 0 : index
    %c0_254 = arith.constant 0 : index
    %c0_255 = arith.constant 0 : index
    %486 = vector.load %arg12[%c0_253, %c0_254, %c0_255] : memref<3x128x128xf32, #tpu.memory_space<vmem>>, vector<1x128x128xf32>
    %487 = vector.shape_cast %486 : vector<1x128x128xf32> to vector<128x128xf32>
    %cst_256 = arith.constant dense<0.000000e+00> : vector<2x128xf32>
    %488 = tpu.matmul %484, %487, %cst_256 {dimension_numbers = #tpu.dot_dimension_numbers<[1], [0], [0], [1], [0, 0, 1, 1], [], []>} : vector<2x128xf32>, vector<128x128xf32>, vector<2x128xf32> -> vector<2x128xf32>
    %c1_257 = arith.constant 1 : index
    %c0_258 = arith.constant 0 : index
    %c0_259 = arith.constant 0 : index
    %489 = vector.load %arg12[%c1_257, %c0_258, %c0_259] : memref<3x128x128xf32, #tpu.memory_space<vmem>>, vector<1x128x128xf32>
    %490 = vector.shape_cast %489 : vector<1x128x128xf32> to vector<128x128xf32>
    %cst_260 = arith.constant dense<0.000000e+00> : vector<2x128xf32>
    %491 = tpu.matmul %484, %490, %cst_260 {dimension_numbers = #tpu.dot_dimension_numbers<[1], [0], [0], [1], [0, 0, 1, 1], [], []>} : vector<2x128xf32>, vector<128x128xf32>, vector<2x128xf32> -> vector<2x128xf32>
    %c2_261 = arith.constant 2 : index
    %c0_262 = arith.constant 0 : index
    %c0_263 = arith.constant 0 : index
    %492 = vector.load %arg12[%c2_261, %c0_262, %c0_263] : memref<3x128x128xf32, #tpu.memory_space<vmem>>, vector<1x128x128xf32>
    %493 = vector.shape_cast %492 : vector<1x128x128xf32> to vector<128x128xf32>
    %cst_264 = arith.constant dense<0.000000e+00> : vector<2x128xf32>
    %494 = tpu.matmul %484, %493, %cst_264 {dimension_numbers = #tpu.dot_dimension_numbers<[1], [0], [0], [1], [0, 0, 1, 1], [], []>} : vector<2x128xf32>, vector<128x128xf32>, vector<2x128xf32> -> vector<2x128xf32>
    %c0_265 = arith.constant 0 : index
    %c0_266 = arith.constant 0 : index
    %495 = vector.load %arg13[%c0_265, %c0_266] : memref<1x128xf32, #tpu.memory_space<vmem>>, vector<1x128xf32>
    %496 = vector.broadcast %495 : vector<1x128xf32> to vector<2x128xf32>
    %497 = arith.addf %494, %496 : vector<2x128xf32>
    %498 = vector.extract_strided_slice %262 {offsets = [12, 0], sizes = [2, 128], strides = [1, 1]} : vector<16x128xf32> to vector<2x128xf32>
    %499 = arith.addf %498, %488 : vector<2x128xf32>
    %500 = arith.negf %499 : vector<2x128xf32>
    %501 = math.exp %500 : vector<2x128xf32>
    %cst_267 = arith.constant 1.000000e+00 : f32
    %502 = vector.broadcast %cst_267 : f32 to vector<2x128xf32>
    %503 = arith.addf %502, %501 : vector<2x128xf32>
    %504 = arith.divf %502, %503 : vector<2x128xf32>
    %505 = vector.extract_strided_slice %265 {offsets = [12, 0], sizes = [2, 128], strides = [1, 1]} : vector<16x128xf32> to vector<2x128xf32>
    %506 = arith.addf %505, %491 : vector<2x128xf32>
    %507 = arith.negf %506 : vector<2x128xf32>
    %508 = math.exp %507 : vector<2x128xf32>
    %cst_268 = arith.constant 1.000000e+00 : f32
    %509 = vector.broadcast %cst_268 : f32 to vector<2x128xf32>
    %510 = arith.addf %509, %508 : vector<2x128xf32>
    %511 = arith.divf %509, %510 : vector<2x128xf32>
    %512 = vector.extract_strided_slice %268 {offsets = [12, 0], sizes = [2, 128], strides = [1, 1]} : vector<16x128xf32> to vector<2x128xf32>
    %513 = arith.mulf %504, %497 : vector<2x128xf32>
    %514 = arith.addf %512, %513 : vector<2x128xf32>
    %515 = math.tanh %514 : vector<2x128xf32>
    %cst_269 = arith.constant 1.000000e+00 : f32
    %516 = vector.broadcast %cst_269 : f32 to vector<2x128xf32>
    %517 = arith.subf %516, %511 : vector<2x128xf32>
    %518 = arith.mulf %517, %515 : vector<2x128xf32>
    %519 = arith.mulf %511, %484 : vector<2x128xf32>
    %520 = arith.addf %518, %519 : vector<2x128xf32>
    %c12 = arith.constant 12 : index
    %c0_270 = arith.constant 0 : index
    %521 = vector.load %arg18[%c12, %c0_270] : memref<16x128xf32, #tpu.memory_space<vmem>>, vector<2x128xf32>
    tpu.vector_store %arg18[%c12, %c0_270], %520 {strides = array<i32>} : memref<16x128xf32, #tpu.memory_space<vmem>>, vector<2x128xf32>,
    %c0_271 = arith.constant 0 : index
    %c0_272 = arith.constant 0 : index
    %c0_273 = arith.constant 0 : index
    %522 = vector.load %arg12[%c0_271, %c0_272, %c0_273] : memref<3x128x128xf32, #tpu.memory_space<vmem>>, vector<1x128x128xf32>
    %523 = vector.shape_cast %522 : vector<1x128x128xf32> to vector<128x128xf32>
    %cst_274 = arith.constant dense<0.000000e+00> : vector<2x128xf32>
    %524 = tpu.matmul %520, %523, %cst_274 {dimension_numbers = #tpu.dot_dimension_numbers<[1], [0], [0], [1], [0, 0, 1, 1], [], []>} : vector<2x128xf32>, vector<128x128xf32>, vector<2x128xf32> -> vector<2x128xf32>
    %c1_275 = arith.constant 1 : index
    %c0_276 = arith.constant 0 : index
    %c0_277 = arith.constant 0 : index
    %525 = vector.load %arg12[%c1_275, %c0_276, %c0_277] : memref<3x128x128xf32, #tpu.memory_space<vmem>>, vector<1x128x128xf32>
    %526 = vector.shape_cast %525 : vector<1x128x128xf32> to vector<128x128xf32>
    %cst_278 = arith.constant dense<0.000000e+00> : vector<2x128xf32>
    %527 = tpu.matmul %520, %526, %cst_278 {dimension_numbers = #tpu.dot_dimension_numbers<[1], [0], [0], [1], [0, 0, 1, 1], [], []>} : vector<2x128xf32>, vector<128x128xf32>, vector<2x128xf32> -> vector<2x128xf32>
    %c2_279 = arith.constant 2 : index
    %c0_280 = arith.constant 0 : index
    %c0_281 = arith.constant 0 : index
    %528 = vector.load %arg12[%c2_279, %c0_280, %c0_281] : memref<3x128x128xf32, #tpu.memory_space<vmem>>, vector<1x128x128xf32>
    %529 = vector.shape_cast %528 : vector<1x128x128xf32> to vector<128x128xf32>
    %cst_282 = arith.constant dense<0.000000e+00> : vector<2x128xf32>
    %530 = tpu.matmul %520, %529, %cst_282 {dimension_numbers = #tpu.dot_dimension_numbers<[1], [0], [0], [1], [0, 0, 1, 1], [], []>} : vector<2x128xf32>, vector<128x128xf32>, vector<2x128xf32> -> vector<2x128xf32>
    %c0_283 = arith.constant 0 : index
    %c0_284 = arith.constant 0 : index
    %531 = vector.load %arg13[%c0_283, %c0_284] : memref<1x128xf32, #tpu.memory_space<vmem>>, vector<1x128xf32>
    %532 = vector.broadcast %531 : vector<1x128xf32> to vector<2x128xf32>
    %533 = arith.addf %530, %532 : vector<2x128xf32>
    %534 = vector.extract_strided_slice %262 {offsets = [14, 0], sizes = [2, 128], strides = [1, 1]} : vector<16x128xf32> to vector<2x128xf32>
    %535 = arith.addf %534, %524 : vector<2x128xf32>
    %536 = arith.negf %535 : vector<2x128xf32>
    %537 = math.exp %536 : vector<2x128xf32>
    %cst_285 = arith.constant 1.000000e+00 : f32
    %538 = vector.broadcast %cst_285 : f32 to vector<2x128xf32>
    %539 = arith.addf %538, %537 : vector<2x128xf32>
    %540 = arith.divf %538, %539 : vector<2x128xf32>
    %541 = vector.extract_strided_slice %265 {offsets = [14, 0], sizes = [2, 128], strides = [1, 1]} : vector<16x128xf32> to vector<2x128xf32>
    %542 = arith.addf %541, %527 : vector<2x128xf32>
    %543 = arith.negf %542 : vector<2x128xf32>
    %544 = math.exp %543 : vector<2x128xf32>
    %cst_286 = arith.constant 1.000000e+00 : f32
    %545 = vector.broadcast %cst_286 : f32 to vector<2x128xf32>
    %546 = arith.addf %545, %544 : vector<2x128xf32>
    %547 = arith.divf %545, %546 : vector<2x128xf32>
    %548 = vector.extract_strided_slice %268 {offsets = [14, 0], sizes = [2, 128], strides = [1, 1]} : vector<16x128xf32> to vector<2x128xf32>
    %549 = arith.mulf %540, %533 : vector<2x128xf32>
    %550 = arith.addf %548, %549 : vector<2x128xf32>
    %551 = math.tanh %550 : vector<2x128xf32>
    %cst_287 = arith.constant 1.000000e+00 : f32
    %552 = vector.broadcast %cst_287 : f32 to vector<2x128xf32>
    %553 = arith.subf %552, %547 : vector<2x128xf32>
    %554 = arith.mulf %553, %551 : vector<2x128xf32>
    %555 = arith.mulf %547, %520 : vector<2x128xf32>
    %556 = arith.addf %554, %555 : vector<2x128xf32>
    %c14 = arith.constant 14 : index
    %c0_288 = arith.constant 0 : index
    %557 = vector.load %arg18[%c14, %c0_288] : memref<16x128xf32, #tpu.memory_space<vmem>>, vector<2x128xf32>
    tpu.vector_store %arg18[%c14, %c0_288], %556 {strides = array<i32>} : memref<16x128xf32, #tpu.memory_space<vmem>>, vector<2x128xf32>,
    %c0_289 = arith.constant 0 : index
    %c0_290 = arith.constant 0 : index
    %558 = vector.load %arg17[%c0_289, %c0_290] : memref<2x128xf32, #tpu.memory_space<vmem>>, vector<2x128xf32>
    tpu.vector_store %arg17[%c0_289, %c0_290], %556 {strides = array<i32>} : memref<2x128xf32, #tpu.memory_space<vmem>>, vector<2x128xf32>,
    %c0_291 = arith.constant 0 : index
    %c0_292 = arith.constant 0 : index
    %559 = vector.load %arg18[%c0_291, %c0_292] : memref<16x128xf32, #tpu.memory_space<vmem>>, vector<16x128xf32>
    %c0_293 = arith.constant 0 : index
    %c0_294 = arith.constant 0 : index
    %560 = vector.load %arg14[%c0_293, %c0_294] : memref<128x16xf32, #tpu.memory_space<vmem>>, vector<128x16xf32>
    %cst_295 = arith.constant dense<0.000000e+00> : vector<16x16xf32>
    %561 = tpu.matmul %559, %560, %cst_295 {dimension_numbers = #tpu.dot_dimension_numbers<[1], [0], [0], [1], [0, 0, 1, 1], [], []>} : vector<16x128xf32>, vector<128x16xf32>, vector<16x16xf32> -> vector<16x16xf32>
    %c0_296 = arith.constant 0 : index
    %c0_297 = arith.constant 0 : index
    %562 = vector.load %arg15[%c0_296, %c0_297] : memref<1x16xf32, #tpu.memory_space<vmem>>, vector<1x16xf32>
    %563 = vector.broadcast %562 : vector<1x16xf32> to vector<16x16xf32>
    %564 = arith.addf %561, %563 : vector<16x16xf32>
    %c0_298 = arith.constant 0 : index
    %c0_299 = arith.constant 0 : index
    %565 = vector.load %arg16[%c0_298, %c0_299] : memref<16x16xf32, #tpu.memory_space<vmem>>, vector<16x16xf32>
    tpu.vector_store %arg16[%c0_298, %c0_299], %564 {strides = array<i32>} : memref<16x16xf32, #tpu.memory_space<vmem>>, vector<16x16xf32>,
    return
  }
}

</mosaic_0001>

<bundles_post_ra>
// kernel: vqa_forward.1
= control target key start
LH: loop header
LB: loop body
LE: loop exit
PB: predicated region body
PF: predicated region fallthrough
CT: control target
= control target key end

     0   :  { %s22904_s0 = inlined_call_operand.vmem [shape: f32[2,768], index: 0, kind: input, shape index: {}]   ;;  %s22905_s1 = inlined_call_operand.vmem [shape: s32[12,1], index: 1, kind: input, shape index: {}]   ;;  %s22906_s2 = inlined_call_operand.vmem [shape: s32[16,1], index: 2, kind: input, shape index: {}]   ;;  %s22907_s3 = inlined_call_operand.vmem [shape: f32[768,1568], index: 3, kind: input, shape index: {}]   ;;  %s22908_s4 = inlined_call_operand.vmem [shape: f32[1,1568], index: 4, kind: input, shape index: {}]   ;;  %s22909_s5 = inlined_call_operand.vmem [shape: f32[1448,400], index: 5, kind: input, shape index: {}]   ;;  %s22910_s6 = inlined_call_operand.vmem [shape: f32[1,400], index: 6, kind: input, shape index: {}]   ;;  %s22911_s7 = inlined_call_operand.vmem [shape: f32[304,64], index: 7, kind: input, shape index: {}]   ;;  %s22912_s8 = inlined_call_operand.vmem [shape: f32[3,16,64], index: 8, kind: input, shape index: {}]   ;;  %s22913_s9 = inlined_call_operand.vmem [shape: f32[3,64,64], index: 9, kind: input, shape index: {}]   ;;  %s22914_s10 = inlined_call_operand.vmem [shape: f32[1,64], index: 10, kind: input, shape index: {}]   ;;  %s22915_s11 = inlined_call_operand.vmem [shape: f32[3,16,128], index: 11, kind: input, shape index: {}]   ;;  %s22916_s12 = inlined_call_operand.vmem [shape: f32[3,128,128], index: 12, kind: input, shape index: {}]   ;;  %s22917_s13 = inlined_call_operand.vmem [shape: f32[1,128], index: 13, kind: input, shape index: {}]   ;;  %s22918_s14 = inlined_call_operand.vmem [shape: f32[128,16], index: 14, kind: input, shape index: {}]   ;;  %s22919_s15 = inlined_call_operand.vmem [shape: f32[1,16], index: 15, kind: input, shape index: {}]   ;;  %s22920_s16 = inlined_call_operand.vmem [shape: f32[16,16], index: 16, kind: output, shape index: {0}]   ;;  %s22921_s17 = inlined_call_operand.hbm [shape: f32[2,128], index: 17, kind: output, shape index: {1}]  }
   0x1   :  { %22924 = sst [smem:[#allocation6_spill]] %s22904_s0 }
   0x2   :  { %22925 = sst [smem:[#allocation7_spill]] %s22905_s1 }
   0x3   :  { %v59_v0 = vld [vmem:[%s22907_s3 + $0x8] sm:$0xff]  ;;  %v72_v1 = vld [vmem:[%s22907_s3 + $0x70] sm:$0xff]  ;;  %v61_v2 = vld [vmem:[%s22907_s3 + $0x18] sm:$0xff]  ;;  %s22926_s27 = sld [smem:[#allocation6_spill]] }
   0x4   :  { %v11781_v3 = vpack.c.bf16 %v72_v1, %v59_v0  ;;  %v74_v4 = vld [vmem:[%s22907_s3 + $0x80] sm:$0xff]  ;;  %v71_v6 = vld [vmem:[%s22907_s3 + $0x68] sm:$0xff]  ;;  %v60_v9 = vld [vmem:[%s22907_s3 + $0x10] sm:$0xff] }
   0x5   :  { %v58_v5 = vld [vmem:[%s22907_s3] sm:$0xff]  ;;  %v11973_v7 = vpack.c.bf16 %v74_v4, %v61_v2  ;;  %v73_v10 = vld [vmem:[%s22907_s3 + $0x78] sm:$0xff]  ;;  %v87_v14 = vld [vmem:[%s22907_s3 + $0xe8] sm:$0xff] }
   0x6   :  { %v11783_v8 = vpack.c.bf16 %v71_v6, %v58_v5  ;;  %v85_v11 = vld [vmem:[%s22907_s3 + $0xd8] sm:$0xff]  ;;  %11782 = vmatprep.subr.bf16.mxu0 %v11781_v3  ;;  %v11975_v12 = vpack.c.bf16 %v73_v10, %v60_v9  ;;  %v98_v13 = vld [vmem:[%s22907_s3 + $0x140] sm:$0xff]  ;;  %v100_v15 = vld [vmem:[%s22907_s3 + $0x150] sm:$0xff] }
   0x7   :  { %11974 = vmatprep.subr.bf16.mxu1 %v11973_v7  ;;  %v11785_v16 = vpack.c.bf16 %v98_v13, %v85_v11  ;;  %v11977_v17 = vpack.c.bf16 %v100_v15, %v87_v14  ;;  %v84_v18 = vld [vmem:[%s22907_s3 + $0xd0] sm:$0xff]  ;;  %v97_v19 = vld [vmem:[%s22907_s3 + $0x138] sm:$0xff]  ;;  %v86_v20 = vld [vmem:[%s22907_s3 + $0xe0] sm:$0xff] }
   0x8   :  { %11784 = vmatpush1.bf16.msra.mxu0 %v11783_v8  ;;  %11976 = vmatpush1.bf16.msra.mxu1 %v11975_v12  ;;  %v11787_v21 = vpack.c.bf16 %v97_v19, %v84_v18  ;;  %v99_v22 = vld [vmem:[%s22907_s3 + $0x148] sm:$0xff]  ;;  %v124_v24 = vld [vmem:[%s22907_s3 + $0x210] sm:$0xff]  ;;  %v113_v27 = vld [vmem:[%s22907_s3 + $0x1b8] sm:$0xff] }
   0x9   :  { %v111_v23 = vld [vmem:[%s22907_s3 + $0x1a8] sm:$0xff]  ;;  %11786 = vmatprep.subr.bf16.mxu0 %v11785_v16  ;;  %11978 = vmatprep.subr.bf16.mxu1 %v11977_v17  ;;  %v11979_v25 = vpack.c.bf16 %v99_v22, %v86_v20  ;;  %v126_v28 = vld [vmem:[%s22907_s3 + $0x220] sm:$0xff]  ;;  %v112_v32 = vld [vmem:[%s22907_s3 + $0x1b0] sm:$0xff] }
   0xa   :  { %v11789_v26 = vpack.c.bf16 %v124_v24, %v111_v23  ;;  %v110_v29 = vld [vmem:[%s22907_s3 + $0x1a0] sm:$0xff]  ;;  %v11981_v30 = vpack.c.bf16 %v126_v28, %v113_v27  ;;  %v123_v31 = vld [vmem:[%s22907_s3 + $0x208] sm:$0xff]  ;;  %v125_v33 = vld [vmem:[%s22907_s3 + $0x218] sm:$0xff] }
   0xb   :  { %v11791_v34 = vpack.c.bf16 %v123_v31, %v110_v29  ;;  %v137_v35 = vld [vmem:[%s22907_s3 + $0x278] sm:$0xff]  ;;  %v150_v36 = vld [vmem:[%s22907_s3 + $0x2e0] sm:$0xff]  ;;  %v139_v37 = vld [vmem:[%s22907_s3 + $0x288] sm:$0xff]  ;;  %v11983_v38 = vpack.c.bf16 %v125_v33, %v112_v32 }
   0xc   :  { %11788 = vmatpush1.bf16.msra.mxu0 %v11787_v21  ;;  %11980 = vmatpush1.bf16.msra.mxu1 %v11979_v25  ;;  %v11793_v39 = vpack.c.bf16 %v150_v36, %v137_v35  ;;  %v152_v40 = vld [vmem:[%s22907_s3 + $0x2f0] sm:$0xff]  ;;  %v149_v42 = vld [vmem:[%s22907_s3 + $0x2d8] sm:$0xff]  ;;  %v138_v44 = vld [vmem:[%s22907_s3 + $0x280] sm:$0xff] }
   0xd   :  { %11790 = vmatprep.subr.bf16.mxu0 %v11789_v26  ;;  %v136_v41 = vld [vmem:[%s22907_s3 + $0x270] sm:$0xff]  ;;  %11982 = vmatprep.subr.bf16.mxu1 %v11981_v30  ;;  %v11985_v43 = vpack.c.bf16 %v152_v40, %v139_v37  ;;  %v151_v45 = vld [vmem:[%s22907_s3 + $0x2e8] sm:$0xff]  ;;  %v165_v48 = vld [vmem:[%s22907_s3 + $0x358] sm:$0xff] }
   0xe   :  { %v163_v46 = vld [vmem:[%s22907_s3 + $0x348] sm:$0xff]  ;;  %v176_v47 = vld [vmem:[%s22907_s3 + $0x3b0] sm:$0xff]  ;;  %v178_v49 = vld [vmem:[%s22907_s3 + $0x3c0] sm:$0xff]  ;;  %v11795_v50 = vpack.c.bf16 %v149_v42, %v136_v41  ;;  %v11987_v51 = vpack.c.bf16 %v151_v45, %v138_v44 }
   0xf   :  { %v11797_v52 = vpack.c.bf16 %v176_v47, %v163_v46  ;;  %v162_v53 = vld [vmem:[%s22907_s3 + $0x340] sm:$0xff]  ;;  %v175_v54 = vld [vmem:[%s22907_s3 + $0x3a8] sm:$0xff]  ;;  %v164_v55 = vld [vmem:[%s22907_s3 + $0x350] sm:$0xff]  ;;  %v11989_v56 = vpack.c.bf16 %v178_v49, %v165_v48  ;;  %v1310_v46 = vlaneseq  ;;  %v14939_v47 = vmov 1983009808  }
  0x10   :  { %11792 = vmatpush1.bf16.msra.mxu0 %v11791_v34  ;;  %11984 = vmatpush1.bf16.msra.mxu1 %v11983_v38  ;;  %v177_v57 = vld [vmem:[%s22907_s3 + $0x3b8] sm:$0xff]  ;;  %v202_v59 = vld [vmem:[%s22907_s3 + $0x480] sm:$0xff]  ;;  %v191_v60 = vld [vmem:[%s22907_s3 + $0x428] sm:$0xff]  ;;  %v11799_v62 = vpack.c.bf16 %v175_v54, %v162_v53  ;;  %v1379_v48 = vunpack.c.l.s4 %v14939_v47 }
  0x11   :  { %11794 = vmatprep.subr.bf16.mxu0 %v11793_v39  ;;  %11986 = vmatprep.subr.bf16.mxu1 %v11985_v43  ;;  %v189_v58 = vld [vmem:[%s22907_s3 + $0x418] sm:$0xff]  ;;  %v204_v61 = vld [vmem:[%s22907_s3 + $0x490] sm:$0xff]  ;;  %v11991_v63 = vpack.c.bf16 %v177_v57, %v164_v55  ;;  %v190_v3 = vld [vmem:[%s22907_s3 + $0x420] sm:$0xff] }
  0x12   :  { %v11801_v0 = vpack.c.bf16 %v202_v59, %v189_v58  ;;  %v188_v1 = vld [vmem:[%s22907_s3 + $0x410] sm:$0xff]  ;;  %v201_v2 = vld [vmem:[%s22907_s3 + $0x478] sm:$0xff]  ;;  %v11993_v4 = vpack.c.bf16 %v204_v61, %v191_v60  ;;  %v203_v5 = vld [vmem:[%s22907_s3 + $0x488] sm:$0xff]  ;;  %v15293_v61 = vshrl.u32 %v1310_v46, 7 }
  0x13   :  { %v215_v6 = vld [vmem:[%s22907_s3 + $0x4e8] sm:$0xff]  ;;  %v228_v7 = vld [vmem:[%s22907_s3 + $0x550] sm:$0xff]  ;;  %v217_v8 = vld [vmem:[%s22907_s3 + $0x4f8] sm:$0xff]  ;;  %v11803_v10 = vpack.c.bf16 %v201_v2, %v188_v1  ;;  %v11995_v11 = vpack.c.bf16 %v203_v5, %v190_v3 }
  0x14   :  { %11796 = vmatpush1.bf16.msra.mxu0 %v11795_v50  ;;  %11988 = vmatpush1.bf16.msra.mxu1 %v11987_v51  ;;  %v230_v9 = vld [vmem:[%s22907_s3 + $0x560] sm:$0xff]  ;;  %v11805_v12 = vpack.c.bf16 %v228_v7, %v215_v6  ;;  %v227_v14 = vld [vmem:[%s22907_s3 + $0x548] sm:$0xff]  ;;  %v216_v15 = vld [vmem:[%s22907_s3 + $0x4f0] sm:$0xff] }
  0x15   :  { %11798 = vmatprep.subr.bf16.mxu0 %v11797_v52  ;;  %11990 = vmatprep.subr.bf16.mxu1 %v11989_v56  ;;  %v214_v13 = vld [vmem:[%s22907_s3 + $0x4e0] sm:$0xff]  ;;  %v11997_v16 = vpack.c.bf16 %v230_v9, %v217_v8  ;;  %v229_v17 = vld [vmem:[%s22907_s3 + $0x558] sm:$0xff]  ;;  %v243_v20 = vld [vmem:[%s22907_s3 + $0x5c8] sm:$0xff] }
  0x16   :  { %v241_v18 = vld [vmem:[%s22907_s3 + $0x5b8] sm:$0xff]  ;;  %v254_v19 = vld [vmem:[%s22907_s3 + $0x620] sm:$0xff]  ;;  %v256_v21 = vld [vmem:[%s22907_s3 + $0x630] sm:$0xff]  ;;  %v11807_v22 = vpack.c.bf16 %v227_v14, %v214_v13  ;;  %v11999_v23 = vpack.c.bf16 %v229_v17, %v216_v15 }
  0x17   :  { %v11809_v24 = vpack.c.bf16 %v254_v19, %v241_v18  ;;  %v240_v25 = vld [vmem:[%s22907_s3 + $0x5b0] sm:$0xff]  ;;  %v253_v26 = vld [vmem:[%s22907_s3 + $0x618] sm:$0xff]  ;;  %v242_v27 = vld [vmem:[%s22907_s3 + $0x5c0] sm:$0xff]  ;;  %v12001_v28 = vpack.c.bf16 %v256_v21, %v243_v20 }
  0x18   :  { %11800 = vmatpush1.bf16.msra.mxu0 %v11799_v62  ;;  %11992 = vmatpush1.bf16.msra.mxu1 %v11991_v63  ;;  %v255_v29 = vld [vmem:[%s22907_s3 + $0x628] sm:$0xff]  ;;  %v280_v31 = vld [vmem:[%s22907_s3 + $0x6f0] sm:$0xff]  ;;  %v269_v32 = vld [vmem:[%s22907_s3 + $0x698] sm:$0xff]  ;;  %v11811_v34 = vpack.c.bf16 %v253_v26, %v240_v25  ;;  %v1380_v62 = vunpack.c.0.s8 %v1379_v48 }
  0x19   :  { %11802 = vmatprep.subr.bf16.mxu0 %v11801_v0  ;;  %11994 = vmatprep.subr.bf16.mxu1 %v11993_v4  ;;  %v267_v30 = vld [vmem:[%s22907_s3 + $0x688] sm:$0xff]  ;;  %v282_v33 = vld [vmem:[%s22907_s3 + $0x700] sm:$0xff]  ;;  %v12003_v35 = vpack.c.bf16 %v255_v29, %v242_v27  ;;  %v268_v39 = vld [vmem:[%s22907_s3 + $0x690] sm:$0xff] }
  0x1a   :  { %v11813_v36 = vpack.c.bf16 %v280_v31, %v267_v30  ;;  %v266_v37 = vld [vmem:[%s22907_s3 + $0x680] sm:$0xff]  ;;  %v279_v38 = vld [vmem:[%s22907_s3 + $0x6e8] sm:$0xff]  ;;  %v12005_v40 = vpack.c.bf16 %v282_v33, %v269_v32  ;;  %v281_v41 = vld [vmem:[%s22907_s3 + $0x6f8] sm:$0xff] }
  0x1b   :  { %v293_v42 = vld [vmem:[%s22907_s3 + $0x758] sm:$0xff]  ;;  %v306_v43 = vld [vmem:[%s22907_s3 + $0x7c0] sm:$0xff]  ;;  %v295_v44 = vld [vmem:[%s22907_s3 + $0x768] sm:$0xff]  ;;  %v11815_v49 = vpack.c.bf16 %v279_v38, %v266_v37  ;;  %v12007_v50 = vpack.c.bf16 %v281_v41, %v268_v39 }
  0x1c   :  { %11804 = vmatpush1.bf16.msra.mxu0 %v11803_v10  ;;  %11996 = vmatpush1.bf16.msra.mxu1 %v11995_v11  ;;  %v308_v45 = vld [vmem:[%s22907_s3 + $0x7d0] sm:$0xff]  ;;  %v11817_v51 = vpack.c.bf16 %v306_v43, %v293_v42  ;;  %v305_v53 = vld [vmem:[%s22907_s3 + $0x7b8] sm:$0xff]  ;;  %v294_v54 = vld [vmem:[%s22907_s3 + $0x760] sm:$0xff]  ;;  %v15320_v11 = vsub.s32 %v1380_v62, %v15293_v61 }
  0x1d   :  { %11806 = vmatprep.subr.bf16.mxu0 %v11805_v12  ;;  %11998 = vmatprep.subr.bf16.mxu1 %v11997_v16  ;;  %v292_v52 = vld [vmem:[%s22907_s3 + $0x750] sm:$0xff]  ;;  %v12009_v55 = vpack.c.bf16 %v308_v45, %v295_v44  ;;  %v307_v56 = vld [vmem:[%s22907_s3 + $0x7c8] sm:$0xff]  ;;  %v321_v59 = vld [vmem:[%s22907_s3 + $0x838] sm:$0xff] }
  0x1e   :  { %v319_v57 = vld [vmem:[%s22907_s3 + $0x828] sm:$0xff]  ;;  %v332_v58 = vld [vmem:[%s22907_s3 + $0x890] sm:$0xff]  ;;  %v334_v60 = vld [vmem:[%s22907_s3 + $0x8a0] sm:$0xff]  ;;  %v11819_v63 = vpack.c.bf16 %v305_v53, %v292_v52  ;;  %v12011_v0 = vpack.c.bf16 %v307_v56, %v294_v54 }
  0x1f   :  { %v11821_v1 = vpack.c.bf16 %v332_v58, %v319_v57  ;;  %v318_v2 = vld [vmem:[%s22907_s3 + $0x820] sm:$0xff]  ;;  %v331_v3 = vld [vmem:[%s22907_s3 + $0x888] sm:$0xff]  ;;  %v320_v4 = vld [vmem:[%s22907_s3 + $0x830] sm:$0xff]  ;;  %v12013_v5 = vpack.c.bf16 %v334_v60, %v321_v59 }
  0x20   :  { %11808 = vmatpush1.bf16.msra.mxu0 %v11807_v22  ;;  %12000 = vmatpush1.bf16.msra.mxu1 %v11999_v23  ;;  %v333_v6 = vld [vmem:[%s22907_s3 + $0x898] sm:$0xff]  ;;  %v358_v8 = vld [vmem:[%s22907_s3 + $0x960] sm:$0xff]  ;;  %v347_v9 = vld [vmem:[%s22907_s3 + $0x908] sm:$0xff]  ;;  %v11823_v12 = vpack.c.bf16 %v331_v3, %v318_v2 }
  0x21   :  { %11810 = vmatprep.subr.bf16.mxu0 %v11809_v24  ;;  %12002 = vmatprep.subr.bf16.mxu1 %v12001_v28  ;;  %v345_v7 = vld [vmem:[%s22907_s3 + $0x8f8] sm:$0xff]  ;;  %v360_v10 = vld [vmem:[%s22907_s3 + $0x970] sm:$0xff]  ;;  %v12015_v14 = vpack.c.bf16 %v333_v6, %v320_v4  ;;  %v346_v17 = vld [vmem:[%s22907_s3 + $0x900] sm:$0xff] }
  0x22   :  { %v344_v13 = vld [vmem:[%s22907_s3 + $0x8f0] sm:$0xff]  ;;  %v11825_v15 = vpack.c.bf16 %v358_v8, %v345_v7  ;;  %v357_v16 = vld [vmem:[%s22907_s3 + $0x958] sm:$0xff]  ;;  %v359_v18 = vld [vmem:[%s22907_s3 + $0x968] sm:$0xff]  ;;  %v12017_v19 = vpack.c.bf16 %v360_v10, %v347_v9 }
  0x23   :  { %v371_v20 = vld [vmem:[%s22907_s3 + $0x9c8] sm:$0xff]  ;;  %v384_v21 = vld [vmem:[%s22907_s3 + $0xa30] sm:$0xff]  ;;  %v15343_v22 = vld [vmem:[%s22926_s27] sm:$0xff]  ;;  %v11827_v26 = vpack.c.bf16 %v357_v16, %v344_v13  ;;  %v12019_v27 = vpack.c.bf16 %v359_v18, %v346_v17 }
  0x24   :  { %11812 = vmatpush1.bf16.msra.mxu0 %v11811_v34  ;;  %12004 = vmatpush1.bf16.msra.mxu1 %v12003_v35  ;;  %v373_v23 = vld [vmem:[%s22907_s3 + $0x9d8] sm:$0xff]  ;;  %v386_v24 = vld [vmem:[%s22907_s3 + $0xa40] sm:$0xff]  ;;  %v15353_v25 = vrot.slane %v15343_v22, %v15320_v11  ;;  %v11829_v28 = vpack.c.bf16 %v384_v21, %v371_v20  ;;  %v383_v30 = vld [vmem:[%s22907_s3 + $0xa28] sm:$0xff] }
  0x25   :  { %11814 = vmatprep.subr.bf16.mxu0 %v11813_v36  ;;  %12006 = vmatprep.subr.bf16.mxu1 %v12005_v40  ;;  %v370_v29 = vld [vmem:[%s22907_s3 + $0x9c0] sm:$0xff]  ;;  %v372_v31 = vld [vmem:[%s22907_s3 + $0x9d0] sm:$0xff]  ;;  %v12021_v33 = vpack.c.bf16 %v386_v24, %v373_v23  ;;  %v385_v34 = vld [vmem:[%s22907_s3 + $0xa38] sm:$0xff] }
  0x26   :  { %v15366_v32 = vcombine.high %v15353_v25, %v15353_v25  ;;  %v397_v35 = vld [vmem:[%s22907_s3 + $0xa98] sm:$0xff]  ;;  %v410_v36 = vld [vmem:[%s22907_s3 + $0xb00] sm:$0xff]  ;;  %v399_v37 = vld [vmem:[%s22907_s3 + $0xaa8] sm:$0xff]  ;;  %v11831_v39 = vpack.c.bf16 %v383_v30, %v370_v29  ;;  %v12023_v40 = vpack.c.bf16 %v385_v34, %v372_v31 }
  0x27   :  { %v412_v38 = vld [vmem:[%s22907_s3 + $0xb10] sm:$0xff]  ;;  %v11833_v41 = vpack.c.bf16 %v410_v36, %v397_v35  ;;  %v409_v43 = vld [vmem:[%s22907_s3 + $0xaf8] sm:$0xff]  ;;  %v398_v44 = vld [vmem:[%s22907_s3 + $0xaa0] sm:$0xff] }
  0x28   :  { %11816 = vmatpush1.bf16.msra.mxu0 %v11815_v49  ;;  %12008 = vmatpush1.bf16.msra.mxu1 %v12007_v50  ;;  %v396_v42 = vld [vmem:[%s22907_s3 + $0xa90] sm:$0xff]  ;;  %v12025_v45 = vpack.c.bf16 %v412_v38, %v399_v37  ;;  %v411_v47 = vld [vmem:[%s22907_s3 + $0xb08] sm:$0xff]  ;;  %v425_v50 = vld [vmem:[%s22907_s3 + $0xb78] sm:$0xff] }
  0x29   :  { %11818 = vmatprep.subr.bf16.mxu0 %v11817_v51  ;;  %12010 = vmatprep.subr.bf16.mxu1 %v12009_v55  ;;  %v423_v48 = vld [vmem:[%s22907_s3 + $0xb68] sm:$0xff]  ;;  %v436_v49 = vld [vmem:[%s22907_s3 + $0xbd0] sm:$0xff]  ;;  %v438_v51 = vld [vmem:[%s22907_s3 + $0xbe0] sm:$0xff]  ;;  %v11835_v52 = vpack.c.bf16 %v409_v43, %v396_v42  ;;  %v12027_v53 = vpack.c.bf16 %v411_v47, %v398_v44 }
  0x2a   :  { %1472 = vmatprep.mubr.f32.mxu0 %v15366_v32  ;;  %1685 = vmatprep.mubr.f32.mxu1 %v15366_v32  ;;  %v11837_v54 = vpack.c.bf16 %v436_v49, %v423_v48  ;;  %v422_v55 = vld [vmem:[%s22907_s3 + $0xb60] sm:$0xff]  ;;  %v435_v56 = vld [vmem:[%s22907_s3 + $0xbc8] sm:$0xff]  ;;  %v424_v57 = vld [vmem:[%s22907_s3 + $0xb70] sm:$0xff]  ;;  %v12029_v58 = vpack.c.bf16 %v438_v51, %v425_v50 }
  0x2b   :  { %v437_v59 = vld [vmem:[%s22907_s3 + $0xbd8] sm:$0xff]  ;;  %v462_v62 = vld [vmem:[%s22907_s3 + $0xca0] sm:$0xff]  ;;  %v448_v4 = vld [vmem:[%s22907_s3 + $0xc30] sm:$0xff] }
  0x2c   :  { %11820 = vmatpush1.bf16.msra.mxu0 %v11819_v63  ;;  %12012 = vmatpush1.bf16.msra.mxu1 %v12011_v0  ;;  %v449_v60 = vld [vmem:[%s22907_s3 + $0xc38] sm:$0xff]  ;;  %v451_v63 = vld [vmem:[%s22907_s3 + $0xc48] sm:$0xff]  ;;  %v464_v0 = vld [vmem:[%s22907_s3 + $0xcb0] sm:$0xff]  ;;  %v12031_v2 = vpack.c.bf16 %v437_v59, %v424_v57 }
  0x2d   :  { %11822 = vmatprep.subr.bf16.mxu0 %v11821_v1  ;;  %12014 = vmatprep.subr.bf16.mxu1 %v12013_v5  ;;  %v11839_v1 = vpack.c.bf16 %v435_v56, %v422_v55  ;;  %v11841_v3 = vpack.c.bf16 %v462_v62, %v449_v60  ;;  %v461_v5 = vld [vmem:[%s22907_s3 + $0xc98] sm:$0xff]  ;;  %v450_v6 = vld [vmem:[%s22907_s3 + $0xc40] sm:$0xff]  ;;  %v12033_v7 = vpack.c.bf16 %v464_v0, %v451_v63  ;;  %v463_v8 = vld [vmem:[%s22907_s3 + $0xca8] sm:$0xff] }
  0x2e   :  { %v475_v9 = vld [vmem:[%s22907_s3 + $0xd08] sm:$0xff]  ;;  %v488_v10 = vld [vmem:[%s22907_s3 + $0xd70] sm:$0xff]  ;;  %v477_v13 = vld [vmem:[%s22907_s3 + $0xd18] sm:$0xff]  ;;  %v12035_v16 = vpack.c.bf16 %v463_v8, %v450_v6 }
  0x2f   :  { %v11845_v17 = vpack.c.bf16 %v488_v10, %v475_v9  ;;  %v474_v18 = vld [vmem:[%s22907_s3 + $0xd00] sm:$0xff]  ;;  %v476_v20 = vld [vmem:[%s22907_s3 + $0xd10] sm:$0xff]  ;;  %v501_v23 = vld [vmem:[%s22907_s3 + $0xdd8] sm:$0xff] }
  0x30   :  { %11824 = vmatpush1.bf16.msra.mxu0 %v11823_v12  ;;  %12016 = vmatpush1.bf16.msra.mxu1 %v12015_v14  ;;  %v1377_v12 = vcombine.high %v15343_v22, %v15343_v22  ;;  %v490_v14 = vld [vmem:[%s22907_s3 + $0xd80] sm:$0xff]  ;;  %v489_v22 = vld [vmem:[%s22907_s3 + $0xd78] sm:$0xff]  ;;  %v515_v36 = vld [vmem:[%s22907_s3 + $0xe48] sm:$0xff] }
  0x31   :  { %11826 = vmatprep.subr.bf16.mxu0 %v11825_v15  ;;  %12018 = vmatprep.subr.bf16.mxu1 %v12017_v19  ;;  %v11843_v15 = vpack.c.bf16 %v461_v5, %v448_v4  ;;  %v487_v19 = vld [vmem:[%s22907_s3 + $0xd68] sm:$0xff]  ;;  %v12037_v21 = vpack.c.bf16 %v490_v14, %v477_v13  ;;  %v514_v24 = vld [vmem:[%s22907_s3 + $0xe40] sm:$0xff]  ;;  %v12039_v30 = vpack.c.bf16 %v489_v22, %v476_v20  ;;  %v540_v38 = vld [vmem:[%s22907_s3 + $0xf10] sm:$0xff] }
  0x32   :  { %v11847_v29 = vpack.c.bf16 %v487_v19, %v474_v18  ;;  %v11849_v31 = vpack.c.bf16 %v514_v24, %v501_v23  ;;  %v502_v34 = vld [vmem:[%s22907_s3 + $0xde0] sm:$0xff]  ;;  %v527_v37 = vld [vmem:[%s22907_s3 + $0xea8] sm:$0xff]  ;;  %v528_v48 = vld [vmem:[%s22907_s3 + $0xeb0] sm:$0xff] }
  0x33   :  { %v12043_v43 = vpack.c.bf16 %v515_v36, %v502_v34  ;;  %v11853_v44 = vpack.c.bf16 %v540_v38, %v527_v37  ;;  %v539_v47 = vld [vmem:[%s22907_s3 + $0xf08] sm:$0xff]  ;;  %v541_v50 = vld [vmem:[%s22907_s3 + $0xf18] sm:$0xff]  ;;  %v554_v60 = vld [vmem:[%s22907_s3 + $0xf80] sm:$0xff] }
  0x34   :  { %11828 = vmatpush1.bf16.msra.mxu0 %v11827_v26  ;;  %12020 = vmatpush1.bf16.msra.mxu1 %v12019_v27  ;;  %v15478_v26 = vrot.slane %v1377_v12, %v15320_v11  ;;  %v503_v27 = vld [vmem:[%s22907_s3 + $0xde8] sm:$0xff]  ;;  %v513_v11 = vld [vmem:[%s22907_s3 + $0xe38] sm:$0xff]  ;;  %v12047_v56 = vpack.c.bf16 %v541_v50, %v528_v48  ;;  %v580_v9 = vld [vmem:[%s22907_s3 + $0x1050] sm:$0xff] }
  0x35   :  { %11830 = vmatprep.subr.bf16.mxu0 %v11829_v28  ;;  %12022 = vmatprep.subr.bf16.mxu1 %v12021_v33  ;;  %v516_v28 = vld [vmem:[%s22907_s3 + $0xe50] sm:$0xff]  ;;  %v553_v51 = vld [vmem:[%s22907_s3 + $0xf78] sm:$0xff]  ;;  %v567_v63 = vld [vmem:[%s22907_s3 + $0xfe8] sm:$0xff] }
  0x36   :  { %v500_v33 = vld [vmem:[%s22907_s3 + $0xdd0] sm:$0xff]  ;;  %v12041_v35 = vpack.c.bf16 %v516_v28, %v503_v27  ;;  %v565_v59 = vld [vmem:[%s22907_s3 + $0xfd8] sm:$0xff]  ;;  %v579_v0 = vld [vmem:[%s22907_s3 + $0x1048] sm:$0xff]  ;;  %v12051_v5 = vpack.c.bf16 %v567_v63, %v554_v60 }
  0x37   :  { %v11851_v42 = vpack.c.bf16 %v513_v11, %v500_v33  ;;  %v591_v8 = vld [vmem:[%s22907_s3 + $0x10a8] sm:$0xff]  ;;  %v593_v12 = vld [vmem:[%s22907_s3 + $0x10b8] sm:$0xff]  ;;  %v618_v14 = vld [vmem:[%s22907_s3 + $0x1180] sm:$0xff] }
  0x38   :  { %11832 = vmatpush1.bf16.msra.mxu0 %v11831_v39  ;;  %12024 = vmatpush1.bf16.msra.mxu1 %v12023_v40  ;;  %v15506_v39 = vcombine.high %v15478_v26, %v15478_v26  ;;  %v529_v40 = vld [vmem:[%s22907_s3 + $0xeb8] sm:$0xff]  ;;  %v12055_v18 = vpack.c.bf16 %v593_v12, %v580_v9  ;;  %v604_v20 = vld [vmem:[%s22907_s3 + $0x1110] sm:$0xff]  ;;  %v606_v22 = vld [vmem:[%s22907_s3 + $0x1120] sm:$0xff] }
  0x39   :  { %11834 = vmatprep.subr.bf16.mxu0 %v11833_v41  ;;  %12026 = vmatprep.subr.bf16.mxu1 %v12025_v45  ;;  %v542_v41 = vld [vmem:[%s22907_s3 + $0xf20] sm:$0xff]  ;;  %v605_v13 = vld [vmem:[%s22907_s3 + $0x1118] sm:$0xff]  ;;  %v619_v24 = vld [vmem:[%s22907_s3 + $0x1188] sm:$0xff] }
  0x3a   :  { %v526_v45 = vld [vmem:[%s22907_s3 + $0xea0] sm:$0xff]  ;;  %v12045_v49 = vpack.c.bf16 %v542_v41, %v529_v40  ;;  %v11865_v19 = vpack.c.bf16 %v618_v14, %v605_v13  ;;  %v631_v27 = vld [vmem:[%s22907_s3 + $0x11e8] sm:$0xff]  ;;  %v644_v28 = vld [vmem:[%s22907_s3 + $0x1250] sm:$0xff]  ;;  %v12059_v33 = vpack.c.bf16 %v619_v24, %v606_v22 }
  0x3b   :  { %v11855_v55 = vpack.c.bf16 %v539_v47, %v526_v45  ;;  %v11869_v11 = vpack.c.bf16 %v644_v28, %v631_v27  ;;  %v630_v34 = vld [vmem:[%s22907_s3 + $0x11e0] sm:$0xff]  ;;  %v632_v36 = vld [vmem:[%s22907_s3 + $0x11f0] sm:$0xff]  ;;  %v645_v38 = vld [vmem:[%s22907_s3 + $0x1258] sm:$0xff] }
  0x3c   :  { %11836 = vmatpush1.bf16.msra.mxu0 %v11835_v52  ;;  %12028 = vmatpush1.bf16.msra.mxu1 %v12027_v53  ;;  %v566_v52 = vld [vmem:[%s22907_s3 + $0xfe0] sm:$0xff]  ;;  %v555_v53 = vld [vmem:[%s22907_s3 + $0xf88] sm:$0xff]  ;;  %v657_v40 = vld [vmem:[%s22907_s3 + $0x12b8] sm:$0xff]  ;;  %v12063_v45 = vpack.c.bf16 %v645_v38, %v632_v36 }
  0x3d   :  { %11838 = vmatprep.subr.bf16.mxu0 %v11837_v54  ;;  %12030 = vmatprep.subr.bf16.mxu1 %v12029_v58  ;;  %v568_v54 = vld [vmem:[%s22907_s3 + $0xff0] sm:$0xff]  ;;  %v11857_v57 = vpack.c.bf16 %v566_v52, %v553_v51  ;;  %v670_v41 = vld [vmem:[%s22907_s3 + $0x1320] sm:$0xff]  ;;  %v671_v52 = vld [vmem:[%s22907_s3 + $0x1328] sm:$0xff] }
  0x3e   :  { %v552_v58 = vld [vmem:[%s22907_s3 + $0xf70] sm:$0xff]  ;;  %v12049_v62 = vpack.c.bf16 %v568_v54, %v555_v53  ;;  %v11873_v47 = vpack.c.bf16 %v670_v41, %v657_v40  ;;  %v658_v50 = vld [vmem:[%s22907_s3 + $0x12c0] sm:$0xff]  ;;  %v683_v53 = vld [vmem:[%s22907_s3 + $0x1388] sm:$0xff] }
  0x3f   :  { %v11859_v4 = vpack.c.bf16 %v565_v59, %v552_v58  ;;  %v656_v48 = vld [vmem:[%s22907_s3 + $0x12b0] sm:$0xff]  ;;  %v12067_v58 = vpack.c.bf16 %v671_v52, %v658_v50  ;;  %v682_v60 = vld [vmem:[%s22907_s3 + $0x1380] sm:$0xff]  ;;  %v723_v14 = vld [vmem:[%s22907_s3 + $0x14c8] sm:$0xff] }
  0x40   :  { %11840 = vmatpush1.bf16.msra.mxu0 %v11839_v1  ;;  %12032 = vmatpush1.bf16.msra.mxu1 %v12031_v2  ;;  %v592_v1 = vld [vmem:[%s22907_s3 + $0x10b0] sm:$0xff]  ;;  %v581_v2 = vld [vmem:[%s22907_s3 + $0x1058] sm:$0xff]  ;;  %v710_v12 = vld [vmem:[%s22907_s3 + $0x1460] sm:$0xff] }
  0x41   :  { %11842 = vmatprep.subr.bf16.mxu0 %v11841_v3  ;;  %12034 = vmatprep.subr.bf16.mxu1 %v12033_v7  ;;  %v594_v3 = vld [vmem:[%s22907_s3 + $0x10c0] sm:$0xff]  ;;  %v11861_v6 = vpack.c.bf16 %v592_v1, %v579_v0  ;;  %v696_v54 = vld [vmem:[%s22907_s3 + $0x13f0] sm:$0xff]  ;;  %v697_v1 = vld [vmem:[%s22907_s3 + $0x13f8] sm:$0xff] }
  0x42   :  { %v578_v7 = vld [vmem:[%s22907_s3 + $0x1040] sm:$0xff]  ;;  %v12053_v10 = vpack.c.bf16 %v594_v3, %v581_v2  ;;  %v11877_v59 = vpack.c.bf16 %v696_v54, %v683_v53  ;;  %v684_v63 = vld [vmem:[%s22907_s3 + $0x1390] sm:$0xff]  ;;  %v709_v2 = vld [vmem:[%s22907_s3 + $0x1458] sm:$0xff] }
  0x43   :  { %v722_v3 = vld [vmem:[%s22907_s3 + $0x14c0] sm:$0xff]  ;;  %v708_v9 = vld [vmem:[%s22907_s3 + $0x1450] sm:$0xff]  ;;  %v749_v28 = vld [vmem:[%s22907_s3 + $0x1598] sm:$0xff] }
  0x44   :  { %11844 = vmatpush1.bf16.msra.mxu0 %v11843_v15  ;;  %12036 = vmatpush1.bf16.msra.mxu1 %v12035_v16  ;;  %v607_v15 = vld [vmem:[%s22907_s3 + $0x1128] sm:$0xff]  ;;  %v620_v16 = vld [vmem:[%s22907_s3 + $0x1190] sm:$0xff]  ;;  %v734_v22 = vld [vmem:[%s22907_s3 + $0x1520] sm:$0xff] }
  0x45   :  { %11846 = vmatprep.subr.bf16.mxu0 %v11845_v17  ;;  %12038 = vmatprep.subr.bf16.mxu1 %v12037_v21  ;;  %v11863_v17 = vpack.c.bf16 %v591_v8, %v578_v7  ;;  %v617_v21 = vld [vmem:[%s22907_s3 + $0x1178] sm:$0xff]  ;;  %v12057_v23 = vpack.c.bf16 %v620_v16, %v607_v15  ;;  %v12071_v7 = vpack.c.bf16 %v697_v1, %v684_v63  ;;  %v735_v15 = vld [vmem:[%s22907_s3 + $0x1528] sm:$0xff]  ;;  %v748_v16 = vld [vmem:[%s22907_s3 + $0x1590] sm:$0xff] }
  0x46   :  { %v11881_v8 = vpack.c.bf16 %v722_v3, %v709_v2  ;;  %v736_v24 = vld [vmem:[%s22907_s3 + $0x1530] sm:$0xff]  ;;  %v762_v38 = vld [vmem:[%s22907_s3 + $0x1600] sm:$0xff]  ;;  %v775_v41 = vld [vmem:[%s22907_s3 + $0x1668] sm:$0xff] }
  0x47   :  { %1473 = vmatmul.mubr.f32.vlgmr.msra.gmra.mrb[0].mxu0 %v15353_v25  ;;  %1686 = vmatmul.mubr.f32.vlgmr.msra.gmra.mrb[0].mxu1 %v15353_v25  ;;  %v760_v36 = vld [vmem:[%s22907_s3 + $0x15f0] sm:$0xff]  ;;  %v786_v50 = vld [vmem:[%s22907_s3 + $0x16c0] sm:$0xff]  ;;  %v801_v54 = vld [vmem:[%s22907_s3 + $0x1738] sm:$0xff] }
  0x48   :  { %11848 = vmatpush1.bf16.msra.mxu0 %v11847_v29  ;;  %12040 = vmatpush1.bf16.msra.mxu1 %v12039_v30  ;;  %v633_v29 = vld [vmem:[%s22907_s3 + $0x11f8] sm:$0xff]  ;;  %v646_v30 = vld [vmem:[%s22907_s3 + $0x1260] sm:$0xff]  ;;  %v788_v52 = vld [vmem:[%s22907_s3 + $0x16d0] sm:$0xff] }
  0x49   :  { %11850 = vmatprep.subr.bf16.mxu0 %v11849_v31  ;;  %12042 = vmatprep.subr.bf16.mxu1 %v12041_v35  ;;  %v11867_v31 = vpack.c.bf16 %v617_v21, %v604_v20  ;;  %v643_v35 = vld [vmem:[%s22907_s3 + $0x1248] sm:$0xff]  ;;  %v12061_v37 = vpack.c.bf16 %v646_v30, %v633_v29  ;;  %v12075_v20 = vpack.c.bf16 %v723_v14, %v710_v12  ;;  %v761_v29 = vld [vmem:[%s22907_s3 + $0x15f8] sm:$0xff]  ;;  %v774_v30 = vld [vmem:[%s22907_s3 + $0x1660] sm:$0xff] }
  0x4a   :  { %1543 = vmatprep.mubr.f32.mxu0 %v15506_v39  ;;  %1756 = vmatprep.mubr.f32.mxu1 %v15506_v39  ;;  %v11885_v21 = vpack.c.bf16 %v748_v16, %v735_v15  ;;  %v812_v63 = vld [vmem:[%s22907_s3 + $0x1790] sm:$0xff]  ;;  %v814_v1 = vld [vmem:[%s22907_s3 + $0x17a0] sm:$0xff]  ;;  %v827_v3 = vld [vmem:[%s22907_s3 + $0x1808] sm:$0xff] }
  0x4b   :  { %v838_v12 = vld [vmem:[%s22907_s3 + $0x1860] sm:$0xff]  ;;  %v840_v14 = vld [vmem:[%s22907_s3 + $0x1870] sm:$0xff]  ;;  %v853_v16 = vld [vmem:[%s22907_s3 + $0x18d8] sm:$0xff] }
  0x4c   :  { %11852 = vmatpush1.bf16.msra.mxu0 %v11851_v42  ;;  %12044 = vmatpush1.bf16.msra.mxu1 %v12043_v43  ;;  %v659_v42 = vld [vmem:[%s22907_s3 + $0x12c8] sm:$0xff]  ;;  %v672_v43 = vld [vmem:[%s22907_s3 + $0x1330] sm:$0xff] }
  0x4d   :  { %11854 = vmatprep.subr.bf16.mxu0 %v11853_v44  ;;  %12046 = vmatprep.subr.bf16.mxu1 %v12045_v49  ;;  %v11871_v44 = vpack.c.bf16 %v643_v35, %v630_v34  ;;  %v669_v49 = vld [vmem:[%s22907_s3 + $0x1318] sm:$0xff]  ;;  %v12065_v51 = vpack.c.bf16 %v672_v43, %v659_v42  ;;  %v12079_v34 = vpack.c.bf16 %v749_v28, %v736_v24  ;;  %v787_v42 = vld [vmem:[%s22907_s3 + $0x16c8] sm:$0xff]  ;;  %v800_v43 = vld [vmem:[%s22907_s3 + $0x1730] sm:$0xff] }
  0x4e   :  { %v11889_v35 = vpack.c.bf16 %v774_v30, %v761_v29  ;;  %v864_v24 = vld [vmem:[%s22907_s3 + $0x1930] sm:$0xff]  ;;  %v866_v28 = vld [vmem:[%s22907_s3 + $0x1940] sm:$0xff]  ;;  %v879_v30 = vld [vmem:[%s22907_s3 + $0x19a8] sm:$0xff] }
  0x50   :  { %11856 = vmatpush1.bf16.msra.mxu0 %v11855_v55  ;;  %12048 = vmatpush1.bf16.msra.mxu1 %v12047_v56  ;;  %v685_v55 = vld [vmem:[%s22907_s3 + $0x1398] sm:$0xff]  ;;  %v698_v56 = vld [vmem:[%s22907_s3 + $0x1400] sm:$0xff] }
  0x51   :  { %11858 = vmatprep.subr.bf16.mxu0 %v11857_v57  ;;  %12050 = vmatprep.subr.bf16.mxu1 %v12049_v62  ;;  %v11875_v57 = vpack.c.bf16 %v669_v49, %v656_v48  ;;  %v695_v62 = vld [vmem:[%s22907_s3 + $0x13e8] sm:$0xff]  ;;  %v12069_v0 = vpack.c.bf16 %v698_v56, %v685_v55  ;;  %v12083_v48 = vpack.c.bf16 %v775_v41, %v762_v38  ;;  %v813_v55 = vld [vmem:[%s22907_s3 + $0x1798] sm:$0xff]  ;;  %v826_v56 = vld [vmem:[%s22907_s3 + $0x1800] sm:$0xff] }
  0x52   :  { %v11893_v49 = vpack.c.bf16 %v800_v43, %v787_v42  ;;  %v890_v38 = vld [vmem:[%s22907_s3 + $0x1a00] sm:$0xff]  ;;  %v892_v41 = vld [vmem:[%s22907_s3 + $0x1a10] sm:$0xff]  ;;  %v905_v43 = vld [vmem:[%s22907_s3 + $0x1a78] sm:$0xff] }
  0x54   :  { %11860 = vmatpush1.bf16.msra.mxu0 %v11859_v4  ;;  %12052 = vmatpush1.bf16.msra.mxu1 %v12051_v5  ;;  %v711_v4 = vld [vmem:[%s22907_s3 + $0x1468] sm:$0xff]  ;;  %v724_v5 = vld [vmem:[%s22907_s3 + $0x14d0] sm:$0xff] }
  0x55   :  { %11862 = vmatprep.subr.bf16.mxu0 %v11861_v6  ;;  %12054 = vmatprep.subr.bf16.mxu1 %v12053_v10  ;;  %v11879_v6 = vpack.c.bf16 %v695_v62, %v682_v60  ;;  %v721_v10 = vld [vmem:[%s22907_s3 + $0x14b8] sm:$0xff]  ;;  %v12073_v13 = vpack.c.bf16 %v724_v5, %v711_v4  ;;  %v12087_v60 = vpack.c.bf16 %v801_v54, %v788_v52  ;;  %v839_v4 = vld [vmem:[%s22907_s3 + $0x1868] sm:$0xff]  ;;  %v852_v5 = vld [vmem:[%s22907_s3 + $0x18d0] sm:$0xff] }
  0x56   :  { %v11897_v62 = vpack.c.bf16 %v826_v56, %v813_v55  ;;  %v929_v54 = vld [vmem:[%s22907_s3 + $0x1b38] sm:$0xff]  ;;  %v918_v55 = vld [vmem:[%s22907_s3 + $0x1ae0] sm:$0xff] }
  0x58   :  { %11864 = vmatpush1.bf16.msra.mxu0 %v11863_v17  ;;  %12056 = vmatpush1.bf16.msra.mxu1 %v12055_v18  ;;  %v737_v17 = vld [vmem:[%s22907_s3 + $0x1538] sm:$0xff]  ;;  %v750_v18 = vld [vmem:[%s22907_s3 + $0x15a0] sm:$0xff] }
  0x59   :  { %11866 = vmatprep.subr.bf16.mxu0 %v11865_v19  ;;  %12058 = vmatprep.subr.bf16.mxu1 %v12057_v23  ;;  %v11883_v19 = vpack.c.bf16 %v721_v10, %v708_v9  ;;  %v747_v23 = vld [vmem:[%s22907_s3 + $0x1588] sm:$0xff]  ;;  %v12077_v27 = vpack.c.bf16 %v750_v18, %v737_v17  ;;  %v12091_v9 = vpack.c.bf16 %v827_v3, %v814_v1  ;;  %v865_v17 = vld [vmem:[%s22907_s3 + $0x1938] sm:$0xff]  ;;  %v878_v18 = vld [vmem:[%s22907_s3 + $0x19a0] sm:$0xff] }
  0x5a   :  { %v11901_v10 = vpack.c.bf16 %v852_v5, %v839_v4  ;;  %v942_v3 = vld [vmem:[%s22907_s3 + $0x1ba0] sm:$0xff]  ;;  %v955_v4 = vld [vmem:[%s22907_s3 + $0x1c08] sm:$0xff]  ;;  %v944_v5 = vld [vmem:[%s22907_s3 + $0x1bb0] sm:$0xff] }
  0x5c   :  { %11868 = vmatpush1.bf16.msra.mxu0 %v11867_v31  ;;  %12060 = vmatpush1.bf16.msra.mxu1 %v12059_v33  ;;  %v763_v31 = vld [vmem:[%s22907_s3 + $0x1608] sm:$0xff]  ;;  %v776_v33 = vld [vmem:[%s22907_s3 + $0x1670] sm:$0xff] }
  0x5d   :  { %11870 = vmatprep.subr.bf16.mxu0 %v11869_v11  ;;  %12062 = vmatprep.subr.bf16.mxu1 %v12061_v37  ;;  %v11887_v11 = vpack.c.bf16 %v747_v23, %v734_v22  ;;  %v773_v37 = vld [vmem:[%s22907_s3 + $0x1658] sm:$0xff]  ;;  %v12081_v40 = vpack.c.bf16 %v776_v33, %v763_v31  ;;  %v12095_v22 = vpack.c.bf16 %v853_v16, %v840_v14  ;;  %v891_v31 = vld [vmem:[%s22907_s3 + $0x1a08] sm:$0xff]  ;;  %v904_v33 = vld [vmem:[%s22907_s3 + $0x1a70] sm:$0xff] }
  0x5e   :  { %v11905_v23 = vpack.c.bf16 %v878_v18, %v865_v17  ;;  %v968_v16 = vld [vmem:[%s22907_s3 + $0x1c70] sm:$0xff]  ;;  %v981_v17 = vld [vmem:[%s22907_s3 + $0x1cd8] sm:$0xff]  ;;  %v970_v18 = vld [vmem:[%s22907_s3 + $0x1c80] sm:$0xff] }
  0x60   :  { %11872 = vmatpush1.bf16.msra.mxu0 %v11871_v44  ;;  %12064 = vmatpush1.bf16.msra.mxu1 %v12063_v45  ;;  %v789_v44 = vld [vmem:[%s22907_s3 + $0x16d8] sm:$0xff]  ;;  %v802_v45 = vld [vmem:[%s22907_s3 + $0x1740] sm:$0xff] }
  0x61   :  { %11874 = vmatprep.subr.bf16.mxu0 %v11873_v47  ;;  %12066 = vmatprep.subr.bf16.mxu1 %v12065_v51  ;;  %v11891_v47 = vpack.c.bf16 %v773_v37, %v760_v36  ;;  %v799_v51 = vld [vmem:[%s22907_s3 + $0x1728] sm:$0xff]  ;;  %v12085_v53 = vpack.c.bf16 %v802_v45, %v789_v44  ;;  %v12099_v36 = vpack.c.bf16 %v879_v30, %v866_v28  ;;  %v917_v44 = vld [vmem:[%s22907_s3 + $0x1ad8] sm:$0xff]  ;;  %v930_v45 = vld [vmem:[%s22907_s3 + $0x1b40] sm:$0xff] }
  0x62   :  { %v11909_v37 = vpack.c.bf16 %v904_v33, %v891_v31  ;;  %v11913_v52 = vpack.c.bf16 %v930_v45, %v917_v44  ;;  %v994_v30 = vld [vmem:[%s22907_s3 + $0x1d40] sm:$0xff]  ;;  %v1007_v31 = vld [vmem:[%s22907_s3 + $0x1da8] sm:$0xff]  ;;  %v996_v33 = vld [vmem:[%s22907_s3 + $0x1d50] sm:$0xff] }
  0x63   :  { %v1033_v44 = vld [vmem:[%s22907_s3 + $0x1e78] sm:$0xff]  ;;  %v1022_v45 = vld [vmem:[%s22907_s3 + $0x1e20] sm:$0xff] }
  0x64   :  { %11876 = vmatpush1.bf16.msra.mxu0 %v11875_v57  ;;  %12068 = vmatpush1.bf16.msra.mxu1 %v12067_v58  ;;  %v815_v57 = vld [vmem:[%s22907_s3 + $0x17a8] sm:$0xff]  ;;  %v828_v58 = vld [vmem:[%s22907_s3 + $0x1810] sm:$0xff] }
  0x65   :  { %11878 = vmatprep.subr.bf16.mxu0 %v11877_v59  ;;  %12070 = vmatprep.subr.bf16.mxu1 %v12069_v0  ;;  %v11895_v59 = vpack.c.bf16 %v799_v51, %v786_v50  ;;  %v825_v0 = vld [vmem:[%s22907_s3 + $0x17f8] sm:$0xff]  ;;  %v12089_v2 = vpack.c.bf16 %v828_v58, %v815_v57  ;;  %v15881_v50 = vld.sshfl [vmem:[%s22926_s27 + $0x8] sm:$0x33 pattern:$0x76325410]  ;;  %v12103_v51 = vpack.c.bf16 %v905_v43, %v892_v41  ;;  %v1020_v43 = vld [vmem:[%s22907_s3 + $0x1e10] sm:$0xff] }
  0x66   :  { %v931_v57 = vld [vmem:[%s22907_s3 + $0x1b48] sm:$0xff] }
  0x67   :  { %v943_v58 = vld [vmem:[%s22907_s3 + $0x1ba8] sm:$0xff]  ;;  %v12107_v1 = vpack.c.bf16 %v931_v57, %v918_v55  ;;  %v1046_v57 = vld [vmem:[%s22907_s3 + $0x1ee0] sm:$0xff] }
  0x68   :  { %11880 = vmatpush1.bf16.msra.mxu0 %v11879_v6  ;;  %12072 = vmatpush1.bf16.msra.mxu1 %v12071_v7  ;;  %v841_v6 = vld [vmem:[%s22907_s3 + $0x1878] sm:$0xff]  ;;  %v854_v7 = vld [vmem:[%s22907_s3 + $0x18e0] sm:$0xff] }
  0x69   :  { %11882 = vmatprep.subr.bf16.mxu0 %v11881_v8  ;;  %12074 = vmatprep.subr.bf16.mxu1 %v12073_v13  ;;  %v11899_v8 = vpack.c.bf16 %v825_v0, %v812_v63  ;;  %v851_v13 = vld [vmem:[%s22907_s3 + $0x18c8] sm:$0xff]  ;;  %v12093_v15 = vpack.c.bf16 %v854_v7, %v841_v6  ;;  %v958_v63 = vld [vmem:[%s22907_s3 + $0x1c20] sm:$0xff]  ;;  %v957_v7 = vld [vmem:[%s22907_s3 + $0x1c18] sm:$0xff] }
  0x6a   :  { %v12111_v14 = vpack.c.bf16 %v957_v7, %v944_v5  ;;  %v1072_v7 = vld [vmem:[%s22907_s3 + $0x1fb0] sm:$0xff] }
  0x6c   :  { %11884 = vmatpush1.bf16.msra.mxu0 %v11883_v19  ;;  %12076 = vmatpush1.bf16.msra.mxu1 %v12075_v20  ;;  %v867_v19 = vld [vmem:[%s22907_s3 + $0x1948] sm:$0xff]  ;;  %v880_v20 = vld [vmem:[%s22907_s3 + $0x19b0] sm:$0xff] }
  0x6d   :  { %11886 = vmatprep.subr.bf16.mxu0 %v11885_v21  ;;  %12078 = vmatprep.subr.bf16.mxu1 %v12077_v27  ;;  %v11903_v21 = vpack.c.bf16 %v851_v13, %v838_v12  ;;  %v877_v27 = vld [vmem:[%s22907_s3 + $0x1998] sm:$0xff]  ;;  %v12097_v29 = vpack.c.bf16 %v880_v20, %v867_v19  ;;  %v984_v12 = vld [vmem:[%s22907_s3 + $0x1cf0] sm:$0xff]  ;;  %v11919_v13 = vpack.c.bf16 %v955_v4, %v942_v3  ;;  %v983_v20 = vld [vmem:[%s22907_s3 + $0x1ce8] sm:$0xff] }
  0x6e   :  { %v12115_v28 = vpack.c.bf16 %v983_v20, %v970_v18  ;;  %v1088_v3 = vld [vmem:[%s22907_s3 + $0x2030] sm:$0xff]  ;;  %v1098_v20 = vld [vmem:[%s22907_s3 + $0x2080] sm:$0xff] }
  0x70   :  { %11888 = vmatpush1.bf16.msra.mxu0 %v11887_v11  ;;  %12080 = vmatpush1.bf16.msra.mxu1 %v12079_v34  ;;  %v893_v11 = vld [vmem:[%s22907_s3 + $0x1a18] sm:$0xff]  ;;  %v906_v34 = vld [vmem:[%s22907_s3 + $0x1a80] sm:$0xff] }
  0x71   :  { %11890 = vmatprep.subr.bf16.mxu0 %v11889_v35  ;;  %12082 = vmatprep.subr.bf16.mxu1 %v12081_v40  ;;  %v11907_v35 = vpack.c.bf16 %v877_v27, %v864_v24  ;;  %v903_v40 = vld [vmem:[%s22907_s3 + $0x1a68] sm:$0xff]  ;;  %v12101_v42 = vpack.c.bf16 %v906_v34, %v893_v11  ;;  %v1010_v24 = vld [vmem:[%s22907_s3 + $0x1dc0] sm:$0xff]  ;;  %v11923_v27 = vpack.c.bf16 %v981_v17, %v968_v16  ;;  %v1009_v34 = vld [vmem:[%s22907_s3 + $0x1db8] sm:$0xff] }
  0x72   :  { %v12119_v41 = vpack.c.bf16 %v1009_v34, %v996_v33  ;;  %v1114_v16 = vld [vmem:[%s22907_s3 + $0x2100] sm:$0xff]  ;;  %v1124_v34 = vld [vmem:[%s22907_s3 + $0x2150] sm:$0xff] }
  0x74   :  { %11892 = vmatpush1.bf16.msra.mxu0 %v11891_v47  ;;  %12084 = vmatpush1.bf16.msra.mxu1 %v12083_v48  ;;  %v919_v47 = vld [vmem:[%s22907_s3 + $0x1ae8] sm:$0xff]  ;;  %v932_v48 = vld [vmem:[%s22907_s3 + $0x1b50] sm:$0xff] }
  0x75   :  { %11894 = vmatprep.subr.bf16.mxu0 %v11893_v49  ;;  %12086 = vmatprep.subr.bf16.mxu1 %v12085_v53  ;;  %v11911_v49 = vpack.c.bf16 %v903_v40, %v890_v38  ;;  %v916_v53 = vld [vmem:[%s22907_s3 + $0x1ad0] sm:$0xff]  ;;  %v12105_v56 = vpack.c.bf16 %v932_v48, %v919_v47  ;;  %v11927_v40 = vpack.c.bf16 %v1007_v31, %v994_v30  ;;  %v1035_v48 = vld [vmem:[%s22907_s3 + $0x1e88] sm:$0xff] }
  0x76   :  { %v11915_v0 = vpack.c.bf16 %v929_v54, %v916_v53  ;;  %v1036_v38 = vld [vmem:[%s22907_s3 + $0x1e90] sm:$0xff]  ;;  %v1062_v53 = vld [vmem:[%s22907_s3 + $0x1f60] sm:$0xff]  ;;  %v11931_v54 = vpack.c.bf16 %v1033_v44, %v1020_v43  ;;  %v12123_v55 = vpack.c.bf16 %v1035_v48, %v1022_v45 }
  0x77   :  { %v1140_v30 = vld [vmem:[%s22907_s3 + $0x21d0] sm:$0xff]  ;;  %v1166_v43 = vld [vmem:[%s22907_s3 + $0x22a0] sm:$0xff] }
  0x78   :  { %11896 = vmatpush1.bf16.msra.mxu0 %v11895_v59  ;;  %12088 = vmatpush1.bf16.msra.mxu1 %v12087_v60  ;;  %v956_v59 = vld [vmem:[%s22907_s3 + $0x1c10] sm:$0xff]  ;;  %v15903_v60 = vcombine.high %v15881_v50, %v15881_v50  ;;  %v1150_v48 = vld [vmem:[%s22907_s3 + $0x2220] sm:$0xff] }
  0x79   :  { %11898 = vmatprep.subr.bf16.mxu0 %v11897_v62  ;;  %12090 = vmatprep.subr.bf16.mxu1 %v12089_v2  ;;  %v945_v62 = vld [vmem:[%s22907_s3 + $0x1bb8] sm:$0xff]  ;;  %v11917_v2 = vpack.c.bf16 %v956_v59, %v943_v58  ;;  %v1059_v58 = vld [vmem:[%s22907_s3 + $0x1f48] sm:$0xff]  ;;  %v1048_v59 = vld [vmem:[%s22907_s3 + $0x1ef0] sm:$0xff] }
  0x7a   :  { %v12109_v6 = vpack.c.bf16 %v958_v63, %v945_v62  ;;  %v1061_v63 = vld [vmem:[%s22907_s3 + $0x1f58] sm:$0xff]  ;;  %v11935_v4 = vpack.c.bf16 %v1059_v58, %v1046_v57  ;;  %v1192_v57 = vld [vmem:[%s22907_s3 + $0x2370] sm:$0xff] }
  0x7b   :  { %v12127_v5 = vpack.c.bf16 %v1061_v63, %v1048_v59  ;;  %v1176_v63 = vld [vmem:[%s22907_s3 + $0x22f0] sm:$0xff] }
  0x7c   :  { %11900 = vmatpush1.bf16.msra.mxu0 %v11899_v8  ;;  %12092 = vmatpush1.bf16.msra.mxu1 %v12091_v9  ;;  %v969_v8 = vld [vmem:[%s22907_s3 + $0x1c78] sm:$0xff]  ;;  %v982_v9 = vld [vmem:[%s22907_s3 + $0x1ce0] sm:$0xff] }
  0x7d   :  { %11902 = vmatprep.subr.bf16.mxu0 %v11901_v10  ;;  %12094 = vmatprep.subr.bf16.mxu1 %v12093_v15  ;;  %v971_v10 = vld [vmem:[%s22907_s3 + $0x1c88] sm:$0xff]  ;;  %v11921_v15 = vpack.c.bf16 %v982_v9, %v969_v8  ;;  %v1085_v8 = vld [vmem:[%s22907_s3 + $0x2018] sm:$0xff]  ;;  %v1074_v9 = vld [vmem:[%s22907_s3 + $0x1fc0] sm:$0xff] }
  0x7e   :  { %v12113_v19 = vpack.c.bf16 %v984_v12, %v971_v10  ;;  %v1087_v12 = vld [vmem:[%s22907_s3 + $0x2028] sm:$0xff]  ;;  %v11939_v17 = vpack.c.bf16 %v1085_v8, %v1072_v7  ;;  %v1218_v7 = vld [vmem:[%s22907_s3 + $0x2440] sm:$0xff] }
  0x7f   :  { %v12131_v18 = vpack.c.bf16 %v1087_v12, %v1074_v9  ;;  %v1202_v12 = vld [vmem:[%s22907_s3 + $0x23c0] sm:$0xff] }
  0x80   :  { %11904 = vmatpush1.bf16.msra.mxu0 %v11903_v21  ;;  %12096 = vmatpush1.bf16.msra.mxu1 %v12095_v22  ;;  %v995_v21 = vld [vmem:[%s22907_s3 + $0x1d48] sm:$0xff]  ;;  %v1008_v22 = vld [vmem:[%s22907_s3 + $0x1db0] sm:$0xff] }
  0x81   :  { %11906 = vmatprep.subr.bf16.mxu0 %v11905_v23  ;;  %12098 = vmatprep.subr.bf16.mxu1 %v12097_v29  ;;  %v997_v23 = vld [vmem:[%s22907_s3 + $0x1d58] sm:$0xff]  ;;  %v11925_v29 = vpack.c.bf16 %v1008_v22, %v995_v21  ;;  %v1111_v21 = vld [vmem:[%s22907_s3 + $0x20e8] sm:$0xff]  ;;  %v1100_v22 = vld [vmem:[%s22907_s3 + $0x2090] sm:$0xff] }
  0x82   :  { %v12117_v11 = vpack.c.bf16 %v1010_v24, %v997_v23  ;;  %v1113_v24 = vld [vmem:[%s22907_s3 + $0x20f8] sm:$0xff]  ;;  %v11943_v31 = vpack.c.bf16 %v1111_v21, %v1098_v20  ;;  %v1244_v20 = vld [vmem:[%s22907_s3 + $0x2510] sm:$0xff] }
  0x83   :  { %v12135_v33 = vpack.c.bf16 %v1113_v24, %v1100_v22  ;;  %v1228_v24 = vld [vmem:[%s22907_s3 + $0x2490] sm:$0xff] }
  0x84   :  { %11908 = vmatpush1.bf16.msra.mxu0 %v11907_v35  ;;  %12100 = vmatpush1.bf16.msra.mxu1 %v12099_v36  ;;  %v1021_v35 = vld [vmem:[%s22907_s3 + $0x1e18] sm:$0xff]  ;;  %v1034_v36 = vld [vmem:[%s22907_s3 + $0x1e80] sm:$0xff] }
  0x85   :  { %11910 = vmatprep.subr.bf16.mxu0 %v11909_v37  ;;  %12102 = vmatprep.subr.bf16.mxu1 %v12101_v42  ;;  %v1023_v37 = vld [vmem:[%s22907_s3 + $0x1e28] sm:$0xff]  ;;  %v11929_v42 = vpack.c.bf16 %v1034_v36, %v1021_v35  ;;  %v1137_v35 = vld [vmem:[%s22907_s3 + $0x21b8] sm:$0xff]  ;;  %v1126_v36 = vld [vmem:[%s22907_s3 + $0x2160] sm:$0xff] }
  0x86   :  { %v12121_v47 = vpack.c.bf16 %v1036_v38, %v1023_v37  ;;  %v1139_v38 = vld [vmem:[%s22907_s3 + $0x21c8] sm:$0xff]  ;;  %v11947_v44 = vpack.c.bf16 %v1137_v35, %v1124_v34  ;;  %v1270_v34 = vld [vmem:[%s22907_s3 + $0x25e0] sm:$0xff] }
  0x87   :  { %1544 = vmatmul.mubr.f32.vlgmr.msra.gmra.mrb[0].mxu0 %v15478_v26  ;;  %1757 = vmatmul.mubr.f32.vlgmr.msra.gmra.mrb[0].mxu1 %v15478_v26  ;;  %v12139_v45 = vpack.c.bf16 %v1139_v38, %v1126_v36  ;;  %v1254_v38 = vld [vmem:[%s22907_s3 + $0x2560] sm:$0xff] }
  0x88   :  { %11912 = vmatpush1.bf16.msra.mxu0 %v11911_v49  ;;  %12104 = vmatpush1.bf16.msra.mxu1 %v12103_v51  ;;  %v1047_v49 = vld [vmem:[%s22907_s3 + $0x1ee8] sm:$0xff]  ;;  %v1060_v51 = vld [vmem:[%s22907_s3 + $0x1f50] sm:$0xff] }
  0x89   :  { %11914 = vmatprep.subr.bf16.mxu0 %v11913_v52  ;;  %12106 = vmatprep.subr.bf16.mxu1 %v12105_v56  ;;  %v1049_v52 = vld [vmem:[%s22907_s3 + $0x1ef8] sm:$0xff]  ;;  %v11933_v56 = vpack.c.bf16 %v1060_v51, %v1047_v49  ;;  %v1163_v49 = vld [vmem:[%s22907_s3 + $0x2288] sm:$0xff]  ;;  %v1152_v51 = vld [vmem:[%s22907_s3 + $0x2230] sm:$0xff] }
  0x8a   :  { %1614 = vmatprep.mubr.f32.mxu0 %v15903_v60  ;;  %1827 = vmatprep.mubr.f32.mxu1 %v15903_v60  ;;  %v12125_v62 = vpack.c.bf16 %v1062_v53, %v1049_v52  ;;  %v1165_v53 = vld [vmem:[%s22907_s3 + $0x2298] sm:$0xff]  ;;  %v11951_v58 = vpack.c.bf16 %v1163_v49, %v1150_v48  ;;  %v1296_v48 = vld [vmem:[%s22907_s3 + $0x26b0] sm:$0xff] }
  0x8b   :  { %v12143_v59 = vpack.c.bf16 %v1165_v53, %v1152_v51  ;;  %v1280_v53 = vld [vmem:[%s22907_s3 + $0x2630] sm:$0xff] }
  0x8c   :  { %11916 = vmatpush1.bf16.msra.mxu0 %v11915_v0  ;;  %12108 = vmatpush1.bf16.msra.mxu1 %v12107_v1  ;;  %v1073_v0 = vld [vmem:[%s22907_s3 + $0x1fb8] sm:$0xff]  ;;  %v1086_v1 = vld [vmem:[%s22907_s3 + $0x2020] sm:$0xff] }
  0x8d   :  { %11918 = vmatprep.subr.bf16.mxu0 %v11917_v2  ;;  %12110 = vmatprep.subr.bf16.mxu1 %v12109_v6  ;;  %v1075_v2 = vld [vmem:[%s22907_s3 + $0x1fc8] sm:$0xff]  ;;  %v11937_v6 = vpack.c.bf16 %v1086_v1, %v1073_v0  ;;  %v1189_v0 = vld [vmem:[%s22907_s3 + $0x2358] sm:$0xff]  ;;  %v1178_v1 = vld [vmem:[%s22907_s3 + $0x2300] sm:$0xff] }
  0x8e   :  { %v12129_v10 = vpack.c.bf16 %v1088_v3, %v1075_v2  ;;  %v1191_v3 = vld [vmem:[%s22907_s3 + $0x2368] sm:$0xff]  ;;  %v11955_v8 = vpack.c.bf16 %v1189_v0, %v1176_v63  ;;  %v78_v63 = vld [vmem:[%s22907_s3 + $0xa0] sm:$0xff] }
  0x8f   :  { %v12147_v9 = vpack.c.bf16 %v1191_v3, %v1178_v1  ;;  %v62_v3 = vld [vmem:[%s22907_s3 + $0x20] sm:$0xff] }
  0x90   :  { %11920 = vmatpush1.bf16.msra.mxu0 %v11919_v13  ;;  %12112 = vmatpush1.bf16.msra.mxu1 %v12111_v14  ;;  %v1099_v13 = vld [vmem:[%s22907_s3 + $0x2088] sm:$0xff]  ;;  %v1112_v14 = vld [vmem:[%s22907_s3 + $0x20f0] sm:$0xff] }
  0x91   :  { %11922 = vmatprep.subr.bf16.mxu0 %v11921_v15  ;;  %12114 = vmatprep.subr.bf16.mxu1 %v12113_v19  ;;  %v1101_v15 = vld [vmem:[%s22907_s3 + $0x2098] sm:$0xff]  ;;  %v11941_v19 = vpack.c.bf16 %v1112_v14, %v1099_v13  ;;  %v1215_v13 = vld [vmem:[%s22907_s3 + $0x2428] sm:$0xff]  ;;  %v1204_v14 = vld [vmem:[%s22907_s3 + $0x23d0] sm:$0xff] }
  0x92   :  { %v12133_v23 = vpack.c.bf16 %v1114_v16, %v1101_v15  ;;  %v1217_v16 = vld [vmem:[%s22907_s3 + $0x2438] sm:$0xff]  ;;  %v11959_v21 = vpack.c.bf16 %v1215_v13, %v1202_v12  ;;  %v104_v12 = vld [vmem:[%s22907_s3 + $0x170] sm:$0xff] }
  0x93   :  { %v12151_v22 = vpack.c.bf16 %v1217_v16, %v1204_v14  ;;  %v88_v16 = vld [vmem:[%s22907_s3 + $0xf0] sm:$0xff] }
  0x94   :  { %11924 = vmatpush1.bf16.msra.mxu0 %v11923_v27  ;;  %12116 = vmatpush1.bf16.msra.mxu1 %v12115_v28  ;;  %v1125_v27 = vld [vmem:[%s22907_s3 + $0x2158] sm:$0xff]  ;;  %v1138_v28 = vld [vmem:[%s22907_s3 + $0x21c0] sm:$0xff] }
  0x95   :  { %11926 = vmatprep.subr.bf16.mxu0 %v11925_v29  ;;  %12118 = vmatprep.subr.bf16.mxu1 %v12117_v11  ;;  %v1127_v29 = vld [vmem:[%s22907_s3 + $0x2168] sm:$0xff]  ;;  %v11945_v11 = vpack.c.bf16 %v1138_v28, %v1125_v27  ;;  %v1241_v27 = vld [vmem:[%s22907_s3 + $0x24f8] sm:$0xff]  ;;  %v1230_v28 = vld [vmem:[%s22907_s3 + $0x24a0] sm:$0xff] }
  0x96   :  { %v12137_v37 = vpack.c.bf16 %v1140_v30, %v1127_v29  ;;  %v1243_v30 = vld [vmem:[%s22907_s3 + $0x2508] sm:$0xff]  ;;  %v11963_v35 = vpack.c.bf16 %v1241_v27, %v1228_v24  ;;  %v130_v24 = vld [vmem:[%s22907_s3 + $0x240] sm:$0xff] }
  0x97   :  { %v12155_v36 = vpack.c.bf16 %v1243_v30, %v1230_v28  ;;  %v114_v30 = vld [vmem:[%s22907_s3 + $0x1c0] sm:$0xff] }
  0x98   :  { %11928 = vmatpush1.bf16.msra.mxu0 %v11927_v40  ;;  %12120 = vmatpush1.bf16.msra.mxu1 %v12119_v41  ;;  %v1151_v40 = vld [vmem:[%s22907_s3 + $0x2228] sm:$0xff]  ;;  %v1164_v41 = vld [vmem:[%s22907_s3 + $0x2290] sm:$0xff] }
  0x99   :  { %11930 = vmatprep.subr.bf16.mxu0 %v11929_v42  ;;  %12122 = vmatprep.subr.bf16.mxu1 %v12121_v47  ;;  %v1153_v42 = vld [vmem:[%s22907_s3 + $0x2238] sm:$0xff]  ;;  %v11949_v47 = vpack.c.bf16 %v1164_v41, %v1151_v40  ;;  %v1267_v40 = vld [vmem:[%s22907_s3 + $0x25c8] sm:$0xff]  ;;  %v1256_v41 = vld [vmem:[%s22907_s3 + $0x2570] sm:$0xff] }
  0x9a   :  { %v12141_v52 = vpack.c.bf16 %v1166_v43, %v1153_v42  ;;  %v1269_v43 = vld [vmem:[%s22907_s3 + $0x25d8] sm:$0xff]  ;;  %v11967_v49 = vpack.c.bf16 %v1267_v40, %v1254_v38 }
  0x9b   :  { %v12159_v51 = vpack.c.bf16 %v1269_v43, %v1256_v41  ;;  %v153_v43 = vld [vmem:[%s22907_s3 + $0x2f8] sm:$0xff] }
  0x9c   :  { %11932 = vmatpush1.bf16.msra.mxu0 %v11931_v54  ;;  %12124 = vmatpush1.bf16.msra.mxu1 %v12123_v55  ;;  %v1177_v54 = vld [vmem:[%s22907_s3 + $0x22f8] sm:$0xff]  ;;  %v1190_v55 = vld [vmem:[%s22907_s3 + $0x2360] sm:$0xff] }
  0x9d   :  { %11934 = vmatprep.subr.bf16.mxu0 %v11933_v56  ;;  %12126 = vmatprep.subr.bf16.mxu1 %v12125_v62  ;;  %v1179_v56 = vld [vmem:[%s22907_s3 + $0x2308] sm:$0xff]  ;;  %v11953_v62 = vpack.c.bf16 %v1190_v55, %v1177_v54  ;;  %v1293_v54 = vld [vmem:[%s22907_s3 + $0x2698] sm:$0xff]  ;;  %v1282_v55 = vld [vmem:[%s22907_s3 + $0x2640] sm:$0xff] }
  0x9e   :  { %v12145_v2 = vpack.c.bf16 %v1192_v57, %v1179_v56  ;;  %v1295_v57 = vld [vmem:[%s22907_s3 + $0x26a8] sm:$0xff]  ;;  %v11971_v0 = vpack.c.bf16 %v1293_v54, %v1280_v53 }
  0x9f   :  { %v12163_v1 = vpack.c.bf16 %v1295_v57, %v1282_v55  ;;  %v179_v57 = vld [vmem:[%s22907_s3 + $0x3c8] sm:$0xff] }
  0xa0   :  { %11936 = vmatpush1.bf16.msra.mxu0 %v11935_v4  ;;  %12128 = vmatpush1.bf16.msra.mxu1 %v12127_v5  ;;  %v1203_v4 = vld [vmem:[%s22907_s3 + $0x23c8] sm:$0xff]  ;;  %v1216_v5 = vld [vmem:[%s22907_s3 + $0x2430] sm:$0xff] }
  0xa1   :  { %11938 = vmatprep.subr.bf16.mxu0 %v11937_v6  ;;  %12130 = vmatprep.subr.bf16.mxu1 %v12129_v10  ;;  %v1205_v6 = vld [vmem:[%s22907_s3 + $0x23d8] sm:$0xff]  ;;  %v11957_v10 = vpack.c.bf16 %v1216_v5, %v1203_v4  ;;  %v75_v4 = vld [vmem:[%s22907_s3 + $0x88] sm:$0xff]  ;;  %v64_v5 = vld [vmem:[%s22907_s3 + $0x30] sm:$0xff] }
  0xa2   :  { %v12149_v15 = vpack.c.bf16 %v1218_v7, %v1205_v6  ;;  %v77_v7 = vld [vmem:[%s22907_s3 + $0x98] sm:$0xff]  ;;  %v12167_v13 = vpack.c.bf16 %v75_v4, %v62_v3 }
  0xa3   :  { %v12359_v14 = vpack.c.bf16 %v77_v7, %v64_v5  ;;  %v205_v7 = vld [vmem:[%s22907_s3 + $0x498] sm:$0xff] }
  0xa4   :  { %11940 = vmatpush1.bf16.msra.mxu0 %v11939_v17  ;;  %12132 = vmatpush1.bf16.msra.mxu1 %v12131_v18  ;;  %v1229_v17 = vld [vmem:[%s22907_s3 + $0x2498] sm:$0xff]  ;;  %v1242_v18 = vld [vmem:[%s22907_s3 + $0x2500] sm:$0xff] }
  0xa5   :  { %11942 = vmatprep.subr.bf16.mxu0 %v11941_v19  ;;  %12134 = vmatprep.subr.bf16.mxu1 %v12133_v23  ;;  %v1231_v19 = vld [vmem:[%s22907_s3 + $0x24a8] sm:$0xff]  ;;  %v11961_v23 = vpack.c.bf16 %v1242_v18, %v1229_v17  ;;  %v101_v17 = vld [vmem:[%s22907_s3 + $0x158] sm:$0xff]  ;;  %v90_v18 = vld [vmem:[%s22907_s3 + $0x100] sm:$0xff] }
  0xa6   :  { %v12153_v29 = vpack.c.bf16 %v1244_v20, %v1231_v19  ;;  %v103_v20 = vld [vmem:[%s22907_s3 + $0x168] sm:$0xff]  ;;  %v12171_v27 = vpack.c.bf16 %v101_v17, %v88_v16 }
  0xa7   :  { %v12363_v28 = vpack.c.bf16 %v103_v20, %v90_v18  ;;  %v231_v20 = vld [vmem:[%s22907_s3 + $0x568] sm:$0xff] }
  0xa8   :  { %11944 = vmatpush1.bf16.msra.mxu0 %v11943_v31  ;;  %12136 = vmatpush1.bf16.msra.mxu1 %v12135_v33  ;;  %v1255_v31 = vld [vmem:[%s22907_s3 + $0x2568] sm:$0xff]  ;;  %v1268_v33 = vld [vmem:[%s22907_s3 + $0x25d0] sm:$0xff] }
  0xa9   :  { %11946 = vmatprep.subr.bf16.mxu0 %v11945_v11  ;;  %12138 = vmatprep.subr.bf16.mxu1 %v12137_v37  ;;  %v1257_v11 = vld [vmem:[%s22907_s3 + $0x2578] sm:$0xff]  ;;  %v11965_v37 = vpack.c.bf16 %v1268_v33, %v1255_v31  ;;  %v127_v31 = vld [vmem:[%s22907_s3 + $0x228] sm:$0xff]  ;;  %v116_v33 = vld [vmem:[%s22907_s3 + $0x1d0] sm:$0xff] }
  0xaa   :  { %v12157_v42 = vpack.c.bf16 %v1270_v34, %v1257_v11  ;;  %v129_v11 = vld [vmem:[%s22907_s3 + $0x238] sm:$0xff]  ;;  %v12175_v38 = vpack.c.bf16 %v127_v31, %v114_v30 }
  0xab   :  { %v141_v34 = vld [vmem:[%s22907_s3 + $0x298] sm:$0xff]  ;;  %v12367_v40 = vpack.c.bf16 %v129_v11, %v116_v33 }
  0xac   :  { %11948 = vmatpush1.bf16.msra.mxu0 %v11947_v44  ;;  %12140 = vmatpush1.bf16.msra.mxu1 %v12139_v45  ;;  %v1281_v44 = vld [vmem:[%s22907_s3 + $0x2638] sm:$0xff]  ;;  %v1294_v45 = vld [vmem:[%s22907_s3 + $0x26a0] sm:$0xff] }
  0xad   :  { %11950 = vmatprep.subr.bf16.mxu0 %v11949_v47  ;;  %12142 = vmatprep.subr.bf16.mxu1 %v12141_v52  ;;  %v1283_v47 = vld [vmem:[%s22907_s3 + $0x2648] sm:$0xff]  ;;  %v11969_v52 = vpack.c.bf16 %v1294_v45, %v1281_v44  ;;  %v142_v44 = vld [vmem:[%s22907_s3 + $0x2a0] sm:$0xff]  ;;  %v257_v11 = vld [vmem:[%s22907_s3 + $0x638] sm:$0xff] }
  0xae   :  { %v12161_v56 = vpack.c.bf16 %v1296_v48, %v1283_v47  ;;  %v155_v47 = vld [vmem:[%s22907_s3 + $0x308] sm:$0xff] }
  0xaf   :  { %v167_v48 = vld [vmem:[%s22907_s3 + $0x368] sm:$0xff]  ;;  %v12371_v54 = vpack.c.bf16 %v155_v47, %v142_v44 }
  0xb0   :  { %11952 = vmatpush1.bf16.msra.mxu0 %v11951_v58  ;;  %12144 = vmatpush1.bf16.msra.mxu1 %v12143_v59  ;;  %v63_v58 = vld [vmem:[%s22907_s3 + $0x28] sm:$0xff]  ;;  %v76_v59 = vld [vmem:[%s22907_s3 + $0x90] sm:$0xff] }
  0xb1   :  { %11954 = vmatprep.subr.bf16.mxu0 %v11953_v62  ;;  %12146 = vmatprep.subr.bf16.mxu1 %v12145_v2  ;;  %v65_v62 = vld [vmem:[%s22907_s3 + $0x38] sm:$0xff]  ;;  %v12165_v2 = vpack.c.bf16 %v76_v59, %v63_v58  ;;  %v168_v58 = vld [vmem:[%s22907_s3 + $0x370] sm:$0xff]  ;;  %v283_v47 = vld [vmem:[%s22907_s3 + $0x708] sm:$0xff] }
  0xb2   :  { %v12357_v6 = vpack.c.bf16 %v78_v63, %v65_v62  ;;  %v181_v62 = vld [vmem:[%s22907_s3 + $0x3d8] sm:$0xff] }
  0xb3   :  { %v193_v63 = vld [vmem:[%s22907_s3 + $0x438] sm:$0xff]  ;;  %v12375_v4 = vpack.c.bf16 %v181_v62, %v168_v58 }
  0xb4   :  { %11956 = vmatpush1.bf16.msra.mxu0 %v11955_v8  ;;  %12148 = vmatpush1.bf16.msra.mxu1 %v12147_v9  ;;  %v89_v8 = vld [vmem:[%s22907_s3 + $0xf8] sm:$0xff]  ;;  %v102_v9 = vld [vmem:[%s22907_s3 + $0x160] sm:$0xff] }
  0xb5   :  { %11958 = vmatprep.subr.bf16.mxu0 %v11957_v10  ;;  %12150 = vmatprep.subr.bf16.mxu1 %v12149_v15  ;;  %v91_v10 = vld [vmem:[%s22907_s3 + $0x108] sm:$0xff]  ;;  %v12169_v15 = vpack.c.bf16 %v102_v9, %v89_v8  ;;  %v194_v8 = vld [vmem:[%s22907_s3 + $0x440] sm:$0xff]  ;;  %v309_v62 = vld [vmem:[%s22907_s3 + $0x7d8] sm:$0xff] }
  0xb6   :  { %v12361_v19 = vpack.c.bf16 %v104_v12, %v91_v10  ;;  %v207_v10 = vld [vmem:[%s22907_s3 + $0x4a8] sm:$0xff] }
  0xb7   :  { %v219_v12 = vld [vmem:[%s22907_s3 + $0x508] sm:$0xff]  ;;  %v12379_v17 = vpack.c.bf16 %v207_v10, %v194_v8 }
  0xb8   :  { %11960 = vmatpush1.bf16.msra.mxu0 %v11959_v21  ;;  %12152 = vmatpush1.bf16.msra.mxu1 %v12151_v22  ;;  %v115_v21 = vld [vmem:[%s22907_s3 + $0x1c8] sm:$0xff]  ;;  %v128_v22 = vld [vmem:[%s22907_s3 + $0x230] sm:$0xff] }
  0xb9   :  { %11962 = vmatprep.subr.bf16.mxu0 %v11961_v23  ;;  %12154 = vmatprep.subr.bf16.mxu1 %v12153_v29  ;;  %v117_v23 = vld [vmem:[%s22907_s3 + $0x1d8] sm:$0xff]  ;;  %v12173_v29 = vpack.c.bf16 %v128_v22, %v115_v21  ;;  %v220_v21 = vld [vmem:[%s22907_s3 + $0x510] sm:$0xff]  ;;  %v335_v10 = vld [vmem:[%s22907_s3 + $0x8a8] sm:$0xff] }
  0xbc   :  { %11964 = vmatpush1.bf16.msra.mxu0 %v11963_v35  ;;  %12156 = vmatpush1.bf16.msra.mxu1 %v12155_v36  ;;  %v154_v35 = vld [vmem:[%s22907_s3 + $0x300] sm:$0xff]  ;;  %v143_v36 = vld [vmem:[%s22907_s3 + $0x2a8] sm:$0xff] }
  0xbd   :  { %11966 = vmatprep.subr.bf16.mxu0 %v11965_v37  ;;  %12158 = vmatprep.subr.bf16.mxu1 %v12157_v42  ;;  %v156_v37 = vld [vmem:[%s22907_s3 + $0x310] sm:$0xff]  ;;  %v12177_v41 = vpack.c.bf16 %v154_v35, %v141_v34  ;;  %v246_v34 = vld [vmem:[%s22907_s3 + $0x5e0] sm:$0xff] }
  0xbe   :  { %v140_v42 = vld [vmem:[%s22907_s3 + $0x290] sm:$0xff]  ;;  %v12369_v45 = vpack.c.bf16 %v156_v37, %v143_v36  ;;  %v259_v36 = vld [vmem:[%s22907_s3 + $0x648] sm:$0xff] }
  0xbf   :  { %v12179_v53 = vpack.c.bf16 %v153_v43, %v140_v42  ;;  %v271_v37 = vld [vmem:[%s22907_s3 + $0x6a8] sm:$0xff]  ;;  %v12387_v43 = vpack.c.bf16 %v259_v36, %v246_v34 }
  0xc0   :  { %11968 = vmatpush1.bf16.msra.mxu0 %v11967_v49  ;;  %12160 = vmatpush1.bf16.msra.mxu1 %v12159_v51  ;;  %v180_v49 = vld [vmem:[%s22907_s3 + $0x3d0] sm:$0xff]  ;;  %v169_v51 = vld [vmem:[%s22907_s3 + $0x378] sm:$0xff]  ;;  %v387_v36 = vld [vmem:[%s22907_s3 + $0xa48] sm:$0xff] }
  0xc1   :  { %11970 = vmatprep.subr.bf16.mxu0 %v11969_v52  ;;  %12162 = vmatprep.subr.bf16.mxu1 %v12161_v56  ;;  %v182_v52 = vld [vmem:[%s22907_s3 + $0x3e0] sm:$0xff]  ;;  %v12181_v55 = vpack.c.bf16 %v180_v49, %v167_v48  ;;  %v272_v48 = vld [vmem:[%s22907_s3 + $0x6b0] sm:$0xff] }
  0xc2   :  { %v166_v56 = vld [vmem:[%s22907_s3 + $0x360] sm:$0xff]  ;;  %v12373_v59 = vpack.c.bf16 %v182_v52, %v169_v51  ;;  %v285_v51 = vld [vmem:[%s22907_s3 + $0x718] sm:$0xff] }
  0xc3   :  { %v12183_v3 = vpack.c.bf16 %v179_v57, %v166_v56  ;;  %v297_v52 = vld [vmem:[%s22907_s3 + $0x778] sm:$0xff]  ;;  %v12391_v57 = vpack.c.bf16 %v285_v51, %v272_v48 }
  0xc4   :  { %11972 = vmatpush1.bf16.msra.mxu0 %v11971_v0  ;;  %12164 = vmatpush1.bf16.msra.mxu1 %v12163_v1  ;;  %v206_v0 = vld [vmem:[%s22907_s3 + $0x4a0] sm:$0xff]  ;;  %v195_v1 = vld [vmem:[%s22907_s3 + $0x448] sm:$0xff]  ;;  %v413_v51 = vld [vmem:[%s22907_s3 + $0xb18] sm:$0xff] }
  0xc5   :  { %12166 = vmatprep.subr.bf16.mxu0 %v12165_v2  ;;  %12358 = vmatprep.subr.bf16.mxu1 %v12357_v6  ;;  %v208_v2 = vld [vmem:[%s22907_s3 + $0x4b0] sm:$0xff]  ;;  %v12185_v5 = vpack.c.bf16 %v206_v0, %v193_v63  ;;  %v298_v63 = vld [vmem:[%s22907_s3 + $0x780] sm:$0xff] }
  0xc6   :  { %v192_v6 = vld [vmem:[%s22907_s3 + $0x430] sm:$0xff]  ;;  %v12377_v9 = vpack.c.bf16 %v208_v2, %v195_v1  ;;  %v311_v1 = vld [vmem:[%s22907_s3 + $0x7e8] sm:$0xff] }
  0xc7   :  { %1615 = vmatmul.mubr.f32.vlgmr.msra.gmra.mrb[0].mxu0 %v15881_v50  ;;  %1828 = vmatmul.mubr.f32.vlgmr.msra.gmra.mrb[0].mxu1 %v15881_v50  ;;  %v12365_v50 = vpack.c.bf16 %v130_v24, %v117_v23  ;;  %v12187_v16 = vpack.c.bf16 %v205_v7, %v192_v6  ;;  %v233_v23 = vld [vmem:[%s22907_s3 + $0x578] sm:$0xff]  ;;  %v323_v2 = vld [vmem:[%s22907_s3 + $0x848] sm:$0xff]  ;;  %v12395_v7 = vpack.c.bf16 %v311_v1, %v298_v63 }
  0xc8   :  { %12168 = vmatpush1.bf16.msra.mxu0 %v12167_v13  ;;  %12360 = vmatpush1.bf16.msra.mxu1 %v12359_v14  ;;  %v232_v13 = vld [vmem:[%s22907_s3 + $0x570] sm:$0xff]  ;;  %v221_v14 = vld [vmem:[%s22907_s3 + $0x518] sm:$0xff]  ;;  %v12383_v31 = vpack.c.bf16 %v233_v23, %v220_v21  ;;  %v439_v1 = vld [vmem:[%s22907_s3 + $0xbe8] sm:$0xff] }
  0xc9   :  { %12170 = vmatprep.subr.bf16.mxu0 %v12169_v15  ;;  %12362 = vmatprep.subr.bf16.mxu1 %v12361_v19  ;;  %v234_v15 = vld [vmem:[%s22907_s3 + $0x580] sm:$0xff]  ;;  %v12189_v18 = vpack.c.bf16 %v232_v13, %v219_v12  ;;  %v245_v24 = vld [vmem:[%s22907_s3 + $0x5d8] sm:$0xff]  ;;  %v324_v12 = vld [vmem:[%s22907_s3 + $0x850] sm:$0xff] }
  0xca   :  { %1898 = vmatprep.mubr.f32.mxu0 %v15366_v32  ;;  %2111 = vmatprep.mubr.f32.mxu1 %v15366_v32  ;;  %v218_v19 = vld [vmem:[%s22907_s3 + $0x500] sm:$0xff]  ;;  %v12381_v22 = vpack.c.bf16 %v234_v15, %v221_v14  ;;  %v337_v14 = vld [vmem:[%s22907_s3 + $0x8b8] sm:$0xff] }
  0xcb   :  { %v12191_v30 = vpack.c.bf16 %v231_v20, %v218_v19  ;;  %v349_v15 = vld [vmem:[%s22907_s3 + $0x918] sm:$0xff]  ;;  %v12399_v20 = vpack.c.bf16 %v337_v14, %v324_v12 }
  0xcc   :  { %12172 = vmatpush1.bf16.msra.mxu0 %v12171_v27  ;;  %12364 = vmatpush1.bf16.msra.mxu1 %v12363_v28  ;;  %v258_v27 = vld [vmem:[%s22907_s3 + $0x640] sm:$0xff]  ;;  %v247_v28 = vld [vmem:[%s22907_s3 + $0x5e8] sm:$0xff]  ;;  %v361_v23 = vld [vmem:[%s22907_s3 + $0x978] sm:$0xff] }
  0xcd   :  { %12174 = vmatprep.subr.bf16.mxu0 %v12173_v29  ;;  %12366 = vmatprep.subr.bf16.mxu1 %v12365_v50  ;;  %v260_v29 = vld [vmem:[%s22907_s3 + $0x650] sm:$0xff]  ;;  %v12193_v33 = vpack.c.bf16 %v258_v27, %v245_v24  ;;  %v350_v24 = vld [vmem:[%s22907_s3 + $0x920] sm:$0xff]  ;;  %v465_v14 = vld [vmem:[%s22907_s3 + $0xcb8] sm:$0xff] }
  0xce   :  { %v244_v50 = vld [vmem:[%s22907_s3 + $0x5d0] sm:$0xff]  ;;  %v12385_v35 = vpack.c.bf16 %v260_v29, %v247_v28  ;;  %v363_v28 = vld [vmem:[%s22907_s3 + $0x988] sm:$0xff] }
  0xcf   :  { %v12195_v42 = vpack.c.bf16 %v257_v11, %v244_v50  ;;  %v375_v29 = vld [vmem:[%s22907_s3 + $0x9e8] sm:$0xff]  ;;  %v12403_v11 = vpack.c.bf16 %v363_v28, %v350_v24 }
  0xd0   :  { %12176 = vmatpush1.bf16.msra.mxu0 %v12175_v38  ;;  %12368 = vmatpush1.bf16.msra.mxu1 %v12367_v40  ;;  %v284_v38 = vld [vmem:[%s22907_s3 + $0x710] sm:$0xff]  ;;  %v273_v40 = vld [vmem:[%s22907_s3 + $0x6b8] sm:$0xff]  ;;  %v491_v28 = vld [vmem:[%s22907_s3 + $0xd88] sm:$0xff] }
  0xd1   :  { %12178 = vmatprep.subr.bf16.mxu0 %v12177_v41  ;;  %12370 = vmatprep.subr.bf16.mxu1 %v12369_v45  ;;  %v286_v41 = vld [vmem:[%s22907_s3 + $0x720] sm:$0xff]  ;;  %v12197_v44 = vpack.c.bf16 %v284_v38, %v271_v37  ;;  %v376_v37 = vld [vmem:[%s22907_s3 + $0x9f0] sm:$0xff] }
  0xd2   :  { %v270_v45 = vld [vmem:[%s22907_s3 + $0x6a0] sm:$0xff]  ;;  %v12389_v49 = vpack.c.bf16 %v286_v41, %v273_v40  ;;  %v389_v40 = vld [vmem:[%s22907_s3 + $0xa58] sm:$0xff] }
  0xd3   :  { %v12199_v56 = vpack.c.bf16 %v283_v47, %v270_v45  ;;  %v401_v41 = vld [vmem:[%s22907_s3 + $0xab8] sm:$0xff]  ;;  %v12407_v47 = vpack.c.bf16 %v389_v40, %v376_v37 }
  0xd4   :  { %12180 = vmatpush1.bf16.msra.mxu0 %v12179_v53  ;;  %12372 = vmatpush1.bf16.msra.mxu1 %v12371_v54  ;;  %v310_v53 = vld [vmem:[%s22907_s3 + $0x7e0] sm:$0xff]  ;;  %v299_v54 = vld [vmem:[%s22907_s3 + $0x788] sm:$0xff] }
  0xd5   :  { %12182 = vmatprep.subr.bf16.mxu0 %v12181_v55  ;;  %12374 = vmatprep.subr.bf16.mxu1 %v12373_v59  ;;  %v312_v55 = vld [vmem:[%s22907_s3 + $0x7f0] sm:$0xff]  ;;  %v12201_v58 = vpack.c.bf16 %v310_v53, %v297_v52  ;;  %v402_v52 = vld [vmem:[%s22907_s3 + $0xac0] sm:$0xff] }
  0xd6   :  { %v296_v59 = vld [vmem:[%s22907_s3 + $0x770] sm:$0xff]  ;;  %v12393_v0 = vpack.c.bf16 %v312_v55, %v299_v54  ;;  %v415_v54 = vld [vmem:[%s22907_s3 + $0xb28] sm:$0xff] }
  0xd7   :  { %v12203_v6 = vpack.c.bf16 %v309_v62, %v296_v59  ;;  %v427_v55 = vld [vmem:[%s22907_s3 + $0xb88] sm:$0xff]  ;;  %v12411_v62 = vpack.c.bf16 %v415_v54, %v402_v52 }
  0xd8   :  { %12184 = vmatpush1.bf16.msra.mxu0 %v12183_v3  ;;  %12376 = vmatpush1.bf16.msra.mxu1 %v12375_v4  ;;  %v336_v3 = vld [vmem:[%s22907_s3 + $0x8b0] sm:$0xff]  ;;  %v325_v4 = vld [vmem:[%s22907_s3 + $0x858] sm:$0xff] }
  0xd9   :  { %12186 = vmatprep.subr.bf16.mxu0 %v12185_v5  ;;  %12378 = vmatprep.subr.bf16.mxu1 %v12377_v9  ;;  %v338_v5 = vld [vmem:[%s22907_s3 + $0x8c0] sm:$0xff]  ;;  %v12205_v8 = vpack.c.bf16 %v336_v3, %v323_v2  ;;  %v428_v2 = vld [vmem:[%s22907_s3 + $0xb90] sm:$0xff] }
  0xda   :  { %v322_v9 = vld [vmem:[%s22907_s3 + $0x840] sm:$0xff]  ;;  %v12397_v13 = vpack.c.bf16 %v338_v5, %v325_v4  ;;  %v441_v4 = vld [vmem:[%s22907_s3 + $0xbf8] sm:$0xff] }
  0xdb   :  { %v12207_v19 = vpack.c.bf16 %v335_v10, %v322_v9  ;;  %v453_v5 = vld [vmem:[%s22907_s3 + $0xc58] sm:$0xff]  ;;  %v12415_v10 = vpack.c.bf16 %v441_v4, %v428_v2 }
  0xdc   :  { %12188 = vmatpush1.bf16.msra.mxu0 %v12187_v16  ;;  %12380 = vmatpush1.bf16.msra.mxu1 %v12379_v17  ;;  %v362_v16 = vld [vmem:[%s22907_s3 + $0x980] sm:$0xff]  ;;  %v351_v17 = vld [vmem:[%s22907_s3 + $0x928] sm:$0xff] }
  0xdd   :  { %12190 = vmatprep.subr.bf16.mxu0 %v12189_v18  ;;  %12382 = vmatprep.subr.bf16.mxu1 %v12381_v22  ;;  %v364_v18 = vld [vmem:[%s22907_s3 + $0x990] sm:$0xff]  ;;  %v12209_v21 = vpack.c.bf16 %v362_v16, %v349_v15  ;;  %v454_v15 = vld [vmem:[%s22907_s3 + $0xc60] sm:$0xff] }
  0xde   :  { %v348_v22 = vld [vmem:[%s22907_s3 + $0x910] sm:$0xff]  ;;  %v12401_v27 = vpack.c.bf16 %v364_v18, %v351_v17  ;;  %v467_v17 = vld [vmem:[%s22907_s3 + $0xcc8] sm:$0xff] }
  0xdf   :  { %v12211_v50 = vpack.c.bf16 %v361_v23, %v348_v22  ;;  %v479_v18 = vld [vmem:[%s22907_s3 + $0xd28] sm:$0xff]  ;;  %v12419_v23 = vpack.c.bf16 %v467_v17, %v454_v15 }
  0xe0   :  { %12192 = vmatpush1.bf16.msra.mxu0 %v12191_v30  ;;  %12384 = vmatpush1.bf16.msra.mxu1 %v12383_v31  ;;  %v388_v30 = vld [vmem:[%s22907_s3 + $0xa50] sm:$0xff]  ;;  %v377_v31 = vld [vmem:[%s22907_s3 + $0x9f8] sm:$0xff] }
  0xe1   :  { %12194 = vmatprep.subr.bf16.mxu0 %v12193_v33  ;;  %12386 = vmatprep.subr.bf16.mxu1 %v12385_v35  ;;  %v390_v33 = vld [vmem:[%s22907_s3 + $0xa60] sm:$0xff]  ;;  %v12213_v34 = vpack.c.bf16 %v388_v30, %v375_v29  ;;  %v480_v29 = vld [vmem:[%s22907_s3 + $0xd30] sm:$0xff] }
  0xe2   :  { %v374_v35 = vld [vmem:[%s22907_s3 + $0x9e0] sm:$0xff]  ;;  %v12405_v38 = vpack.c.bf16 %v390_v33, %v377_v31  ;;  %v493_v31 = vld [vmem:[%s22907_s3 + $0xd98] sm:$0xff] }
  0xe3   :  { %v12215_v45 = vpack.c.bf16 %v387_v36, %v374_v35  ;;  %v505_v33 = vld [vmem:[%s22907_s3 + $0xdf8] sm:$0xff] }
  0xe4   :  { %12196 = vmatpush1.bf16.msra.mxu0 %v12195_v42  ;;  %12388 = vmatpush1.bf16.msra.mxu1 %v12387_v43  ;;  %v414_v42 = vld [vmem:[%s22907_s3 + $0xb20] sm:$0xff]  ;;  %v403_v43 = vld [vmem:[%s22907_s3 + $0xac8] sm:$0xff] }
  0xe5   :  { %12198 = vmatprep.subr.bf16.mxu0 %v12197_v44  ;;  %12390 = vmatprep.subr.bf16.mxu1 %v12389_v49  ;;  %v416_v44 = vld [vmem:[%s22907_s3 + $0xb30] sm:$0xff]  ;;  %v12217_v48 = vpack.c.bf16 %v414_v42, %v401_v41 }
  0xe6   :  { %v400_v49 = vld [vmem:[%s22907_s3 + $0xab0] sm:$0xff]  ;;  %v12409_v53 = vpack.c.bf16 %v416_v44, %v403_v43 }
  0xe7   :  { %v12219_v59 = vpack.c.bf16 %v413_v51, %v400_v49 }
  0xe8   :  { %12200 = vmatpush1.bf16.msra.mxu0 %v12199_v56  ;;  %12392 = vmatpush1.bf16.msra.mxu1 %v12391_v57  ;;  %v440_v56 = vld [vmem:[%s22907_s3 + $0xbf0] sm:$0xff]  ;;  %v429_v57 = vld [vmem:[%s22907_s3 + $0xb98] sm:$0xff] }
  0xe9   :  { %12202 = vmatprep.subr.bf16.mxu0 %v12201_v58  ;;  %12394 = vmatprep.subr.bf16.mxu1 %v12393_v0  ;;  %v442_v58 = vld [vmem:[%s22907_s3 + $0xc00] sm:$0xff]  ;;  %v12221_v63 = vpack.c.bf16 %v440_v56, %v427_v55 }
  0xea   :  { %v426_v0 = vld [vmem:[%s22907_s3 + $0xb80] sm:$0xff]  ;;  %v12413_v3 = vpack.c.bf16 %v442_v58, %v429_v57 }
  0xeb   :  { %v12223_v9 = vpack.c.bf16 %v439_v1, %v426_v0 }
  0xec   :  { %12204 = vmatpush1.bf16.msra.mxu0 %v12203_v6  ;;  %12396 = vmatpush1.bf16.msra.mxu1 %v12395_v7  ;;  %v466_v6 = vld [vmem:[%s22907_s3 + $0xcc0] sm:$0xff]  ;;  %v455_v7 = vld [vmem:[%s22907_s3 + $0xc68] sm:$0xff] }
  0xed   :  { %12206 = vmatprep.subr.bf16.mxu0 %v12205_v8  ;;  %12398 = vmatprep.subr.bf16.mxu1 %v12397_v13  ;;  %v468_v8 = vld [vmem:[%s22907_s3 + $0xcd0] sm:$0xff]  ;;  %v12225_v12 = vpack.c.bf16 %v466_v6, %v453_v5 }
  0xee   :  { %v452_v13 = vld [vmem:[%s22907_s3 + $0xc50] sm:$0xff]  ;;  %v12417_v16 = vpack.c.bf16 %v468_v8, %v455_v7 }
  0xef   :  { %v12227_v22 = vpack.c.bf16 %v465_v14, %v452_v13 }
  0xf0   :  { %12208 = vmatpush1.bf16.msra.mxu0 %v12207_v19  ;;  %12400 = vmatpush1.bf16.msra.mxu1 %v12399_v20  ;;  %v492_v19 = vld [vmem:[%s22907_s3 + $0xd90] sm:$0xff]  ;;  %v481_v20 = vld [vmem:[%s22907_s3 + $0xd38] sm:$0xff] }
  0xf1   :  { %12210 = vmatprep.subr.bf16.mxu0 %v12209_v21  ;;  %12402 = vmatprep.subr.bf16.mxu1 %v12401_v27  ;;  %v494_v21 = vld [vmem:[%s22907_s3 + $0xda0] sm:$0xff]  ;;  %v12229_v24 = vpack.c.bf16 %v492_v19, %v479_v18 }
  0xf2   :  { %v478_v27 = vld [vmem:[%s22907_s3 + $0xd20] sm:$0xff]  ;;  %v12421_v30 = vpack.c.bf16 %v494_v21, %v481_v20 }
  0xf3   :  { %v12231_v35 = vpack.c.bf16 %v491_v28, %v478_v27 }
  0xf4   :  { %12212 = vmatpush1.bf16.msra.mxu0 %v12211_v50  ;;  %12404 = vmatpush1.bf16.msra.mxu1 %v12403_v11  ;;  %v518_v50 = vld [vmem:[%s22907_s3 + $0xe60] sm:$0xff]  ;;  %v507_v11 = vld [vmem:[%s22907_s3 + $0xe08] sm:$0xff] }
  0xf5   :  { %12214 = vmatprep.subr.bf16.mxu0 %v12213_v34  ;;  %12406 = vmatprep.subr.bf16.mxu1 %v12405_v38  ;;  %v520_v34 = vld [vmem:[%s22907_s3 + $0xe70] sm:$0xff] }
  0xf8   :  { %12216 = vmatpush1.bf16.msra.mxu0 %v12215_v45  ;;  %12408 = vmatpush1.bf16.msra.mxu1 %v12407_v47 }
  0xf9   :  { %12218 = vmatprep.subr.bf16.mxu0 %v12217_v48  ;;  %12410 = vmatprep.subr.bf16.mxu1 %v12409_v53 }
  0xfc   :  { %12220 = vmatpush1.bf16.msra.mxu0 %v12219_v59  ;;  %12412 = vmatpush1.bf16.msra.mxu1 %v12411_v62 }
  0xfd   :  { %12222 = vmatprep.subr.bf16.mxu0 %v12221_v63  ;;  %12414 = vmatprep.subr.bf16.mxu1 %v12413_v3 }
 0x100   :  { %12224 = vmatpush1.bf16.msra.mxu0 %v12223_v9  ;;  %12416 = vmatpush1.bf16.msra.mxu1 %v12415_v10 }
 0x101   :  { %12226 = vmatprep.subr.bf16.mxu0 %v12225_v12  ;;  %12418 = vmatprep.subr.bf16.mxu1 %v12417_v16 }
 0x104   :  { %12228 = vmatpush1.bf16.msra.mxu0 %v12227_v22 }
 0x105   :  { %23 = vsyncpa [#allocation4], 0  ;;  %12420 = vmatpush1.bf16.msra.mxu1 %v12419_v23  ;;  %12230 = vmatprep.subr.bf16.mxu0 %v12229_v24  ;;  %v12423_v36 = vpack.c.bf16 %v493_v31, %v480_v29  ;;  %v12233_v37 = vpack.c.bf16 %v518_v50, %v505_v33  ;;  %v504_v38 = vld [vmem:[%s22907_s3 + $0xdf0] sm:$0xff]  ;;  %v517_v40 = vld [vmem:[%s22907_s3 + $0xe58] sm:$0xff]  ;;  %v12425_v42 = vpack.c.bf16 %v520_v34, %v507_v11  ;;  %s14940_s18 = smov 120   ;;  %vm2948_vm0 = vcmask 982016  }
 0x106   :  { %v506_v41 = vld [vmem:[%s22907_s3 + $0xe00] sm:$0xff]  ;;  %12422 = vmatprep.subr.bf16.mxu1 %v12421_v30  ;;  %v519_v43 = vld [vmem:[%s22907_s3 + $0xe68] sm:$0xff]  ;;  %v544_v45 = vld [vmem:[%s22907_s3 + $0xf30] sm:$0xff]  ;;  %v12235_v49 = vpack.c.bf16 %v517_v40, %v504_v38  ;;  %s14941_s30 = smov 16   ;;  %vm3026_vm1 = vcmask 130048   ;;  %vm3809_vm2 = vcmask 326656  }
 0x107   :  { %v531_v44 = vld [vmem:[%s22907_s3 + $0xec8] sm:$0xff]  ;;  %1899 = vmatmul.mubr.f32.vlgmr.msra.gmra.mrb[2].mxu0 %v15353_v25  ;;  %v533_v47 = vld [vmem:[%s22907_s3 + $0xed8] sm:$0xff]  ;;  %v546_v48 = vld [vmem:[%s22907_s3 + $0xf40] sm:$0xff]  ;;  %v12427_v51 = vpack.c.bf16 %v519_v43, %v506_v41  ;;  %s14943_s19 = smov 112   ;;  %vm14944_vm3 = vmmov 0   ;;  %vm4681_vm4 = vcmask 916480  }
 0x108   :  { %12232 = vmatpush1.bf16.msra.mxu0 %v12231_v35  ;;  %2112 = vmatmul.mubr.f32.vlgmr.msra.gmra.mrb[2].mxu1 %v15353_v25  ;;  %v12237_v52 = vpack.c.bf16 %v544_v45, %v531_v44  ;;  %v530_v53 = vld [vmem:[%s22907_s3 + $0xec0] sm:$0xff]  ;;  %v543_v54 = vld [vmem:[%s22907_s3 + $0xf28] sm:$0xff]  ;;  %v532_v55 = vld [vmem:[%s22907_s3 + $0xed0] sm:$0xff]  ;;  %v12429_v56 = vpack.c.bf16 %v546_v48, %v533_v47  ;;  %vm4700_vm5 = vcmask 392192   ;;  %vm5153_vm8 = vcmask 523264   ;;  %s14948_s23 = smov 64  }
 0x109   :  { %12424 = vmatpush1.bf16.msra.mxu1 %v12423_v36  ;;  %12234 = vmatprep.subr.bf16.mxu0 %v12233_v37  ;;  %v545_v57 = vld [vmem:[%s22907_s3 + $0xf38] sm:$0xff]  ;;  %v570_v59 = vld [vmem:[%s22907_s3 + $0x1000] sm:$0xff]  ;;  %v559_v62 = vld [vmem:[%s22907_s3 + $0xfa8] sm:$0xff]  ;;  %v12239_v0 = vpack.c.bf16 %v543_v54, %v530_v53 }
 0x10a   :  { %12426 = vmatprep.subr.bf16.mxu1 %v12425_v42  ;;  %v557_v58 = vld [vmem:[%s22907_s3 + $0xf98] sm:$0xff]  ;;  %1969 = vmatprep.mubr.f32.mxu0 %v15506_v39  ;;  %v572_v63 = vld [vmem:[%s22907_s3 + $0x1010] sm:$0xff]  ;;  %v12431_v1 = vpack.c.bf16 %v545_v57, %v532_v55  ;;  %v558_v5 = vld [vmem:[%s22907_s3 + $0xfa0] sm:$0xff] }
 0x10b   :  { %2182 = vmatprep.mubr.f32.mxu1 %v15506_v39  ;;  %v12241_v2 = vpack.c.bf16 %v570_v59, %v557_v58  ;;  %v556_v3 = vld [vmem:[%s22907_s3 + $0xf90] sm:$0xff]  ;;  %v569_v4 = vld [vmem:[%s22907_s3 + $0xff8] sm:$0xff]  ;;  %v12433_v6 = vpack.c.bf16 %v572_v63, %v559_v62  ;;  %v571_v7 = vld [vmem:[%s22907_s3 + $0x1008] sm:$0xff] }
 0x10c   :  { %12236 = vmatpush1.bf16.msra.mxu0 %v12235_v49  ;;  %v583_v8 = vld [vmem:[%s22907_s3 + $0x1068] sm:$0xff]  ;;  %v596_v9 = vld [vmem:[%s22907_s3 + $0x10d0] sm:$0xff]  ;;  %v585_v10 = vld [vmem:[%s22907_s3 + $0x1078] sm:$0xff]  ;;  %v12243_v13 = vpack.c.bf16 %v569_v4, %v556_v3  ;;  %v12435_v14 = vpack.c.bf16 %v571_v7, %v558_v5 }
 0x10d   :  { %12428 = vmatpush1.bf16.msra.mxu1 %v12427_v51  ;;  %12238 = vmatprep.subr.bf16.mxu0 %v12237_v52  ;;  %v598_v12 = vld [vmem:[%s22907_s3 + $0x10e0] sm:$0xff]  ;;  %v12245_v15 = vpack.c.bf16 %v596_v9, %v583_v8  ;;  %v595_v17 = vld [vmem:[%s22907_s3 + $0x10c8] sm:$0xff]  ;;  %v584_v18 = vld [vmem:[%s22907_s3 + $0x1070] sm:$0xff] }
 0x10e   :  { %12430 = vmatprep.subr.bf16.mxu1 %v12429_v56  ;;  %v582_v16 = vld [vmem:[%s22907_s3 + $0x1060] sm:$0xff]  ;;  %v12437_v19 = vpack.c.bf16 %v598_v12, %v585_v10  ;;  %v597_v20 = vld [vmem:[%s22907_s3 + $0x10d8] sm:$0xff]  ;;  %v611_v23 = vld [vmem:[%s22907_s3 + $0x1148] sm:$0xff] }
 0x10f   :  { %v609_v21 = vld [vmem:[%s22907_s3 + $0x1138] sm:$0xff]  ;;  %v622_v22 = vld [vmem:[%s22907_s3 + $0x11a0] sm:$0xff]  ;;  %v624_v24 = vld [vmem:[%s22907_s3 + $0x11b0] sm:$0xff]  ;;  %v12247_v27 = vpack.c.bf16 %v595_v17, %v582_v16  ;;  %v12439_v28 = vpack.c.bf16 %v597_v20, %v584_v18 }
 0x110   :  { %12240 = vmatpush1.bf16.msra.mxu0 %v12239_v0  ;;  %v12249_v29 = vpack.c.bf16 %v622_v22, %v609_v21  ;;  %v608_v30 = vld [vmem:[%s22907_s3 + $0x1130] sm:$0xff]  ;;  %v621_v31 = vld [vmem:[%s22907_s3 + $0x1198] sm:$0xff]  ;;  %v610_v33 = vld [vmem:[%s22907_s3 + $0x1140] sm:$0xff]  ;;  %v12441_v50 = vpack.c.bf16 %v624_v24, %v611_v23 }
 0x111   :  { %12432 = vmatpush1.bf16.msra.mxu1 %v12431_v1  ;;  %12242 = vmatprep.subr.bf16.mxu0 %v12241_v2  ;;  %v623_v11 = vld [vmem:[%s22907_s3 + $0x11a8] sm:$0xff]  ;;  %v648_v35 = vld [vmem:[%s22907_s3 + $0x1270] sm:$0xff]  ;;  %v637_v36 = vld [vmem:[%s22907_s3 + $0x1218] sm:$0xff]  ;;  %v12251_v38 = vpack.c.bf16 %v621_v31, %v608_v30 }
 0x112   :  { %12434 = vmatprep.subr.bf16.mxu1 %v12433_v6  ;;  %v635_v34 = vld [vmem:[%s22907_s3 + $0x1208] sm:$0xff]  ;;  %v650_v37 = vld [vmem:[%s22907_s3 + $0x1280] sm:$0xff]  ;;  %v12443_v40 = vpack.c.bf16 %v623_v11, %v610_v33  ;;  %v636_v44 = vld [vmem:[%s22907_s3 + $0x1210] sm:$0xff] }
 0x113   :  { %v12253_v41 = vpack.c.bf16 %v648_v35, %v635_v34  ;;  %v634_v42 = vld [vmem:[%s22907_s3 + $0x1200] sm:$0xff]  ;;  %v647_v43 = vld [vmem:[%s22907_s3 + $0x1268] sm:$0xff]  ;;  %v12445_v45 = vpack.c.bf16 %v650_v37, %v637_v36  ;;  %v649_v47 = vld [vmem:[%s22907_s3 + $0x1278] sm:$0xff] }
 0x114   :  { %12244 = vmatpush1.bf16.msra.mxu0 %v12243_v13  ;;  %v661_v48 = vld [vmem:[%s22907_s3 + $0x12d8] sm:$0xff]  ;;  %v674_v49 = vld [vmem:[%s22907_s3 + $0x1340] sm:$0xff]  ;;  %v663_v51 = vld [vmem:[%s22907_s3 + $0x12e8] sm:$0xff]  ;;  %v12255_v53 = vpack.c.bf16 %v647_v43, %v634_v42  ;;  %v12447_v54 = vpack.c.bf16 %v649_v47, %v636_v44 }
 0x115   :  { %12436 = vmatpush1.bf16.msra.mxu1 %v12435_v14  ;;  %12246 = vmatprep.subr.bf16.mxu0 %v12245_v15  ;;  %v676_v52 = vld [vmem:[%s22907_s3 + $0x1350] sm:$0xff]  ;;  %v12257_v55 = vpack.c.bf16 %v674_v49, %v661_v48  ;;  %v673_v57 = vld [vmem:[%s22907_s3 + $0x1338] sm:$0xff]  ;;  %v662_v58 = vld [vmem:[%s22907_s3 + $0x12e0] sm:$0xff] }
 0x116   :  { %12438 = vmatprep.subr.bf16.mxu1 %v12437_v19  ;;  %v660_v56 = vld [vmem:[%s22907_s3 + $0x12d0] sm:$0xff]  ;;  %v12449_v59 = vpack.c.bf16 %v676_v52, %v663_v51  ;;  %v675_v62 = vld [vmem:[%s22907_s3 + $0x1348] sm:$0xff]  ;;  %v689_v1 = vld [vmem:[%s22907_s3 + $0x13b8] sm:$0xff] }
 0x117   :  { %v687_v63 = vld [vmem:[%s22907_s3 + $0x13a8] sm:$0xff]  ;;  %v700_v0 = vld [vmem:[%s22907_s3 + $0x1410] sm:$0xff]  ;;  %v702_v2 = vld [vmem:[%s22907_s3 + $0x1420] sm:$0xff]  ;;  %v12259_v3 = vpack.c.bf16 %v673_v57, %v660_v56  ;;  %v12451_v4 = vpack.c.bf16 %v675_v62, %v662_v58 }
 0x118   :  { %12248 = vmatpush1.bf16.msra.mxu0 %v12247_v27  ;;  %v12261_v5 = vpack.c.bf16 %v700_v0, %v687_v63  ;;  %v686_v6 = vld [vmem:[%s22907_s3 + $0x13a0] sm:$0xff]  ;;  %v699_v7 = vld [vmem:[%s22907_s3 + $0x1408] sm:$0xff]  ;;  %v688_v8 = vld [vmem:[%s22907_s3 + $0x13b0] sm:$0xff]  ;;  %v12453_v9 = vpack.c.bf16 %v702_v2, %v689_v1 }
 0x119   :  { %12440 = vmatpush1.bf16.msra.mxu1 %v12439_v28  ;;  %12250 = vmatprep.subr.bf16.mxu0 %v12249_v29  ;;  %v701_v10 = vld [vmem:[%s22907_s3 + $0x1418] sm:$0xff]  ;;  %v726_v13 = vld [vmem:[%s22907_s3 + $0x14e0] sm:$0xff]  ;;  %v715_v14 = vld [vmem:[%s22907_s3 + $0x1488] sm:$0xff]  ;;  %v12263_v16 = vpack.c.bf16 %v699_v7, %v686_v6 }
 0x11a   :  { %12442 = vmatprep.subr.bf16.mxu1 %v12441_v50  ;;  %v713_v12 = vld [vmem:[%s22907_s3 + $0x1478] sm:$0xff]  ;;  %v728_v15 = vld [vmem:[%s22907_s3 + $0x14f0] sm:$0xff]  ;;  %v12455_v17 = vpack.c.bf16 %v701_v10, %v688_v8  ;;  %v714_v21 = vld [vmem:[%s22907_s3 + $0x1480] sm:$0xff] }
 0x11b   :  { %v12265_v18 = vpack.c.bf16 %v726_v13, %v713_v12  ;;  %v712_v19 = vld [vmem:[%s22907_s3 + $0x1470] sm:$0xff]  ;;  %v725_v20 = vld [vmem:[%s22907_s3 + $0x14d8] sm:$0xff]  ;;  %v12457_v22 = vpack.c.bf16 %v728_v15, %v715_v14  ;;  %v727_v23 = vld [vmem:[%s22907_s3 + $0x14e8] sm:$0xff] }
 0x11c   :  { %12252 = vmatpush1.bf16.msra.mxu0 %v12251_v38  ;;  %v739_v24 = vld [vmem:[%s22907_s3 + $0x1548] sm:$0xff]  ;;  %v752_v27 = vld [vmem:[%s22907_s3 + $0x15b0] sm:$0xff]  ;;  %v741_v28 = vld [vmem:[%s22907_s3 + $0x1558] sm:$0xff]  ;;  %v12267_v30 = vpack.c.bf16 %v725_v20, %v712_v19  ;;  %v12459_v31 = vpack.c.bf16 %v727_v23, %v714_v21 }
 0x11d   :  { %12444 = vmatpush1.bf16.msra.mxu1 %v12443_v40  ;;  %12254 = vmatprep.subr.bf16.mxu0 %v12253_v41  ;;  %v754_v29 = vld [vmem:[%s22907_s3 + $0x15c0] sm:$0xff]  ;;  %v12269_v33 = vpack.c.bf16 %v752_v27, %v739_v24  ;;  %v751_v11 = vld [vmem:[%s22907_s3 + $0x15a8] sm:$0xff]  ;;  %v740_v34 = vld [vmem:[%s22907_s3 + $0x1550] sm:$0xff] }
 0x11e   :  { %12446 = vmatprep.subr.bf16.mxu1 %v12445_v45  ;;  %v738_v50 = vld [vmem:[%s22907_s3 + $0x1540] sm:$0xff]  ;;  %v12461_v35 = vpack.c.bf16 %v754_v29, %v741_v28  ;;  %v753_v36 = vld [vmem:[%s22907_s3 + $0x15b8] sm:$0xff]  ;;  %v767_v40 = vld [vmem:[%s22907_s3 + $0x1628] sm:$0xff] }
 0x11f   :  { %v765_v37 = vld [vmem:[%s22907_s3 + $0x1618] sm:$0xff]  ;;  %v778_v38 = vld [vmem:[%s22907_s3 + $0x1680] sm:$0xff]  ;;  %v780_v41 = vld [vmem:[%s22907_s3 + $0x1690] sm:$0xff]  ;;  %v12271_v42 = vpack.c.bf16 %v751_v11, %v738_v50  ;;  %v12463_v43 = vpack.c.bf16 %v753_v36, %v740_v34 }
 0x120   :  { %12256 = vmatpush1.bf16.msra.mxu0 %v12255_v53  ;;  %v12273_v44 = vpack.c.bf16 %v778_v38, %v765_v37  ;;  %v764_v45 = vld [vmem:[%s22907_s3 + $0x1610] sm:$0xff]  ;;  %v777_v47 = vld [vmem:[%s22907_s3 + $0x1678] sm:$0xff]  ;;  %v766_v48 = vld [vmem:[%s22907_s3 + $0x1620] sm:$0xff]  ;;  %v12465_v49 = vpack.c.bf16 %v780_v41, %v767_v40 }
 0x121   :  { %12448 = vmatpush1.bf16.msra.mxu1 %v12447_v54  ;;  %12258 = vmatprep.subr.bf16.mxu0 %v12257_v55  ;;  %v779_v51 = vld [vmem:[%s22907_s3 + $0x1688] sm:$0xff]  ;;  %v804_v53 = vld [vmem:[%s22907_s3 + $0x1750] sm:$0xff]  ;;  %v793_v54 = vld [vmem:[%s22907_s3 + $0x16f8] sm:$0xff]  ;;  %v12275_v56 = vpack.c.bf16 %v777_v47, %v764_v45 }
 0x122   :  { %12450 = vmatprep.subr.bf16.mxu1 %v12449_v59  ;;  %v791_v52 = vld [vmem:[%s22907_s3 + $0x16e8] sm:$0xff]  ;;  %v806_v55 = vld [vmem:[%s22907_s3 + $0x1760] sm:$0xff]  ;;  %v12467_v57 = vpack.c.bf16 %v779_v51, %v766_v48  ;;  %v792_v63 = vld [vmem:[%s22907_s3 + $0x16f0] sm:$0xff] }
 0x123   :  { %v12277_v58 = vpack.c.bf16 %v804_v53, %v791_v52  ;;  %v790_v59 = vld [vmem:[%s22907_s3 + $0x16e0] sm:$0xff]  ;;  %v803_v62 = vld [vmem:[%s22907_s3 + $0x1748] sm:$0xff]  ;;  %v12469_v0 = vpack.c.bf16 %v806_v55, %v793_v54  ;;  %v805_v1 = vld [vmem:[%s22907_s3 + $0x1758] sm:$0xff] }
 0x124   :  { %12260 = vmatpush1.bf16.msra.mxu0 %v12259_v3  ;;  %v817_v2 = vld [vmem:[%s22907_s3 + $0x17b8] sm:$0xff]  ;;  %v830_v3 = vld [vmem:[%s22907_s3 + $0x1820] sm:$0xff]  ;;  %v12279_v6 = vpack.c.bf16 %v803_v62, %v790_v59  ;;  %v12471_v7 = vpack.c.bf16 %v805_v1, %v792_v63  ;;  %v831_v14 = vld [vmem:[%s22907_s3 + $0x1828] sm:$0xff] }
 0x125   :  { %12452 = vmatpush1.bf16.msra.mxu1 %v12451_v4  ;;  %12262 = vmatprep.subr.bf16.mxu0 %v12261_v5  ;;  %v819_v4 = vld [vmem:[%s22907_s3 + $0x17c8] sm:$0xff]  ;;  %v832_v5 = vld [vmem:[%s22907_s3 + $0x1830] sm:$0xff]  ;;  %v12281_v8 = vpack.c.bf16 %v830_v3, %v817_v2  ;;  %v829_v10 = vld [vmem:[%s22907_s3 + $0x1818] sm:$0xff] }
 0x126   :  { %12454 = vmatprep.subr.bf16.mxu1 %v12453_v9  ;;  %v816_v9 = vld [vmem:[%s22907_s3 + $0x17b0] sm:$0xff]  ;;  %v818_v12 = vld [vmem:[%s22907_s3 + $0x17c0] sm:$0xff]  ;;  %v12473_v13 = vpack.c.bf16 %v832_v5, %v819_v4  ;;  %v843_v15 = vld [vmem:[%s22907_s3 + $0x1888] sm:$0xff] }
 0x127   :  { %v12283_v19 = vpack.c.bf16 %v829_v10, %v816_v9  ;;  %v12475_v20 = vpack.c.bf16 %v831_v14, %v818_v12  ;;  %v855_v23 = vld [vmem:[%s22907_s3 + $0x18e8] sm:$0xff]  ;;  %v844_v24 = vld [vmem:[%s22907_s3 + $0x1890] sm:$0xff]  ;;  %v857_v28 = vld [vmem:[%s22907_s3 + $0x18f8] sm:$0xff] }
 0x128   :  { %12264 = vmatpush1.bf16.msra.mxu0 %v12263_v16  ;;  %v856_v16 = vld [vmem:[%s22907_s3 + $0x18f0] sm:$0xff]  ;;  %v869_v29 = vld [vmem:[%s22907_s3 + $0x1958] sm:$0xff]  ;;  %v12479_v11 = vpack.c.bf16 %v857_v28, %v844_v24  ;;  %v870_v37 = vld [vmem:[%s22907_s3 + $0x1960] sm:$0xff] }
 0x129   :  { %12456 = vmatpush1.bf16.msra.mxu1 %v12455_v17  ;;  %12266 = vmatprep.subr.bf16.mxu0 %v12265_v18  ;;  %v845_v17 = vld [vmem:[%s22907_s3 + $0x1898] sm:$0xff]  ;;  %v858_v18 = vld [vmem:[%s22907_s3 + $0x1900] sm:$0xff]  ;;  %v12285_v21 = vpack.c.bf16 %v856_v16, %v843_v15  ;;  %v883_v40 = vld [vmem:[%s22907_s3 + $0x19c8] sm:$0xff] }
 0x12a   :  { %12458 = vmatprep.subr.bf16.mxu1 %v12457_v22  ;;  %v842_v22 = vld [vmem:[%s22907_s3 + $0x1880] sm:$0xff]  ;;  %v12477_v27 = vpack.c.bf16 %v858_v18, %v845_v17  ;;  %v881_v36 = vld [vmem:[%s22907_s3 + $0x19b8] sm:$0xff]  ;;  %v895_v41 = vld [vmem:[%s22907_s3 + $0x1a28] sm:$0xff]  ;;  %v12483_v47 = vpack.c.bf16 %v883_v40, %v870_v37 }
 0x12b   :  { %v12287_v50 = vpack.c.bf16 %v855_v23, %v842_v22  ;;  %v907_v51 = vld [vmem:[%s22907_s3 + $0x1a88] sm:$0xff]  ;;  %v896_v52 = vld [vmem:[%s22907_s3 + $0x1a30] sm:$0xff]  ;;  %v909_v54 = vld [vmem:[%s22907_s3 + $0x1a98] sm:$0xff] }
 0x12c   :  { %12268 = vmatpush1.bf16.msra.mxu0 %v12267_v30  ;;  %v882_v30 = vld [vmem:[%s22907_s3 + $0x19c0] sm:$0xff]  ;;  %v921_v55 = vld [vmem:[%s22907_s3 + $0x1af8] sm:$0xff]  ;;  %v12487_v62 = vpack.c.bf16 %v909_v54, %v896_v52  ;;  %v935_v4 = vld [vmem:[%s22907_s3 + $0x1b68] sm:$0xff] }
 0x12d   :  { %12460 = vmatpush1.bf16.msra.mxu1 %v12459_v31  ;;  %12270 = vmatprep.subr.bf16.mxu0 %v12269_v33  ;;  %v871_v31 = vld [vmem:[%s22907_s3 + $0x1968] sm:$0xff]  ;;  %v884_v33 = vld [vmem:[%s22907_s3 + $0x19d0] sm:$0xff]  ;;  %v12289_v34 = vpack.c.bf16 %v882_v30, %v869_v29  ;;  %v933_v1 = vld [vmem:[%s22907_s3 + $0x1b58] sm:$0xff] }
 0x12e   :  { %12462 = vmatprep.subr.bf16.mxu1 %v12461_v35  ;;  %v868_v35 = vld [vmem:[%s22907_s3 + $0x1950] sm:$0xff]  ;;  %v12481_v38 = vpack.c.bf16 %v884_v33, %v871_v31  ;;  %v922_v2 = vld [vmem:[%s22907_s3 + $0x1b00] sm:$0xff]  ;;  %v947_v5 = vld [vmem:[%s22907_s3 + $0x1bc8] sm:$0xff] }
 0x12f   :  { %v12291_v45 = vpack.c.bf16 %v881_v36, %v868_v35  ;;  %v12491_v10 = vpack.c.bf16 %v935_v4, %v922_v2  ;;  %v959_v14 = vld [vmem:[%s22907_s3 + $0x1c28] sm:$0xff]  ;;  %v948_v15 = vld [vmem:[%s22907_s3 + $0x1bd0] sm:$0xff]  ;;  %v961_v17 = vld [vmem:[%s22907_s3 + $0x1c38] sm:$0xff] }
 0x130   :  { %12272 = vmatpush1.bf16.msra.mxu0 %v12271_v42  ;;  %v908_v42 = vld [vmem:[%s22907_s3 + $0x1a90] sm:$0xff]  ;;  %v973_v18 = vld [vmem:[%s22907_s3 + $0x1c98] sm:$0xff]  ;;  %v12495_v23 = vpack.c.bf16 %v961_v17, %v948_v15  ;;  %v974_v29 = vld [vmem:[%s22907_s3 + $0x1ca0] sm:$0xff] }
 0x131   :  { %12464 = vmatpush1.bf16.msra.mxu1 %v12463_v43  ;;  %12274 = vmatprep.subr.bf16.mxu0 %v12273_v44  ;;  %v897_v43 = vld [vmem:[%s22907_s3 + $0x1a38] sm:$0xff]  ;;  %v910_v44 = vld [vmem:[%s22907_s3 + $0x1aa0] sm:$0xff]  ;;  %v12293_v48 = vpack.c.bf16 %v908_v42, %v895_v41  ;;  %v987_v31 = vld [vmem:[%s22907_s3 + $0x1d08] sm:$0xff] }
 0x132   :  { %12466 = vmatprep.subr.bf16.mxu1 %v12465_v49  ;;  %v894_v49 = vld [vmem:[%s22907_s3 + $0x1a20] sm:$0xff]  ;;  %v12485_v53 = vpack.c.bf16 %v910_v44, %v897_v43  ;;  %v985_v28 = vld [vmem:[%s22907_s3 + $0x1cf8] sm:$0xff]  ;;  %v999_v33 = vld [vmem:[%s22907_s3 + $0x1d68] sm:$0xff]  ;;  %v12499_v36 = vpack.c.bf16 %v987_v31, %v974_v29 }
 0x133   :  { %v12295_v59 = vpack.c.bf16 %v907_v51, %v894_v49  ;;  %v1011_v40 = vld [vmem:[%s22907_s3 + $0x1dc8] sm:$0xff]  ;;  %v1000_v41 = vld [vmem:[%s22907_s3 + $0x1d70] sm:$0xff]  ;;  %v1013_v43 = vld [vmem:[%s22907_s3 + $0x1dd8] sm:$0xff] }
 0x134   :  { %12276 = vmatpush1.bf16.msra.mxu0 %v12275_v56  ;;  %v934_v56 = vld [vmem:[%s22907_s3 + $0x1b60] sm:$0xff]  ;;  %v1025_v44 = vld [vmem:[%s22907_s3 + $0x1e38] sm:$0xff]  ;;  %v12503_v51 = vpack.c.bf16 %v1013_v43, %v1000_v41  ;;  %v1063_v4 = vld [vmem:[%s22907_s3 + $0x1f68] sm:$0xff] }
 0x135   :  { %12468 = vmatpush1.bf16.msra.mxu1 %v12467_v57  ;;  %12278 = vmatprep.subr.bf16.mxu0 %v12277_v58  ;;  %v923_v57 = vld [vmem:[%s22907_s3 + $0x1b08] sm:$0xff]  ;;  %v936_v58 = vld [vmem:[%s22907_s3 + $0x1b70] sm:$0xff]  ;;  %v12297_v63 = vpack.c.bf16 %v934_v56, %v921_v55  ;;  %v1037_v54 = vld [vmem:[%s22907_s3 + $0x1e98] sm:$0xff] }
 0x136   :  { %12470 = vmatprep.subr.bf16.mxu1 %v12469_v0  ;;  %v920_v0 = vld [vmem:[%s22907_s3 + $0x1af0] sm:$0xff]  ;;  %v12489_v3 = vpack.c.bf16 %v936_v58, %v923_v57  ;;  %v1026_v55 = vld [vmem:[%s22907_s3 + $0x1e40] sm:$0xff]  ;;  %v1039_v57 = vld [vmem:[%s22907_s3 + $0x1ea8] sm:$0xff] }
 0x137   :  { %v12299_v9 = vpack.c.bf16 %v933_v1, %v920_v0  ;;  %v1051_v58 = vld [vmem:[%s22907_s3 + $0x1f08] sm:$0xff]  ;;  %v12507_v1 = vpack.c.bf16 %v1039_v57, %v1026_v55  ;;  %v1089_v17 = vld [vmem:[%s22907_s3 + $0x2038] sm:$0xff] }
 0x138   :  { %12280 = vmatpush1.bf16.msra.mxu0 %v12279_v6  ;;  %v960_v6 = vld [vmem:[%s22907_s3 + $0x1c30] sm:$0xff]  ;;  %v1115_v31 = vld [vmem:[%s22907_s3 + $0x2108] sm:$0xff]  ;;  %v1141_v43 = vld [vmem:[%s22907_s3 + $0x21d8] sm:$0xff] }
 0x139   :  { %12472 = vmatpush1.bf16.msra.mxu1 %v12471_v7  ;;  %12282 = vmatprep.subr.bf16.mxu0 %v12281_v8  ;;  %v949_v7 = vld [vmem:[%s22907_s3 + $0x1bd8] sm:$0xff]  ;;  %v962_v8 = vld [vmem:[%s22907_s3 + $0x1c40] sm:$0xff]  ;;  %v12301_v12 = vpack.c.bf16 %v960_v6, %v947_v5  ;;  %v1052_v5 = vld [vmem:[%s22907_s3 + $0x1f10] sm:$0xff] }
 0x13a   :  { %12474 = vmatprep.subr.bf16.mxu1 %v12473_v13  ;;  %v946_v13 = vld [vmem:[%s22907_s3 + $0x1bc0] sm:$0xff]  ;;  %v12493_v16 = vpack.c.bf16 %v962_v8, %v949_v7  ;;  %v1065_v7 = vld [vmem:[%s22907_s3 + $0x1f78] sm:$0xff]  ;;  %v1167_v57 = vld [vmem:[%s22907_s3 + $0x22a8] sm:$0xff] }
 0x13b   :  { %v12303_v22 = vpack.c.bf16 %v959_v14, %v946_v13  ;;  %v1077_v8 = vld [vmem:[%s22907_s3 + $0x1fd8] sm:$0xff]  ;;  %v12511_v14 = vpack.c.bf16 %v1065_v7, %v1052_v5 }
 0x13c   :  { %12284 = vmatpush1.bf16.msra.mxu0 %v12283_v19  ;;  %v986_v19 = vld [vmem:[%s22907_s3 + $0x1d00] sm:$0xff]  ;;  %v1193_v7 = vld [vmem:[%s22907_s3 + $0x2378] sm:$0xff] }
 0x13d   :  { %12476 = vmatpush1.bf16.msra.mxu1 %v12475_v20  ;;  %12286 = vmatprep.subr.bf16.mxu0 %v12285_v21  ;;  %v975_v20 = vld [vmem:[%s22907_s3 + $0x1ca8] sm:$0xff]  ;;  %v988_v21 = vld [vmem:[%s22907_s3 + $0x1d10] sm:$0xff]  ;;  %v12305_v24 = vpack.c.bf16 %v986_v19, %v973_v18  ;;  %v1078_v18 = vld [vmem:[%s22907_s3 + $0x1fe0] sm:$0xff] }
 0x13e   :  { %12478 = vmatprep.subr.bf16.mxu1 %v12477_v27  ;;  %v972_v27 = vld [vmem:[%s22907_s3 + $0x1c90] sm:$0xff]  ;;  %v12497_v30 = vpack.c.bf16 %v988_v21, %v975_v20  ;;  %v1091_v20 = vld [vmem:[%s22907_s3 + $0x2048] sm:$0xff] }
 0x13f   :  { %v12307_v35 = vpack.c.bf16 %v985_v28, %v972_v27  ;;  %v1103_v21 = vld [vmem:[%s22907_s3 + $0x20a8] sm:$0xff]  ;;  %v12515_v28 = vpack.c.bf16 %v1091_v20, %v1078_v18 }
 0x140   :  { %12288 = vmatpush1.bf16.msra.mxu0 %v12287_v50  ;;  %v1012_v50 = vld [vmem:[%s22907_s3 + $0x1dd0] sm:$0xff]  ;;  %v1219_v20 = vld [vmem:[%s22907_s3 + $0x2448] sm:$0xff] }
 0x141   :  { %12480 = vmatpush1.bf16.msra.mxu1 %v12479_v11  ;;  %12290 = vmatprep.subr.bf16.mxu0 %v12289_v34  ;;  %v1001_v11 = vld [vmem:[%s22907_s3 + $0x1d78] sm:$0xff]  ;;  %v1014_v34 = vld [vmem:[%s22907_s3 + $0x1de0] sm:$0xff]  ;;  %v12309_v37 = vpack.c.bf16 %v1012_v50, %v999_v33  ;;  %v1104_v33 = vld [vmem:[%s22907_s3 + $0x20b0] sm:$0xff] }
 0x142   :  { %12482 = vmatprep.subr.bf16.mxu1 %v12481_v38  ;;  %v998_v38 = vld [vmem:[%s22907_s3 + $0x1d60] sm:$0xff]  ;;  %v12501_v42 = vpack.c.bf16 %v1014_v34, %v1001_v11  ;;  %v1117_v11 = vld [vmem:[%s22907_s3 + $0x2118] sm:$0xff] }
 0x143   :  { %v12311_v49 = vpack.c.bf16 %v1011_v40, %v998_v38  ;;  %v1129_v34 = vld [vmem:[%s22907_s3 + $0x2178] sm:$0xff]  ;;  %v12519_v40 = vpack.c.bf16 %v1117_v11, %v1104_v33 }
 0x144   :  { %12292 = vmatpush1.bf16.msra.mxu0 %v12291_v45  ;;  %v1038_v45 = vld [vmem:[%s22907_s3 + $0x1ea0] sm:$0xff]  ;;  %v1245_v11 = vld [vmem:[%s22907_s3 + $0x2518] sm:$0xff] }
 0x145   :  { %12484 = vmatpush1.bf16.msra.mxu1 %v12483_v47  ;;  %12294 = vmatprep.subr.bf16.mxu0 %v12293_v48  ;;  %v1027_v47 = vld [vmem:[%s22907_s3 + $0x1e48] sm:$0xff]  ;;  %v1040_v48 = vld [vmem:[%s22907_s3 + $0x1eb0] sm:$0xff]  ;;  %v12313_v52 = vpack.c.bf16 %v1038_v45, %v1025_v44  ;;  %v1130_v44 = vld [vmem:[%s22907_s3 + $0x2180] sm:$0xff] }
 0x146   :  { %12486 = vmatprep.subr.bf16.mxu1 %v12485_v53  ;;  %v1024_v53 = vld [vmem:[%s22907_s3 + $0x1e30] sm:$0xff]  ;;  %v12505_v56 = vpack.c.bf16 %v1040_v48, %v1027_v47  ;;  %v1143_v47 = vld [vmem:[%s22907_s3 + $0x21e8] sm:$0xff] }
 0x147   :  { %1970 = vmatmul.mubr.f32.vlgmr.msra.gmra.mrb[2].mxu0 %v15478_v26  ;;  %v12315_v0 = vpack.c.bf16 %v1037_v54, %v1024_v53  ;;  %v1155_v48 = vld [vmem:[%s22907_s3 + $0x2248] sm:$0xff]  ;;  %v12523_v54 = vpack.c.bf16 %v1143_v47, %v1130_v44 }
 0x148   :  { %12296 = vmatpush1.bf16.msra.mxu0 %v12295_v59  ;;  %2183 = vmatmul.mubr.f32.vlgmr.msra.gmra.mrb[2].mxu1 %v15478_v26  ;;  %v1064_v59 = vld [vmem:[%s22907_s3 + $0x1f70] sm:$0xff]  ;;  %v1271_v47 = vld [vmem:[%s22907_s3 + $0x25e8] sm:$0xff] }
 0x149   :  { %12488 = vmatpush1.bf16.msra.mxu1 %v12487_v62  ;;  %12298 = vmatprep.subr.bf16.mxu0 %v12297_v63  ;;  %v1053_v62 = vld [vmem:[%s22907_s3 + $0x1f18] sm:$0xff]  ;;  %v1066_v63 = vld [vmem:[%s22907_s3 + $0x1f80] sm:$0xff]  ;;  %v12317_v2 = vpack.c.bf16 %v1064_v59, %v1051_v58  ;;  %v1156_v58 = vld [vmem:[%s22907_s3 + $0x2250] sm:$0xff] }
 0x14a   :  { %12490 = vmatprep.subr.bf16.mxu1 %v12489_v3  ;;  %2040 = vmatprep.mubr.f32.mxu0 %v15903_v60  ;;  %v1050_v3 = vld [vmem:[%s22907_s3 + $0x1f00] sm:$0xff]  ;;  %v12509_v6 = vpack.c.bf16 %v1066_v63, %v1053_v62  ;;  %v1169_v62 = vld [vmem:[%s22907_s3 + $0x22b8] sm:$0xff] }
 0x14b   :  { %2253 = vmatprep.mubr.f32.mxu1 %v15903_v60  ;;  %v12319_v13 = vpack.c.bf16 %v1063_v4, %v1050_v3  ;;  %v1181_v63 = vld [vmem:[%s22907_s3 + $0x2318] sm:$0xff]  ;;  %v12527_v4 = vpack.c.bf16 %v1169_v62, %v1156_v58 }
 0x14c   :  { %12300 = vmatpush1.bf16.msra.mxu0 %v12299_v9  ;;  %v1090_v9 = vld [vmem:[%s22907_s3 + $0x2040] sm:$0xff]  ;;  %v1297_v62 = vld [vmem:[%s22907_s3 + $0x26b8] sm:$0xff] }
 0x14d   :  { %12492 = vmatpush1.bf16.msra.mxu1 %v12491_v10  ;;  %12302 = vmatprep.subr.bf16.mxu0 %v12301_v12  ;;  %v1079_v10 = vld [vmem:[%s22907_s3 + $0x1fe8] sm:$0xff]  ;;  %v1092_v12 = vld [vmem:[%s22907_s3 + $0x2050] sm:$0xff]  ;;  %v12321_v15 = vpack.c.bf16 %v1090_v9, %v1077_v8  ;;  %v1182_v8 = vld [vmem:[%s22907_s3 + $0x2320] sm:$0xff] }
 0x14e   :  { %12494 = vmatprep.subr.bf16.mxu1 %v12493_v16  ;;  %v1076_v16 = vld [vmem:[%s22907_s3 + $0x1fd0] sm:$0xff]  ;;  %v12513_v19 = vpack.c.bf16 %v1092_v12, %v1079_v10  ;;  %v1195_v10 = vld [vmem:[%s22907_s3 + $0x2388] sm:$0xff] }
 0x14f   :  { %v12323_v27 = vpack.c.bf16 %v1089_v17, %v1076_v16  ;;  %v1207_v12 = vld [vmem:[%s22907_s3 + $0x23e8] sm:$0xff]  ;;  %v12531_v17 = vpack.c.bf16 %v1195_v10, %v1182_v8 }
 0x150   :  { %12304 = vmatpush1.bf16.msra.mxu0 %v12303_v22  ;;  %v1116_v22 = vld [vmem:[%s22907_s3 + $0x2110] sm:$0xff]  ;;  %v79_v10 = vld [vmem:[%s22907_s3 + $0xa8] sm:$0xff] }
 0x151   :  { %12496 = vmatpush1.bf16.msra.mxu1 %v12495_v23  ;;  %12306 = vmatprep.subr.bf16.mxu0 %v12305_v24  ;;  %v1105_v23 = vld [vmem:[%s22907_s3 + $0x20b8] sm:$0xff]  ;;  %v1118_v24 = vld [vmem:[%s22907_s3 + $0x2120] sm:$0xff]  ;;  %v12325_v29 = vpack.c.bf16 %v1116_v22, %v1103_v21  ;;  %v1208_v21 = vld [vmem:[%s22907_s3 + $0x23f0] sm:$0xff] }
 0x152   :  { %12498 = vmatprep.subr.bf16.mxu1 %v12497_v30  ;;  %v1102_v30 = vld [vmem:[%s22907_s3 + $0x20a0] sm:$0xff]  ;;  %v12517_v50 = vpack.c.bf16 %v1118_v24, %v1105_v23  ;;  %v1221_v23 = vld [vmem:[%s22907_s3 + $0x2458] sm:$0xff] }
 0x153   :  { %v12327_v38 = vpack.c.bf16 %v1115_v31, %v1102_v30  ;;  %v1233_v24 = vld [vmem:[%s22907_s3 + $0x24b8] sm:$0xff]  ;;  %v12535_v31 = vpack.c.bf16 %v1221_v23, %v1208_v21 }
 0x154   :  { %12308 = vmatpush1.bf16.msra.mxu0 %v12307_v35  ;;  %v1142_v35 = vld [vmem:[%s22907_s3 + $0x21e0] sm:$0xff]  ;;  %v105_v23 = vld [vmem:[%s22907_s3 + $0x178] sm:$0xff] }
 0x155   :  { %12500 = vmatpush1.bf16.msra.mxu1 %v12499_v36  ;;  %12310 = vmatprep.subr.bf16.mxu0 %v12309_v37  ;;  %v1131_v36 = vld [vmem:[%s22907_s3 + $0x2188] sm:$0xff]  ;;  %v1144_v37 = vld [vmem:[%s22907_s3 + $0x21f0] sm:$0xff]  ;;  %v12329_v41 = vpack.c.bf16 %v1142_v35, %v1129_v34  ;;  %v1234_v34 = vld [vmem:[%s22907_s3 + $0x24c0] sm:$0xff] }
 0x156   :  { %12502 = vmatprep.subr.bf16.mxu1 %v12501_v42  ;;  %v1128_v42 = vld [vmem:[%s22907_s3 + $0x2170] sm:$0xff]  ;;  %v12521_v45 = vpack.c.bf16 %v1144_v37, %v1131_v36  ;;  %v1247_v36 = vld [vmem:[%s22907_s3 + $0x2528] sm:$0xff] }
 0x157   :  { %v12331_v53 = vpack.c.bf16 %v1141_v43, %v1128_v42  ;;  %v1259_v37 = vld [vmem:[%s22907_s3 + $0x2588] sm:$0xff]  ;;  %v12539_v43 = vpack.c.bf16 %v1247_v36, %v1234_v34  ;;  %v118_v36 = vld [vmem:[%s22907_s3 + $0x1e0] sm:$0xff] }
 0x158   :  { %12312 = vmatpush1.bf16.msra.mxu0 %v12311_v49  ;;  %v1168_v49 = vld [vmem:[%s22907_s3 + $0x22b0] sm:$0xff] }
 0x159   :  { %12504 = vmatpush1.bf16.msra.mxu1 %v12503_v51  ;;  %12314 = vmatprep.subr.bf16.mxu0 %v12313_v52  ;;  %v1157_v51 = vld [vmem:[%s22907_s3 + $0x2258] sm:$0xff]  ;;  %v1170_v52 = vld [vmem:[%s22907_s3 + $0x22c0] sm:$0xff]  ;;  %v12333_v55 = vpack.c.bf16 %v1168_v49, %v1155_v48  ;;  %v1260_v48 = vld [vmem:[%s22907_s3 + $0x2590] sm:$0xff] }
 0x15a   :  { %12506 = vmatprep.subr.bf16.mxu1 %v12505_v56  ;;  %v1154_v56 = vld [vmem:[%s22907_s3 + $0x2240] sm:$0xff]  ;;  %v12525_v59 = vpack.c.bf16 %v1170_v52, %v1157_v51  ;;  %v1273_v51 = vld [vmem:[%s22907_s3 + $0x25f8] sm:$0xff] }
 0x15b   :  { %v12335_v3 = vpack.c.bf16 %v1167_v57, %v1154_v56  ;;  %v1285_v52 = vld [vmem:[%s22907_s3 + $0x2658] sm:$0xff]  ;;  %v12543_v57 = vpack.c.bf16 %v1273_v51, %v1260_v48  ;;  %v144_v51 = vld [vmem:[%s22907_s3 + $0x2b0] sm:$0xff] }
 0x15c   :  { %12316 = vmatpush1.bf16.msra.mxu0 %v12315_v0  ;;  %v1194_v0 = vld [vmem:[%s22907_s3 + $0x2380] sm:$0xff] }
 0x15d   :  { %12508 = vmatpush1.bf16.msra.mxu1 %v12507_v1  ;;  %12318 = vmatprep.subr.bf16.mxu0 %v12317_v2  ;;  %v1183_v1 = vld [vmem:[%s22907_s3 + $0x2328] sm:$0xff]  ;;  %v1196_v2 = vld [vmem:[%s22907_s3 + $0x2390] sm:$0xff]  ;;  %v12337_v5 = vpack.c.bf16 %v1194_v0, %v1181_v63  ;;  %v1286_v63 = vld [vmem:[%s22907_s3 + $0x2660] sm:$0xff] }
 0x15e   :  { %12510 = vmatprep.subr.bf16.mxu1 %v12509_v6  ;;  %v1180_v6 = vld [vmem:[%s22907_s3 + $0x2310] sm:$0xff]  ;;  %v12529_v9 = vpack.c.bf16 %v1196_v2, %v1183_v1  ;;  %v1299_v1 = vld [vmem:[%s22907_s3 + $0x26c8] sm:$0xff] }
 0x15f   :  { %v12339_v16 = vpack.c.bf16 %v1193_v7, %v1180_v6  ;;  %v67_v2 = vld [vmem:[%s22907_s3 + $0x48] sm:$0xff]  ;;  %v12547_v7 = vpack.c.bf16 %v1299_v1, %v1286_v63  ;;  %v170_v1 = vld [vmem:[%s22907_s3 + $0x380] sm:$0xff] }
 0x160   :  { %12320 = vmatpush1.bf16.msra.mxu0 %v12319_v13  ;;  %v1220_v13 = vld [vmem:[%s22907_s3 + $0x2450] sm:$0xff] }
 0x161   :  { %12512 = vmatpush1.bf16.msra.mxu1 %v12511_v14  ;;  %12322 = vmatprep.subr.bf16.mxu0 %v12321_v15  ;;  %v1209_v14 = vld [vmem:[%s22907_s3 + $0x23f8] sm:$0xff]  ;;  %v1222_v15 = vld [vmem:[%s22907_s3 + $0x2460] sm:$0xff]  ;;  %v12341_v18 = vpack.c.bf16 %v1220_v13, %v1207_v12  ;;  %v68_v12 = vld [vmem:[%s22907_s3 + $0x50] sm:$0xff] }
 0x162   :  { %12514 = vmatprep.subr.bf16.mxu1 %v12513_v19  ;;  %v1206_v19 = vld [vmem:[%s22907_s3 + $0x23e0] sm:$0xff]  ;;  %v12533_v22 = vpack.c.bf16 %v1222_v15, %v1209_v14  ;;  %v81_v14 = vld [vmem:[%s22907_s3 + $0xb8] sm:$0xff] }
 0x163   :  { %v12343_v30 = vpack.c.bf16 %v1219_v20, %v1206_v19  ;;  %v93_v15 = vld [vmem:[%s22907_s3 + $0x118] sm:$0xff]  ;;  %v12743_v20 = vpack.c.bf16 %v81_v14, %v68_v12  ;;  %v1306_v12 = vld [vmem:[%s22908_s4] sm:$0xff]  ;;  %v17547_v14 = vsub.s32 2, %v15293_v61 }
 0x164   :  { %12324 = vmatpush1.bf16.msra.mxu0 %v12323_v27  ;;  %v1246_v27 = vld [vmem:[%s22907_s3 + $0x2520] sm:$0xff] }
 0x165   :  { %12516 = vmatpush1.bf16.msra.mxu1 %v12515_v28  ;;  %12326 = vmatprep.subr.bf16.mxu0 %v12325_v29  ;;  %v1235_v28 = vld [vmem:[%s22907_s3 + $0x24c8] sm:$0xff]  ;;  %v1248_v29 = vld [vmem:[%s22907_s3 + $0x2530] sm:$0xff]  ;;  %v12345_v33 = vpack.c.bf16 %v1246_v27, %v1233_v24  ;;  %v94_v24 = vld [vmem:[%s22907_s3 + $0x120] sm:$0xff] }
 0x166   :  { %12518 = vmatprep.subr.bf16.mxu1 %v12517_v50  ;;  %v1232_v50 = vld [vmem:[%s22907_s3 + $0x24b0] sm:$0xff]  ;;  %v12537_v35 = vpack.c.bf16 %v1248_v29, %v1235_v28  ;;  %v107_v28 = vld [vmem:[%s22907_s3 + $0x188] sm:$0xff] }
 0x167   :  { %v12347_v42 = vpack.c.bf16 %v1245_v11, %v1232_v50  ;;  %v119_v29 = vld [vmem:[%s22907_s3 + $0x1e8] sm:$0xff]  ;;  %v134_v50 = vld [vmem:[%s22907_s3 + $0x260] sm:$0xff]  ;;  %v12747_v34 = vpack.c.bf16 %v107_v28, %v94_v24  ;;  %v225_v28 = vld [vmem:[%s22907_s3 + $0x538] sm:$0xff] }
 0x168   :  { %12328 = vmatpush1.bf16.msra.mxu0 %v12327_v38  ;;  %v1272_v38 = vld [vmem:[%s22907_s3 + $0x25f0] sm:$0xff]  ;;  %v223_v24 = vld [vmem:[%s22907_s3 + $0x528] sm:$0xff] }
 0x169   :  { %12520 = vmatpush1.bf16.msra.mxu1 %v12519_v40  ;;  %12330 = vmatprep.subr.bf16.mxu0 %v12329_v41  ;;  %v1261_v40 = vld [vmem:[%s22907_s3 + $0x2598] sm:$0xff]  ;;  %v1274_v41 = vld [vmem:[%s22907_s3 + $0x2600] sm:$0xff]  ;;  %v12349_v44 = vpack.c.bf16 %v1272_v38, %v1259_v37  ;;  %v131_v37 = vld [vmem:[%s22907_s3 + $0x248] sm:$0xff] }
 0x16a   :  { %12522 = vmatprep.subr.bf16.mxu1 %v12521_v45  ;;  %v1258_v45 = vld [vmem:[%s22907_s3 + $0x2580] sm:$0xff]  ;;  %v12541_v49 = vpack.c.bf16 %v1274_v41, %v1261_v40  ;;  %v120_v38 = vld [vmem:[%s22907_s3 + $0x1f0] sm:$0xff]  ;;  %v133_v41 = vld [vmem:[%s22907_s3 + $0x258] sm:$0xff] }
 0x16b   :  { %v12351_v56 = vpack.c.bf16 %v1271_v47, %v1258_v45  ;;  %v160_v45 = vld [vmem:[%s22907_s3 + $0x330] sm:$0xff]  ;;  %v12559_v47 = vpack.c.bf16 %v131_v37, %v118_v36  ;;  %v12751_v48 = vpack.c.bf16 %v133_v41, %v120_v38  ;;  %v222_v36 = vld [vmem:[%s22907_s3 + $0x520] sm:$0xff]  ;;  %v235_v37 = vld [vmem:[%s22907_s3 + $0x588] sm:$0xff] }
 0x16c   :  { %12332 = vmatpush1.bf16.msra.mxu0 %v12331_v53  ;;  %v1298_v53 = vld [vmem:[%s22907_s3 + $0x26c0] sm:$0xff]  ;;  %v224_v38 = vld [vmem:[%s22907_s3 + $0x530] sm:$0xff] }
 0x16d   :  { %12524 = vmatpush1.bf16.msra.mxu1 %v12523_v54  ;;  %12334 = vmatprep.subr.bf16.mxu0 %v12333_v55  ;;  %v1287_v54 = vld [vmem:[%s22907_s3 + $0x2668] sm:$0xff]  ;;  %v1300_v55 = vld [vmem:[%s22907_s3 + $0x26d0] sm:$0xff]  ;;  %v12353_v58 = vpack.c.bf16 %v1298_v53, %v1285_v52  ;;  %v157_v52 = vld [vmem:[%s22907_s3 + $0x318] sm:$0xff] }
 0x16e   :  { %12526 = vmatprep.subr.bf16.mxu1 %v12525_v59  ;;  %v1284_v59 = vld [vmem:[%s22907_s3 + $0x2650] sm:$0xff]  ;;  %v12545_v0 = vpack.c.bf16 %v1300_v55, %v1287_v54  ;;  %v146_v53 = vld [vmem:[%s22907_s3 + $0x2c0] sm:$0xff]  ;;  %v159_v55 = vld [vmem:[%s22907_s3 + $0x328] sm:$0xff] }
 0x16f   :  { %v12355_v6 = vpack.c.bf16 %v1297_v62, %v1284_v59  ;;  %v186_v59 = vld [vmem:[%s22907_s3 + $0x400] sm:$0xff]  ;;  %v12563_v62 = vpack.c.bf16 %v157_v52, %v144_v51  ;;  %v12755_v63 = vpack.c.bf16 %v159_v55, %v146_v53  ;;  %v12575_v55 = vpack.c.bf16 %v235_v37, %v222_v36  ;;  %v315_v37 = vld [vmem:[%s22907_s3 + $0x808] sm:$0xff] }
 0x170   :  { %12336 = vmatpush1.bf16.msra.mxu0 %v12335_v3  ;;  %v80_v3 = vld [vmem:[%s22907_s3 + $0xb0] sm:$0xff] }
 0x171   :  { %12528 = vmatpush1.bf16.msra.mxu1 %v12527_v4  ;;  %12338 = vmatprep.subr.bf16.mxu0 %v12337_v5  ;;  %v69_v4 = vld [vmem:[%s22907_s3 + $0x58] sm:$0xff]  ;;  %v82_v5 = vld [vmem:[%s22907_s3 + $0xc0] sm:$0xff]  ;;  %v12549_v8 = vpack.c.bf16 %v80_v3, %v67_v2  ;;  %v183_v2 = vld [vmem:[%s22907_s3 + $0x3e8] sm:$0xff] }
 0x172   :  { %12530 = vmatprep.subr.bf16.mxu1 %v12529_v9  ;;  %v66_v9 = vld [vmem:[%s22907_s3 + $0x40] sm:$0xff]  ;;  %v12741_v13 = vpack.c.bf16 %v82_v5, %v69_v4  ;;  %v172_v3 = vld [vmem:[%s22907_s3 + $0x390] sm:$0xff]  ;;  %v185_v5 = vld [vmem:[%s22907_s3 + $0x3f8] sm:$0xff] }
 0x173   :  { %v12551_v19 = vpack.c.bf16 %v79_v10, %v66_v9  ;;  %v212_v9 = vld [vmem:[%s22907_s3 + $0x4d0] sm:$0xff]  ;;  %v12567_v10 = vpack.c.bf16 %v183_v2, %v170_v1 }
 0x174   :  { %12340 = vmatpush1.bf16.msra.mxu0 %v12339_v16  ;;  %v106_v16 = vld [vmem:[%s22907_s3 + $0x180] sm:$0xff] }
 0x175   :  { %12532 = vmatpush1.bf16.msra.mxu1 %v12531_v17  ;;  %12342 = vmatprep.subr.bf16.mxu0 %v12341_v18  ;;  %v95_v17 = vld [vmem:[%s22907_s3 + $0x128] sm:$0xff]  ;;  %v108_v18 = vld [vmem:[%s22907_s3 + $0x190] sm:$0xff]  ;;  %v12553_v21 = vpack.c.bf16 %v106_v16, %v93_v15  ;;  %v17550_v15 = vsub.s32 1, %v15293_v61  ;;  %v12759_v16 = vpack.c.bf16 %v185_v5, %v172_v3 }
 0x176   :  { %12534 = vmatprep.subr.bf16.mxu1 %v12533_v22  ;;  %v92_v22 = vld [vmem:[%s22907_s3 + $0x110] sm:$0xff]  ;;  %v12745_v27 = vpack.c.bf16 %v108_v18, %v95_v17  ;;  %v17553_v17 = vsub.s32 3, %v15293_v61  ;;  %v263_v3 = vld [vmem:[%s22907_s3 + $0x668] sm:$0xff] }
 0x177   :  { %v12555_v11 = vpack.c.bf16 %v105_v23, %v92_v22  ;;  %v211_v23 = vld [vmem:[%s22907_s3 + $0x4c8] sm:$0xff]  ;;  %v288_v5 = vld [vmem:[%s22907_s3 + $0x730] sm:$0xff] }
 0x178   :  { %12344 = vmatpush1.bf16.msra.mxu0 %v12343_v30  ;;  %v132_v30 = vld [vmem:[%s22907_s3 + $0x250] sm:$0xff] }
 0x179   :  { %12536 = vmatpush1.bf16.msra.mxu1 %v12535_v31  ;;  %12346 = vmatprep.subr.bf16.mxu0 %v12345_v33  ;;  %v14912_v31 = vld.sshfl [vmem:[%s22926_s27 + $0x8] sm:$0x33 pattern:$0x76325410]  ;;  %v121_v33 = vld [vmem:[%s22907_s3 + $0x1f8] sm:$0xff] }
 0x17a   :  { %12538 = vmatprep.subr.bf16.mxu1 %v12537_v35  ;;  %v12557_v35 = vpack.c.bf16 %v132_v30, %v119_v29  ;;  %v12749_v40 = vpack.c.bf16 %v134_v50, %v121_v33  ;;  %v238_v29 = vld [vmem:[%s22907_s3 + $0x5a0] sm:$0xff]  ;;  %v1317_v33 = vrot.slane %v1306_v12, %v17550_v15 }
 0x17b   :  { %v12765_v41 = vpack.c.bf16 %v238_v29, %v225_v28  ;;  %v303_v28 = vld [vmem:[%s22907_s3 + $0x7a8] sm:$0xff]  ;;  %v316_v29 = vld [vmem:[%s22907_s3 + $0x810] sm:$0xff] }
 0x17c   :  { %12348 = vmatpush1.bf16.msra.mxu0 %v12347_v42  ;;  %v145_v42 = vld [vmem:[%s22907_s3 + $0x2b8] sm:$0xff]  ;;  %v12777_v36 = vpack.c.bf16 %v316_v29, %v303_v28 }
 0x17d   :  { %12540 = vmatpush1.bf16.msra.mxu1 %v12539_v43  ;;  %12350 = vmatprep.subr.bf16.mxu0 %v12349_v44  ;;  %v158_v43 = vld [vmem:[%s22907_s3 + $0x320] sm:$0xff]  ;;  %v147_v44 = vld [vmem:[%s22907_s3 + $0x2c8] sm:$0xff]  ;;  %v393_v29 = vld [vmem:[%s22907_s3 + $0xa78] sm:$0xff] }
 0x17e   :  { %12542 = vmatprep.subr.bf16.mxu1 %v12541_v49  ;;  %v12561_v49 = vpack.c.bf16 %v158_v43, %v145_v42  ;;  %v12753_v54 = vpack.c.bf16 %v160_v45, %v147_v44  ;;  %v237_v42 = vld [vmem:[%s22907_s3 + $0x598] sm:$0xff]  ;;  %v262_v44 = vld [vmem:[%s22907_s3 + $0x660] sm:$0xff] }
 0x17f   :  { %v249_v43 = vld [vmem:[%s22907_s3 + $0x5f8] sm:$0xff] }
 0x180   :  { %12352 = vmatpush1.bf16.msra.mxu0 %v12351_v56  ;;  %v171_v56 = vld [vmem:[%s22907_s3 + $0x388] sm:$0xff] }
 0x181   :  { %12544 = vmatpush1.bf16.msra.mxu1 %v12543_v57  ;;  %12354 = vmatprep.subr.bf16.mxu0 %v12353_v58  ;;  %v184_v57 = vld [vmem:[%s22907_s3 + $0x3f0] sm:$0xff]  ;;  %v173_v58 = vld [vmem:[%s22907_s3 + $0x398] sm:$0xff] }
 0x182   :  { %12546 = vmatprep.subr.bf16.mxu1 %v12545_v0  ;;  %v12565_v0 = vpack.c.bf16 %v184_v57, %v171_v56  ;;  %v12757_v4 = vpack.c.bf16 %v186_v59, %v173_v58  ;;  %v12767_v57 = vpack.c.bf16 %v237_v42, %v224_v38  ;;  %v12577_v58 = vpack.c.bf16 %v262_v44, %v249_v43  ;;  %v248_v59 = vld [vmem:[%s22907_s3 + $0x5f0] sm:$0xff]  ;;  %v327_v38 = vld [vmem:[%s22907_s3 + $0x868] sm:$0xff]  ;;  %v342_v42 = vld [vmem:[%s22907_s3 + $0x8e0] sm:$0xff] }
 0x184   :  { %12356 = vmatpush1.bf16.msra.mxu0 %v12355_v6  ;;  %v197_v6 = vld [vmem:[%s22907_s3 + $0x458] sm:$0xff] }
 0x185   :  { %12548 = vmatpush1.bf16.msra.mxu1 %v12547_v7  ;;  %12550 = vmatprep.subr.bf16.mxu0 %v12549_v8  ;;  %v210_v7 = vld [vmem:[%s22907_s3 + $0x4c0] sm:$0xff]  ;;  %v199_v8 = vld [vmem:[%s22907_s3 + $0x468] sm:$0xff] }
 0x186   :  { %12742 = vmatprep.subr.bf16.mxu1 %v12741_v13  ;;  %v17544_v13 = vsub.s32 0, %v15293_v61  ;;  %v12569_v18 = vpack.c.bf16 %v210_v7, %v197_v6  ;;  %v12761_v22 = vpack.c.bf16 %v212_v9, %v199_v8  ;;  %v277_v6 = vld [vmem:[%s22907_s3 + $0x6d8] sm:$0xff]  ;;  %v290_v7 = vld [vmem:[%s22907_s3 + $0x740] sm:$0xff] }
 0x187   :  { %2041 = vmatmul.mubr.f32.vlgmr.msra.gmra.mrb[2].mxu0 %v14912_v31 }
 0x188   :  { %2254 = vmatmul.mubr.f32.vlgmr.msra.gmra.mrb[2].mxu1 %v14912_v31  ;;  %12552 = vmatpush1.bf16.msra.mxu0 %v12551_v19  ;;  %v196_v19 = vld [vmem:[%s22907_s3 + $0x450] sm:$0xff]  ;;  %v1313_v30 = vrot.slane %v1306_v12, %v17544_v13  ;;  %v1321_v31 = vrot.slane %v1306_v12, %v17547_v14 }
 0x189   :  { %12744 = vmatpush1.bf16.msra.mxu1 %v12743_v20  ;;  %12554 = vmatprep.subr.bf16.mxu0 %v12553_v21  ;;  %v209_v20 = vld [vmem:[%s22907_s3 + $0x4b8] sm:$0xff]  ;;  %v198_v21 = vld [vmem:[%s22907_s3 + $0x460] sm:$0xff] }
 0x18a   :  { %12746 = vmatprep.subr.bf16.mxu1 %v12745_v27  ;;  %2324 = vmatprep.mubr.f32.mxu0 %v15366_v32  ;;  %v236_v27 = vld [vmem:[%s22907_s3 + $0x590] sm:$0xff]  ;;  %v12571_v50 = vpack.c.bf16 %v209_v20, %v196_v19  ;;  %v274_v19 = vld [vmem:[%s22907_s3 + $0x6c0] sm:$0xff]  ;;  %v287_v20 = vld [vmem:[%s22907_s3 + $0x728] sm:$0xff] }
 0x18b   :  { %2537 = vmatprep.mubr.f32.mxu1 %v15366_v32 }
 0x18c   :  { %12556 = vmatpush1.bf16.msra.mxu0 %v12555_v11  ;;  %v1325_v11 = vrot.slane %v1306_v12, %v17553_v17 }
 0x18d   :  { %12748 = vmatpush1.bf16.msra.mxu1 %v12747_v34  ;;  %12558 = vmatprep.subr.bf16.mxu0 %v12557_v35  ;;  %v12763_v34 = vpack.c.bf16 %v211_v23, %v198_v21  ;;  %v12573_v35 = vpack.c.bf16 %v236_v27, %v223_v24  ;;  %v276_v21 = vld [vmem:[%s22907_s3 + $0x6d0] sm:$0xff]  ;;  %v289_v23 = vld [vmem:[%s22907_s3 + $0x738] sm:$0xff]  ;;  %v314_v27 = vld [vmem:[%s22907_s3 + $0x800] sm:$0xff] }
 0x18e   :  { %12750 = vmatprep.subr.bf16.mxu1 %v12749_v40  ;;  %v301_v24 = vld [vmem:[%s22907_s3 + $0x798] sm:$0xff] }
 0x190   :  { %12560 = vmatpush1.bf16.msra.mxu0 %v12559_v47 }
 0x191   :  { %12752 = vmatpush1.bf16.msra.mxu1 %v12751_v48  ;;  %12562 = vmatprep.subr.bf16.mxu0 %v12561_v49  ;;  %v251_v48 = vld [vmem:[%s22907_s3 + $0x608] sm:$0xff]  ;;  %v264_v49 = vld [vmem:[%s22907_s3 + $0x670] sm:$0xff] }
 0x192   :  { %12754 = vmatprep.subr.bf16.mxu1 %v12753_v54  ;;  %v12769_v2 = vpack.c.bf16 %v264_v49, %v251_v48  ;;  %v339_v48 = vld [vmem:[%s22907_s3 + $0x8c8] sm:$0xff]  ;;  %v328_v49 = vld [vmem:[%s22907_s3 + $0x870] sm:$0xff] }
 0x194   :  { %12564 = vmatpush1.bf16.msra.mxu0 %v12563_v62  ;;  %v261_v62 = vld [vmem:[%s22907_s3 + $0x658] sm:$0xff] }
 0x195   :  { %12756 = vmatpush1.bf16.msra.mxu1 %v12755_v63  ;;  %12566 = vmatprep.subr.bf16.mxu0 %v12565_v0  ;;  %v250_v63 = vld [vmem:[%s22907_s3 + $0x600] sm:$0xff]  ;;  %v12579_v12 = vpack.c.bf16 %v261_v62, %v248_v59  ;;  %v355_v59 = vld [vmem:[%s22907_s3 + $0x948] sm:$0xff]  ;;  %v368_v62 = vld [vmem:[%s22907_s3 + $0x9b0] sm:$0xff] }
 0x196   :  { %12758 = vmatprep.subr.bf16.mxu1 %v12757_v4  ;;  %v275_v4 = vld [vmem:[%s22907_s3 + $0x6c8] sm:$0xff] }
 0x198   :  { %12568 = vmatpush1.bf16.msra.mxu0 %v12567_v10 }
 0x199   :  { %12760 = vmatpush1.bf16.msra.mxu1 %v12759_v16  ;;  %12570 = vmatprep.subr.bf16.mxu0 %v12569_v18  ;;  %v12771_v16 = vpack.c.bf16 %v263_v3, %v250_v63  ;;  %v12581_v18 = vpack.c.bf16 %v288_v5, %v275_v4  ;;  %v352_v4 = vld [vmem:[%s22907_s3 + $0x930] sm:$0xff]  ;;  %v365_v5 = vld [vmem:[%s22907_s3 + $0x998] sm:$0xff] }
 0x19a   :  { %v1616_v40 = vpop.f32.mrb[0].mxu0  ;;  %12762 = vmatprep.subr.bf16.mxu1 %v12761_v22  ;;  %v1829_v45 = vpop.f32.mrb[0].mxu1  ;;  %v12773_v22 = vpack.c.bf16 %v290_v7, %v277_v6  ;;  %v354_v6 = vld [vmem:[%s22907_s3 + $0x940] sm:$0xff]  ;;  %v12785_v7 = vpack.c.bf16 %v368_v62, %v355_v59  ;;  %v445_v59 = vld [vmem:[%s22907_s3 + $0xc18] sm:$0xff] }
 0x19b   :  { %v1618_v47 = vpop.f32.mrb[1].mxu0  ;;  %v17607_v51 = vadd.f32 %v1616_v40, %v1313_v30  ;;  %v17609_v52 = vadd.f32 %v1829_v45, %v1321_v31  ;;  %v1831_v54 = vpop.f32.mrb[1].mxu1  ;;  %v12583_v31 = vpack.c.bf16 %v287_v20, %v274_v19  ;;  %v340_v40 = vld [vmem:[%s22907_s3 + $0x8d0] sm:$0xff]  ;;  %v394_v19 = vld [vmem:[%s22907_s3 + $0xa80] sm:$0xff]  ;;  %v12595_v20 = vpack.c.bf16 %v365_v5, %v352_v4  ;;  %v457_v62 = vld [vmem:[%s22907_s3 + $0xc78] sm:$0xff] }
 0x19c   :  { %v17611_v53 = vadd.f32 %v1618_v47, %v1317_v33  ;;  %12572 = vmatpush1.bf16.msra.mxu0 %v12571_v50  ;;  %v17613_v56 = vadd.f32 %v1831_v54, %v1325_v11  ;;  %v12775_v33 = vpack.c.bf16 %v289_v23, %v276_v21  ;;  %v12585_v50 = vpack.c.bf16 %v314_v27, %v301_v24  ;;  %v300_v11 = vld [vmem:[%s22907_s3 + $0x790] sm:$0xff]  ;;  %v326_v47 = vld [vmem:[%s22907_s3 + $0x860] sm:$0xff]  ;;  %v391_v24 = vld [vmem:[%s22907_s3 + $0xa68] sm:$0xff] }
 0x19d   :  { %12764 = vmatpush1.bf16.msra.mxu1 %v12763_v34  ;;  %12574 = vmatprep.subr.bf16.mxu0 %v12573_v35  ;;  %v2898_v0 = vmax.f32 %v17609_v52, 0.0  ;;  %v2896_v8 = vmax.f32 %v17607_v51, 0.0  ;;  %v313_v34 = vld [vmem:[%s22907_s3 + $0x7f8] sm:$0xff]  ;;  %v302_v35 = vld [vmem:[%s22907_s3 + $0x7a0] sm:$0xff]  ;;  %v12589_v45 = vpack.c.bf16 %v340_v40, %v327_v38  ;;  %v12591_v63 = vpack.c.bf16 %v339_v48, %v326_v47  ;;  %v380_v27 = vld [vmem:[%s22907_s3 + $0xa10] sm:$0xff] }
 0x19e   :  { %v2897_v1 = vmax.f32 %v17611_v53, 0.0  ;;  %12766 = vmatprep.subr.bf16.mxu1 %v12765_v41  ;;  %v2899_v9 = vmax.f32 %v17613_v56, 0.0  ;;  %v329_v41 = vld [vmem:[%s22907_s3 + $0x878] sm:$0xff]  ;;  %v12587_v43 = vpack.c.bf16 %v313_v34, %v300_v11  ;;  %v12779_v44 = vpack.c.bf16 %v315_v37, %v302_v35  ;;  %v378_v23 = vld [vmem:[%s22907_s3 + $0xa00] sm:$0xff]  ;;  %v1148_v51 = vld [vmem:[%s22907_s3 + $0x2210] sm:$0xff] }
 0x19f   :  { %v12781_v54 = vpack.c.bf16 %v342_v42, %v329_v41  ;;  %v12599_v11 = vpack.c.bf16 %v391_v24, %v378_v23  ;;  %v12791_v34 = vpack.c.bf16 %v393_v29, %v380_v27  ;;  %v417_v37 = vld [vmem:[%s22907_s3 + $0xb38] sm:$0xff]  ;;  %v406_v38 = vld [vmem:[%s22907_s3 + $0xae0] sm:$0xff]  ;;  %v419_v41 = vld [vmem:[%s22907_s3 + $0xb48] sm:$0xff] }
 0x1a0   :  { %12576 = vmatpush1.bf16.msra.mxu0 %v12575_v55  ;;  %v14709_v10 = vpack.i.bf16 %v2898_v0, %v2897_v1  ;;  %v14714_v30 = vpack.i.bf16 %v2896_v8, %v2899_v9  ;;  %v341_v55 = vld [vmem:[%s22907_s3 + $0x8d8] sm:$0xff]  ;;  %v431_v42 = vld [vmem:[%s22907_s3 + $0xba8] sm:$0xff]  ;;  %v12795_v48 = vpack.c.bf16 %v419_v41, %v406_v38  ;;  %v1082_v53 = vld [vmem:[%s22907_s3 + $0x2000] sm:$0xff] }
 0x1a1   :  { %12768 = vmatpush1.bf16.msra.mxu1 %v12767_v57  ;;  %12578 = vmatprep.subr.bf16.mxu0 %v12577_v58  ;;  %v353_v57 = vld [vmem:[%s22907_s3 + $0x938] sm:$0xff]  ;;  %v366_v58 = vld [vmem:[%s22907_s3 + $0x9a0] sm:$0xff]  ;;  %v495_v29 = vld [vmem:[%s22907_s3 + $0xda8] sm:$0xff] }
 0x1a2   :  { %14710 = vrot.lane.b32.xlu0 %v14709_v10, %s14940_s18  ;;  %12770 = vmatprep.subr.bf16.mxu1 %v12769_v2  ;;  %v12783_v2 = vpack.c.bf16 %v341_v55, %v328_v49  ;;  %v12593_v3 = vpack.c.bf16 %v366_v58, %v353_v57  ;;  %v367_v10 = vld [vmem:[%s22907_s3 + $0x9a8] sm:$0xff]  ;;  %v432_v57 = vld [vmem:[%s22907_s3 + $0xbb0] sm:$0xff]  ;;  %v521_v41 = vld [vmem:[%s22907_s3 + $0xe78] sm:$0xff] }
 0x1a3   :  { %v12787_v21 = vpack.c.bf16 %v367_v10, %v354_v6  ;;  %v443_v55 = vld [vmem:[%s22907_s3 + $0xc08] sm:$0xff]  ;;  %v12799_v5 = vpack.c.bf16 %v445_v59, %v432_v57  ;;  %v469_v10 = vld [vmem:[%s22907_s3 + $0xcd8] sm:$0xff]  ;;  %v3245_v56 = vld [vmem:[%s22909_s5 + $0x5b0] sm:$0xff] }
 0x1a4   :  { %12580 = vmatpush1.bf16.msra.mxu0 %v12579_v12  ;;  %v379_v12 = vld [vmem:[%s22907_s3 + $0xa08] sm:$0xff] }
 0x1a5   :  { %12772 = vmatpush1.bf16.msra.mxu1 %v12771_v16  ;;  %12582 = vmatprep.subr.bf16.mxu0 %v12581_v18  ;;  %v392_v16 = vld [vmem:[%s22907_s3 + $0xa70] sm:$0xff]  ;;  %v381_v18 = vld [vmem:[%s22907_s3 + $0xa18] sm:$0xff]  ;;  %v547_v59 = vld [vmem:[%s22907_s3 + $0xf48] sm:$0xff] }
 0x1a6   :  { %14715 = vrot.lane.b32.xlu0 %v14714_v30, %s14940_s18  ;;  %12774 = vmatprep.subr.bf16.mxu1 %v12773_v22  ;;  %v12597_v22 = vpack.c.bf16 %v392_v16, %v379_v12  ;;  %v12789_v28 = vpack.c.bf16 %v394_v19, %v381_v18  ;;  %v405_v30 = vld [vmem:[%s22907_s3 + $0xad8] sm:$0xff]  ;;  %v458_v12 = vld [vmem:[%s22907_s3 + $0xc80] sm:$0xff]  ;;  %v471_v18 = vld [vmem:[%s22907_s3 + $0xce8] sm:$0xff] }
 0x1a7   :  { %v483_v19 = vld [vmem:[%s22907_s3 + $0xd48] sm:$0xff]  ;;  %v12803_v24 = vpack.c.bf16 %v471_v18, %v458_v12  ;;  %v573_v18 = vld [vmem:[%s22907_s3 + $0x1018] sm:$0xff] }
 0x1a8   :  { %12584 = vmatpush1.bf16.msra.mxu0 %v12583_v31  ;;  %v418_v31 = vld [vmem:[%s22907_s3 + $0xb40] sm:$0xff] }
 0x1a9   :  { %12776 = vmatpush1.bf16.msra.mxu1 %v12775_v33  ;;  %12586 = vmatprep.subr.bf16.mxu0 %v12585_v50  ;;  %v407_v33 = vld [vmem:[%s22907_s3 + $0xae8] sm:$0xff]  ;;  %v420_v50 = vld [vmem:[%s22907_s3 + $0xb50] sm:$0xff]  ;;  %v12601_v35 = vpack.c.bf16 %v418_v31, %v405_v30 }
 0x1aa   :  { %12778 = vmatprep.subr.bf16.mxu1 %v12777_v36  ;;  %v404_v36 = vld [vmem:[%s22907_s3 + $0xad0] sm:$0xff]  ;;  %v12793_v40 = vpack.c.bf16 %v420_v50, %v407_v33  ;;  %v497_v33 = vld [vmem:[%s22907_s3 + $0xdb8] sm:$0xff] }
 0x1ab   :  { %v12603_v47 = vpack.c.bf16 %v417_v37, %v404_v36  ;;  %v484_v30 = vld [vmem:[%s22907_s3 + $0xd50] sm:$0xff]  ;;  %v509_v50 = vld [vmem:[%s22907_s3 + $0xe18] sm:$0xff] }
 0x1ac   :  { %12588 = vmatpush1.bf16.msra.mxu0 %v12587_v43  ;;  %v444_v43 = vld [vmem:[%s22907_s3 + $0xc10] sm:$0xff]  ;;  %v12807_v37 = vpack.c.bf16 %v497_v33, %v484_v30  ;;  %v599_v33 = vld [vmem:[%s22907_s3 + $0x10e8] sm:$0xff] }
 0x1ad   :  { %12780 = vmatpush1.bf16.msra.mxu1 %v12779_v44  ;;  %12590 = vmatprep.subr.bf16.mxu0 %v12589_v45  ;;  %v433_v44 = vld [vmem:[%s22907_s3 + $0xbb8] sm:$0xff]  ;;  %v446_v45 = vld [vmem:[%s22907_s3 + $0xc20] sm:$0xff]  ;;  %v12605_v49 = vpack.c.bf16 %v444_v43, %v431_v42 }
 0x1ae   :  { %12782 = vmatprep.subr.bf16.mxu1 %v12781_v54  ;;  %v430_v54 = vld [vmem:[%s22907_s3 + $0xba0] sm:$0xff]  ;;  %v12797_v58 = vpack.c.bf16 %v446_v45, %v433_v44  ;;  %v523_v44 = vld [vmem:[%s22907_s3 + $0xe88] sm:$0xff] }
 0x1af   :  { %v12607_v4 = vpack.c.bf16 %v443_v55, %v430_v54  ;;  %v510_v42 = vld [vmem:[%s22907_s3 + $0xe20] sm:$0xff]  ;;  %v535_v45 = vld [vmem:[%s22907_s3 + $0xee8] sm:$0xff] }
 0x1b0   :  { %12592 = vmatpush1.bf16.msra.mxu0 %v12591_v63  ;;  %v470_v63 = vld [vmem:[%s22907_s3 + $0xce0] sm:$0xff]  ;;  %v12811_v55 = vpack.c.bf16 %v523_v44, %v510_v42  ;;  %v625_v44 = vld [vmem:[%s22907_s3 + $0x11b8] sm:$0xff] }
 0x1b1   :  { %12784 = vmatpush1.bf16.msra.mxu1 %v12783_v2  ;;  %12594 = vmatprep.subr.bf16.mxu0 %v12593_v3  ;;  %v459_v2 = vld [vmem:[%s22907_s3 + $0xc88] sm:$0xff]  ;;  %v472_v3 = vld [vmem:[%s22907_s3 + $0xcf0] sm:$0xff]  ;;  %v12609_v6 = vpack.c.bf16 %v470_v63, %v457_v62 }
 0x1b2   :  { %12786 = vmatprep.subr.bf16.mxu1 %v12785_v7  ;;  %v456_v7 = vld [vmem:[%s22907_s3 + $0xc70] sm:$0xff]  ;;  %v12801_v16 = vpack.c.bf16 %v472_v3, %v459_v2  ;;  %v549_v2 = vld [vmem:[%s22907_s3 + $0xf58] sm:$0xff] }
 0x1b3   :  { %v12611_v23 = vpack.c.bf16 %v469_v10, %v456_v7  ;;  %v536_v62 = vld [vmem:[%s22907_s3 + $0xef0] sm:$0xff]  ;;  %v561_v3 = vld [vmem:[%s22907_s3 + $0xfb8] sm:$0xff] }
 0x1b4   :  { %12596 = vmatpush1.bf16.msra.mxu0 %v12595_v20  ;;  %v496_v20 = vld [vmem:[%s22907_s3 + $0xdb0] sm:$0xff]  ;;  %v12815_v10 = vpack.c.bf16 %v549_v2, %v536_v62  ;;  %v651_v2 = vld [vmem:[%s22907_s3 + $0x1288] sm:$0xff] }
 0x1b5   :  { %12788 = vmatpush1.bf16.msra.mxu1 %v12787_v21  ;;  %12598 = vmatprep.subr.bf16.mxu0 %v12597_v22  ;;  %v485_v21 = vld [vmem:[%s22907_s3 + $0xd58] sm:$0xff]  ;;  %v498_v22 = vld [vmem:[%s22907_s3 + $0xdc0] sm:$0xff]  ;;  %v12613_v27 = vpack.c.bf16 %v496_v20, %v483_v19 }
 0x1b6   :  { %12790 = vmatprep.subr.bf16.mxu1 %v12789_v28  ;;  %v482_v28 = vld [vmem:[%s22907_s3 + $0xd40] sm:$0xff]  ;;  %v12805_v31 = vpack.c.bf16 %v498_v22, %v485_v21  ;;  %v575_v21 = vld [vmem:[%s22907_s3 + $0x1028] sm:$0xff] }
 0x1b7   :  { %v12615_v36 = vpack.c.bf16 %v495_v29, %v482_v28  ;;  %v562_v19 = vld [vmem:[%s22907_s3 + $0xfc0] sm:$0xff]  ;;  %v587_v22 = vld [vmem:[%s22907_s3 + $0x1088] sm:$0xff] }
 0x1b8   :  { %12600 = vmatpush1.bf16.msra.mxu0 %v12599_v11  ;;  %v522_v11 = vld [vmem:[%s22907_s3 + $0xe80] sm:$0xff]  ;;  %v12819_v29 = vpack.c.bf16 %v575_v21, %v562_v19  ;;  %v677_v21 = vld [vmem:[%s22907_s3 + $0x1358] sm:$0xff] }
 0x1b9   :  { %12792 = vmatpush1.bf16.msra.mxu1 %v12791_v34  ;;  %12602 = vmatprep.subr.bf16.mxu0 %v12601_v35  ;;  %v511_v34 = vld [vmem:[%s22907_s3 + $0xe28] sm:$0xff]  ;;  %v524_v35 = vld [vmem:[%s22907_s3 + $0xe90] sm:$0xff]  ;;  %v12617_v38 = vpack.c.bf16 %v522_v11, %v509_v50 }
 0x1ba   :  { %12794 = vmatprep.subr.bf16.mxu1 %v12793_v40  ;;  %v508_v40 = vld [vmem:[%s22907_s3 + $0xe10] sm:$0xff]  ;;  %v12809_v43 = vpack.c.bf16 %v524_v35, %v511_v34  ;;  %v601_v34 = vld [vmem:[%s22907_s3 + $0x10f8] sm:$0xff] }
 0x1bb   :  { %v12619_v54 = vpack.c.bf16 %v521_v41, %v508_v40  ;;  %v588_v50 = vld [vmem:[%s22907_s3 + $0x1090] sm:$0xff]  ;;  %v613_v35 = vld [vmem:[%s22907_s3 + $0x1158] sm:$0xff] }
 0x1bc   :  { %12604 = vmatpush1.bf16.msra.mxu0 %v12603_v47  ;;  %v548_v47 = vld [vmem:[%s22907_s3 + $0xf50] sm:$0xff]  ;;  %v12823_v41 = vpack.c.bf16 %v601_v34, %v588_v50  ;;  %v703_v34 = vld [vmem:[%s22907_s3 + $0x1428] sm:$0xff] }
 0x1bd   :  { %12796 = vmatpush1.bf16.msra.mxu1 %v12795_v48  ;;  %12606 = vmatprep.subr.bf16.mxu0 %v12605_v49  ;;  %v537_v48 = vld [vmem:[%s22907_s3 + $0xef8] sm:$0xff]  ;;  %v550_v49 = vld [vmem:[%s22907_s3 + $0xf60] sm:$0xff]  ;;  %v12621_v57 = vpack.c.bf16 %v548_v47, %v535_v45 }
 0x1be   :  { %12798 = vmatprep.subr.bf16.mxu1 %v12797_v58  ;;  %v534_v58 = vld [vmem:[%s22907_s3 + $0xee0] sm:$0xff]  ;;  %v12813_v63 = vpack.c.bf16 %v550_v49, %v537_v48  ;;  %v627_v48 = vld [vmem:[%s22907_s3 + $0x11c8] sm:$0xff] }
 0x1bf   :  { %v12623_v7 = vpack.c.bf16 %v547_v59, %v534_v58  ;;  %v614_v45 = vld [vmem:[%s22907_s3 + $0x1160] sm:$0xff]  ;;  %v639_v49 = vld [vmem:[%s22907_s3 + $0x1228] sm:$0xff] }
 0x1c0   :  { %12608 = vmatpush1.bf16.msra.mxu0 %v12607_v4  ;;  %v574_v4 = vld [vmem:[%s22907_s3 + $0x1020] sm:$0xff]  ;;  %v12827_v59 = vpack.c.bf16 %v627_v48, %v614_v45  ;;  %v729_v48 = vld [vmem:[%s22907_s3 + $0x14f8] sm:$0xff] }
 0x1c1   :  { %12800 = vmatpush1.bf16.msra.mxu1 %v12799_v5  ;;  %12610 = vmatprep.subr.bf16.mxu0 %v12609_v6  ;;  %v563_v5 = vld [vmem:[%s22907_s3 + $0xfc8] sm:$0xff]  ;;  %v576_v6 = vld [vmem:[%s22907_s3 + $0x1030] sm:$0xff]  ;;  %v12625_v12 = vpack.c.bf16 %v574_v4, %v561_v3 }
 0x1c2   :  { %12802 = vmatprep.subr.bf16.mxu1 %v12801_v16  ;;  %v560_v16 = vld [vmem:[%s22907_s3 + $0xfb0] sm:$0xff]  ;;  %v12817_v20 = vpack.c.bf16 %v576_v6, %v563_v5  ;;  %v653_v5 = vld [vmem:[%s22907_s3 + $0x1298] sm:$0xff] }
 0x1c3   :  { %v12627_v28 = vpack.c.bf16 %v573_v18, %v560_v16  ;;  %v640_v3 = vld [vmem:[%s22907_s3 + $0x1230] sm:$0xff]  ;;  %v665_v6 = vld [vmem:[%s22907_s3 + $0x12f8] sm:$0xff] }
 0x1c4   :  { %12612 = vmatpush1.bf16.msra.mxu0 %v12611_v23  ;;  %v600_v23 = vld [vmem:[%s22907_s3 + $0x10f0] sm:$0xff]  ;;  %v12831_v18 = vpack.c.bf16 %v653_v5, %v640_v3  ;;  %v755_v5 = vld [vmem:[%s22907_s3 + $0x15c8] sm:$0xff] }
 0x1c5   :  { %12804 = vmatpush1.bf16.msra.mxu1 %v12803_v24  ;;  %12614 = vmatprep.subr.bf16.mxu0 %v12613_v27  ;;  %v589_v24 = vld [vmem:[%s22907_s3 + $0x1098] sm:$0xff]  ;;  %v602_v27 = vld [vmem:[%s22907_s3 + $0x1100] sm:$0xff]  ;;  %v12629_v30 = vpack.c.bf16 %v600_v23, %v587_v22 }
 0x1c6   :  { %12806 = vmatprep.subr.bf16.mxu1 %v12805_v31  ;;  %v586_v31 = vld [vmem:[%s22907_s3 + $0x1080] sm:$0xff]  ;;  %v12821_v11 = vpack.c.bf16 %v602_v27, %v589_v24  ;;  %v679_v24 = vld [vmem:[%s22907_s3 + $0x1368] sm:$0xff] }
 0x1c7   :  { %2325 = vmatmul.mubr.f32.vlgmr.msra.gmra.mrb[4].mxu0 %v15353_v25  ;;  %v12631_v40 = vpack.c.bf16 %v599_v33, %v586_v31  ;;  %v666_v22 = vld [vmem:[%s22907_s3 + $0x1300] sm:$0xff]  ;;  %v691_v27 = vld [vmem:[%s22907_s3 + $0x13c8] sm:$0xff] }
 0x1c8   :  { %12616 = vmatpush1.bf16.msra.mxu0 %v12615_v36  ;;  %2538 = vmatmul.mubr.f32.vlgmr.msra.gmra.mrb[4].mxu1 %v15353_v25  ;;  %v626_v36 = vld [vmem:[%s22907_s3 + $0x11c0] sm:$0xff]  ;;  %v12835_v33 = vpack.c.bf16 %v679_v24, %v666_v22  ;;  %v781_v24 = vld [vmem:[%s22907_s3 + $0x1698] sm:$0xff] }
 0x1c9   :  { %12808 = vmatpush1.bf16.msra.mxu1 %v12807_v37  ;;  %12618 = vmatprep.subr.bf16.mxu0 %v12617_v38  ;;  %v615_v37 = vld [vmem:[%s22907_s3 + $0x1168] sm:$0xff]  ;;  %v628_v38 = vld [vmem:[%s22907_s3 + $0x11d0] sm:$0xff]  ;;  %v12633_v42 = vpack.c.bf16 %v626_v36, %v613_v35 }
 0x1ca   :  { %12810 = vmatprep.subr.bf16.mxu1 %v12809_v43  ;;  %2395 = vmatprep.mubr.f32.mxu0 %v15506_v39  ;;  %v612_v43 = vld [vmem:[%s22907_s3 + $0x1150] sm:$0xff]  ;;  %v12825_v47 = vpack.c.bf16 %v628_v38, %v615_v37  ;;  %v705_v37 = vld [vmem:[%s22907_s3 + $0x1438] sm:$0xff] }
 0x1cb   :  { %2608 = vmatprep.mubr.f32.mxu1 %v15506_v39  ;;  %v12635_v58 = vpack.c.bf16 %v625_v44, %v612_v43  ;;  %v692_v35 = vld [vmem:[%s22907_s3 + $0x13d0] sm:$0xff]  ;;  %v717_v38 = vld [vmem:[%s22907_s3 + $0x1498] sm:$0xff] }
 0x1cc   :  { %12620 = vmatpush1.bf16.msra.mxu0 %v12619_v54  ;;  %v652_v54 = vld [vmem:[%s22907_s3 + $0x1290] sm:$0xff]  ;;  %v12839_v44 = vpack.c.bf16 %v705_v37, %v692_v35  ;;  %v807_v37 = vld [vmem:[%s22907_s3 + $0x1768] sm:$0xff] }
 0x1cd   :  { %12812 = vmatpush1.bf16.msra.mxu1 %v12811_v55  ;;  %12622 = vmatprep.subr.bf16.mxu0 %v12621_v57  ;;  %v641_v55 = vld [vmem:[%s22907_s3 + $0x1238] sm:$0xff]  ;;  %v654_v57 = vld [vmem:[%s22907_s3 + $0x12a0] sm:$0xff]  ;;  %v12637_v62 = vpack.c.bf16 %v652_v54, %v639_v49 }
 0x1ce   :  { %12814 = vmatprep.subr.bf16.mxu1 %v12813_v63  ;;  %v638_v63 = vld [vmem:[%s22907_s3 + $0x1220] sm:$0xff]  ;;  %v12829_v4 = vpack.c.bf16 %v654_v57, %v641_v55  ;;  %v731_v55 = vld [vmem:[%s22907_s3 + $0x1508] sm:$0xff] }
 0x1cf   :  { %v12639_v16 = vpack.c.bf16 %v651_v2, %v638_v63  ;;  %v718_v49 = vld [vmem:[%s22907_s3 + $0x14a0] sm:$0xff]  ;;  %v743_v57 = vld [vmem:[%s22907_s3 + $0x1568] sm:$0xff] }
 0x1d0   :  { %12624 = vmatpush1.bf16.msra.mxu0 %v12623_v7  ;;  %v678_v7 = vld [vmem:[%s22907_s3 + $0x1360] sm:$0xff]  ;;  %v12843_v2 = vpack.c.bf16 %v731_v55, %v718_v49  ;;  %v833_v55 = vld [vmem:[%s22907_s3 + $0x1838] sm:$0xff] }
 0x1d1   :  { %12816 = vmatpush1.bf16.msra.mxu1 %v12815_v10  ;;  %12626 = vmatprep.subr.bf16.mxu0 %v12625_v12  ;;  %v667_v10 = vld [vmem:[%s22907_s3 + $0x1308] sm:$0xff]  ;;  %v680_v12 = vld [vmem:[%s22907_s3 + $0x1370] sm:$0xff]  ;;  %v12641_v19 = vpack.c.bf16 %v678_v7, %v665_v6 }
 0x1d2   :  { %12818 = vmatprep.subr.bf16.mxu1 %v12817_v20  ;;  %v664_v20 = vld [vmem:[%s22907_s3 + $0x12f0] sm:$0xff]  ;;  %v12833_v23 = vpack.c.bf16 %v680_v12, %v667_v10  ;;  %v757_v10 = vld [vmem:[%s22907_s3 + $0x15d8] sm:$0xff] }
 0x1d3   :  { %v12643_v31 = vpack.c.bf16 %v677_v21, %v664_v20  ;;  %v744_v6 = vld [vmem:[%s22907_s3 + $0x1570] sm:$0xff]  ;;  %v769_v12 = vld [vmem:[%s22907_s3 + $0x1638] sm:$0xff] }
 0x1d4   :  { %12628 = vmatpush1.bf16.msra.mxu0 %v12627_v28  ;;  %v704_v28 = vld [vmem:[%s22907_s3 + $0x1430] sm:$0xff]  ;;  %v12847_v21 = vpack.c.bf16 %v757_v10, %v744_v6  ;;  %v859_v10 = vld [vmem:[%s22907_s3 + $0x1908] sm:$0xff] }
 0x1d5   :  { %12820 = vmatpush1.bf16.msra.mxu1 %v12819_v29  ;;  %12630 = vmatprep.subr.bf16.mxu0 %v12629_v30  ;;  %v693_v29 = vld [vmem:[%s22907_s3 + $0x13d8] sm:$0xff]  ;;  %v706_v30 = vld [vmem:[%s22907_s3 + $0x1440] sm:$0xff]  ;;  %v12645_v50 = vpack.c.bf16 %v704_v28, %v691_v27 }
 0x1d6   :  { %12822 = vmatprep.subr.bf16.mxu1 %v12821_v11  ;;  %v690_v11 = vld [vmem:[%s22907_s3 + $0x13c0] sm:$0xff]  ;;  %v12837_v36 = vpack.c.bf16 %v706_v30, %v693_v29  ;;  %v783_v29 = vld [vmem:[%s22907_s3 + $0x16a8] sm:$0xff] }
 0x1d7   :  { %v12647_v43 = vpack.c.bf16 %v703_v34, %v690_v11  ;;  %v770_v27 = vld [vmem:[%s22907_s3 + $0x1640] sm:$0xff]  ;;  %v795_v30 = vld [vmem:[%s22907_s3 + $0x1708] sm:$0xff] }
 0x1d8   :  { %12632 = vmatpush1.bf16.msra.mxu0 %v12631_v40  ;;  %v730_v40 = vld [vmem:[%s22907_s3 + $0x1500] sm:$0xff]  ;;  %v12851_v34 = vpack.c.bf16 %v783_v29, %v770_v27  ;;  %v885_v29 = vld [vmem:[%s22907_s3 + $0x19d8] sm:$0xff] }
 0x1d9   :  { %12824 = vmatpush1.bf16.msra.mxu1 %v12823_v41  ;;  %12634 = vmatprep.subr.bf16.mxu0 %v12633_v42  ;;  %v719_v41 = vld [vmem:[%s22907_s3 + $0x14a8] sm:$0xff]  ;;  %v732_v42 = vld [vmem:[%s22907_s3 + $0x1510] sm:$0xff]  ;;  %v12649_v45 = vpack.c.bf16 %v730_v40, %v717_v38 }
 0x1da   :  { %12826 = vmatprep.subr.bf16.mxu1 %v12825_v47  ;;  %v716_v47 = vld [vmem:[%s22907_s3 + $0x1490] sm:$0xff]  ;;  %v12841_v54 = vpack.c.bf16 %v732_v42, %v719_v41  ;;  %v809_v41 = vld [vmem:[%s22907_s3 + $0x1778] sm:$0xff] }
 0x1db   :  { %v12651_v63 = vpack.c.bf16 %v729_v48, %v716_v47  ;;  %v796_v38 = vld [vmem:[%s22907_s3 + $0x1710] sm:$0xff]  ;;  %v821_v42 = vld [vmem:[%s22907_s3 + $0x17d8] sm:$0xff] }
 0x1dc   :  { %12636 = vmatpush1.bf16.msra.mxu0 %v12635_v58  ;;  %v756_v58 = vld [vmem:[%s22907_s3 + $0x15d0] sm:$0xff]  ;;  %v12855_v48 = vpack.c.bf16 %v809_v41, %v796_v38  ;;  %v911_v41 = vld [vmem:[%s22907_s3 + $0x1aa8] sm:$0xff] }
 0x1dd   :  { %12828 = vmatpush1.bf16.msra.mxu1 %v12827_v59  ;;  %12638 = vmatprep.subr.bf16.mxu0 %v12637_v62  ;;  %v745_v59 = vld [vmem:[%s22907_s3 + $0x1578] sm:$0xff]  ;;  %v758_v62 = vld [vmem:[%s22907_s3 + $0x15e0] sm:$0xff]  ;;  %v12653_v3 = vpack.c.bf16 %v756_v58, %v743_v57 }
 0x1de   :  { %12830 = vmatprep.subr.bf16.mxu1 %v12829_v4  ;;  %v742_v4 = vld [vmem:[%s22907_s3 + $0x1560] sm:$0xff]  ;;  %v12845_v7 = vpack.c.bf16 %v758_v62, %v745_v59  ;;  %v835_v59 = vld [vmem:[%s22907_s3 + $0x1848] sm:$0xff] }
 0x1df   :  { %v12655_v20 = vpack.c.bf16 %v755_v5, %v742_v4  ;;  %v822_v57 = vld [vmem:[%s22907_s3 + $0x17e0] sm:$0xff]  ;;  %v847_v62 = vld [vmem:[%s22907_s3 + $0x18a8] sm:$0xff] }
 0x1e0   :  { %12640 = vmatpush1.bf16.msra.mxu0 %v12639_v16  ;;  %v782_v16 = vld [vmem:[%s22907_s3 + $0x16a0] sm:$0xff]  ;;  %v12859_v5 = vpack.c.bf16 %v835_v59, %v822_v57  ;;  %v937_v59 = vld [vmem:[%s22907_s3 + $0x1b78] sm:$0xff] }
 0x1e1   :  { %12832 = vmatpush1.bf16.msra.mxu1 %v12831_v18  ;;  %12642 = vmatprep.subr.bf16.mxu0 %v12641_v19  ;;  %v771_v18 = vld [vmem:[%s22907_s3 + $0x1648] sm:$0xff]  ;;  %v784_v19 = vld [vmem:[%s22907_s3 + $0x16b0] sm:$0xff]  ;;  %v12657_v22 = vpack.c.bf16 %v782_v16, %v769_v12 }
 0x1e2   :  { %12834 = vmatprep.subr.bf16.mxu1 %v12833_v23  ;;  %v768_v23 = vld [vmem:[%s22907_s3 + $0x1630] sm:$0xff]  ;;  %v12849_v28 = vpack.c.bf16 %v784_v19, %v771_v18  ;;  %v861_v18 = vld [vmem:[%s22907_s3 + $0x1918] sm:$0xff] }
 0x1e3   :  { %v12659_v11 = vpack.c.bf16 %v781_v24, %v768_v23  ;;  %v848_v12 = vld [vmem:[%s22907_s3 + $0x18b0] sm:$0xff]  ;;  %v873_v19 = vld [vmem:[%s22907_s3 + $0x1978] sm:$0xff] }
 0x1e4   :  { %12644 = vmatpush1.bf16.msra.mxu0 %v12643_v31  ;;  %v808_v31 = vld [vmem:[%s22907_s3 + $0x1770] sm:$0xff]  ;;  %v12863_v24 = vpack.c.bf16 %v861_v18, %v848_v12  ;;  %v963_v18 = vld [vmem:[%s22907_s3 + $0x1c48] sm:$0xff] }
 0x1e5   :  { %12836 = vmatpush1.bf16.msra.mxu1 %v12835_v33  ;;  %12646 = vmatprep.subr.bf16.mxu0 %v12645_v50  ;;  %v797_v33 = vld [vmem:[%s22907_s3 + $0x1718] sm:$0xff]  ;;  %v810_v50 = vld [vmem:[%s22907_s3 + $0x1780] sm:$0xff]  ;;  %v12661_v35 = vpack.c.bf16 %v808_v31, %v795_v30 }
 0x1e6   :  { %12838 = vmatprep.subr.bf16.mxu1 %v12837_v36  ;;  %v794_v36 = vld [vmem:[%s22907_s3 + $0x1700] sm:$0xff]  ;;  %v12853_v40 = vpack.c.bf16 %v810_v50, %v797_v33  ;;  %v887_v33 = vld [vmem:[%s22907_s3 + $0x19e8] sm:$0xff] }
 0x1e7   :  { %v12663_v47 = vpack.c.bf16 %v807_v37, %v794_v36  ;;  %v874_v30 = vld [vmem:[%s22907_s3 + $0x1980] sm:$0xff]  ;;  %v899_v50 = vld [vmem:[%s22907_s3 + $0x1a48] sm:$0xff] }
 0x1e8   :  { %12648 = vmatpush1.bf16.msra.mxu0 %v12647_v43  ;;  %v834_v43 = vld [vmem:[%s22907_s3 + $0x1840] sm:$0xff]  ;;  %v12867_v37 = vpack.c.bf16 %v887_v33, %v874_v30  ;;  %v989_v33 = vld [vmem:[%s22907_s3 + $0x1d18] sm:$0xff] }
 0x1e9   :  { %12840 = vmatpush1.bf16.msra.mxu1 %v12839_v44  ;;  %12650 = vmatprep.subr.bf16.mxu0 %v12649_v45  ;;  %v823_v44 = vld [vmem:[%s22907_s3 + $0x17e8] sm:$0xff]  ;;  %v836_v45 = vld [vmem:[%s22907_s3 + $0x1850] sm:$0xff]  ;;  %v12665_v49 = vpack.c.bf16 %v834_v43, %v821_v42 }
 0x1ea   :  { %12842 = vmatprep.subr.bf16.mxu1 %v12841_v54  ;;  %v820_v54 = vld [vmem:[%s22907_s3 + $0x17d0] sm:$0xff]  ;;  %v12857_v58 = vpack.c.bf16 %v836_v45, %v823_v44  ;;  %v913_v44 = vld [vmem:[%s22907_s3 + $0x1ab8] sm:$0xff] }
 0x1eb   :  { %v12667_v4 = vpack.c.bf16 %v833_v55, %v820_v54  ;;  %v900_v42 = vld [vmem:[%s22907_s3 + $0x1a50] sm:$0xff]  ;;  %v925_v45 = vld [vmem:[%s22907_s3 + $0x1b18] sm:$0xff] }
 0x1ec   :  { %12652 = vmatpush1.bf16.msra.mxu0 %v12651_v63  ;;  %v860_v63 = vld [vmem:[%s22907_s3 + $0x1910] sm:$0xff]  ;;  %v12871_v55 = vpack.c.bf16 %v913_v44, %v900_v42  ;;  %v1015_v44 = vld [vmem:[%s22907_s3 + $0x1de8] sm:$0xff] }
 0x1ed   :  { %12844 = vmatpush1.bf16.msra.mxu1 %v12843_v2  ;;  %12654 = vmatprep.subr.bf16.mxu0 %v12653_v3  ;;  %v849_v2 = vld [vmem:[%s22907_s3 + $0x18b8] sm:$0xff]  ;;  %v862_v3 = vld [vmem:[%s22907_s3 + $0x1920] sm:$0xff]  ;;  %v12669_v6 = vpack.c.bf16 %v860_v63, %v847_v62 }
 0x1ee   :  { %12846 = vmatprep.subr.bf16.mxu1 %v12845_v7  ;;  %v846_v7 = vld [vmem:[%s22907_s3 + $0x18a0] sm:$0xff]  ;;  %v12861_v16 = vpack.c.bf16 %v862_v3, %v849_v2  ;;  %v939_v2 = vld [vmem:[%s22907_s3 + $0x1b88] sm:$0xff] }
 0x1ef   :  { %v12671_v23 = vpack.c.bf16 %v859_v10, %v846_v7  ;;  %v926_v62 = vld [vmem:[%s22907_s3 + $0x1b20] sm:$0xff]  ;;  %v951_v3 = vld [vmem:[%s22907_s3 + $0x1be8] sm:$0xff] }
 0x1f0   :  { %12656 = vmatpush1.bf16.msra.mxu0 %v12655_v20  ;;  %v886_v20 = vld [vmem:[%s22907_s3 + $0x19e0] sm:$0xff]  ;;  %v12875_v10 = vpack.c.bf16 %v939_v2, %v926_v62 }
 0x1f1   :  { %12848 = vmatpush1.bf16.msra.mxu1 %v12847_v21  ;;  %12658 = vmatprep.subr.bf16.mxu0 %v12657_v22  ;;  %v875_v21 = vld [vmem:[%s22907_s3 + $0x1988] sm:$0xff]  ;;  %v888_v22 = vld [vmem:[%s22907_s3 + $0x19f0] sm:$0xff]  ;;  %v12673_v27 = vpack.c.bf16 %v886_v20, %v873_v19 }
 0x1f2   :  { %12850 = vmatprep.subr.bf16.mxu1 %v12849_v28  ;;  %v872_v28 = vld [vmem:[%s22907_s3 + $0x1970] sm:$0xff]  ;;  %v12865_v31 = vpack.c.bf16 %v888_v22, %v875_v21  ;;  %v965_v21 = vld [vmem:[%s22907_s3 + $0x1c58] sm:$0xff] }
 0x1f3   :  { %v12675_v36 = vpack.c.bf16 %v885_v29, %v872_v28  ;;  %v952_v19 = vld [vmem:[%s22907_s3 + $0x1bf0] sm:$0xff]  ;;  %v977_v22 = vld [vmem:[%s22907_s3 + $0x1cb8] sm:$0xff] }
 0x1f4   :  { %12660 = vmatpush1.bf16.msra.mxu0 %v12659_v11  ;;  %v912_v11 = vld [vmem:[%s22907_s3 + $0x1ab0] sm:$0xff]  ;;  %v12879_v29 = vpack.c.bf16 %v965_v21, %v952_v19  ;;  %v1070_v19 = vld [vmem:[%s22907_s3 + $0x1fa0] sm:$0xff] }
 0x1f5   :  { %12852 = vmatpush1.bf16.msra.mxu1 %v12851_v34  ;;  %12662 = vmatprep.subr.bf16.mxu0 %v12661_v35  ;;  %v901_v34 = vld [vmem:[%s22907_s3 + $0x1a58] sm:$0xff]  ;;  %v914_v35 = vld [vmem:[%s22907_s3 + $0x1ac0] sm:$0xff]  ;;  %v12677_v38 = vpack.c.bf16 %v912_v11, %v899_v50 }
 0x1f6   :  { %12854 = vmatprep.subr.bf16.mxu1 %v12853_v40  ;;  %v898_v40 = vld [vmem:[%s22907_s3 + $0x1a40] sm:$0xff]  ;;  %v12869_v43 = vpack.c.bf16 %v914_v35, %v901_v34  ;;  %v991_v34 = vld [vmem:[%s22907_s3 + $0x1d28] sm:$0xff] }
 0x1f7   :  { %v12679_v54 = vpack.c.bf16 %v911_v41, %v898_v40  ;;  %v978_v50 = vld [vmem:[%s22907_s3 + $0x1cc0] sm:$0xff]  ;;  %v1003_v35 = vld [vmem:[%s22907_s3 + $0x1d88] sm:$0xff] }
 0x1f8   :  { %12664 = vmatpush1.bf16.msra.mxu0 %v12663_v47  ;;  %v938_v47 = vld [vmem:[%s22907_s3 + $0x1b80] sm:$0xff]  ;;  %v12883_v41 = vpack.c.bf16 %v991_v34, %v978_v50  ;;  %v1081_v50 = vld [vmem:[%s22907_s3 + $0x1ff8] sm:$0xff] }
 0x1f9   :  { %12856 = vmatpush1.bf16.msra.mxu1 %v12855_v48  ;;  %12666 = vmatprep.subr.bf16.mxu0 %v12665_v49  ;;  %v927_v48 = vld [vmem:[%s22907_s3 + $0x1b28] sm:$0xff]  ;;  %v940_v49 = vld [vmem:[%s22907_s3 + $0x1b90] sm:$0xff]  ;;  %v12681_v57 = vpack.c.bf16 %v938_v47, %v925_v45 }
 0x1fa   :  { %12858 = vmatprep.subr.bf16.mxu1 %v12857_v58  ;;  %v924_v58 = vld [vmem:[%s22907_s3 + $0x1b10] sm:$0xff]  ;;  %v12873_v63 = vpack.c.bf16 %v940_v49, %v927_v48  ;;  %v1017_v48 = vld [vmem:[%s22907_s3 + $0x1df8] sm:$0xff] }
 0x1fb   :  { %v12683_v7 = vpack.c.bf16 %v937_v59, %v924_v58  ;;  %v1004_v45 = vld [vmem:[%s22907_s3 + $0x1d90] sm:$0xff]  ;;  %v1029_v49 = vld [vmem:[%s22907_s3 + $0x1e58] sm:$0xff] }
 0x1fc   :  { %12668 = vmatpush1.bf16.msra.mxu0 %v12667_v4  ;;  %v964_v4 = vld [vmem:[%s22907_s3 + $0x1c50] sm:$0xff]  ;;  %v12887_v2 = vpack.c.bf16 %v1017_v48, %v1004_v45  ;;  %v1093_v45 = vld [vmem:[%s22907_s3 + $0x2058] sm:$0xff] }
 0x1fd   :  { %12860 = vmatpush1.bf16.msra.mxu1 %v12859_v5  ;;  %12670 = vmatprep.subr.bf16.mxu0 %v12669_v6  ;;  %v953_v5 = vld [vmem:[%s22907_s3 + $0x1bf8] sm:$0xff]  ;;  %v966_v6 = vld [vmem:[%s22907_s3 + $0x1c60] sm:$0xff]  ;;  %v12685_v12 = vpack.c.bf16 %v964_v4, %v951_v3  ;;  %v1028_v4 = vld [vmem:[%s22907_s3 + $0x1e50] sm:$0xff] }
 0x1fe   :  { %12862 = vmatprep.subr.bf16.mxu1 %v12861_v16  ;;  %v950_v16 = vld [vmem:[%s22907_s3 + $0x1be0] sm:$0xff]  ;;  %v12877_v20 = vpack.c.bf16 %v966_v6, %v953_v5  ;;  %v1041_v5 = vld [vmem:[%s22907_s3 + $0x1eb8] sm:$0xff]  ;;  %v1120_v48 = vld [vmem:[%s22907_s3 + $0x2130] sm:$0xff] }
 0x1ff   :  { %v12687_v28 = vpack.c.bf16 %v963_v18, %v950_v16  ;;  %v1030_v6 = vld [vmem:[%s22907_s3 + $0x1e60] sm:$0xff]  ;;  %v1068_v16 = vld [vmem:[%s22907_s3 + $0x1f90] sm:$0xff]  ;;  %v1057_v18 = vld [vmem:[%s22907_s3 + $0x1f38] sm:$0xff]  ;;  %v12699_v21 = vpack.c.bf16 %v1041_v5, %v1028_v4 }
 0x200   :  { %12672 = vmatpush1.bf16.msra.mxu0 %v12671_v23  ;;  %v990_v23 = vld [vmem:[%s22907_s3 + $0x1d20] sm:$0xff]  ;;  %v1121_v5 = vld [vmem:[%s22907_s3 + $0x2138] sm:$0xff] }
 0x201   :  { %12864 = vmatpush1.bf16.msra.mxu1 %v12863_v24  ;;  %12674 = vmatprep.subr.bf16.mxu0 %v12673_v27  ;;  %v979_v24 = vld [vmem:[%s22907_s3 + $0x1cc8] sm:$0xff]  ;;  %v992_v27 = vld [vmem:[%s22907_s3 + $0x1d30] sm:$0xff]  ;;  %v12689_v30 = vpack.c.bf16 %v990_v23, %v977_v22 }
 0x202   :  { %12866 = vmatprep.subr.bf16.mxu1 %v12865_v31  ;;  %v976_v31 = vld [vmem:[%s22907_s3 + $0x1cb0] sm:$0xff]  ;;  %v12881_v11 = vpack.c.bf16 %v992_v27, %v979_v24  ;;  %v1054_v27 = vld [vmem:[%s22907_s3 + $0x1f20] sm:$0xff] }
 0x203   :  { %v12691_v40 = vpack.c.bf16 %v989_v33, %v976_v31  ;;  %v12893_v31 = vpack.c.bf16 %v1070_v19, %v1057_v18  ;;  %v1069_v33 = vld [vmem:[%s22907_s3 + $0x1f98] sm:$0xff]  ;;  %v1132_v18 = vld [vmem:[%s22907_s3 + $0x2190] sm:$0xff] }
 0x204   :  { %12676 = vmatpush1.bf16.msra.mxu0 %v12675_v36  ;;  %v1016_v36 = vld [vmem:[%s22907_s3 + $0x1df0] sm:$0xff]  ;;  %v1145_v19 = vld [vmem:[%s22907_s3 + $0x21f8] sm:$0xff] }
 0x205   :  { %12868 = vmatpush1.bf16.msra.mxu1 %v12867_v37  ;;  %12678 = vmatprep.subr.bf16.mxu0 %v12677_v38  ;;  %v1005_v37 = vld [vmem:[%s22907_s3 + $0x1d98] sm:$0xff]  ;;  %v1018_v38 = vld [vmem:[%s22907_s3 + $0x1e00] sm:$0xff]  ;;  %v12693_v42 = vpack.c.bf16 %v1016_v36, %v1003_v35  ;;  %v1083_v36 = vld [vmem:[%s22907_s3 + $0x2008] sm:$0xff] }
 0x206   :  { %12870 = vmatprep.subr.bf16.mxu1 %v12869_v43  ;;  %v1002_v43 = vld [vmem:[%s22907_s3 + $0x1d80] sm:$0xff]  ;;  %v12885_v47 = vpack.c.bf16 %v1018_v38, %v1005_v37  ;;  %v1096_v37 = vld [vmem:[%s22907_s3 + $0x2070] sm:$0xff] }
 0x207   :  { %2396 = vmatmul.mubr.f32.vlgmr.msra.gmra.mrb[4].mxu0 %v15478_v26  ;;  %v12695_v59 = vpack.c.bf16 %v1015_v44, %v1002_v43  ;;  %v1080_v44 = vld [vmem:[%s22907_s3 + $0x1ff0] sm:$0xff] }
 0x208   :  { %12680 = vmatpush1.bf16.msra.mxu0 %v12679_v54  ;;  %2609 = vmatmul.mubr.f32.vlgmr.msra.gmra.mrb[4].mxu1 %v15478_v26  ;;  %v1042_v54 = vld [vmem:[%s22907_s3 + $0x1ec0] sm:$0xff] }
 0x209   :  { %12872 = vmatpush1.bf16.msra.mxu1 %v12871_v55  ;;  %12682 = vmatprep.subr.bf16.mxu0 %v12681_v57  ;;  %v1031_v55 = vld [vmem:[%s22907_s3 + $0x1e68] sm:$0xff]  ;;  %v1044_v57 = vld [vmem:[%s22907_s3 + $0x1ed0] sm:$0xff]  ;;  %v12697_v3 = vpack.c.bf16 %v1042_v54, %v1029_v49  ;;  %v1109_v54 = vld [vmem:[%s22907_s3 + $0x20d8] sm:$0xff] }
 0x20a   :  { %12874 = vmatprep.subr.bf16.mxu1 %v12873_v63  ;;  %2466 = vmatprep.mubr.f32.mxu0 %v15903_v60 }
 0x20b   :  { %2679 = vmatprep.mubr.f32.mxu1 %v15903_v60 }
 0x20c   :  { %12684 = vmatpush1.bf16.msra.mxu0 %v12683_v7  ;;  %v12889_v7 = vpack.c.bf16 %v1044_v57, %v1031_v55  ;;  %v1122_v55 = vld [vmem:[%s22907_s3 + $0x2140] sm:$0xff]  ;;  %v12707_v57 = vpack.c.bf16 %v1093_v45, %v1080_v44  ;;  %v1200_v44 = vld [vmem:[%s22907_s3 + $0x23b0] sm:$0xff] }
 0x20d   :  { %12876 = vmatpush1.bf16.msra.mxu1 %v12875_v10  ;;  %12686 = vmatprep.subr.bf16.mxu0 %v12685_v12  ;;  %v1043_v10 = vld [vmem:[%s22907_s3 + $0x1ec8] sm:$0xff]  ;;  %v12901_v4 = vpack.c.bf16 %v1122_v55, %v1109_v54  ;;  %v1224_v55 = vld [vmem:[%s22907_s3 + $0x2470] sm:$0xff] }
 0x20e   :  { %12878 = vmatprep.subr.bf16.mxu1 %v12877_v20  ;;  %v1055_v12 = vld [vmem:[%s22907_s3 + $0x1f28] sm:$0xff]  ;;  %v12891_v23 = vpack.c.bf16 %v1043_v10, %v1030_v6  ;;  %v1133_v6 = vld [vmem:[%s22907_s3 + $0x2198] sm:$0xff] }
 0x20f   :  { %v12701_v24 = vpack.c.bf16 %v1068_v16, %v1055_v12  ;;  %v1135_v10 = vld [vmem:[%s22907_s3 + $0x21a8] sm:$0xff] }
 0x210   :  { %12688 = vmatpush1.bf16.msra.mxu0 %v12687_v28  ;;  %v1067_v28 = vld [vmem:[%s22907_s3 + $0x1f88] sm:$0xff] }
 0x211   :  { %12880 = vmatpush1.bf16.msra.mxu1 %v12879_v29  ;;  %12690 = vmatprep.subr.bf16.mxu0 %v12689_v30  ;;  %v1056_v29 = vld [vmem:[%s22907_s3 + $0x1f30] sm:$0xff]  ;;  %v12703_v38 = vpack.c.bf16 %v1067_v28, %v1054_v27  ;;  %v1159_v27 = vld [vmem:[%s22907_s3 + $0x2268] sm:$0xff] }
 0x212   :  { %12882 = vmatprep.subr.bf16.mxu1 %v12881_v11  ;;  %v1094_v11 = vld [vmem:[%s22907_s3 + $0x2060] sm:$0xff]  ;;  %v1172_v28 = vld [vmem:[%s22907_s3 + $0x22d0] sm:$0xff]  ;;  %v1211_v54 = vld [vmem:[%s22907_s3 + $0x2408] sm:$0xff] }
 0x213   :  { %v12705_v43 = vpack.c.bf16 %v1094_v11, %v1081_v50  ;;  %v12717_v50 = vpack.c.bf16 %v1172_v28, %v1159_v27  ;;  %v1158_v11 = vld [vmem:[%s22907_s3 + $0x2260] sm:$0xff]  ;;  %v1251_v28 = vld [vmem:[%s22907_s3 + $0x2548] sm:$0xff] }
 0x214   :  { %12692 = vmatpush1.bf16.msra.mxu0 %v12691_v40  ;;  %v14711_v58 = vpop.permute.xlu0 %14710 }
 0x215   :  { %12884 = vmatpush1.bf16.msra.mxu1 %v12883_v41  ;;  %v14713_v62 = vunpack.i.h.bf16 %v14711_v58  ;;  %v14712_v63 = vunpack.i.l.bf16 %v14711_v58  ;;  %12694 = vmatprep.subr.bf16.mxu0 %v12693_v42  ;;  %v12895_v42 = vpack.c.bf16 %v1069_v33, %v1056_v29  ;;  %v1161_v29 = vld [vmem:[%s22907_s3 + $0x2278] sm:$0xff] }
 0x216   :  { %12886 = vmatprep.subr.bf16.mxu1 %v12885_v47  ;;  %v1107_v47 = vld [vmem:[%s22907_s3 + $0x20c8] sm:$0xff] }
 0x217   :  { %v2950_v30 = vsel %vm2948_vm0, %v14712_v63, %v14713_v62 }
 0x218   :  { %12696 = vmatpush1.bf16.msra.mxu0 %v12695_v59  ;;  %v18381_v20 = vpop.permute.xlu0 %14715  ;;  %v18415_v40 = vmax.f32 %v2897_v1, %v2950_v30  ;;  %v1095_v1 = vld [vmem:[%s22907_s3 + $0x2068] sm:$0xff]  ;;  %v12709_v59 = vpack.c.bf16 %v1120_v48, %v1107_v47  ;;  %v1174_v30 = vld [vmem:[%s22907_s3 + $0x22e0] sm:$0xff] }
 0x219   :  { %12888 = vmatpush1.bf16.msra.mxu1 %v12887_v2  ;;  %v14717_v22 = vunpack.i.l.bf16 %v18381_v20  ;;  %12698 = vmatprep.subr.bf16.mxu0 %v12697_v3  ;;  %v14718_v34 = vunpack.i.h.bf16 %v18381_v20  ;;  %v12899_v58 = vpack.c.bf16 %v1095_v1, %v1082_v53  ;;  %v1108_v2 = vld [vmem:[%s22907_s3 + $0x20d0] sm:$0xff]  ;;  %v1197_v1 = vld [vmem:[%s22907_s3 + $0x2398] sm:$0xff]  ;;  %v1186_v47 = vld [vmem:[%s22907_s3 + $0x2340] sm:$0xff] }
 0x21a   :  { %12890 = vmatprep.subr.bf16.mxu1 %v12889_v7  ;;  %v1146_v7 = vld [vmem:[%s22907_s3 + $0x2200] sm:$0xff]  ;;  %v12903_v12 = vpack.c.bf16 %v1121_v5, %v1108_v2  ;;  %v1212_v5 = vld [vmem:[%s22907_s3 + $0x2410] sm:$0xff] }
 0x21b   :  { %v2951_v35 = vsel %vm2948_vm0, %v14713_v62, %v14717_v22  ;;  %v2949_v49 = vsel %vm2948_vm0, %v14718_v34, %v14712_v63  ;;  %v1106_v62 = vld [vmem:[%s22907_s3 + $0x20c0] sm:$0xff]  ;;  %v1119_v63 = vld [vmem:[%s22907_s3 + $0x2128] sm:$0xff]  ;;  %v12713_v16 = vpack.c.bf16 %v1146_v7, %v1133_v6  ;;  %v1225_v7 = vld [vmem:[%s22907_s3 + $0x2478] sm:$0xff] }
 0x21c   :  { %12700 = vmatpush1.bf16.msra.mxu0 %v12699_v21  ;;  %v18419_v41 = vmax.f32 %v2898_v0, %v2951_v35  ;;  %v12897_v0 = vpack.c.bf16 %v1096_v37, %v1083_v36  ;;  %v18460_v3 = vmax.f32 %v2896_v8, %v2949_v49  ;;  %v12711_v8 = vpack.c.bf16 %v1119_v63, %v1106_v62  ;;  %v1134_v21 = vld [vmem:[%s22907_s3 + $0x21a0] sm:$0xff]  ;;  %v1171_v34 = vld [vmem:[%s22907_s3 + $0x22c8] sm:$0xff]  ;;  %v1160_v35 = vld [vmem:[%s22907_s3 + $0x2270] sm:$0xff] }
 0x21d   :  { %12892 = vmatpush1.bf16.msra.mxu1 %v12891_v23  ;;  %12702 = vmatprep.subr.bf16.mxu0 %v12701_v24  ;;  %v12905_v23 = vpack.c.bf16 %v1148_v51, %v1135_v10  ;;  %v1147_v24 = vld [vmem:[%s22907_s3 + $0x2208] sm:$0xff]  ;;  %v12909_v36 = vpack.c.bf16 %v1174_v30, %v1161_v29  ;;  %v1173_v37 = vld [vmem:[%s22907_s3 + $0x22d8] sm:$0xff]  ;;  %v12719_v45 = vpack.c.bf16 %v1171_v34, %v1158_v11  ;;  %v1210_v2 = vld [vmem:[%s22907_s3 + $0x2400] sm:$0xff] }
 0x21e   :  { %12894 = vmatprep.subr.bf16.mxu1 %v12893_v31  ;;  %v14719_v52 = vpack.i.bf16 %v18419_v41, %v18415_v40  ;;  %v12715_v31 = vpack.c.bf16 %v1145_v19, %v1132_v18  ;;  %v12907_v33 = vpack.c.bf16 %v1147_v24, %v1134_v21  ;;  %v12911_v53 = vpack.c.bf16 %v1173_v37, %v1160_v35  ;;  %v1199_v49 = vld [vmem:[%s22907_s3 + $0x23a8] sm:$0xff]  ;;  %v1237_v10 = vld [vmem:[%s22907_s3 + $0x24d8] sm:$0xff]  ;;  %v1250_v51 = vld [vmem:[%s22907_s3 + $0x2540] sm:$0xff] }
 0x21f   :  { %v12915_v62 = vpack.c.bf16 %v1199_v49, %v1186_v47  ;;  %v12725_v63 = vpack.c.bf16 %v1224_v55, %v1211_v54  ;;  %v12919_v18 = vpack.c.bf16 %v1225_v7, %v1212_v5  ;;  %v12729_v19 = vpack.c.bf16 %v1250_v51, %v1237_v10  ;;  %v1236_v21 = vld [vmem:[%s22907_s3 + $0x24d0] sm:$0xff]  ;;  %v1238_v24 = vld [vmem:[%s22907_s3 + $0x24e0] sm:$0xff]  ;;  %v1263_v29 = vld [vmem:[%s22907_s3 + $0x25a8] sm:$0xff] }
 0x220   :  { %12704 = vmatpush1.bf16.msra.mxu0 %v12703_v38  ;;  %14720 = vrot.lane.b32.xlu1 %v14719_v52, %s14941_s30  ;;  %v1185_v38 = vld [vmem:[%s22907_s3 + $0x2338] sm:$0xff]  ;;  %v1276_v30 = vld [vmem:[%s22907_s3 + $0x2610] sm:$0xff]  ;;  %v12923_v11 = vpack.c.bf16 %v1251_v28, %v1238_v24  ;;  %v1262_v35 = vld [vmem:[%s22907_s3 + $0x25a0] sm:$0xff] }
 0x221   :  { %12896 = vmatpush1.bf16.msra.mxu1 %v12895_v42  ;;  %12706 = vmatprep.subr.bf16.mxu0 %v12705_v43  ;;  %v1198_v42 = vld [vmem:[%s22907_s3 + $0x23a0] sm:$0xff]  ;;  %v1187_v43 = vld [vmem:[%s22907_s3 + $0x2348] sm:$0xff]  ;;  %v12733_v34 = vpack.c.bf16 %v1276_v30, %v1263_v29  ;;  %v1264_v37 = vld [vmem:[%s22907_s3 + $0x25b0] sm:$0xff] }
 0x222   :  { %12898 = vmatprep.subr.bf16.mxu1 %v12897_v0  ;;  %v12721_v52 = vpack.c.bf16 %v1198_v42, %v1185_v38  ;;  %v1184_v0 = vld [vmem:[%s22907_s3 + $0x2330] sm:$0xff]  ;;  %v12913_v48 = vpack.c.bf16 %v1200_v44, %v1187_v43  ;;  %v1277_v42 = vld [vmem:[%s22907_s3 + $0x2618] sm:$0xff]  ;;  %v1302_v44 = vld [vmem:[%s22907_s3 + $0x26e0] sm:$0xff] }
 0x223   :  { %v1289_v43 = vld [vmem:[%s22907_s3 + $0x2678] sm:$0xff]  ;;  %v1288_v47 = vld [vmem:[%s22907_s3 + $0x2670] sm:$0xff]  ;;  %v1290_v49 = vld [vmem:[%s22907_s3 + $0x2680] sm:$0xff] }
 0x224   :  { %12708 = vmatpush1.bf16.msra.mxu0 %v12707_v57  ;;  %3000 = vrot.lane.b32.xlu1 %v18460_v3, %s14941_s30  ;;  %v1213_v57 = vld [vmem:[%s22907_s3 + $0x2418] sm:$0xff]  ;;  %v1303_v55 = vld [vmem:[%s22907_s3 + $0x26e8] sm:$0xff]  ;;  %v70_v5 = vld [vmem:[%s22907_s3 + $0x60] sm:$0xff] }
 0x225   :  { %12900 = vmatpush1.bf16.msra.mxu1 %v12899_v58  ;;  %12710 = vmatprep.subr.bf16.mxu0 %v12709_v59  ;;  %v1226_v58 = vld [vmem:[%s22907_s3 + $0x2480] sm:$0xff]  ;;  %v12723_v59 = vpack.c.bf16 %v1197_v1, %v1184_v0  ;;  %v12927_v0 = vpack.c.bf16 %v1277_v42, %v1264_v37  ;;  %v12737_v1 = vpack.c.bf16 %v1302_v44, %v1289_v43  ;;  %v499_v51 = vld [vmem:[%s22907_s3 + $0xdc8] sm:$0xff]  ;;  %v96_v24 = vld [vmem:[%s22907_s3 + $0x130] sm:$0xff] }
 0x226   :  { %12902 = vmatprep.subr.bf16.mxu1 %v12901_v4  ;;  %v1223_v4 = vld [vmem:[%s22907_s3 + $0x2468] sm:$0xff]  ;;  %v12917_v6 = vpack.c.bf16 %v1226_v58, %v1213_v57  ;;  %v278_v57 = vld [vmem:[%s22907_s3 + $0x6e0] sm:$0xff]  ;;  %v512_v28 = vld [vmem:[%s22907_s3 + $0xe30] sm:$0xff] }
 0x227   :  { %v291_v58 = vld [vmem:[%s22907_s3 + $0x748] sm:$0xff]  ;;  %v486_v7 = vld [vmem:[%s22907_s3 + $0xd60] sm:$0xff]  ;;  %v525_v30 = vld [vmem:[%s22907_s3 + $0xe98] sm:$0xff] }
 0x228   :  { %12712 = vmatpush1.bf16.msra.mxu0 %v12711_v8  ;;  %v1239_v8 = vld [vmem:[%s22907_s3 + $0x24e8] sm:$0xff]  ;;  %v538_v43 = vld [vmem:[%s22907_s3 + $0xf00] sm:$0xff] }
 0x229   :  { %12904 = vmatpush1.bf16.msra.mxu1 %v12903_v12  ;;  %12714 = vmatprep.subr.bf16.mxu0 %v12713_v16  ;;  %v1252_v12 = vld [vmem:[%s22907_s3 + $0x2550] sm:$0xff]  ;;  %v12727_v16 = vpack.c.bf16 %v1223_v4, %v1210_v2  ;;  %v12931_v2 = vpack.c.bf16 %v1303_v55, %v1290_v49  ;;  %v12933_v4 = vpack.c.bf16 %v291_v58, %v278_v57  ;;  %v135_v42 = vld [vmem:[%s22907_s3 + $0x268] sm:$0xff]  ;;  %v577_v57 = vld [vmem:[%s22907_s3 + $0x1038] sm:$0xff] }
 0x22a   :  { %12906 = vmatprep.subr.bf16.mxu1 %v12905_v23  ;;  %v1249_v23 = vld [vmem:[%s22907_s3 + $0x2538] sm:$0xff]  ;;  %v12921_v27 = vpack.c.bf16 %v1252_v12, %v1239_v8  ;;  %v304_v8 = vld [vmem:[%s22907_s3 + $0x7b0] sm:$0xff]  ;;  %v382_v58 = vld [vmem:[%s22907_s3 + $0xa20] sm:$0xff] }
 0x22b   :  { %v317_v12 = vld [vmem:[%s22907_s3 + $0x818] sm:$0xff]  ;;  %v564_v55 = vld [vmem:[%s22907_s3 + $0xfd0] sm:$0xff] }
 0x22c   :  { %12716 = vmatpush1.bf16.msra.mxu0 %v12715_v31  ;;  %v1265_v31 = vld [vmem:[%s22907_s3 + $0x25b8] sm:$0xff] }
 0x22d   :  { %12908 = vmatpush1.bf16.msra.mxu1 %v12907_v33  ;;  %12718 = vmatprep.subr.bf16.mxu0 %v12717_v50  ;;  %v1278_v33 = vld [vmem:[%s22907_s3 + $0x2620] sm:$0xff]  ;;  %v12731_v50 = vpack.c.bf16 %v1249_v23, %v1236_v21  ;;  %v12967_v21 = vpack.c.bf16 %v499_v51, %v486_v7  ;;  %v12937_v23 = vpack.c.bf16 %v317_v12, %v304_v8  ;;  %v187_v7 = vld [vmem:[%s22907_s3 + $0x408] sm:$0xff]  ;;  %v408_v12 = vld [vmem:[%s22907_s3 + $0xaf0] sm:$0xff] }
 0x22e   :  { %12910 = vmatprep.subr.bf16.mxu1 %v12909_v36  ;;  %v1275_v36 = vld [vmem:[%s22907_s3 + $0x2608] sm:$0xff]  ;;  %v12925_v38 = vpack.c.bf16 %v1278_v33, %v1265_v31  ;;  %v330_v31 = vld [vmem:[%s22907_s3 + $0x880] sm:$0xff] }
 0x22f   :  { %v343_v33 = vld [vmem:[%s22907_s3 + $0x8e8] sm:$0xff] }
 0x230   :  { %12720 = vmatpush1.bf16.msra.mxu0 %v12719_v45  ;;  %v1291_v45 = vld [vmem:[%s22907_s3 + $0x2688] sm:$0xff]  ;;  %v12941_v37 = vpack.c.bf16 %v343_v33, %v330_v31  ;;  %v200_v31 = vld [vmem:[%s22907_s3 + $0x470] sm:$0xff]  ;;  %v213_v33 = vld [vmem:[%s22907_s3 + $0x4d8] sm:$0xff] }
 0x231   :  { %12912 = vmatpush1.bf16.msra.mxu1 %v12911_v53  ;;  %12722 = vmatprep.subr.bf16.mxu0 %v12721_v52  ;;  %v1304_v53 = vld [vmem:[%s22907_s3 + $0x26f0] sm:$0xff]  ;;  %v12735_v52 = vpack.c.bf16 %v1275_v36, %v1262_v35  ;;  %v12971_v36 = vpack.c.bf16 %v525_v30, %v512_v28  ;;  %v603_v8 = vld [vmem:[%s22907_s3 + $0x1108] sm:$0xff] }
 0x232   :  { %12914 = vmatprep.subr.bf16.mxu1 %v12913_v48  ;;  %v1301_v48 = vld [vmem:[%s22907_s3 + $0x26d8] sm:$0xff]  ;;  %v12929_v54 = vpack.c.bf16 %v1304_v53, %v1291_v45  ;;  %v551_v45 = vld [vmem:[%s22907_s3 + $0xf68] sm:$0xff]  ;;  %v356_v53 = vld [vmem:[%s22907_s3 + $0x950] sm:$0xff] }
 0x234   :  { %12724 = vmatpush1.bf16.msra.mxu0 %v12723_v59  ;;  %v694_v59 = vld [vmem:[%s22907_s3 + $0x13e0] sm:$0xff] }
 0x235   :  { %12916 = vmatpush1.bf16.msra.mxu1 %v12915_v62  ;;  %12726 = vmatprep.subr.bf16.mxu0 %v12725_v63  ;;  %v707_v62 = vld [vmem:[%s22907_s3 + $0x1448] sm:$0xff]  ;;  %v12739_v63 = vpack.c.bf16 %v1301_v48, %v1288_v47  ;;  %v12975_v48 = vpack.c.bf16 %v551_v45, %v538_v43  ;;  %v850_v43 = vld [vmem:[%s22907_s3 + $0x18c0] sm:$0xff] }
 0x236   :  { %12918 = vmatprep.subr.bf16.mxu1 %v12917_v6  ;;  %v83_v6 = vld [vmem:[%s22907_s3 + $0xc8] sm:$0xff]  ;;  %v12965_v10 = vpack.c.bf16 %v707_v62, %v694_v59  ;;  %v798_v62 = vld [vmem:[%s22907_s3 + $0x1720] sm:$0xff] }
 0x237   :  { %v395_v59 = vld [vmem:[%s22907_s3 + $0xa88] sm:$0xff] }
 0x238   :  { %12728 = vmatpush1.bf16.msra.mxu0 %v12727_v16  ;;  %v720_v16 = vld [vmem:[%s22907_s3 + $0x14b0] sm:$0xff] }
 0x239   :  { %12920 = vmatpush1.bf16.msra.mxu1 %v12919_v18  ;;  %12730 = vmatprep.subr.bf16.mxu0 %v12729_v19  ;;  %v733_v18 = vld [vmem:[%s22907_s3 + $0x1518] sm:$0xff]  ;;  %v12935_v19 = vpack.c.bf16 %v83_v6, %v70_v5  ;;  %v12949_v5 = vpack.c.bf16 %v395_v59, %v382_v58  ;;  %v174_v6 = vld [vmem:[%s22907_s3 + $0x3a0] sm:$0xff] }
 0x23a   :  { %12922 = vmatprep.subr.bf16.mxu1 %v12921_v27  ;;  %v109_v27 = vld [vmem:[%s22907_s3 + $0x198] sm:$0xff]  ;;  %v12969_v29 = vpack.c.bf16 %v733_v18, %v720_v16  ;;  %v1328_v18 = vsub.s32 4, %v15293_v61 }
 0x23b   :  { %v12939_v35 = vpack.c.bf16 %v109_v27, %v96_v24  ;;  %v421_v16 = vld [vmem:[%s22907_s3 + $0xb58] sm:$0xff]  ;;  %v1336_v24 = vsub.s32 6, %v15293_v61  ;;  %v1332_v27 = vsub.s32 5, %v15293_v61 }
 0x23c   :  { %12732 = vmatpush1.bf16.msra.mxu0 %v12731_v50  ;;  %v18692_v50 = vld.sshfl [vmem:[%s22926_s27 + $0x8] sm:$0x33 pattern:$0x76325410]  ;;  %v12953_v30 = vpack.c.bf16 %v421_v16, %v408_v12  ;;  %v473_v58 = vld [vmem:[%s22907_s3 + $0xcf8] sm:$0xff] }
 0x23d   :  { %12924 = vmatpush1.bf16.msra.mxu1 %v12923_v11  ;;  %12734 = vmatprep.subr.bf16.mxu0 %v12733_v34  ;;  %v746_v11 = vld [vmem:[%s22907_s3 + $0x1580] sm:$0xff]  ;;  %v759_v34 = vld [vmem:[%s22907_s3 + $0x15e8] sm:$0xff] }
 0x23e   :  { %12926 = vmatprep.subr.bf16.mxu1 %v12925_v38  ;;  %v122_v38 = vld [vmem:[%s22907_s3 + $0x200] sm:$0xff]  ;;  %v12973_v44 = vpack.c.bf16 %v759_v34, %v746_v11  ;;  %v616_v11 = vld [vmem:[%s22907_s3 + $0x1170] sm:$0xff] }
 0x23f   :  { %v12943_v47 = vpack.c.bf16 %v135_v42, %v122_v38  ;;  %v14914_v38 = vld [vmem:[%s22908_s4] sm:$0xff] }
 0x240   :  { %12736 = vmatpush1.bf16.msra.mxu0 %v12735_v52  ;;  %v369_v52 = vld [vmem:[%s22907_s3 + $0x9b8] sm:$0xff]  ;;  %v1329_v42 = vrot.slane %v14914_v38, %v1328_v18  ;;  %v1337_v45 = vrot.slane %v14914_v38, %v1336_v24 }
 0x241   :  { %12928 = vmatpush1.bf16.msra.mxu1 %v12927_v0  ;;  %12738 = vmatprep.subr.bf16.mxu0 %v12737_v1  ;;  %v772_v0 = vld [vmem:[%s22907_s3 + $0x1650] sm:$0xff]  ;;  %v785_v1 = vld [vmem:[%s22907_s3 + $0x16b8] sm:$0xff]  ;;  %v12945_v49 = vpack.c.bf16 %v369_v52, %v356_v53  ;;  %v1333_v53 = vrot.slane %v14914_v38, %v1332_v27  ;;  %v12955_v52 = vpack.c.bf16 %v213_v33, %v200_v31  ;;  %v3064_v31 = vld [vmem:[%s22909_s5 + $0x8] sm:$0xff] }
 0x242   :  { %12930 = vmatprep.subr.bf16.mxu1 %v12929_v54  ;;  %v161_v54 = vld [vmem:[%s22907_s3 + $0x338] sm:$0xff]  ;;  %v3068_v33 = vld [vmem:[%s22909_s5 + $0x28] sm:$0xff] }
 0x244   :  { %12740 = vmatpush1.bf16.msra.mxu0 %v12739_v63  ;;  %v811_v63 = vld [vmem:[%s22907_s3 + $0x1788] sm:$0xff] }
 0x245   :  { %12932 = vmatpush1.bf16.msra.mxu1 %v12931_v2  ;;  %12934 = vmatprep.subr.bf16.mxu0 %v12933_v4  ;;  %v12979_v4 = vpack.c.bf16 %v577_v57, %v564_v55  ;;  %v12981_v51 = vpack.c.bf16 %v811_v63, %v798_v62  ;;  %v460_v57 = vld [vmem:[%s22907_s3 + $0xc90] sm:$0xff] }
 0x246   :  { %12966 = vmatprep.subr.bf16.mxu1 %v12965_v10  ;;  %v590_v10 = vld [vmem:[%s22907_s3 + $0x10a0] sm:$0xff]  ;;  %v12961_v16 = vpack.c.bf16 %v473_v58, %v460_v57 }
 0x247   :  { %2467 = vmatmul.mubr.f32.vlgmr.msra.gmra.mrb[4].mxu0 %v18692_v50  ;;  %v12983_v28 = vpack.c.bf16 %v603_v8, %v590_v10  ;;  %v3071_v57 = vld [vmem:[%s22909_s5 + $0x40] sm:$0xff] }
 0x248   :  { %2680 = vmatmul.mubr.f32.vlgmr.msra.gmra.mrb[4].mxu1 %v18692_v50  ;;  %12936 = vmatpush3.bf16.msra.mxu0 %v12935_v19  ;;  %v824_v19 = vld [vmem:[%s22907_s3 + $0x17f0] sm:$0xff] }
 0x249   :  { %12968 = vmatpush3.bf16.msra.mxu1 %v12967_v21  ;;  %12938 = vmatprep.subr.bf16.mxu0 %v12937_v23  ;;  %v837_v21 = vld [vmem:[%s22907_s3 + $0x1858] sm:$0xff]  ;;  %v12951_v23 = vpack.c.bf16 %v187_v7, %v174_v6 }
 0x24a   :  { %12970 = vmatprep.subr.bf16.mxu1 %v12969_v29  ;;  %2750 = vmatprep.mubr.f32.mxu0 %v15366_v32  ;;  %v148_v32 = vld [vmem:[%s22907_s3 + $0x2d0] sm:$0xff]  ;;  %v1340_v29 = vsub.s32 7, %v15293_v61  ;;  %v12985_v34 = vpack.c.bf16 %v837_v21, %v824_v19  ;;  %v265_v21 = vld [vmem:[%s22907_s3 + $0x678] sm:$0xff]  ;;  %v3323_v61 = vld [vmem:[%s22909_s5 + $0x820] sm:$0xff] }
 0x24b   :  { %2820 = vmatprep.mubr.f32.mxu1 %v15506_v39  ;;  %v12977_v39 = vpack.c.bf16 %v785_v1, %v772_v0  ;;  %v12947_v2 = vpack.c.bf16 %v161_v54, %v148_v32  ;;  %v642_v32 = vld [vmem:[%s22907_s3 + $0x1240] sm:$0xff]  ;;  %v252_v19 = vld [vmem:[%s22907_s3 + $0x610] sm:$0xff] }
 0x24c   :  { %12940 = vmatpush3.bf16.msra.mxu0 %v12939_v35  ;;  %v629_v35 = vld [vmem:[%s22907_s3 + $0x11d8] sm:$0xff]  ;;  %v1341_v0 = vrot.slane %v14914_v38, %v1340_v29  ;;  %v1110_v29 = vld [vmem:[%s22907_s3 + $0x20e0] sm:$0xff] }
 0x24d   :  { %12972 = vmatpush3.bf16.msra.mxu1 %v12971_v36  ;;  %12942 = vmatprep.subr.bf16.mxu0 %v12941_v37  ;;  %v434_v36 = vld [vmem:[%s22907_s3 + $0xbc0] sm:$0xff]  ;;  %v447_v37 = vld [vmem:[%s22907_s3 + $0xc28] sm:$0xff]  ;;  %v12987_v1 = vpack.c.bf16 %v629_v35, %v616_v11 }
 0x24e   :  { %12974 = vmatprep.subr.bf16.mxu1 %v12973_v44  ;;  %v863_v44 = vld [vmem:[%s22907_s3 + $0x1928] sm:$0xff] }
 0x24f   :  { %v12989_v55 = vpack.c.bf16 %v863_v44, %v850_v43  ;;  %v915_v43 = vld [vmem:[%s22907_s3 + $0x1ac8] sm:$0xff]  ;;  %v3063_v44 = vld [vmem:[%s22909_s5] sm:$0xff] }
 0x250   :  { %12944 = vmatpush3.bf16.msra.mxu0 %v12943_v47  ;;  %v12957_v47 = vpack.c.bf16 %v447_v37, %v434_v36  ;;  %v12963_v36 = vpack.c.bf16 %v265_v21, %v252_v19  ;;  %v967_v19 = vld [vmem:[%s22907_s3 + $0x1c68] sm:$0xff]  ;;  %v3079_v21 = vld [vmem:[%s22909_s5 + $0x80] sm:$0xff] }
 0x251   :  { %12976 = vmatpush3.bf16.msra.mxu1 %v12975_v48  ;;  %12946 = vmatprep.subr.bf16.mxu0 %v12945_v49  ;;  %v226_v48 = vld [vmem:[%s22907_s3 + $0x540] sm:$0xff]  ;;  %v239_v49 = vld [vmem:[%s22907_s3 + $0x5a8] sm:$0xff] }
 0x252   :  { %12978 = vmatprep.subr.bf16.mxu1 %v12977_v39  ;;  %v655_v39 = vld [vmem:[%s22907_s3 + $0x12a8] sm:$0xff]  ;;  %v12959_v10 = vpack.c.bf16 %v239_v49, %v226_v48 }
 0x253   :  { %v12991_v12 = vpack.c.bf16 %v655_v39, %v642_v32  ;;  %v941_v39 = vld [vmem:[%s22907_s3 + $0x1b98] sm:$0xff] }
 0x254   :  { %12948 = vmatpush3.bf16.msra.mxu0 %v12947_v2  ;;  %v876_v2 = vld [vmem:[%s22907_s3 + $0x1990] sm:$0xff] }
 0x255   :  { %12980 = vmatpush3.bf16.msra.mxu1 %v12979_v4  ;;  %12950 = vmatprep.subr.bf16.mxu0 %v12949_v5  ;;  %v889_v4 = vld [vmem:[%s22907_s3 + $0x19f8] sm:$0xff] }
 0x256   :  { %12982 = vmatprep.subr.bf16.mxu1 %v12981_v51  ;;  %v12993_v27 = vpack.c.bf16 %v889_v4, %v876_v2  ;;  %v1175_v2 = vld [vmem:[%s22907_s3 + $0x22e8] sm:$0xff] }
 0x257   :  { %v3080_v4 = vld [vmem:[%s22909_s5 + $0x88] sm:$0xff] }
 0x258   :  { %12952 = vmatpush3.bf16.msra.mxu0 %v12951_v23  ;;  %v668_v23 = vld [vmem:[%s22907_s3 + $0x1310] sm:$0xff] }
 0x259   :  { %12984 = vmatpush3.bf16.msra.mxu1 %v12983_v28  ;;  %12954 = vmatprep.subr.bf16.mxu0 %v12953_v30  ;;  %v681_v28 = vld [vmem:[%s22907_s3 + $0x1378] sm:$0xff]  ;;  %v1123_v30 = vld [vmem:[%s22907_s3 + $0x2148] sm:$0xff] }
 0x25a   :  { %v2042_v54 = vpop.f32.mrb[2].mxu0  ;;  %12986 = vmatprep.subr.bf16.mxu1 %v12985_v34  ;;  %v12995_v37 = vpack.c.bf16 %v681_v28, %v668_v23  ;;  %v12997_v38 = vpack.c.bf16 %v1123_v30, %v1110_v29  ;;  %v3083_v23 = vld [vmem:[%s22909_s5 + $0xa0] sm:$0xff]  ;;  %v1201_v28 = vld [vmem:[%s22907_s3 + $0x23b8] sm:$0xff]  ;;  %v3088_v29 = vld [vmem:[%s22909_s5 + $0xc8] sm:$0xff] }
 0x25b   :  { %v18827_v59 = vadd.f32 %v2042_v54, %v1329_v42  ;;  %v2255_v62 = vpop.f32.mrb[2].mxu1  ;;  %v2044_v63 = vpop.f32.mrb[3].mxu0  ;;  %v902_v42 = vld [vmem:[%s22907_s3 + $0x1a60] sm:$0xff]  ;;  %v3092_v30 = vld [vmem:[%s22909_s5 + $0xe8] sm:$0xff] }
 0x25c   :  { %v18835_v5 = vadd.f32 %v2255_v62, %v1337_v45  ;;  %v18837_v6 = vadd.f32 %v2044_v63, %v1333_v53  ;;  %v2257_v7 = vpop.f32.mrb[3].mxu1  ;;  %12956 = vmatpush3.bf16.msra.mxu0 %v12955_v52  ;;  %v13029_v45 = vpack.c.bf16 %v3068_v33, %v3064_v31  ;;  %v3067_v53 = vld [vmem:[%s22909_s5 + $0x20] sm:$0xff]  ;;  %v1136_v52 = vld [vmem:[%s22907_s3 + $0x21b0] sm:$0xff]  ;;  %v12999_v49 = vpack.c.bf16 %v915_v43, %v902_v42 }
 0x25d   :  { %v2900_v51 = vmax.f32 %v18827_v59, 0.0  ;;  %v18840_v8 = vadd.f32 %v2257_v7, %v1341_v0  ;;  %12988 = vmatpush3.bf16.msra.mxu1 %v12987_v1  ;;  %12958 = vmatprep.subr.bf16.mxu0 %v12957_v47  ;;  %v1149_v0 = vld [vmem:[%s22907_s3 + $0x2218] sm:$0xff]  ;;  %v3072_v1 = vld [vmem:[%s22909_s5 + $0x48] sm:$0xff]  ;;  %v13031_v32 = vpack.c.bf16 %v3067_v53, %v3063_v44  ;;  %v3075_v62 = vld [vmem:[%s22909_s5 + $0x60] sm:$0xff]  ;;  %v13039_v33 = vpack.c.bf16 %v3083_v23, %v3079_v21 }
 0x25e   :  { %v2901_v24 = vmax.f32 %v18837_v6, 0.0  ;;  %12990 = vmatprep.subr.bf16.mxu1 %v12989_v55  ;;  %v2902_v11 = vmax.f32 %v18835_v5, 0.0  ;;  %v3076_v47 = vld [vmem:[%s22909_s5 + $0x68] sm:$0xff]  ;;  %v13001_v54 = vpack.c.bf16 %v1149_v0, %v1136_v52  ;;  %v928_v55 = vld [vmem:[%s22907_s3 + $0x1b30] sm:$0xff]  ;;  %v1162_v63 = vld [vmem:[%s22907_s3 + $0x2280] sm:$0xff] }
 0x25f   :  { %v2903_v35 = vmax.f32 %v18840_v8, 0.0  ;;  %v13033_v58 = vpack.c.bf16 %v3076_v47, %v3072_v1  ;;  %v3084_v7 = vld [vmem:[%s22909_s5 + $0xa8] sm:$0xff]  ;;  %v3091_v42 = vld [vmem:[%s22909_s5 + $0xe0] sm:$0xff]  ;;  %v3258_v6 = vld [vmem:[%s22909_s5 + $0x618] sm:$0xff] }
 0x260   :  { %v14724_v34 = vpack.i.bf16 %v2901_v24, %v2900_v51  ;;  %12960 = vmatpush3.bf16.msra.mxu0 %v12959_v10  ;;  %v13003_v10 = vpack.c.bf16 %v941_v39, %v928_v55  ;;  %v1214_v43 = vld [vmem:[%s22907_s3 + $0x2420] sm:$0xff]  ;;  %v1227_v44 = vld [vmem:[%s22907_s3 + $0x2488] sm:$0xff]  ;;  %v1240_v55 = vld [vmem:[%s22907_s3 + $0x24f0] sm:$0xff] }
 0x261   :  { %12992 = vmatpush3.bf16.msra.mxu1 %v12991_v12  ;;  %12962 = vmatprep.subr.bf16.mxu0 %v12961_v16  ;;  %v14734_v48 = vpack.i.bf16 %v2903_v35, %v2902_v11  ;;  %v13035_v12 = vpack.c.bf16 %v3075_v62, %v3071_v57  ;;  %v13005_v16 = vpack.c.bf16 %v1175_v2, %v1162_v63  ;;  %v3100_v53 = vld [vmem:[%s22909_s5 + $0x128] sm:$0xff]  ;;  %v1006_v47 = vld [vmem:[%s22907_s3 + $0x1da0] sm:$0xff]  ;;  %v1253_v39 = vld [vmem:[%s22907_s3 + $0x2558] sm:$0xff] }
 0x262   :  { %14725 = vrot.lane.b32.xlu0 %v14724_v34, %s14940_s18  ;;  %12994 = vmatprep.subr.bf16.mxu1 %v12993_v27  ;;  %v1188_v27 = vld [vmem:[%s22907_s3 + $0x2350] sm:$0xff]  ;;  %v13013_v1 = vpack.c.bf16 %v1227_v44, %v1214_v43  ;;  %v3104_v57 = vld [vmem:[%s22909_s5 + $0x148] sm:$0xff]  ;;  %v13017_v2 = vpack.c.bf16 %v1253_v39, %v1240_v55 }
 0x263   :  { %v13009_v34 = vpack.c.bf16 %v1201_v28, %v1188_v27  ;;  %v3112_v21 = vld [vmem:[%s22909_s5 + $0x188] sm:$0xff] }
 0x264   :  { %12964 = vmatpush3.bf16.msra.mxu0 %v12963_v36  ;;  %v980_v36 = vld [vmem:[%s22907_s3 + $0x1cd0] sm:$0xff] }
 0x265   :  { %12996 = vmatpush3.bf16.msra.mxu1 %v12995_v37  ;;  %12998 = vmatprep.subr.bf16.mxu0 %v12997_v38  ;;  %v3087_v37 = vld [vmem:[%s22909_s5 + $0xc0] sm:$0xff]  ;;  %v13041_v38 = vpack.c.bf16 %v3092_v30, %v3088_v29  ;;  %v1071_v30 = vld [vmem:[%s22907_s3 + $0x1fa8] sm:$0xff] }
 0x266   :  { %14735 = vrot.lane.b32.xlu0 %v14734_v48, %s14940_s18  ;;  %13030 = vmatprep.subr.bf16.mxu1 %v13029_v45  ;;  %v3096_v45 = vld [vmem:[%s22909_s5 + $0x108] sm:$0xff]  ;;  %v13043_v0 = vpack.c.bf16 %v3091_v42, %v3087_v37  ;;  %v1058_v29 = vld [vmem:[%s22907_s3 + $0x1f40] sm:$0xff] }
 0x267   :  { %2751 = vmatmul.mubr.f32.vlgmr.msra.gmra.mrb[6].mxu0 %v15353_v25  ;;  %v954_v25 = vld [vmem:[%s22907_s3 + $0x1c00] sm:$0xff]  ;;  %v1019_v48 = vld [vmem:[%s22907_s3 + $0x1e08] sm:$0xff]  ;;  %v13023_v42 = vpack.c.bf16 %v1071_v30, %v1058_v29  ;;  %v3082_v29 = vld [vmem:[%s22909_s5 + $0x98] sm:$0xff] }
 0x268   :  { %2821 = vmatmul.mubr.f32.vlgmr.msra.gmra.mrb[6].mxu1 %v15478_v26  ;;  %13000 = vmatpush3.bf16.msra.mxu0 %v12999_v49  ;;  %v13037_v26 = vpack.c.bf16 %v3084_v7, %v3080_v4  ;;  %v13007_v31 = vpack.c.bf16 %v967_v19, %v954_v25  ;;  %v3095_v49 = vld [vmem:[%s22909_s5 + $0x100] sm:$0xff]  ;;  %v13015_v62 = vpack.c.bf16 %v1019_v48, %v1006_v47  ;;  %v1032_v4 = vld [vmem:[%s22907_s3 + $0x1e70] sm:$0xff]  ;;  %v1045_v7 = vld [vmem:[%s22907_s3 + $0x1ed8] sm:$0xff] }
 0x269   :  { %13032 = vmatpush1.bf16.msra.mxu1 %v13031_v32  ;;  %13002 = vmatprep.subr.bf16.mxu0 %v13001_v54  ;;  %v13045_v32 = vpack.c.bf16 %v3100_v53, %v3096_v45  ;;  %v3099_v54 = vld [vmem:[%s22909_s5 + $0x120] sm:$0xff]  ;;  %v1279_v19 = vld [vmem:[%s22907_s3 + $0x2628] sm:$0xff]  ;;  %v13019_v23 = vpack.c.bf16 %v1045_v7, %v1032_v4  ;;  %v1084_v45 = vld [vmem:[%s22907_s3 + $0x2010] sm:$0xff] }
 0x26a   :  { %13034 = vmatprep.subr.bf16.mxu1 %v13033_v58  ;;  %2890 = vmatprep.mubr.f32.mxu0 %v15903_v60  ;;  %v993_v60 = vld [vmem:[%s22907_s3 + $0x1d38] sm:$0xff]  ;;  %v3108_v58 = vld [vmem:[%s22909_s5 + $0x168] sm:$0xff]  ;;  %v13047_v63 = vpack.c.bf16 %v3099_v54, %v3095_v49  ;;  %v1266_v25 = vld [vmem:[%s22907_s3 + $0x25c0] sm:$0xff] }
 0x26b   :  { %v13011_v52 = vpack.c.bf16 %v993_v60, %v980_v36  ;;  %v13021_v28 = vpack.c.bf16 %v1279_v19, %v1266_v25  ;;  %v1292_v36 = vld [vmem:[%s22907_s3 + $0x2690] sm:$0xff]  ;;  %v1305_v60 = vld [vmem:[%s22907_s3 + $0x26f8] sm:$0xff]  ;;  %v3120_v37 = vld [vmem:[%s22909_s5 + $0x1c8] sm:$0xff] }
 0x26c   :  { %13004 = vmatpush3.bf16.msra.mxu0 %v13003_v10  ;;  %v3103_v10 = vld [vmem:[%s22909_s5 + $0x140] sm:$0xff]  ;;  %v13025_v44 = vpack.c.bf16 %v1305_v60, %v1292_v36  ;;  %v1097_v53 = vld [vmem:[%s22907_s3 + $0x2078] sm:$0xff]  ;;  %v3128_v49 = vld [vmem:[%s22909_s5 + $0x208] sm:$0xff] }
 0x26d   :  { %13036 = vmatpush1.bf16.msra.mxu1 %v13035_v12  ;;  %13006 = vmatprep.subr.bf16.mxu0 %v13005_v16  ;;  %v13049_v12 = vpack.c.bf16 %v3108_v58, %v3104_v57  ;;  %v3107_v16 = vld [vmem:[%s22909_s5 + $0x160] sm:$0xff]  ;;  %v3066_v47 = vld [vmem:[%s22909_s5 + $0x18] sm:$0xff]  ;;  %v13027_v54 = vpack.c.bf16 %v1097_v53, %v1084_v45  ;;  %v3065_v58 = vld [vmem:[%s22909_s5 + $0x10] sm:$0xff] }
 0x26e   :  { %13038 = vmatprep.subr.bf16.mxu1 %v13037_v26  ;;  %v3116_v26 = vld [vmem:[%s22909_s5 + $0x1a8] sm:$0xff]  ;;  %v13051_v27 = vpack.c.bf16 %v3107_v16, %v3103_v10  ;;  %v3070_v48 = vld [vmem:[%s22909_s5 + $0x38] sm:$0xff]  ;;  %v3127_v57 = vld [vmem:[%s22909_s5 + $0x200] sm:$0xff] }
 0x26f   :  { %v13389_v39 = vpack.c.bf16 %v3070_v48, %v3066_v47  ;;  %v3074_v4 = vld [vmem:[%s22909_s5 + $0x58] sm:$0xff]  ;;  %v3136_v10 = vld [vmem:[%s22909_s5 + $0x248] sm:$0xff]  ;;  %v3151_v48 = vld [vmem:[%s22909_s5 + $0x2c0] sm:$0xff] }
 0x270   :  { %13008 = vmatpush3.bf16.msra.mxu0 %v13007_v31  ;;  %v3111_v31 = vld [vmem:[%s22909_s5 + $0x180] sm:$0xff]  ;;  %v3078_v7 = vld [vmem:[%s22909_s5 + $0x78] sm:$0xff]  ;;  %v3152_v53 = vld [vmem:[%s22909_s5 + $0x2c8] sm:$0xff] }
 0x271   :  { %13040 = vmatpush1.bf16.msra.mxu1 %v13039_v33  ;;  %13010 = vmatprep.subr.bf16.mxu0 %v13009_v34  ;;  %v13053_v33 = vpack.c.bf16 %v3116_v26, %v3112_v21  ;;  %v3115_v34 = vld [vmem:[%s22909_s5 + $0x1a0] sm:$0xff]  ;;  %v13393_v19 = vpack.c.bf16 %v3078_v7, %v3074_v4  ;;  %v3073_v26 = vld [vmem:[%s22909_s5 + $0x50] sm:$0xff]  ;;  %v3086_v30 = vld [vmem:[%s22909_s5 + $0xb8] sm:$0xff] }
 0x272   :  { %13042 = vmatprep.subr.bf16.mxu1 %v13041_v38  ;;  %v3124_v38 = vld [vmem:[%s22909_s5 + $0x1e8] sm:$0xff]  ;;  %v13055_v43 = vpack.c.bf16 %v3115_v34, %v3111_v31  ;;  %v3135_v21 = vld [vmem:[%s22909_s5 + $0x240] sm:$0xff]  ;;  %v13397_v60 = vpack.c.bf16 %v3086_v30, %v3082_v29  ;;  %v3094_v45 = vld [vmem:[%s22909_s5 + $0xf8] sm:$0xff] }
 0x273   :  { %v3144_v31 = vld [vmem:[%s22909_s5 + $0x288] sm:$0xff]  ;;  %v3097_v7 = vld [vmem:[%s22909_s5 + $0x110] sm:$0xff]  ;;  %v3110_v29 = vld [vmem:[%s22909_s5 + $0x178] sm:$0xff] }
 0x274   :  { %13012 = vmatpush3.bf16.msra.mxu0 %v13011_v52  ;;  %v3119_v52 = vld [vmem:[%s22909_s5 + $0x1c0] sm:$0xff] }
 0x275   :  { %13044 = vmatpush1.bf16.msra.mxu1 %v13043_v0  ;;  %13014 = vmatprep.subr.bf16.mxu0 %v13013_v1  ;;  %v13057_v0 = vpack.c.bf16 %v3124_v38, %v3120_v37  ;;  %v3123_v1 = vld [vmem:[%s22909_s5 + $0x1e0] sm:$0xff]  ;;  %v3085_v38 = vld [vmem:[%s22909_s5 + $0xb0] sm:$0xff] }
 0x276   :  { %13046 = vmatprep.subr.bf16.mxu1 %v13045_v32  ;;  %v3132_v32 = vld [vmem:[%s22909_s5 + $0x228] sm:$0xff]  ;;  %v13059_v55 = vpack.c.bf16 %v3123_v1, %v3119_v52  ;;  %v3143_v37 = vld [vmem:[%s22909_s5 + $0x280] sm:$0xff] }
 0x277   :  { %v3156_v52 = vld [vmem:[%s22909_s5 + $0x2e8] sm:$0xff] }
 0x278   :  { %13016 = vmatpush3.bf16.msra.mxu0 %v13015_v62  ;;  %v3069_v62 = vld [vmem:[%s22909_s5 + $0x30] sm:$0xff] }
 0x279   :  { %13048 = vmatpush1.bf16.msra.mxu1 %v13047_v63  ;;  %13018 = vmatprep.subr.bf16.mxu0 %v13017_v2  ;;  %v13061_v63 = vpack.c.bf16 %v3132_v32, %v3128_v49  ;;  %v3131_v2 = vld [vmem:[%s22909_s5 + $0x220] sm:$0xff]  ;;  %v13391_v16 = vpack.c.bf16 %v3069_v62, %v3065_v58  ;;  %v3089_v49 = vld [vmem:[%s22909_s5 + $0xd0] sm:$0xff]  ;;  %v3160_v58 = vld [vmem:[%s22909_s5 + $0x308] sm:$0xff] }
 0x27a   :  { %13050 = vmatprep.subr.bf16.mxu1 %v13049_v12  ;;  %v3140_v12 = vld [vmem:[%s22909_s5 + $0x268] sm:$0xff]  ;;  %v13063_v25 = vpack.c.bf16 %v3131_v2, %v3127_v57  ;;  %v3093_v32 = vld [vmem:[%s22909_s5 + $0xf0] sm:$0xff]  ;;  %v3102_v57 = vld [vmem:[%s22909_s5 + $0x138] sm:$0xff] }
 0x27b   :  { %v3164_v62 = vld [vmem:[%s22909_s5 + $0x328] sm:$0xff] }
 0x27c   :  { %13020 = vmatpush3.bf16.msra.mxu0 %v13019_v23  ;;  %v3077_v23 = vld [vmem:[%s22909_s5 + $0x70] sm:$0xff] }
 0x27d   :  { %13052 = vmatpush1.bf16.msra.mxu1 %v13051_v27  ;;  %13022 = vmatprep.subr.bf16.mxu0 %v13021_v28  ;;  %v13065_v27 = vpack.c.bf16 %v3140_v12, %v3136_v10  ;;  %v3139_v28 = vld [vmem:[%s22909_s5 + $0x260] sm:$0xff]  ;;  %v13395_v34 = vpack.c.bf16 %v3077_v23, %v3073_v26  ;;  %v3101_v10 = vld [vmem:[%s22909_s5 + $0x130] sm:$0xff] }
 0x27e   :  { %13054 = vmatprep.subr.bf16.mxu1 %v13053_v33  ;;  %v3148_v33 = vld [vmem:[%s22909_s5 + $0x2a8] sm:$0xff]  ;;  %v13067_v36 = vpack.c.bf16 %v3139_v28, %v3135_v21  ;;  %v3106_v28 = vld [vmem:[%s22909_s5 + $0x158] sm:$0xff]  ;;  %v13407_v30 = vpack.c.bf16 %v3101_v10, %v3097_v7  ;;  %v3125_v7 = vld [vmem:[%s22909_s5 + $0x1f0] sm:$0xff] }
 0x27f   :  { %v3168_v21 = vld [vmem:[%s22909_s5 + $0x348] sm:$0xff] }
 0x280   :  { %13024 = vmatpush3.bf16.msra.mxu0 %v13023_v42  ;;  %v13069_v42 = vpack.c.bf16 %v3148_v33, %v3144_v31 }
 0x281   :  { %13056 = vmatpush1.bf16.msra.mxu1 %v13055_v43  ;;  %13026 = vmatprep.subr.bf16.mxu0 %v13025_v44  ;;  %v3147_v43 = vld [vmem:[%s22909_s5 + $0x2a0] sm:$0xff]  ;;  %v3090_v44 = vld [vmem:[%s22909_s5 + $0xd8] sm:$0xff] }
 0x282   :  { %13058 = vmatprep.subr.bf16.mxu1 %v13057_v0  ;;  %v13071_v1 = vpack.c.bf16 %v3147_v43, %v3143_v37  ;;  %v13401_v47 = vpack.c.bf16 %v3094_v45, %v3090_v44  ;;  %v3114_v43 = vld [vmem:[%s22909_s5 + $0x198] sm:$0xff]  ;;  %v3176_v45 = vld [vmem:[%s22909_s5 + $0x388] sm:$0xff] }
 0x283   :  { %v3118_v44 = vld [vmem:[%s22909_s5 + $0x1b8] sm:$0xff] }
 0x284   :  { %13028 = vmatpush3.bf16.msra.mxu0 %v13027_v54  ;;  %v13073_v54 = vpack.c.bf16 %v3156_v52, %v3152_v53 }
 0x285   :  { %13060 = vmatpush1.bf16.msra.mxu1 %v13059_v55  ;;  %13390 = vmatprep.subr.bf16.mxu0 %v13389_v39  ;;  %v3155_v55 = vld [vmem:[%s22909_s5 + $0x2e0] sm:$0xff]  ;;  %v3098_v39 = vld [vmem:[%s22909_s5 + $0x118] sm:$0xff] }
 0x286   :  { %13062 = vmatprep.subr.bf16.mxu1 %v13061_v63  ;;  %v13403_v63 = vpack.c.bf16 %v3093_v32, %v3089_v49  ;;  %v13075_v2 = vpack.c.bf16 %v3155_v55, %v3151_v48  ;;  %v13405_v4 = vpack.c.bf16 %v3102_v57, %v3098_v39  ;;  %v3117_v48 = vld [vmem:[%s22909_s5 + $0x1b0] sm:$0xff]  ;;  %v3179_v32 = vld [vmem:[%s22909_s5 + $0x3a0] sm:$0xff]  ;;  %v3126_v55 = vld [vmem:[%s22909_s5 + $0x1f8] sm:$0xff] }
 0x287   :  { %2891 = vmatmul.mubr.f32.vlgmr.msra.gmra.mrb[8].mxu0 %v18692_v50  ;;  %v3081_v50 = vld [vmem:[%s22909_s5 + $0x90] sm:$0xff]  ;;  %v3184_v39 = vld [vmem:[%s22909_s5 + $0x3c8] sm:$0xff] }
 0x288   :  { %13392 = vmatpush1.bf16.msra.mxu0 %v13391_v16  ;;  %v13399_v0 = vpack.c.bf16 %v3085_v38, %v3081_v50  ;;  %v13077_v16 = vpack.c.bf16 %v3164_v62, %v3160_v58  ;;  %v13409_v38 = vpack.c.bf16 %v3110_v29, %v3106_v28  ;;  %v3188_v57 = vld [vmem:[%s22909_s5 + $0x3e8] sm:$0xff] }
 0x289   :  { %13064 = vmatpush1.bf16.msra.mxu1 %v13063_v25  ;;  %13394 = vmatprep.subr.bf16.mxu0 %v13393_v19  ;;  %v3159_v25 = vld [vmem:[%s22909_s5 + $0x300] sm:$0xff]  ;;  %v13089_v10 = vpack.c.bf16 %v3188_v57, %v3184_v39  ;;  %v3145_v57 = vld [vmem:[%s22909_s5 + $0x290] sm:$0xff] }
 0x28a   :  { %13066 = vmatprep.subr.bf16.mxu1 %v13065_v27  ;;  %v3163_v19 = vld [vmem:[%s22909_s5 + $0x320] sm:$0xff]  ;;  %v3172_v27 = vld [vmem:[%s22909_s5 + $0x368] sm:$0xff] }
 0x28b   :  { %v13079_v31 = vpack.c.bf16 %v3163_v19, %v3159_v25  ;;  %v13081_v50 = vpack.c.bf16 %v3172_v27, %v3168_v21  ;;  %v3130_v25 = vld [vmem:[%s22909_s5 + $0x218] sm:$0xff]  ;;  %v3192_v21 = vld [vmem:[%s22909_s5 + $0x408] sm:$0xff] }
 0x28c   :  { %13396 = vmatpush1.bf16.msra.mxu0 %v13395_v34  ;;  %v3167_v34 = vld [vmem:[%s22909_s5 + $0x340] sm:$0xff]  ;;  %v3134_v19 = vld [vmem:[%s22909_s5 + $0x238] sm:$0xff]  ;;  %v3196_v27 = vld [vmem:[%s22909_s5 + $0x428] sm:$0xff] }
 0x28d   :  { %13068 = vmatpush1.bf16.msra.mxu1 %v13067_v36  ;;  %13398 = vmatprep.subr.bf16.mxu0 %v13397_v60  ;;  %v3105_v36 = vld [vmem:[%s22909_s5 + $0x150] sm:$0xff] }
 0x28e   :  { %13070 = vmatprep.subr.bf16.mxu1 %v13069_v42  ;;  %v3109_v60 = vld [vmem:[%s22909_s5 + $0x170] sm:$0xff]  ;;  %v3171_v42 = vld [vmem:[%s22909_s5 + $0x360] sm:$0xff] }
 0x28f   :  { %v13411_v53 = vpack.c.bf16 %v3109_v60, %v3105_v36  ;;  %v13083_v52 = vpack.c.bf16 %v3171_v42, %v3167_v34  ;;  %v3133_v34 = vld [vmem:[%s22909_s5 + $0x230] sm:$0xff]  ;;  %v3138_v36 = vld [vmem:[%s22909_s5 + $0x258] sm:$0xff] }
 0x290   :  { %13400 = vmatpush1.bf16.msra.mxu0 %v13399_v0  ;;  %v13413_v0 = vpack.c.bf16 %v3118_v44, %v3114_v43  ;;  %v3142_v60 = vld [vmem:[%s22909_s5 + $0x278] sm:$0xff]  ;;  %v3200_v43 = vld [vmem:[%s22909_s5 + $0x448] sm:$0xff] }
 0x291   :  { %13072 = vmatpush1.bf16.msra.mxu1 %v13071_v1  ;;  %13402 = vmatprep.subr.bf16.mxu0 %v13401_v47  ;;  %v3175_v1 = vld [vmem:[%s22909_s5 + $0x380] sm:$0xff]  ;;  %v3113_v47 = vld [vmem:[%s22909_s5 + $0x190] sm:$0xff]  ;;  %v3204_v44 = vld [vmem:[%s22909_s5 + $0x468] sm:$0xff] }
 0x292   :  { %v19177_v12 = vpop.permute.xlu1 %14720  ;;  %13074 = vmatprep.subr.bf16.mxu1 %v13073_v54  ;;  %v3122_v54 = vld [vmem:[%s22909_s5 + $0x1d8] sm:$0xff]  ;;  %v13415_v58 = vpack.c.bf16 %v3117_v48, %v3113_v47  ;;  %v13087_v62 = vpack.c.bf16 %v3179_v32, %v3175_v1  ;;  %v13097_v48 = vpack.c.bf16 %v3204_v44, %v3200_v43  ;;  %v3203_v32 = vld [vmem:[%s22909_s5 + $0x460] sm:$0xff]  ;;  %v3165_v43 = vld [vmem:[%s22909_s5 + $0x330] sm:$0xff] }
 0x293   :  { %v14723_v26 = vunpack.i.h.bf16 %v19177_v12  ;;  %v14722_v23 = vunpack.i.l.bf16 %v19177_v12  ;;  %v3150_v47 = vld [vmem:[%s22909_s5 + $0x2b8] sm:$0xff]  ;;  %v3331_v12 = vld [vmem:[%s22909_s5 + $0x860] sm:$0xff] }
 0x294   :  { %13404 = vmatpush1.bf16.msra.mxu0 %v13403_v63  ;;  %v13417_v63 = vpack.c.bf16 %v3126_v55, %v3122_v54  ;;  %v3208_v54 = vld [vmem:[%s22909_s5 + $0x488] sm:$0xff]  ;;  %v3170_v44 = vld [vmem:[%s22909_s5 + $0x358] sm:$0xff] }
 0x295   :  { %13076 = vmatpush1.bf16.msra.mxu1 %v13075_v2  ;;  %13406 = vmatprep.subr.bf16.mxu0 %v13405_v4  ;;  %v3028_v33 = vsel %vm3026_vm1, %v14722_v23, %v14723_v26  ;;  %v3183_v2 = vld [vmem:[%s22909_s5 + $0x3c0] sm:$0xff]  ;;  %v3121_v4 = vld [vmem:[%s22909_s5 + $0x1d0] sm:$0xff] }
 0x296   :  { %13078 = vmatprep.subr.bf16.mxu1 %v13077_v16  ;;  %v3052_v37 = vmax.f32 %v18415_v40, %v3028_v33  ;;  %v3180_v40 = vld [vmem:[%s22909_s5 + $0x3a8] sm:$0xff]  ;;  %v3187_v16 = vld [vmem:[%s22909_s5 + $0x3e0] sm:$0xff]  ;;  %v3001_v28 = vpop.permute.xlu1 %3000  ;;  %v13419_v29 = vpack.c.bf16 %v3125_v7, %v3121_v4  ;;  %v3129_v33 = vld [vmem:[%s22909_s5 + $0x210] sm:$0xff] }
 0x297   :  { %v13085_v49 = vpack.c.bf16 %v3180_v40, %v3176_v45  ;;  %v3027_v42 = vsel %vm3026_vm1, %v3001_v28, %v14722_v23  ;;  %v13423_v45 = vpack.c.bf16 %v3133_v34, %v3129_v33  ;;  %v13425_v40 = vpack.c.bf16 %v3142_v60, %v3138_v36  ;;  %v3141_v23 = vld [vmem:[%s22909_s5 + $0x270] sm:$0xff]  ;;  %v3207_v7 = vld [vmem:[%s22909_s5 + $0x480] sm:$0xff]  ;;  %v3224_v60 = vld [vmem:[%s22909_s5 + $0x508] sm:$0xff] }
 0x298   :  { %3877 = vmatprep.mubr.f32.mxu1 %v3052_v37  ;;  %13408 = vmatpush1.bf16.msra.mxu0 %v13407_v30  ;;  %v13091_v30 = vpack.c.bf16 %v3187_v16, %v3183_v2  ;;  %v19314_v1 = vmax.f32 %v18460_v3, %v3027_v42  ;;  %v3212_v3 = vld [vmem:[%s22909_s5 + $0x4a8] sm:$0xff]  ;;  %v3158_v2 = vld [vmem:[%s22909_s5 + $0x2f8] sm:$0xff]  ;;  %v3157_v28 = vld [vmem:[%s22909_s5 + $0x2f0] sm:$0xff] }
 0x299   :  { %13080 = vmatpush1.bf16.msra.mxu1 %v13079_v31  ;;  %4303 = vmatprep.mubr.f32.mxu0 %v3052_v37  ;;  %v13421_v31 = vpack.c.bf16 %v3134_v19, %v3130_v25  ;;  %v13093_v37 = vpack.c.bf16 %v3196_v27, %v3192_v21  ;;  %v13101_v4 = vpack.c.bf16 %v3212_v3, %v3208_v54  ;;  %v3216_v16 = vld [vmem:[%s22909_s5 + $0x4c8] sm:$0xff]  ;;  %v3153_v27 = vld [vmem:[%s22909_s5 + $0x2d0] sm:$0xff]  ;;  %v3215_v34 = vld [vmem:[%s22909_s5 + $0x4c0] sm:$0xff] }
 0x29a   :  { %13082 = vmatprep.subr.bf16.mxu1 %v13081_v50  ;;  %13410 = vmatprep.subr.bf16.mxu0 %v13409_v38  ;;  %v3191_v50 = vld [vmem:[%s22909_s5 + $0x400] sm:$0xff]  ;;  %v3220_v25 = vld [vmem:[%s22909_s5 + $0x4e8] sm:$0xff]  ;;  %v3161_v42 = vld [vmem:[%s22909_s5 + $0x310] sm:$0xff] }
 0x29b   :  { %v3195_v38 = vld [vmem:[%s22909_s5 + $0x420] sm:$0xff]  ;;  %v13105_v33 = vpack.c.bf16 %v3220_v25, %v3216_v16  ;;  %v3173_v54 = vld [vmem:[%s22909_s5 + $0x370] sm:$0xff]  ;;  %v3178_v3 = vld [vmem:[%s22909_s5 + $0x398] sm:$0xff] }
 0x29c   :  { %13412 = vmatpush1.bf16.msra.mxu0 %v13411_v53  ;;  %v3137_v53 = vld [vmem:[%s22909_s5 + $0x250] sm:$0xff]  ;;  %v3219_v36 = vld [vmem:[%s22909_s5 + $0x4e0] sm:$0xff]  ;;  %v3186_v25 = vld [vmem:[%s22909_s5 + $0x3d8] sm:$0xff] }
 0x29d   :  { %13084 = vmatpush1.bf16.msra.mxu1 %v13083_v52  ;;  %13414 = vmatprep.subr.bf16.mxu0 %v13413_v0  ;;  %v3146_v52 = vld [vmem:[%s22909_s5 + $0x298] sm:$0xff]  ;;  %v13095_v0 = vpack.c.bf16 %v3195_v38, %v3191_v50  ;;  %v13427_v55 = vpack.c.bf16 %v3141_v23, %v3137_v53  ;;  %v13435_v50 = vpack.c.bf16 %v3157_v28, %v3153_v27  ;;  %v3223_v23 = vld [vmem:[%s22909_s5 + $0x500] sm:$0xff]  ;;  %v3181_v16 = vld [vmem:[%s22909_s5 + $0x3b0] sm:$0xff] }
 0x29e   :  { %13086 = vmatprep.subr.bf16.mxu1 %v13085_v49  ;;  %v3199_v49 = vld [vmem:[%s22909_s5 + $0x440] sm:$0xff]  ;;  %v13429_v39 = vpack.c.bf16 %v3150_v47, %v3146_v52  ;;  %v3236_v47 = vld [vmem:[%s22909_s5 + $0x568] sm:$0xff] }
 0x29f   :  { %v3227_v52 = vld [vmem:[%s22909_s5 + $0x520] sm:$0xff] }
 0x2a0   :  { %13416 = vmatpush1.bf16.msra.mxu0 %v13415_v58  ;;  %v3149_v58 = vld [vmem:[%s22909_s5 + $0x2b0] sm:$0xff]  ;;  %v3239_v28 = vld [vmem:[%s22909_s5 + $0x580] sm:$0xff] }
 0x2a1   :  { %13088 = vmatpush1.bf16.msra.mxu1 %v13087_v62  ;;  %13418 = vmatprep.subr.bf16.mxu0 %v13417_v63  ;;  %v3154_v62 = vld [vmem:[%s22909_s5 + $0x2d8] sm:$0xff]  ;;  %v13099_v63 = vpack.c.bf16 %v3203_v32, %v3199_v49  ;;  %v13431_v19 = vpack.c.bf16 %v3149_v58, %v3145_v57  ;;  %v3169_v32 = vld [vmem:[%s22909_s5 + $0x350] sm:$0xff]  ;;  %v3231_v58 = vld [vmem:[%s22909_s5 + $0x540] sm:$0xff] }
 0x2a2   :  { %13090 = vmatprep.subr.bf16.mxu1 %v13089_v10  ;;  %v3211_v10 = vld [vmem:[%s22909_s5 + $0x4a0] sm:$0xff]  ;;  %v13433_v21 = vpack.c.bf16 %v3158_v2, %v3154_v62  ;;  %v3244_v2 = vld [vmem:[%s22909_s5 + $0x5a8] sm:$0xff] }
 0x2a3   :  { %v3235_v62 = vld [vmem:[%s22909_s5 + $0x560] sm:$0xff] }
 0x2a4   :  { %13420 = vmatpush1.bf16.msra.mxu0 %v13419_v29  ;;  %v3162_v29 = vld [vmem:[%s22909_s5 + $0x318] sm:$0xff] }
 0x2a5   :  { %13092 = vmatpush1.bf16.msra.mxu1 %v13091_v30  ;;  %13422 = vmatprep.subr.bf16.mxu0 %v13421_v31  ;;  %v13103_v30 = vpack.c.bf16 %v3211_v10, %v3207_v7  ;;  %v3166_v31 = vld [vmem:[%s22909_s5 + $0x338] sm:$0xff]  ;;  %v3177_v10 = vld [vmem:[%s22909_s5 + $0x390] sm:$0xff] }
 0x2a6   :  { %13094 = vmatprep.subr.bf16.mxu1 %v13093_v37  ;;  %v3228_v37 = vld [vmem:[%s22909_s5 + $0x528] sm:$0xff]  ;;  %v13437_v38 = vpack.c.bf16 %v3166_v31, %v3162_v29  ;;  %v3243_v29 = vld [vmem:[%s22909_s5 + $0x5a0] sm:$0xff] }
 0x2a7   :  { %v13109_v53 = vpack.c.bf16 %v3228_v37, %v3224_v60  ;;  %v3252_v31 = vld [vmem:[%s22909_s5 + $0x5e8] sm:$0xff]  ;;  %v3189_v60 = vld [vmem:[%s22909_s5 + $0x3f0] sm:$0xff]  ;;  %v3194_v37 = vld [vmem:[%s22909_s5 + $0x418] sm:$0xff] }
 0x2a8   :  { %3878 = vmatmul.mubr.f32.vlgmr.msra.gmra.mrb[8].mxu1 %v19314_v1  ;;  %13424 = vmatpush1.bf16.msra.mxu0 %v13423_v45  ;;  %v13107_v45 = vpack.c.bf16 %v3219_v36, %v3215_v34  ;;  %v3185_v36 = vld [vmem:[%s22909_s5 + $0x3d0] sm:$0xff] }
 0x2a9   :  { %13426 = vmatprep.subr.bf16.mxu0 %v13425_v40  ;;  %13096 = vmatpush1.bf16.msra.mxu1 %v13095_v0  ;;  %v3174_v40 = vld [vmem:[%s22909_s5 + $0x378] sm:$0xff]  ;;  %v3232_v0 = vld [vmem:[%s22909_s5 + $0x548] sm:$0xff] }
 0x2aa   :  { %13098 = vmatprep.subr.bf16.mxu1 %v13097_v48  ;;  %v13439_v48 = vpack.c.bf16 %v3165_v43, %v3161_v42  ;;  %v13441_v49 = vpack.c.bf16 %v3174_v40, %v3170_v44  ;;  %v13113_v57 = vpack.c.bf16 %v3236_v47, %v3232_v0  ;;  %v3247_v43 = vld [vmem:[%s22909_s5 + $0x5c0] sm:$0xff]  ;;  %v3260_v40 = vld [vmem:[%s22909_s5 + $0x628] sm:$0xff]  ;;  %v3197_v0 = vld [vmem:[%s22909_s5 + $0x430] sm:$0xff] }
 0x2ab   :  { %v3251_v44 = vld [vmem:[%s22909_s5 + $0x5e0] sm:$0xff]  ;;  %v3202_v47 = vld [vmem:[%s22909_s5 + $0x458] sm:$0xff] }
 0x2ac   :  { %13428 = vmatpush1.bf16.msra.mxu0 %v13427_v55  ;;  %v13111_v55 = vpack.c.bf16 %v3227_v52, %v3223_v23  ;;  %v3193_v52 = vld [vmem:[%s22909_s5 + $0x410] sm:$0xff] }
 0x2ad   :  { %13430 = vmatprep.subr.bf16.mxu0 %v13429_v39  ;;  %13100 = vmatpush1.bf16.msra.mxu1 %v13099_v63  ;;  %v3182_v39 = vld [vmem:[%s22909_s5 + $0x3b8] sm:$0xff]  ;;  %v3240_v63 = vld [vmem:[%s22909_s5 + $0x588] sm:$0xff] }
 0x2ae   :  { %13102 = vmatprep.subr.bf16.mxu1 %v13101_v4  ;;  %v13443_v4 = vpack.c.bf16 %v3173_v54, %v3169_v32  ;;  %v13445_v7 = vpack.c.bf16 %v3182_v39, %v3178_v3  ;;  %v13117_v27 = vpack.c.bf16 %v3244_v2, %v3240_v63  ;;  %v3255_v54 = vld [vmem:[%s22909_s5 + $0x600] sm:$0xff]  ;;  %v3268_v39 = vld [vmem:[%s22909_s5 + $0x668] sm:$0xff]  ;;  %v3205_v63 = vld [vmem:[%s22909_s5 + $0x470] sm:$0xff] }
 0x2af   :  { %v3259_v3 = vld [vmem:[%s22909_s5 + $0x620] sm:$0xff]  ;;  %v3210_v2 = vld [vmem:[%s22909_s5 + $0x498] sm:$0xff] }
 0x2b0   :  { %13432 = vmatpush1.bf16.msra.mxu0 %v13431_v19  ;;  %v13115_v19 = vpack.c.bf16 %v3235_v62, %v3231_v58  ;;  %v3201_v62 = vld [vmem:[%s22909_s5 + $0x450] sm:$0xff] }
 0x2b1   :  { %13434 = vmatprep.subr.bf16.mxu0 %v13433_v21  ;;  %13104 = vmatpush1.bf16.msra.mxu1 %v13103_v30  ;;  %v3190_v21 = vld [vmem:[%s22909_s5 + $0x3f8] sm:$0xff]  ;;  %v3248_v30 = vld [vmem:[%s22909_s5 + $0x5c8] sm:$0xff] }
 0x2b2   :  { %13106 = vmatprep.subr.bf16.mxu1 %v13105_v33  ;;  %v13447_v33 = vpack.c.bf16 %v3181_v16, %v3177_v10  ;;  %v13449_v34 = vpack.c.bf16 %v3190_v21, %v3186_v25  ;;  %v13121_v42 = vpack.c.bf16 %v3252_v31, %v3248_v30  ;;  %v3263_v16 = vld [vmem:[%s22909_s5 + $0x640] sm:$0xff]  ;;  %v3276_v21 = vld [vmem:[%s22909_s5 + $0x6a8] sm:$0xff]  ;;  %v3218_v30 = vld [vmem:[%s22909_s5 + $0x4d8] sm:$0xff] }
 0x2b3   :  { %v3267_v25 = vld [vmem:[%s22909_s5 + $0x660] sm:$0xff] }
 0x2b4   :  { %13436 = vmatpush1.bf16.msra.mxu0 %v13435_v50  ;;  %v13119_v50 = vpack.c.bf16 %v3243_v29, %v3239_v28  ;;  %v3209_v29 = vld [vmem:[%s22909_s5 + $0x490] sm:$0xff]  ;;  %v13131_v31 = vpack.c.bf16 %v3267_v25, %v3263_v16 }
 0x2b5   :  { %13438 = vmatprep.subr.bf16.mxu0 %v13437_v38  ;;  %13108 = vmatpush1.bf16.msra.mxu1 %v13107_v45  ;;  %v3198_v38 = vld [vmem:[%s22909_s5 + $0x438] sm:$0xff]  ;;  %v3256_v45 = vld [vmem:[%s22909_s5 + $0x608] sm:$0xff] }
 0x2b6   :  { %13110 = vmatprep.subr.bf16.mxu1 %v13109_v53  ;;  %v13451_v53 = vpack.c.bf16 %v3189_v60, %v3185_v36  ;;  %v13453_v23 = vpack.c.bf16 %v3198_v38, %v3194_v37  ;;  %v13125_v32 = vpack.c.bf16 %v3260_v40, %v3256_v45  ;;  %v3271_v36 = vld [vmem:[%s22909_s5 + $0x680] sm:$0xff]  ;;  %v3280_v37 = vld [vmem:[%s22909_s5 + $0x6c8] sm:$0xff]  ;;  %v3226_v45 = vld [vmem:[%s22909_s5 + $0x518] sm:$0xff] }
 0x2b7   :  { %v3275_v60 = vld [vmem:[%s22909_s5 + $0x6a0] sm:$0xff] }
 0x2b8   :  { %13440 = vmatpush1.bf16.msra.mxu0 %v13439_v48  ;;  %v13123_v48 = vpack.c.bf16 %v3251_v44, %v3247_v43  ;;  %v3217_v43 = vld [vmem:[%s22909_s5 + $0x4d0] sm:$0xff]  ;;  %v13135_v40 = vpack.c.bf16 %v3275_v60, %v3271_v36  ;;  %v3304_v60 = vld [vmem:[%s22909_s5 + $0x788] sm:$0xff] }
 0x2b9   :  { %13442 = vmatprep.subr.bf16.mxu0 %v13441_v49  ;;  %13112 = vmatpush1.bf16.msra.mxu1 %v13111_v55  ;;  %v3206_v49 = vld [vmem:[%s22909_s5 + $0x478] sm:$0xff]  ;;  %v3264_v55 = vld [vmem:[%s22909_s5 + $0x648] sm:$0xff]  ;;  %v3221_v44 = vld [vmem:[%s22909_s5 + $0x4f0] sm:$0xff] }
 0x2ba   :  { %13114 = vmatprep.subr.bf16.mxu1 %v13113_v57  ;;  %v13455_v57 = vpack.c.bf16 %v3197_v0, %v3193_v52  ;;  %v13457_v58 = vpack.c.bf16 %v3206_v49, %v3202_v47  ;;  %v13129_v10 = vpack.c.bf16 %v3268_v39, %v3264_v55  ;;  %v3279_v52 = vld [vmem:[%s22909_s5 + $0x6c0] sm:$0xff]  ;;  %v3288_v47 = vld [vmem:[%s22909_s5 + $0x708] sm:$0xff]  ;;  %v13467_v49 = vpack.c.bf16 %v3221_v44, %v3217_v43  ;;  %v3234_v55 = vld [vmem:[%s22909_s5 + $0x558] sm:$0xff] }
 0x2bb   :  { %v3283_v0 = vld [vmem:[%s22909_s5 + $0x6e0] sm:$0xff] }
 0x2bc   :  { %13444 = vmatpush1.bf16.msra.mxu0 %v13443_v4  ;;  %v13127_v4 = vpack.c.bf16 %v3259_v3, %v3255_v54  ;;  %v3225_v54 = vld [vmem:[%s22909_s5 + $0x510] sm:$0xff]  ;;  %v13139_v39 = vpack.c.bf16 %v3283_v0, %v3279_v52  ;;  %v3307_v52 = vld [vmem:[%s22909_s5 + $0x7a0] sm:$0xff] }
 0x2bd   :  { %13446 = vmatprep.subr.bf16.mxu0 %v13445_v7  ;;  %13116 = vmatpush1.bf16.msra.mxu1 %v13115_v19  ;;  %v3214_v7 = vld [vmem:[%s22909_s5 + $0x4b8] sm:$0xff]  ;;  %v3272_v19 = vld [vmem:[%s22909_s5 + $0x688] sm:$0xff]  ;;  %v3229_v3 = vld [vmem:[%s22909_s5 + $0x530] sm:$0xff] }
 0x2be   :  { %13118 = vmatprep.subr.bf16.mxu1 %v13117_v27  ;;  %v13459_v27 = vpack.c.bf16 %v3205_v63, %v3201_v62  ;;  %v13461_v28 = vpack.c.bf16 %v3214_v7, %v3210_v2  ;;  %v3287_v62 = vld [vmem:[%s22909_s5 + $0x700] sm:$0xff]  ;;  %v3296_v2 = vld [vmem:[%s22909_s5 + $0x748] sm:$0xff] }
 0x2bf   :  { %v3291_v63 = vld [vmem:[%s22909_s5 + $0x720] sm:$0xff] }
 0x2c0   :  { %13448 = vmatpush1.bf16.msra.mxu0 %v13447_v33  ;;  %v3222_v33 = vld [vmem:[%s22909_s5 + $0x4f8] sm:$0xff] }
 0x2c1   :  { %13450 = vmatprep.subr.bf16.mxu0 %v13449_v34  ;;  %13120 = vmatpush1.bf16.msra.mxu1 %v13119_v50  ;;  %v13133_v34 = vpack.c.bf16 %v3276_v21, %v3272_v19  ;;  %v3284_v50 = vld [vmem:[%s22909_s5 + $0x6e8] sm:$0xff]  ;;  %v3233_v21 = vld [vmem:[%s22909_s5 + $0x550] sm:$0xff] }
 0x2c2   :  { %13122 = vmatprep.subr.bf16.mxu1 %v13121_v42  ;;  %v13465_v42 = vpack.c.bf16 %v3222_v33, %v3218_v30  ;;  %v3299_v33 = vld [vmem:[%s22909_s5 + $0x760] sm:$0xff] }
 0x2c4   :  { %13452 = vmatpush1.bf16.msra.mxu0 %v13451_v53  ;;  %v3230_v53 = vld [vmem:[%s22909_s5 + $0x538] sm:$0xff] }
 0x2c5   :  { %13454 = vmatprep.subr.bf16.mxu0 %v13453_v23  ;;  %13124 = vmatpush1.bf16.msra.mxu1 %v13123_v48  ;;  %v13137_v23 = vpack.c.bf16 %v3284_v50, %v3280_v37  ;;  %v3292_v48 = vld [vmem:[%s22909_s5 + $0x728] sm:$0xff] }
 0x2c6   :  { %13126 = vmatprep.subr.bf16.mxu1 %v13125_v32  ;;  %v13469_v32 = vpack.c.bf16 %v3230_v53, %v3226_v45  ;;  %v3308_v37 = vld [vmem:[%s22909_s5 + $0x7a8] sm:$0xff]  ;;  %v3241_v45 = vld [vmem:[%s22909_s5 + $0x590] sm:$0xff] }
 0x2c7   :  { %4304 = vmatmul.mubr.f32.vlgmr.msra.gmra.mrb[10].mxu0 %v19314_v1  ;;  %v3213_v1 = vld [vmem:[%s22909_s5 + $0x4b0] sm:$0xff]  ;;  %v13149_v53 = vpack.c.bf16 %v3308_v37, %v3304_v60 }
 0x2c8   :  { %13456 = vmatpush1.bf16.msra.mxu0 %v13455_v57  ;;  %v13463_v38 = vpack.c.bf16 %v3213_v1, %v3209_v29  ;;  %v3238_v57 = vld [vmem:[%s22909_s5 + $0x578] sm:$0xff]  ;;  %v13143_v29 = vpack.c.bf16 %v3291_v63, %v3287_v62  ;;  %v3311_v62 = vld [vmem:[%s22909_s5 + $0x7c0] sm:$0xff]  ;;  %v3273_v37 = vld [vmem:[%s22909_s5 + $0x690] sm:$0xff] }
 0x2c9   :  { %13458 = vmatprep.subr.bf16.mxu0 %v13457_v58  ;;  %13128 = vmatpush1.bf16.msra.mxu1 %v13127_v4  ;;  %v13141_v58 = vpack.c.bf16 %v3292_v48, %v3288_v47  ;;  %v3300_v4 = vld [vmem:[%s22909_s5 + $0x768] sm:$0xff]  ;;  %v13473_v19 = vpack.c.bf16 %v3238_v57, %v3234_v55  ;;  %v3246_v1 = vld [vmem:[%s22909_s5 + $0x5b8] sm:$0xff]  ;;  %v3253_v57 = vld [vmem:[%s22909_s5 + $0x5f0] sm:$0xff] }
 0x2ca   :  { %13130 = vmatprep.subr.bf16.mxu1 %v13129_v10  ;;  %v13471_v10 = vpack.c.bf16 %v3229_v3, %v3225_v54  ;;  %v13145_v30 = vpack.c.bf16 %v3300_v4, %v3296_v2  ;;  %v3312_v48 = vld [vmem:[%s22909_s5 + $0x7c8] sm:$0xff]  ;;  %v13479_v3 = vpack.c.bf16 %v3245_v56, %v3241_v45  ;;  %v3315_v63 = vld [vmem:[%s22909_s5 + $0x7e0] sm:$0xff] }
 0x2cb   :  { %v3320_v2 = vld [vmem:[%s22909_s5 + $0x808] sm:$0xff] }
 0x2cc   :  { %13460 = vmatpush1.bf16.msra.mxu0 %v13459_v27  ;;  %v3237_v27 = vld [vmem:[%s22909_s5 + $0x570] sm:$0xff]  ;;  %v3324_v4 = vld [vmem:[%s22909_s5 + $0x828] sm:$0xff] }
 0x2cd   :  { %13462 = vmatprep.subr.bf16.mxu0 %v13461_v28  ;;  %13132 = vmatpush1.bf16.msra.mxu1 %v13131_v31  ;;  %v3242_v28 = vld [vmem:[%s22909_s5 + $0x598] sm:$0xff]  ;;  %v3295_v31 = vld [vmem:[%s22909_s5 + $0x740] sm:$0xff] }
 0x2ce   :  { %13134 = vmatprep.subr.bf16.mxu1 %v13133_v34  ;;  %v13477_v44 = vpack.c.bf16 %v3246_v1, %v3242_v28  ;;  %v13147_v59 = vpack.c.bf16 %v3299_v33, %v3295_v31  ;;  %v13157_v28 = vpack.c.bf16 %v3324_v4, %v3320_v2  ;;  %v3269_v31 = vld [vmem:[%s22909_s5 + $0x670] sm:$0xff]  ;;  %v3274_v33 = vld [vmem:[%s22909_s5 + $0x698] sm:$0xff] }
 0x2d0   :  { %13464 = vmatpush1.bf16.msra.mxu0 %v13463_v38 }
 0x2d1   :  { %13466 = vmatprep.subr.bf16.mxu0 %v13465_v42  ;;  %13136 = vmatpush1.bf16.msra.mxu1 %v13135_v40  ;;  %v3254_v40 = vld [vmem:[%s22909_s5 + $0x5f8] sm:$0xff] }
 0x2d2   :  { %13138 = vmatprep.subr.bf16.mxu1 %v13137_v23  ;;  %v3303_v23 = vld [vmem:[%s22909_s5 + $0x780] sm:$0xff] }
 0x2d3   :  { %v13151_v5 = vpack.c.bf16 %v3307_v52, %v3303_v23  ;;  %v3289_v52 = vld [vmem:[%s22909_s5 + $0x710] sm:$0xff] }
 0x2d4   :  { %v14726_v7 = vpop.permute.xlu0 %14725  ;;  %13468 = vmatpush1.bf16.msra.mxu0 %v13467_v49  ;;  %v3316_v49 = vld [vmem:[%s22909_s5 + $0x7e8] sm:$0xff] }
 0x2d5   :  { %v14728_v16 = vunpack.i.h.bf16 %v14726_v7  ;;  %v14727_v25 = vunpack.i.l.bf16 %v14726_v7  ;;  %13470 = vmatprep.subr.bf16.mxu0 %v13469_v32  ;;  %13140 = vmatpush1.bf16.msra.mxu1 %v13139_v39  ;;  %v3249_v39 = vld [vmem:[%s22909_s5 + $0x5d0] sm:$0xff] }
 0x2d6   :  { %13142 = vmatprep.subr.bf16.mxu1 %v13141_v58  ;;  %v13153_v58 = vpack.c.bf16 %v3316_v49, %v3312_v48  ;;  %v13483_v7 = vpack.c.bf16 %v3253_v57, %v3249_v39  ;;  %v3302_v48 = vld [vmem:[%s22909_s5 + $0x778] sm:$0xff]  ;;  %v3301_v39 = vld [vmem:[%s22909_s5 + $0x770] sm:$0xff] }
 0x2d7   :  { %v2952_v34 = vsel %vm2948_vm0, %v14717_v22, %v14727_v25  ;;  %v2953_v36 = vsel %vm2948_vm0, %v14727_v25, %v14728_v16  ;;  %v13475_v22 = vpack.c.bf16 %v3237_v27, %v3233_v21  ;;  %v3261_v25 = vld [vmem:[%s22909_s5 + $0x630] sm:$0xff]  ;;  %v3266_v21 = vld [vmem:[%s22909_s5 + $0x658] sm:$0xff] }
 0x2d8   :  { %v19625_v50 = vpop.permute.xlu0 %14735  ;;  %v19629_v38 = vmax.f32 %v2899_v9, %v2952_v34  ;;  %v19633_v20 = vmax.f32 %v2900_v51, %v2953_v36  ;;  %13472 = vmatpush1.bf16.msra.mxu0 %v13471_v10  ;;  %v3250_v9 = vld [vmem:[%s22909_s5 + $0x5d8] sm:$0xff] }
 0x2d9   :  { %v14738_v42 = vunpack.i.h.bf16 %v19625_v50  ;;  %v14737_v43 = vunpack.i.l.bf16 %v19625_v50  ;;  %13474 = vmatprep.subr.bf16.mxu0 %v13473_v19  ;;  %13144 = vmatpush1.bf16.msra.mxu1 %v13143_v29  ;;  %v13481_v55 = vpack.c.bf16 %v3254_v40, %v3250_v9  ;;  %v13155_v19 = vpack.c.bf16 %v3315_v63, %v3311_v62  ;;  %v3270_v27 = vld [vmem:[%s22909_s5 + $0x678] sm:$0xff]  ;;  %v3281_v9 = vld [vmem:[%s22909_s5 + $0x6d0] sm:$0xff]  ;;  %v3472_v50 = vld [vmem:[%s22909_s5 + $0xcc8] sm:$0xff] }
 0x2da   :  { %v14729_v51 = vpack.i.bf16 %v19633_v20, %v19629_v38  ;;  %13146 = vmatprep.subr.bf16.mxu1 %v13145_v30  ;;  %v13489_v1 = vpack.c.bf16 %v3270_v27, %v3266_v21  ;;  %v3265_v30 = vld [vmem:[%s22909_s5 + $0x650] sm:$0xff]  ;;  %v3278_v34 = vld [vmem:[%s22909_s5 + $0x6b8] sm:$0xff]  ;;  %v19802_v27 = vld [vmem:[%s22908_s4 + $0x8] sm:$0x1f] }
 0x2db   :  { %v2954_v0 = vsel %vm2948_vm0, %v14728_v16, %v14737_v43  ;;  %v2955_v47 = vsel %vm2948_vm0, %v14737_v43, %v14738_v42  ;;  %v3257_v16 = vld [vmem:[%s22909_s5 + $0x610] sm:$0xff]  ;;  %v13491_v36 = vpack.c.bf16 %v3269_v31, %v3265_v30  ;;  %v13493_v60 = vpack.c.bf16 %v3278_v34, %v3274_v33  ;;  %v3282_v43 = vld [vmem:[%s22909_s5 + $0x6d8] sm:$0xff] }
 0x2dc   :  { %14730 = vrot.lane.b32.xlu1 %v14729_v51, %s14941_s30  ;;  %v19670_v32 = vmax.f32 %v2901_v24, %v2954_v0  ;;  %v19674_v54 = vmax.f32 %v2902_v11, %v2955_v47  ;;  %13476 = vmatpush1.bf16.msra.mxu0 %v13475_v22  ;;  %v3262_v11 = vld [vmem:[%s22909_s5 + $0x638] sm:$0xff]  ;;  %v13487_v29 = vpack.c.bf16 %v3261_v25, %v3257_v16  ;;  %v3277_v22 = vld [vmem:[%s22909_s5 + $0x6b0] sm:$0xff] }
 0x2dd   :  { %13478 = vmatprep.subr.bf16.mxu0 %v13477_v44  ;;  %13148 = vmatpush1.bf16.msra.mxu1 %v13147_v59  ;;  %v13485_v10 = vpack.c.bf16 %v3262_v11, %v3258_v6  ;;  %v3286_v44 = vld [vmem:[%s22909_s5 + $0x6f8] sm:$0xff]  ;;  %v13495_v45 = vpack.c.bf16 %v3277_v22, %v3273_v37  ;;  %v3285_v59 = vld [vmem:[%s22909_s5 + $0x6f0] sm:$0xff]  ;;  %v1353_v34 = vrot.slane %v19802_v27, %v17547_v14 }
 0x2de   :  { %v14739_v24 = vpack.i.bf16 %v19674_v54, %v19670_v32  ;;  %13150 = vmatprep.subr.bf16.mxu1 %v13149_v53  ;;  %v13497_v56 = vpack.c.bf16 %v3286_v44, %v3282_v43  ;;  %v3290_v51 = vld [vmem:[%s22909_s5 + $0x718] sm:$0xff]  ;;  %v13499_v53 = vpack.c.bf16 %v3285_v59, %v3281_v9  ;;  %v3293_v0 = vld [vmem:[%s22909_s5 + $0x730] sm:$0xff]  ;;  %v1361_v9 = vrot.slane %v19802_v27, %v1328_v18 }
 0x2df   :  { %v3294_v40 = vld [vmem:[%s22909_s5 + $0x738] sm:$0xff]  ;;  %v13503_v49 = vpack.c.bf16 %v3293_v0, %v3289_v52  ;;  %v3305_v11 = vld [vmem:[%s22909_s5 + $0x790] sm:$0xff] }
 0x2e0   :  { %14740 = vrot.lane.b32.xlu1 %v14739_v24, %s14941_s30  ;;  %13480 = vmatpush1.bf16.msra.mxu0 %v13479_v3  ;;  %v13501_v23 = vpack.c.bf16 %v3294_v40, %v3290_v51  ;;  %v3298_v47 = vld [vmem:[%s22909_s5 + $0x758] sm:$0xff] }
 0x2e1   :  { %13482 = vmatprep.subr.bf16.mxu0 %v13481_v55  ;;  %13152 = vmatpush1.bf16.msra.mxu1 %v13151_v5  ;;  %v13505_v3 = vpack.c.bf16 %v3302_v48, %v3298_v47  ;;  %v3297_v55 = vld [vmem:[%s22909_s5 + $0x750] sm:$0xff]  ;;  %v3306_v57 = vld [vmem:[%s22909_s5 + $0x798] sm:$0xff]  ;;  %v3319_v48 = vld [vmem:[%s22909_s5 + $0x800] sm:$0xff] }
 0x2e2   :  { %13154 = vmatprep.subr.bf16.mxu1 %v13153_v58  ;;  %v3310_v6 = vld [vmem:[%s22909_s5 + $0x7b8] sm:$0xff]  ;;  %v13507_v5 = vpack.c.bf16 %v3301_v39, %v3297_v55  ;;  %v3309_v58 = vld [vmem:[%s22909_s5 + $0x7b0] sm:$0xff]  ;;  %v3328_v39 = vld [vmem:[%s22909_s5 + $0x848] sm:$0xff] }
 0x2e3   :  { %v13509_v24 = vpack.c.bf16 %v3310_v6, %v3306_v57  ;;  %v3314_v62 = vld [vmem:[%s22909_s5 + $0x7d8] sm:$0xff]  ;;  %v13511_v2 = vpack.c.bf16 %v3309_v58, %v3305_v11  ;;  %v3325_v55 = vld [vmem:[%s22909_s5 + $0x830] sm:$0xff]  ;;  %v3332_v57 = vld [vmem:[%s22909_s5 + $0x868] sm:$0xff] }
 0x2e4   :  { %13484 = vmatpush1.bf16.msra.mxu0 %v13483_v7  ;;  %v3318_v63 = vld [vmem:[%s22909_s5 + $0x7f8] sm:$0xff]  ;;  %v3313_v7 = vld [vmem:[%s22909_s5 + $0x7d0] sm:$0xff] }
 0x2e5   :  { %13486 = vmatprep.subr.bf16.mxu0 %v13485_v10  ;;  %13156 = vmatpush1.bf16.msra.mxu1 %v13155_v19  ;;  %v13513_v4 = vpack.c.bf16 %v3318_v63, %v3314_v62  ;;  %v3317_v10 = vld [vmem:[%s22909_s5 + $0x7f0] sm:$0xff]  ;;  %v3322_v16 = vld [vmem:[%s22909_s5 + $0x818] sm:$0xff] }
 0x2e6   :  { %13158 = vmatprep.subr.bf16.mxu1 %v13157_v28  ;;  %v3326_v25 = vld [vmem:[%s22909_s5 + $0x838] sm:$0xff]  ;;  %v13515_v19 = vpack.c.bf16 %v3317_v10, %v3313_v7  ;;  %v1345_v28 = vrot.slane %v19802_v27, %v17544_v13  ;;  %v3327_v7 = vld [vmem:[%s22909_s5 + $0x840] sm:$0xff] }
 0x2e7   :  { %v13517_v21 = vpack.c.bf16 %v3326_v25, %v3322_v16  ;;  %v3330_v6 = vld [vmem:[%s22909_s5 + $0x858] sm:$0xff]  ;;  %v13161_v16 = vpack.c.bf16 %v3332_v57, %v3328_v39  ;;  %v3333_v25 = vld [vmem:[%s22909_s5 + $0x870] sm:$0xff] }
 0x2e8   :  { %13488 = vmatpush1.bf16.msra.mxu0 %v13487_v29  ;;  %v1349_v29 = vrot.slane %v19802_v27, %v17550_v15 }
 0x2e9   :  { %13490 = vmatprep.subr.bf16.mxu0 %v13489_v1 }
 0x2ec   :  { %13492 = vmatpush1.bf16.msra.mxu0 %v13491_v36 }
 0x2ed   :  { %13494 = vmatprep.subr.bf16.mxu0 %v13493_v60 }
 0x2f0   :  { %13496 = vmatpush1.bf16.msra.mxu0 %v13495_v45 }
 0x2f1   :  { %13498 = vmatprep.subr.bf16.mxu0 %v13497_v56 }
 0x2f4   :  { %13500 = vmatpush1.bf16.msra.mxu0 %v13499_v53 }
 0x2f5   :  { %13502 = vmatprep.subr.bf16.mxu0 %v13501_v23 }
 0x2f8   :  { %13504 = vmatpush1.bf16.msra.mxu0 %v13503_v49 }
 0x2f9   :  { %13506 = vmatprep.subr.bf16.mxu0 %v13505_v3  ;;  %v3321_v3 = vld [vmem:[%s22909_s5 + $0x810] sm:$0xff] }
 0x2fc   :  { %13508 = vmatpush1.bf16.msra.mxu0 %v13507_v5  ;;  %v3334_v5 = vld [vmem:[%s22909_s5 + $0x878] sm:$0xff] }
 0x2fd   :  { %13510 = vmatprep.subr.bf16.mxu0 %v13509_v24 }
 0x300   :  { %13512 = vmatpush1.bf16.msra.mxu0 %v13511_v2  ;;  %v13159_v2 = vpack.c.bf16 %v3323_v61, %v3319_v48 }
 0x301   :  { %13514 = vmatprep.subr.bf16.mxu0 %v13513_v4  ;;  %v13519_v4 = vpack.c.bf16 %v3325_v55, %v3321_v3  ;;  %v3343_v3 = vld [vmem:[%s22909_s5 + $0x8c0] sm:$0xff] }
 0x304   :  { %13516 = vmatpush1.bf16.msra.mxu0 %v13515_v19  ;;  %v3336_v19 = vld [vmem:[%s22909_s5 + $0x888] sm:$0xff] }
 0x305   :  { %13518 = vmatprep.subr.bf16.mxu0 %v13517_v21  ;;  %v3340_v21 = vld [vmem:[%s22909_s5 + $0x8a8] sm:$0xff] }
 0x31a   :  { %v2468_v1 = vpop.f32.mrb[4].mxu0 }
 0x31b   :  { %v19808_v30 = vadd.f32 %v2468_v1, %v1345_v28  ;;  %v2681_v31 = vpop.f32.mrb[4].mxu1  ;;  %v2470_v33 = vpop.f32.mrb[5].mxu0  ;;  %v3338_v28 = vld [vmem:[%s22909_s5 + $0x898] sm:$0xff] }
 0x31c   :  { %v19812_v36 = vadd.f32 %v2470_v33, %v1349_v29  ;;  %v19814_v60 = vpop.f32.mrb[5].mxu1  ;;  %v19818_v43 = vadd.f32 %v2681_v31, %v1353_v34  ;;  %v3342_v29 = vld [vmem:[%s22909_s5 + $0x8b8] sm:$0xff]  ;;  %v13163_v33 = vpack.c.bf16 %v3331_v12, %v3327_v7 }
 0x31d   :  { %v2904_v37 = vmax.f32 %v19808_v30, 0.0 }
 0x31e   :  { %v2905_v22 = vmax.f32 %v19812_v36, 0.0  ;;  %v2906_v45 = vmax.f32 %v19818_v43, 0.0  ;;  %v3587_v36 = vld [vmem:[%s22909_s5 + $0x1060] sm:$0xff]  ;;  %v3596_v43 = vld [vmem:[%s22909_s5 + $0x10a8] sm:$0xff] }
 0x320   :  { %v14744_v44 = vpack.i.bf16 %v2905_v22, %v2904_v37 }
 0x322   :  { %14745 = vrot.lane.b32.xlu0 %v14744_v44, %s14940_s18  ;;  %v3335_v44 = vld [vmem:[%s22909_s5 + $0x880] sm:$0xff] }
 0x326   :  { %2942 = vrot.lane.b32.xlu0 %v2906_v45, %s14940_s18 }
 0x33a   :  { %v9780_v56 = vpop.f32.mrb[6].mxu0 }
 0x33b   :  { %v9781_v59 = vpop.f32.mrb[7].mxu0  ;;  %v9815_v51 = vpop.f32.mrb[6].mxu1 }
 0x33c   :  { %v9782_v40 = vadd.f32 %v9781_v59, %v9780_v56  ;;  %v9816_v53 = vpop.f32.mrb[7].mxu1  ;;  %v3339_v56 = vld [vmem:[%s22909_s5 + $0x8a0] sm:$0xff]  ;;  %v13525_v59 = vpack.c.bf16 %v3342_v29, %v3338_v28 }
 0x33d   :  { %v9817_v23 = vadd.f32 %v9816_v53, %v9815_v51  ;;  %v3337_v51 = vld [vmem:[%s22909_s5 + $0x890] sm:$0xff]  ;;  %v3348_v53 = vld [vmem:[%s22909_s5 + $0x8e8] sm:$0xff]  ;;  %v13167_v61 = vpack.c.bf16 %v3339_v56, %v3335_v44  ;;  %v3359_v56 = vld [vmem:[%s22909_s5 + $0x940] sm:$0xff] }
 0x33e   :  { %v2753_v52 = vadd.f32 %v9782_v40, %v1361_v9  ;;  %v13165_v9 = vpack.c.bf16 %v3340_v21, %v3336_v19  ;;  %v3344_v40 = vld [vmem:[%s22909_s5 + $0x8c8] sm:$0xff]  ;;  %v3357_v19 = vld [vmem:[%s22909_s5 + $0x930] sm:$0xff] }
 0x33f   :  { %v13169_v39 = vpack.c.bf16 %v3348_v53, %v3344_v40  ;;  %v3360_v21 = vld [vmem:[%s22909_s5 + $0x948] sm:$0xff]  ;;  %v3365_v40 = vld [vmem:[%s22909_s5 + $0x970] sm:$0xff] }
 0x340   :  { %v19832_v0 = vadd.f32 %v9817_v23, %v2753_v52  ;;  %v3346_v23 = vld [vmem:[%s22909_s5 + $0x8d8] sm:$0xff]  ;;  %v3368_v53 = vld [vmem:[%s22909_s5 + $0x988] sm:$0xff] }
 0x341   :  { %v3350_v52 = vld [vmem:[%s22909_s5 + $0x8f8] sm:$0xff] }
 0x342   :  { %v13529_v57 = vpack.c.bf16 %v3350_v52, %v3346_v23  ;;  %v3372_v23 = vld [vmem:[%s22909_s5 + $0x9a8] sm:$0xff]  ;;  %v3370_v52 = vld [vmem:[%s22909_s5 + $0x998] sm:$0xff] }
 0x34e   :  { %v19834_v47 = vpop.permute.xlu1 %14730 }
 0x34f   :  { %v14733_v18 = vunpack.i.h.bf16 %v19834_v47  ;;  %v14732_v49 = vunpack.i.l.bf16 %v19834_v47  ;;  %v3455_v47 = vld [vmem:[%s22909_s5 + $0xc40] sm:$0xff] }
 0x351   :  { %v3029_v24 = vsel %vm3026_vm1, %v14723_v26, %v14732_v49  ;;  %v3030_v11 = vsel %vm3026_vm1, %v14732_v49, %v14733_v18 }
 0x352   :  { %v3053_v58 = vmax.f32 %v18419_v41, %v3029_v24  ;;  %v19869_v62 = vpop.permute.xlu1 %14740  ;;  %v3054_v63 = vmax.f32 %v19629_v38, %v3030_v11  ;;  %v13521_v41 = vpack.c.bf16 %v3334_v5, %v3330_v6  ;;  %v3329_v38 = vld [vmem:[%s22909_s5 + $0x850] sm:$0xff]  ;;  %v3347_v6 = vld [vmem:[%s22909_s5 + $0x8e0] sm:$0xff] }
 0x353   :  { %v14743_v26 = vunpack.i.h.bf16 %v19869_v62  ;;  %v14742_v10 = vunpack.i.l.bf16 %v19869_v62  ;;  %v13523_v34 = vpack.c.bf16 %v3333_v25, %v3329_v38  ;;  %v3345_v5 = vld [vmem:[%s22909_s5 + $0x8d0] sm:$0xff]  ;;  %v13171_v12 = vpack.c.bf16 %v3347_v6, %v3343_v3  ;;  %v3355_v38 = vld [vmem:[%s22909_s5 + $0x920] sm:$0xff] }
 0x354   :  { %3948 = vmatprep.mubr.f32.mxu1 %v3054_v63  ;;  %4374 = vmatprep.mubr.f32.mxu0 %v3054_v63  ;;  %v3349_v24 = vld [vmem:[%s22909_s5 + $0x8f0] sm:$0xff]  ;;  %v3356_v63 = vld [vmem:[%s22909_s5 + $0x928] sm:$0xff]  ;;  %v3367_v3 = vld [vmem:[%s22909_s5 + $0x980] sm:$0xff] }
 0x355   :  { %3949 = vmatmul.mubr.f32.vlgmr.msra.gmra.mrb[8].mxu1 %v3053_v58  ;;  %4375 = vmatmul.mubr.f32.vlgmr.msra.gmra.mrb[10].mxu0 %v3053_v58  ;;  %v3032_v1 = vsel %vm3026_vm1, %v14742_v10, %v14743_v26  ;;  %v3352_v58 = vld [vmem:[%s22909_s5 + $0x908] sm:$0xff]  ;;  %v3369_v6 = vld [vmem:[%s22909_s5 + $0x990] sm:$0xff] }
 0x356   :  { %13160 = vmatpush1.bf16.msra.mxu1 %v13159_v2  ;;  %13520 = vmatpush1.bf16.msra.mxu0 %v13519_v4  ;;  %v3056_v31 = vmax.f32 %v19670_v32, %v3032_v1  ;;  %v3341_v32 = vld [vmem:[%s22909_s5 + $0x8b0] sm:$0xff]  ;;  %v3354_v2 = vld [vmem:[%s22909_s5 + $0x918] sm:$0xff]  ;;  %v13173_v25 = vpack.c.bf16 %v3356_v63, %v3352_v58  ;;  %v3364_v1 = vld [vmem:[%s22909_s5 + $0x968] sm:$0xff] }
 0x357   :  { %13162 = vmatprep.subr.bf16.mxu1 %v13161_v16  ;;  %13522 = vmatprep.subr.bf16.mxu0 %v13521_v41  ;;  %v13527_v49 = vpack.c.bf16 %v3341_v32, %v3337_v51  ;;  %v3358_v4 = vld [vmem:[%s22909_s5 + $0x938] sm:$0xff]  ;;  %v13531_v16 = vpack.c.bf16 %v3349_v24, %v3345_v5  ;;  %v3351_v41 = vld [vmem:[%s22909_s5 + $0x900] sm:$0xff]  ;;  %v3361_v32 = vld [vmem:[%s22909_s5 + $0x950] sm:$0xff] }
 0x358   :  { %4019 = vmatprep.mubr.f32.mxu1 %v3056_v31  ;;  %4445 = vmatprep.mubr.f32.mxu0 %v3056_v31  ;;  %v13533_v29 = vpack.c.bf16 %v3358_v4, %v3354_v2  ;;  %v3362_v31 = vld [vmem:[%s22909_s5 + $0x958] sm:$0xff]  ;;  %v3373_v5 = vld [vmem:[%s22909_s5 + $0x9b0] sm:$0xff]  ;;  %v3376_v24 = vld [vmem:[%s22909_s5 + $0x9c8] sm:$0xff] }
 0x359   :  { %v3378_v58 = vld [vmem:[%s22909_s5 + $0x9d8] sm:$0xff]  ;;  %v13543_v4 = vpack.c.bf16 %v3373_v5, %v3369_v6  ;;  %v3400_v6 = vld [vmem:[%s22909_s5 + $0xa88] sm:$0xff] }
 0x35a   :  { %13164 = vmatpush1.bf16.msra.mxu1 %v13163_v33  ;;  %13524 = vmatpush1.bf16.msra.mxu0 %v13523_v34  ;;  %v9850_v48 = vpop.f32.mrb[8].mxu0  ;;  %v3366_v33 = vld [vmem:[%s22909_s5 + $0x978] sm:$0xff]  ;;  %v13175_v34 = vpack.c.bf16 %v3355_v38, %v3351_v41  ;;  %v3404_v5 = vld [vmem:[%s22909_s5 + $0xaa8] sm:$0xff] }
 0x35b   :  { %v9851_v55 = vpop.f32.mrb[9].mxu0  ;;  %13166 = vmatprep.subr.bf16.mxu1 %v13165_v9  ;;  %13526 = vmatprep.subr.bf16.mxu0 %v13525_v59  ;;  %v3363_v9 = vld [vmem:[%s22909_s5 + $0x960] sm:$0xff]  ;;  %v13177_v59 = vpack.c.bf16 %v3364_v1, %v3360_v21  ;;  %v13537_v51 = vpack.c.bf16 %v3366_v33, %v3362_v31  ;;  %v3382_v63 = vld [vmem:[%s22909_s5 + $0x9f8] sm:$0xff]  ;;  %v3388_v21 = vld [vmem:[%s22909_s5 + $0xa28] sm:$0xff] }
 0x35c   :  { %v9852_v11 = vadd.f32 %v9851_v55, %v9850_v48  ;;  %v3374_v48 = vld [vmem:[%s22909_s5 + $0x9b8] sm:$0xff]  ;;  %v3371_v55 = vld [vmem:[%s22909_s5 + $0x9a0] sm:$0xff]  ;;  %v13545_v38 = vpack.c.bf16 %v3382_v63, %v3378_v58 }
 0x35d   :  { %v13183_v2 = vpack.c.bf16 %v3371_v55, %v3367_v3  ;;  %v3390_v1 = vld [vmem:[%s22909_s5 + $0xa38] sm:$0xff] }
 0x35e   :  { %v19953_v7 = vadd.f32 %v9852_v11, %v19832_v0  ;;  %13168 = vmatpush1.bf16.msra.mxu1 %v13167_v61  ;;  %13528 = vmatpush1.bf16.msra.mxu0 %v13527_v49  ;;  %v3353_v0 = vld [vmem:[%s22909_s5 + $0x910] sm:$0xff]  ;;  %v13179_v61 = vpack.c.bf16 %v3363_v9, %v3359_v56  ;;  %v13539_v49 = vpack.c.bf16 %v3365_v40, %v3361_v32  ;;  %v3380_v11 = vld [vmem:[%s22909_s5 + $0x9e8] sm:$0xff] }
 0x35f   :  { %13170 = vmatprep.subr.bf16.mxu1 %v13169_v39  ;;  %13530 = vmatprep.subr.bf16.mxu0 %v13529_v57  ;;  %v13535_v44 = vpack.c.bf16 %v3357_v19, %v3353_v0  ;;  %v13181_v39 = vpack.c.bf16 %v3372_v23, %v3368_v53  ;;  %v13541_v57 = vpack.c.bf16 %v3374_v48, %v3370_v52  ;;  %v3381_v0 = vld [vmem:[%s22909_s5 + $0x9f0] sm:$0xff]  ;;  %v3384_v19 = vld [vmem:[%s22909_s5 + $0xa08] sm:$0xff]  ;;  %v3394_v53 = vld [vmem:[%s22909_s5 + $0xa58] sm:$0xff] }
 0x360   :  { %v2908_v28 = vmax.f32 %v19953_v7, 0.0  ;;  %v13185_v41 = vpack.c.bf16 %v3380_v11, %v3376_v24  ;;  %v13189_v56 = vpack.c.bf16 %v3388_v21, %v3384_v19  ;;  %v3392_v32 = vld [vmem:[%s22909_s5 + $0xa48] sm:$0xff]  ;;  %v3398_v23 = vld [vmem:[%s22909_s5 + $0xa78] sm:$0xff] }
 0x361   :  { %v3396_v40 = vld [vmem:[%s22909_s5 + $0xa68] sm:$0xff]  ;;  %v13553_v55 = vpack.c.bf16 %v3398_v23, %v3394_v53  ;;  %v3402_v24 = vld [vmem:[%s22909_s5 + $0xa98] sm:$0xff] }
 0x362   :  { %13172 = vmatpush1.bf16.msra.mxu1 %v13171_v12  ;;  %13532 = vmatpush1.bf16.msra.mxu0 %v13531_v16  ;;  %v3375_v12 = vld [vmem:[%s22909_s5 + $0x9c0] sm:$0xff]  ;;  %v13193_v3 = vpack.c.bf16 %v3396_v40, %v3392_v32  ;;  %v3406_v11 = vld [vmem:[%s22909_s5 + $0xab8] sm:$0xff] }
 0x363   :  { %2946 = vrot.lane.b32.xlu0 %v2908_v28, %s14940_s18  ;;  %13174 = vmatprep.subr.bf16.mxu1 %v13173_v25  ;;  %v3379_v16 = vld [vmem:[%s22909_s5 + $0x9e0] sm:$0xff]  ;;  %v3377_v25 = vld [vmem:[%s22909_s5 + $0x9d0] sm:$0xff]  ;;  %v3410_v19 = vld [vmem:[%s22909_s5 + $0xad8] sm:$0xff] }
 0x364   :  { %13534 = vmatprep.subr.bf16.mxu0 %v13533_v29  ;;  %v3386_v29 = vld [vmem:[%s22909_s5 + $0xa18] sm:$0xff]  ;;  %v13187_v31 = vpack.c.bf16 %v3379_v16, %v3375_v12  ;;  %v13547_v33 = vpack.c.bf16 %v3381_v0, %v3377_v25  ;;  %v13197_v12 = vpack.c.bf16 %v3404_v5, %v3400_v6  ;;  %v13557_v16 = vpack.c.bf16 %v3406_v11, %v3402_v24  ;;  %v3408_v25 = vld [vmem:[%s22909_s5 + $0xac8] sm:$0xff] }
 0x365   :  { %v13549_v9 = vpack.c.bf16 %v3390_v1, %v3386_v29  ;;  %v3412_v0 = vld [vmem:[%s22909_s5 + $0xae8] sm:$0xff]  ;;  %v3414_v21 = vld [vmem:[%s22909_s5 + $0xaf8] sm:$0xff] }
 0x366   :  { %13176 = vmatpush1.bf16.msra.mxu1 %v13175_v34  ;;  %13536 = vmatpush1.bf16.msra.mxu0 %v13535_v44  ;;  %v3383_v34 = vld [vmem:[%s22909_s5 + $0xa00] sm:$0xff]  ;;  %v3418_v32 = vld [vmem:[%s22909_s5 + $0xb18] sm:$0xff] }
 0x367   :  { %13178 = vmatprep.subr.bf16.mxu1 %v13177_v59  ;;  %13538 = vmatprep.subr.bf16.mxu0 %v13537_v51  ;;  %v3387_v44 = vld [vmem:[%s22909_s5 + $0xa20] sm:$0xff]  ;;  %v3385_v59 = vld [vmem:[%s22909_s5 + $0xa10] sm:$0xff]  ;;  %v3422_v40 = vld [vmem:[%s22909_s5 + $0xb38] sm:$0xff] }
 0x368   :  { %v3389_v51 = vld [vmem:[%s22909_s5 + $0xa30] sm:$0xff]  ;;  %v13191_v52 = vpack.c.bf16 %v3387_v44, %v3383_v34  ;;  %v13201_v34 = vpack.c.bf16 %v3412_v0, %v3408_v25  ;;  %v13561_v44 = vpack.c.bf16 %v3414_v21, %v3410_v19  ;;  %v3426_v6 = vld [vmem:[%s22909_s5 + $0xb58] sm:$0xff] }
 0x369   :  { %v13551_v48 = vpack.c.bf16 %v3389_v51, %v3385_v59  ;;  %v3416_v59 = vld [vmem:[%s22909_s5 + $0xb08] sm:$0xff]  ;;  %v3430_v5 = vld [vmem:[%s22909_s5 + $0xb78] sm:$0xff] }
 0x36a   :  { %13180 = vmatpush1.bf16.msra.mxu1 %v13179_v61  ;;  %13540 = vmatpush1.bf16.msra.mxu0 %v13539_v49  ;;  %v3391_v61 = vld [vmem:[%s22909_s5 + $0xa40] sm:$0xff]  ;;  %v3420_v51 = vld [vmem:[%s22909_s5 + $0xb28] sm:$0xff]  ;;  %v3434_v25 = vld [vmem:[%s22909_s5 + $0xb98] sm:$0xff] }
 0x36b   :  { %13182 = vmatprep.subr.bf16.mxu1 %v13181_v39  ;;  %13542 = vmatprep.subr.bf16.mxu0 %v13541_v57  ;;  %v3395_v49 = vld [vmem:[%s22909_s5 + $0xa60] sm:$0xff]  ;;  %v3393_v39 = vld [vmem:[%s22909_s5 + $0xa50] sm:$0xff]  ;;  %v3438_v0 = vld [vmem:[%s22909_s5 + $0xbb8] sm:$0xff] }
 0x36c   :  { %v3397_v57 = vld [vmem:[%s22909_s5 + $0xa70] sm:$0xff]  ;;  %v13195_v58 = vpack.c.bf16 %v3395_v49, %v3391_v61  ;;  %v13205_v61 = vpack.c.bf16 %v3420_v51, %v3416_v59  ;;  %v13565_v49 = vpack.c.bf16 %v3422_v40, %v3418_v32  ;;  %v3442_v59 = vld [vmem:[%s22909_s5 + $0xbd8] sm:$0xff] }
 0x36d   :  { %v13555_v63 = vpack.c.bf16 %v3397_v57, %v3393_v39  ;;  %v3424_v39 = vld [vmem:[%s22909_s5 + $0xb48] sm:$0xff]  ;;  %v3446_v51 = vld [vmem:[%s22909_s5 + $0xbf8] sm:$0xff] }
 0x36e   :  { %13184 = vmatpush1.bf16.msra.mxu1 %v13183_v2  ;;  %13544 = vmatpush1.bf16.msra.mxu0 %v13543_v4  ;;  %v3399_v2 = vld [vmem:[%s22909_s5 + $0xa80] sm:$0xff]  ;;  %v3428_v57 = vld [vmem:[%s22909_s5 + $0xb68] sm:$0xff] }
 0x36f   :  { %13186 = vmatprep.subr.bf16.mxu1 %v13185_v41  ;;  %13546 = vmatprep.subr.bf16.mxu0 %v13545_v38  ;;  %v3403_v4 = vld [vmem:[%s22909_s5 + $0xaa0] sm:$0xff]  ;;  %v3401_v41 = vld [vmem:[%s22909_s5 + $0xa90] sm:$0xff] }
 0x370   :  { %v3405_v38 = vld [vmem:[%s22909_s5 + $0xab0] sm:$0xff]  ;;  %v13199_v29 = vpack.c.bf16 %v3403_v4, %v3399_v2  ;;  %v13209_v2 = vpack.c.bf16 %v3428_v57, %v3424_v39  ;;  %v13569_v4 = vpack.c.bf16 %v3430_v5, %v3426_v6  ;;  %v3450_v39 = vld [vmem:[%s22909_s5 + $0xc18] sm:$0xff] }
 0x371   :  { %v13559_v1 = vpack.c.bf16 %v3405_v38, %v3401_v41  ;;  %v3432_v41 = vld [vmem:[%s22909_s5 + $0xb88] sm:$0xff]  ;;  %v3454_v57 = vld [vmem:[%s22909_s5 + $0xc38] sm:$0xff] }
 0x372   :  { %13188 = vmatpush1.bf16.msra.mxu1 %v13187_v31  ;;  %13548 = vmatpush1.bf16.msra.mxu0 %v13547_v33  ;;  %v3407_v31 = vld [vmem:[%s22909_s5 + $0xac0] sm:$0xff]  ;;  %v3436_v38 = vld [vmem:[%s22909_s5 + $0xba8] sm:$0xff] }
 0x373   :  { %13190 = vmatprep.subr.bf16.mxu1 %v13189_v56  ;;  %13550 = vmatprep.subr.bf16.mxu0 %v13549_v9  ;;  %v3411_v33 = vld [vmem:[%s22909_s5 + $0xae0] sm:$0xff]  ;;  %v3409_v56 = vld [vmem:[%s22909_s5 + $0xad0] sm:$0xff] }
 0x374   :  { %v3413_v9 = vld [vmem:[%s22909_s5 + $0xaf0] sm:$0xff]  ;;  %v13203_v53 = vpack.c.bf16 %v3411_v33, %v3407_v31  ;;  %v13213_v31 = vpack.c.bf16 %v3436_v38, %v3432_v41  ;;  %v13573_v33 = vpack.c.bf16 %v3438_v0, %v3434_v25  ;;  %v3460_v41 = vld [vmem:[%s22909_s5 + $0xc68] sm:$0xff]  ;;  %v3458_v38 = vld [vmem:[%s22909_s5 + $0xc58] sm:$0xff] }
 0x375   :  { %v13563_v23 = vpack.c.bf16 %v3413_v9, %v3409_v56  ;;  %v3440_v56 = vld [vmem:[%s22909_s5 + $0xbc8] sm:$0xff]  ;;  %v3462_v25 = vld [vmem:[%s22909_s5 + $0xc78] sm:$0xff] }
 0x376   :  { %13192 = vmatpush1.bf16.msra.mxu1 %v13191_v52  ;;  %13552 = vmatpush1.bf16.msra.mxu0 %v13551_v48  ;;  %v3415_v52 = vld [vmem:[%s22909_s5 + $0xb00] sm:$0xff]  ;;  %v3444_v9 = vld [vmem:[%s22909_s5 + $0xbe8] sm:$0xff] }
 0x377   :  { %13194 = vmatprep.subr.bf16.mxu1 %v13193_v3  ;;  %13554 = vmatprep.subr.bf16.mxu0 %v13553_v55  ;;  %v3419_v48 = vld [vmem:[%s22909_s5 + $0xb20] sm:$0xff]  ;;  %v3417_v3 = vld [vmem:[%s22909_s5 + $0xb10] sm:$0xff] }
 0x378   :  { %v3421_v55 = vld [vmem:[%s22909_s5 + $0xb30] sm:$0xff]  ;;  %v13207_v24 = vpack.c.bf16 %v3419_v48, %v3415_v52  ;;  %v13217_v52 = vpack.c.bf16 %v3444_v9, %v3440_v56  ;;  %v13577_v48 = vpack.c.bf16 %v3446_v51, %v3442_v59  ;;  %v3470_v56 = vld [vmem:[%s22909_s5 + $0xcb8] sm:$0xff]  ;;  %v1357_v9 = vrot.slane %v19802_v27, %v17553_v17 }
 0x379   :  { %v13567_v11 = vpack.c.bf16 %v3421_v55, %v3417_v3  ;;  %v3448_v3 = vld [vmem:[%s22909_s5 + $0xc08] sm:$0xff] }
 0x37a   :  { %13196 = vmatpush1.bf16.msra.mxu1 %v13195_v58  ;;  %13556 = vmatpush1.bf16.msra.mxu0 %v13555_v63  ;;  %v3423_v58 = vld [vmem:[%s22909_s5 + $0xb40] sm:$0xff]  ;;  %v3452_v55 = vld [vmem:[%s22909_s5 + $0xc28] sm:$0xff]  ;;  %v20346_v8 = vadd.f32 %v19814_v60, %v1357_v9 }
 0x37b   :  { %13198 = vmatprep.subr.bf16.mxu1 %v13197_v12  ;;  %13558 = vmatprep.subr.bf16.mxu0 %v13557_v16  ;;  %v3427_v63 = vld [vmem:[%s22909_s5 + $0xb60] sm:$0xff]  ;;  %v3425_v12 = vld [vmem:[%s22909_s5 + $0xb50] sm:$0xff] }
 0x37c   :  { %v3429_v16 = vld [vmem:[%s22909_s5 + $0xb70] sm:$0xff]  ;;  %v13211_v19 = vpack.c.bf16 %v3427_v63, %v3423_v58  ;;  %v13221_v58 = vpack.c.bf16 %v3452_v55, %v3448_v3  ;;  %v13581_v63 = vpack.c.bf16 %v3454_v57, %v3450_v39  ;;  %v3476_v39 = vld [vmem:[%s22909_s5 + $0xce8] sm:$0xff]  ;;  %v3474_v57 = vld [vmem:[%s22909_s5 + $0xcd8] sm:$0xff] }
 0x37d   :  { %v13571_v21 = vpack.c.bf16 %v3429_v16, %v3425_v12  ;;  %v3456_v12 = vld [vmem:[%s22909_s5 + $0xc48] sm:$0xff]  ;;  %v3031_v16 = vsel %vm3026_vm1, %v14733_v18, %v14742_v10  ;;  %v3459_v18 = vld [vmem:[%s22909_s5 + $0xc60] sm:$0xff]  ;;  %v3457_v10 = vld [vmem:[%s22909_s5 + $0xc50] sm:$0xff] }
 0x37e   :  { %13200 = vmatpush1.bf16.msra.mxu1 %v13199_v29  ;;  %13560 = vmatpush1.bf16.msra.mxu0 %v13559_v1  ;;  %v3431_v29 = vld [vmem:[%s22909_s5 + $0xb80] sm:$0xff]  ;;  %v3469_v3 = vld [vmem:[%s22909_s5 + $0xcb0] sm:$0xff] }
 0x37f   :  { %13202 = vmatprep.subr.bf16.mxu1 %v13201_v34  ;;  %13562 = vmatprep.subr.bf16.mxu0 %v13561_v44  ;;  %v3435_v1 = vld [vmem:[%s22909_s5 + $0xba0] sm:$0xff]  ;;  %v3433_v34 = vld [vmem:[%s22909_s5 + $0xb90] sm:$0xff] }
 0x380   :  { %v3437_v44 = vld [vmem:[%s22909_s5 + $0xbb0] sm:$0xff]  ;;  %v13215_v32 = vpack.c.bf16 %v3435_v1, %v3431_v29  ;;  %v13225_v29 = vpack.c.bf16 %v3460_v41, %v3456_v12  ;;  %v13585_v1 = vpack.c.bf16 %v3462_v25, %v3458_v38  ;;  %v3482_v12 = vld [vmem:[%s22909_s5 + $0xd18] sm:$0xff]  ;;  %v2907_v41 = vmax.f32 %v20346_v8, 0.0  ;;  %v3491_v9 = vld [vmem:[%s22909_s5 + $0xd60] sm:$0xff] }
 0x381   :  { %v13575_v40 = vpack.c.bf16 %v3437_v44, %v3433_v34  ;;  %v3468_v34 = vld [vmem:[%s22909_s5 + $0xca8] sm:$0xff]  ;;  %v3598_v8 = vld [vmem:[%s22909_s5 + $0x10b8] sm:$0xff] }
 0x382   :  { %13204 = vmatpush1.bf16.msra.mxu1 %v13203_v53  ;;  %13564 = vmatpush1.bf16.msra.mxu0 %v13563_v23  ;;  %v3439_v53 = vld [vmem:[%s22909_s5 + $0xbc0] sm:$0xff] }
 0x383   :  { %13206 = vmatprep.subr.bf16.mxu1 %v13205_v61  ;;  %13566 = vmatprep.subr.bf16.mxu0 %v13565_v49  ;;  %v3443_v23 = vld [vmem:[%s22909_s5 + $0xbe0] sm:$0xff]  ;;  %v3441_v61 = vld [vmem:[%s22909_s5 + $0xbd0] sm:$0xff] }
 0x384   :  { %v3445_v49 = vld [vmem:[%s22909_s5 + $0xbf0] sm:$0xff]  ;;  %v13219_v6 = vpack.c.bf16 %v3443_v23, %v3439_v53  ;;  %v3463_v23 = vld [vmem:[%s22909_s5 + $0xc80] sm:$0xff] }
 0x385   :  { %v13579_v5 = vpack.c.bf16 %v3445_v49, %v3441_v61  ;;  %v3465_v49 = vld [vmem:[%s22909_s5 + $0xc90] sm:$0xff] }
 0x386   :  { %13208 = vmatpush1.bf16.msra.mxu1 %v13207_v24  ;;  %13568 = vmatpush1.bf16.msra.mxu0 %v13567_v11  ;;  %v3447_v24 = vld [vmem:[%s22909_s5 + $0xc00] sm:$0xff] }
 0x387   :  { %13210 = vmatprep.subr.bf16.mxu1 %v13209_v2  ;;  %13570 = vmatprep.subr.bf16.mxu0 %v13569_v4  ;;  %v3451_v11 = vld [vmem:[%s22909_s5 + $0xc20] sm:$0xff]  ;;  %v3449_v2 = vld [vmem:[%s22909_s5 + $0xc10] sm:$0xff] }
 0x388   :  { %v3453_v4 = vld [vmem:[%s22909_s5 + $0xc30] sm:$0xff]  ;;  %v13223_v0 = vpack.c.bf16 %v3451_v11, %v3447_v24  ;;  %v3475_v24 = vld [vmem:[%s22909_s5 + $0xce0] sm:$0xff]  ;;  %v13233_v11 = vpack.c.bf16 %v3476_v39, %v3472_v50 }
 0x389   :  { %v3499_v50 = vld [vmem:[%s22909_s5 + $0xda0] sm:$0xff] }
 0x38a   :  { %13212 = vmatpush1.bf16.msra.mxu1 %v13211_v19  ;;  %13572 = vmatpush1.bf16.msra.mxu0 %v13571_v21  ;;  %v13583_v19 = vpack.c.bf16 %v3453_v4, %v3449_v2  ;;  %v3055_v21 = vmax.f32 %v19633_v20, %v3031_v16  ;;  %v3466_v20 = vld [vmem:[%s22909_s5 + $0xc98] sm:$0xff]  ;;  %v3480_v2 = vld [vmem:[%s22909_s5 + $0xd08] sm:$0xff] }
 0x38b   :  { %13214 = vmatprep.subr.bf16.mxu1 %v13213_v31  ;;  %13574 = vmatprep.subr.bf16.mxu0 %v13573_v33  ;;  %v3461_v31 = vld [vmem:[%s22909_s5 + $0xc70] sm:$0xff]  ;;  %v3464_v33 = vld [vmem:[%s22909_s5 + $0xc88] sm:$0xff]  ;;  %v13589_v61 = vpack.c.bf16 %v3470_v56, %v3466_v20  ;;  %v3486_v16 = vld [vmem:[%s22909_s5 + $0xd38] sm:$0xff] }
 0x38c   :  { %v13229_v53 = vpack.c.bf16 %v3468_v34, %v3464_v33  ;;  %v3484_v4 = vld [vmem:[%s22909_s5 + $0xd28] sm:$0xff]  ;;  %v3494_v33 = vld [vmem:[%s22909_s5 + $0xd78] sm:$0xff]  ;;  %v3487_v56 = vld [vmem:[%s22909_s5 + $0xd40] sm:$0xff] }
 0x38e   :  { %13216 = vmatpush1.bf16.msra.mxu1 %v13215_v32  ;;  %13576 = vmatpush1.bf16.msra.mxu0 %v13575_v40  ;;  %v13227_v32 = vpack.c.bf16 %v3459_v18, %v3455_v47  ;;  %v13587_v40 = vpack.c.bf16 %v3461_v31, %v3457_v10  ;;  %v13237_v47 = vpack.c.bf16 %v3484_v4, %v3480_v2  ;;  %v3481_v10 = vld [vmem:[%s22909_s5 + $0xd10] sm:$0xff]  ;;  %v3490_v31 = vld [vmem:[%s22909_s5 + $0xd58] sm:$0xff] }
 0x38f   :  { %13218 = vmatprep.subr.bf16.mxu1 %v13217_v52  ;;  %13578 = vmatprep.subr.bf16.mxu0 %v13577_v48  ;;  %v3467_v52 = vld [vmem:[%s22909_s5 + $0xca0] sm:$0xff]  ;;  %v13597_v18 = vpack.c.bf16 %v3486_v16, %v3482_v12  ;;  %v3505_v12 = vld [vmem:[%s22909_s5 + $0xdd0] sm:$0xff] }
 0x390   :  { %v13231_v30 = vpack.c.bf16 %v3467_v52, %v3463_v23  ;;  %v3496_v23 = vld [vmem:[%s22909_s5 + $0xd88] sm:$0xff]  ;;  %v3509_v16 = vld [vmem:[%s22909_s5 + $0xdf0] sm:$0xff] }
 0x391   :  { %v3500_v52 = vld [vmem:[%s22909_s5 + $0xda8] sm:$0xff] }
 0x392   :  { %13220 = vmatpush1.bf16.msra.mxu1 %v13219_v6  ;;  %13580 = vmatpush1.bf16.msra.mxu0 %v13579_v5  ;;  %v3478_v6 = vld [vmem:[%s22909_s5 + $0xcf8] sm:$0xff]  ;;  %v3471_v5 = vld [vmem:[%s22909_s5 + $0xcc0] sm:$0xff]  ;;  %v13245_v39 = vpack.c.bf16 %v3500_v52, %v3496_v23 }
 0x393   :  { %13222 = vmatprep.subr.bf16.mxu1 %v13221_v58  ;;  %13582 = vmatprep.subr.bf16.mxu0 %v13581_v63  ;;  %v13593_v60 = vpack.c.bf16 %v3478_v6, %v3474_v57  ;;  %v3473_v58 = vld [vmem:[%s22909_s5 + $0xcd0] sm:$0xff]  ;;  %v13235_v38 = vpack.c.bf16 %v3475_v24, %v3471_v5  ;;  %v3506_v5 = vld [vmem:[%s22909_s5 + $0xdd8] sm:$0xff] }
 0x394   :  { %v20295_v44 = vpop.permute.xlu0 %14745  ;;  %v3477_v63 = vld [vmem:[%s22909_s5 + $0xcf0] sm:$0xff]  ;;  %v3510_v24 = vld [vmem:[%s22909_s5 + $0xdf8] sm:$0xff] }
 0x395   :  { %v14748_v59 = vunpack.i.h.bf16 %v20295_v44  ;;  %v14747_v51 = vunpack.i.l.bf16 %v20295_v44  ;;  %4020 = vmatmul.mubr.f32.vlgmr.msra.gmra.mrb[8].mxu1 %v3055_v21  ;;  %4446 = vmatmul.mubr.f32.vlgmr.msra.gmra.mrb[10].mxu0 %v3055_v21  ;;  %v13595_v25 = vpack.c.bf16 %v3477_v63, %v3473_v58  ;;  %v3485_v21 = vld [vmem:[%s22909_s5 + $0xd30] sm:$0xff]  ;;  %v3503_v58 = vld [vmem:[%s22909_s5 + $0xdc0] sm:$0xff]  ;;  %v13609_v4 = vpack.c.bf16 %v3510_v24, %v3506_v5 }
 0x396   :  { %13224 = vmatpush1.bf16.msra.mxu1 %v13223_v0  ;;  %13584 = vmatpush1.bf16.msra.mxu0 %v13583_v19  ;;  %v3479_v0 = vld [vmem:[%s22909_s5 + $0xd00] sm:$0xff]  ;;  %v13599_v20 = vpack.c.bf16 %v3485_v21, %v3481_v10  ;;  %v3497_v6 = vld [vmem:[%s22909_s5 + $0xd90] sm:$0xff] }
 0x397   :  { %v2956_v27 = vsel %vm2948_vm0, %v14738_v42, %v14747_v51  ;;  %v2957_v48 = vsel %vm2948_vm0, %v14747_v51, %v14748_v59  ;;  %13226 = vmatprep.subr.bf16.mxu1 %v13225_v29  ;;  %13586 = vmatprep.subr.bf16.mxu0 %v13585_v1  ;;  %v3483_v19 = vld [vmem:[%s22909_s5 + $0xd20] sm:$0xff]  ;;  %v3488_v29 = vld [vmem:[%s22909_s5 + $0xd48] sm:$0xff]  ;;  %v3529_v5 = vld [vmem:[%s22909_s5 + $0xe90] sm:$0xff] }
 0x398   :  { %v20330_v42 = vmax.f32 %v2903_v35, %v2956_v27  ;;  %v20334_v55 = vmax.f32 %v2904_v37, %v2957_v48  ;;  %v13591_v37 = vpack.c.bf16 %v3469_v3, %v3465_v49  ;;  %v3492_v1 = vld [vmem:[%s22909_s5 + $0xd68] sm:$0xff]  ;;  %v13239_v34 = vpack.c.bf16 %v3483_v19, %v3479_v0  ;;  %v3498_v27 = vld [vmem:[%s22909_s5 + $0xd98] sm:$0xff]  ;;  %v3495_v3 = vld [vmem:[%s22909_s5 + $0xd80] sm:$0xff] }
 0x399   :  { %v13241_v51 = vpack.c.bf16 %v3492_v1, %v3488_v29  ;;  %v3502_v48 = vld [vmem:[%s22909_s5 + $0xdb8] sm:$0xff]  ;;  %v3507_v63 = vld [vmem:[%s22909_s5 + $0xde0] sm:$0xff]  ;;  %v3533_v24 = vld [vmem:[%s22909_s5 + $0xeb0] sm:$0xff] }
 0x39a   :  { %v14749_v35 = vpack.i.bf16 %v20334_v55, %v20330_v42  ;;  %13228 = vmatpush1.bf16.msra.mxu1 %v13227_v32  ;;  %13588 = vmatpush1.bf16.msra.mxu0 %v13587_v40  ;;  %v13601_v32 = vpack.c.bf16 %v3494_v33, %v3490_v31  ;;  %v3489_v40 = vld [vmem:[%s22909_s5 + $0xd50] sm:$0xff]  ;;  %v13605_v57 = vpack.c.bf16 %v3502_v48, %v3498_v27  ;;  %v3514_v0 = vld [vmem:[%s22909_s5 + $0xe18] sm:$0xff]  ;;  %v3511_v10 = vld [vmem:[%s22909_s5 + $0xe00] sm:$0xff] }
 0x39b   :  { %13230 = vmatprep.subr.bf16.mxu1 %v13229_v53  ;;  %13590 = vmatprep.subr.bf16.mxu0 %v13589_v61  ;;  %v3493_v53 = vld [vmem:[%s22909_s5 + $0xd70] sm:$0xff]  ;;  %v13243_v61 = vpack.c.bf16 %v3491_v9, %v3487_v56  ;;  %v3518_v19 = vld [vmem:[%s22909_s5 + $0xe38] sm:$0xff]  ;;  %v3515_v21 = vld [vmem:[%s22909_s5 + $0xe20] sm:$0xff] }
 0x39c   :  { %14750 = vrot.lane.b32.xlu1 %v14749_v35, %s14941_s30  ;;  %v13603_v49 = vpack.c.bf16 %v3493_v53, %v3489_v40  ;;  %v3501_v35 = vld [vmem:[%s22909_s5 + $0xdb0] sm:$0xff]  ;;  %v13613_v1 = vpack.c.bf16 %v3518_v19, %v3514_v0  ;;  %v3522_v56 = vld [vmem:[%s22909_s5 + $0xe58] sm:$0xff]  ;;  %v3519_v40 = vld [vmem:[%s22909_s5 + $0xe40] sm:$0xff] }
 0x39d   :  { %v3513_v31 = vld [vmem:[%s22909_s5 + $0xe10] sm:$0xff]  ;;  %v3526_v9 = vld [vmem:[%s22909_s5 + $0xe78] sm:$0xff]  ;;  %v3523_v53 = vld [vmem:[%s22909_s5 + $0xe60] sm:$0xff] }
 0x39e   :  { %13232 = vmatpush1.bf16.msra.mxu1 %v13231_v30  ;;  %13592 = vmatpush1.bf16.msra.mxu0 %v13591_v37  ;;  %v3504_v30 = vld [vmem:[%s22909_s5 + $0xdc8] sm:$0xff]  ;;  %v3517_v33 = vld [vmem:[%s22909_s5 + $0xe30] sm:$0xff]  ;;  %v13617_v52 = vpack.c.bf16 %v3526_v9, %v3522_v56 }
 0x39f   :  { %13234 = vmatprep.subr.bf16.mxu1 %v13233_v11  ;;  %13594 = vmatprep.subr.bf16.mxu0 %v13593_v60  ;;  %v3508_v37 = vld [vmem:[%s22909_s5 + $0xde8] sm:$0xff]  ;;  %v13247_v11 = vpack.c.bf16 %v3499_v50, %v3495_v3  ;;  %v13607_v60 = vpack.c.bf16 %v3501_v35, %v3497_v6  ;;  %v3521_v27 = vld [vmem:[%s22909_s5 + $0xe50] sm:$0xff]  ;;  %v3530_v3 = vld [vmem:[%s22909_s5 + $0xe98] sm:$0xff] }
 0x3a0   :  { %2944 = vrot.lane.b32.xlu1 %v2907_v41, %s14940_s18  ;;  %v13249_v2 = vpack.c.bf16 %v3508_v37, %v3504_v30  ;;  %v3525_v48 = vld [vmem:[%s22909_s5 + $0xe70] sm:$0xff]  ;;  %v3534_v50 = vld [vmem:[%s22909_s5 + $0xeb8] sm:$0xff]  ;;  %v3527_v6 = vld [vmem:[%s22909_s5 + $0xe80] sm:$0xff] }
 0x3a1   :  { %v3531_v35 = vld [vmem:[%s22909_s5 + $0xea0] sm:$0xff]  ;;  %v13621_v37 = vpack.c.bf16 %v3534_v50, %v3530_v3  ;;  %v3537_v0 = vld [vmem:[%s22909_s5 + $0xed0] sm:$0xff] }
 0x3a2   :  { %13236 = vmatpush1.bf16.msra.mxu1 %v13235_v38  ;;  %13596 = vmatpush1.bf16.msra.mxu0 %v13595_v25  ;;  %v3512_v38 = vld [vmem:[%s22909_s5 + $0xe08] sm:$0xff]  ;;  %v3541_v19 = vld [vmem:[%s22909_s5 + $0xef0] sm:$0xff] }
 0x3a3   :  { %13238 = vmatprep.subr.bf16.mxu1 %v13237_v47  ;;  %13598 = vmatprep.subr.bf16.mxu0 %v13597_v18  ;;  %v3516_v25 = vld [vmem:[%s22909_s5 + $0xe28] sm:$0xff]  ;;  %v13251_v47 = vpack.c.bf16 %v3507_v63, %v3503_v58  ;;  %v13611_v18 = vpack.c.bf16 %v3509_v16, %v3505_v12  ;;  %v3538_v58 = vld [vmem:[%s22909_s5 + $0xed8] sm:$0xff]  ;;  %v3535_v12 = vld [vmem:[%s22909_s5 + $0xec0] sm:$0xff] }
 0x3a4   :  { %v13253_v29 = vpack.c.bf16 %v3516_v25, %v3512_v38  ;;  %v3542_v63 = vld [vmem:[%s22909_s5 + $0xef8] sm:$0xff]  ;;  %v3539_v16 = vld [vmem:[%s22909_s5 + $0xee0] sm:$0xff]  ;;  %v3545_v56 = vld [vmem:[%s22909_s5 + $0xf10] sm:$0xff] }
 0x3a5   :  { %v13625_v25 = vpack.c.bf16 %v3542_v63, %v3538_v58  ;;  %v3549_v9 = vld [vmem:[%s22909_s5 + $0xf30] sm:$0xff] }
 0x3a6   :  { %13240 = vmatpush1.bf16.msra.mxu1 %v13239_v34  ;;  %13600 = vmatpush1.bf16.msra.mxu0 %v13599_v20  ;;  %v3520_v34 = vld [vmem:[%s22909_s5 + $0xe48] sm:$0xff]  ;;  %v3553_v3 = vld [vmem:[%s22909_s5 + $0xf50] sm:$0xff] }
 0x3a7   :  { %13242 = vmatprep.subr.bf16.mxu1 %v13241_v51  ;;  %13602 = vmatprep.subr.bf16.mxu0 %v13601_v32  ;;  %v3524_v20 = vld [vmem:[%s22909_s5 + $0xe68] sm:$0xff]  ;;  %v13255_v51 = vpack.c.bf16 %v3515_v21, %v3511_v10  ;;  %v13615_v32 = vpack.c.bf16 %v3517_v33, %v3513_v31  ;;  %v3546_v10 = vld [vmem:[%s22909_s5 + $0xf18] sm:$0xff]  ;;  %v3543_v31 = vld [vmem:[%s22909_s5 + $0xf00] sm:$0xff] }
 0x3a8   :  { %v13257_v23 = vpack.c.bf16 %v3524_v20, %v3520_v34  ;;  %v3550_v21 = vld [vmem:[%s22909_s5 + $0xf38] sm:$0xff]  ;;  %v3547_v33 = vld [vmem:[%s22909_s5 + $0xf20] sm:$0xff]  ;;  %v3557_v50 = vld [vmem:[%s22909_s5 + $0xf70] sm:$0xff] }
 0x3a9   :  { %v13629_v20 = vpack.c.bf16 %v3550_v21, %v3546_v10  ;;  %v3561_v58 = vld [vmem:[%s22909_s5 + $0xf90] sm:$0xff] }
 0x3aa   :  { %13244 = vmatpush1.bf16.msra.mxu1 %v13243_v61  ;;  %13604 = vmatpush1.bf16.msra.mxu0 %v13603_v49  ;;  %v3528_v61 = vld [vmem:[%s22909_s5 + $0xe88] sm:$0xff]  ;;  %v3565_v63 = vld [vmem:[%s22909_s5 + $0xfb0] sm:$0xff] }
 0x3ab   :  { %13246 = vmatprep.subr.bf16.mxu1 %v13245_v39  ;;  %13606 = vmatprep.subr.bf16.mxu0 %v13605_v57  ;;  %v3532_v49 = vld [vmem:[%s22909_s5 + $0xea8] sm:$0xff]  ;;  %v13259_v39 = vpack.c.bf16 %v3523_v53, %v3519_v40  ;;  %v13619_v57 = vpack.c.bf16 %v3525_v48, %v3521_v27  ;;  %v3554_v40 = vld [vmem:[%s22909_s5 + $0xf58] sm:$0xff]  ;;  %v3551_v27 = vld [vmem:[%s22909_s5 + $0xf40] sm:$0xff] }
 0x3ac   :  { %v13261_v30 = vpack.c.bf16 %v3532_v49, %v3528_v61  ;;  %v3558_v53 = vld [vmem:[%s22909_s5 + $0xf78] sm:$0xff]  ;;  %v3555_v48 = vld [vmem:[%s22909_s5 + $0xf60] sm:$0xff]  ;;  %v3569_v10 = vld [vmem:[%s22909_s5 + $0xfd0] sm:$0xff] }
 0x3ad   :  { %v13633_v49 = vpack.c.bf16 %v3558_v53, %v3554_v40  ;;  %v3573_v21 = vld [vmem:[%s22909_s5 + $0xff0] sm:$0xff] }
 0x3ae   :  { %13248 = vmatpush1.bf16.msra.mxu1 %v13247_v11  ;;  %13608 = vmatpush1.bf16.msra.mxu0 %v13607_v60  ;;  %v3536_v11 = vld [vmem:[%s22909_s5 + $0xec8] sm:$0xff]  ;;  %v3581_v44 = vld [vmem:[%s22909_s5 + $0x1030] sm:$0xff] }
 0x3af   :  { %13250 = vmatprep.subr.bf16.mxu1 %v13249_v2  ;;  %13610 = vmatprep.subr.bf16.mxu0 %v13609_v4  ;;  %v3540_v60 = vld [vmem:[%s22909_s5 + $0xee8] sm:$0xff]  ;;  %v13263_v2 = vpack.c.bf16 %v3531_v35, %v3527_v6  ;;  %v13623_v4 = vpack.c.bf16 %v3533_v24, %v3529_v5  ;;  %v3562_v6 = vld [vmem:[%s22909_s5 + $0xf98] sm:$0xff]  ;;  %v3559_v5 = vld [vmem:[%s22909_s5 + $0xf80] sm:$0xff] }
 0x3b0   :  { %v13265_v38 = vpack.c.bf16 %v3540_v60, %v3536_v11  ;;  %v3566_v35 = vld [vmem:[%s22909_s5 + $0xfb8] sm:$0xff]  ;;  %v3563_v24 = vld [vmem:[%s22909_s5 + $0xfa0] sm:$0xff] }
 0x3b1   :  { %v13637_v60 = vpack.c.bf16 %v3566_v35, %v3562_v6 }
 0x3b2   :  { %13252 = vmatpush1.bf16.msra.mxu1 %v13251_v47  ;;  %13612 = vmatpush1.bf16.msra.mxu0 %v13611_v18  ;;  %v3544_v47 = vld [vmem:[%s22909_s5 + $0xf08] sm:$0xff] }
 0x3b3   :  { %13254 = vmatprep.subr.bf16.mxu1 %v13253_v29  ;;  %13614 = vmatprep.subr.bf16.mxu0 %v13613_v1  ;;  %v3548_v18 = vld [vmem:[%s22909_s5 + $0xf28] sm:$0xff]  ;;  %v13267_v29 = vpack.c.bf16 %v3539_v16, %v3535_v12  ;;  %v13627_v1 = vpack.c.bf16 %v3541_v19, %v3537_v0  ;;  %v3570_v12 = vld [vmem:[%s22909_s5 + $0xfd8] sm:$0xff]  ;;  %v3567_v0 = vld [vmem:[%s22909_s5 + $0xfc0] sm:$0xff] }
 0x3b4   :  { %v13269_v34 = vpack.c.bf16 %v3548_v18, %v3544_v47  ;;  %v3574_v16 = vld [vmem:[%s22909_s5 + $0xff8] sm:$0xff]  ;;  %v3571_v19 = vld [vmem:[%s22909_s5 + $0xfe0] sm:$0xff] }
 0x3b5   :  { %v13641_v18 = vpack.c.bf16 %v3574_v16, %v3570_v12 }
 0x3b6   :  { %13256 = vmatpush1.bf16.msra.mxu1 %v13255_v51  ;;  %13616 = vmatpush1.bf16.msra.mxu0 %v13615_v32  ;;  %v3552_v51 = vld [vmem:[%s22909_s5 + $0xf48] sm:$0xff] }
 0x3b7   :  { %13258 = vmatprep.subr.bf16.mxu1 %v13257_v23  ;;  %13618 = vmatprep.subr.bf16.mxu0 %v13617_v52  ;;  %v3556_v32 = vld [vmem:[%s22909_s5 + $0xf68] sm:$0xff]  ;;  %v13271_v23 = vpack.c.bf16 %v3547_v33, %v3543_v31  ;;  %v13631_v52 = vpack.c.bf16 %v3549_v9, %v3545_v56  ;;  %v3578_v31 = vld [vmem:[%s22909_s5 + $0x1018] sm:$0xff] }
 0x3b8   :  { %v13273_v61 = vpack.c.bf16 %v3556_v32, %v3552_v51  ;;  %v3582_v33 = vld [vmem:[%s22909_s5 + $0x1038] sm:$0xff]  ;;  %v2943_v51 = vpop.permute.xlu0 %2942 }
 0x3b9   :  { %v13645_v9 = vpack.c.bf16 %v3582_v33, %v3578_v31  ;;  %v2958_v40 = vsel %vm2948_vm0, %v14748_v59, %v2943_v51  ;;  %v3584_v59 = vld [vmem:[%s22909_s5 + $0x1048] sm:$0xff] }
 0x3ba   :  { %13260 = vmatpush1.bf16.msra.mxu1 %v13259_v39  ;;  %13620 = vmatpush1.bf16.msra.mxu0 %v13619_v57  ;;  %v3560_v39 = vld [vmem:[%s22909_s5 + $0xf88] sm:$0xff] }
 0x3bb   :  { %13262 = vmatprep.subr.bf16.mxu1 %v13261_v30  ;;  %13622 = vmatprep.subr.bf16.mxu0 %v13621_v37  ;;  %v3564_v57 = vld [vmem:[%s22909_s5 + $0xfa8] sm:$0xff]  ;;  %v13275_v30 = vpack.c.bf16 %v3555_v48, %v3551_v27  ;;  %v13635_v37 = vpack.c.bf16 %v3557_v50, %v3553_v3  ;;  %v3579_v27 = vld [vmem:[%s22909_s5 + $0x1020] sm:$0xff]  ;;  %v3577_v48 = vld [vmem:[%s22909_s5 + $0x1010] sm:$0xff] }
 0x3bc   :  { %v13277_v11 = vpack.c.bf16 %v3564_v57, %v3560_v39  ;;  %v3586_v50 = vld [vmem:[%s22909_s5 + $0x1058] sm:$0xff]  ;;  %v20706_v57 = vmax.f32 %v2905_v22, %v2958_v40  ;;  %v3612_v40 = vld [vmem:[%s22909_s5 + $0x1128] sm:$0xff] }
 0x3bd   :  { %v3590_v39 = vld [vmem:[%s22909_s5 + $0x1078] sm:$0xff] }
 0x3be   :  { %13264 = vmatpush1.bf16.msra.mxu1 %v13263_v2  ;;  %13624 = vmatpush1.bf16.msra.mxu0 %v13623_v4  ;;  %v3568_v2 = vld [vmem:[%s22909_s5 + $0xfc8] sm:$0xff] }
 0x3bf   :  { %13266 = vmatprep.subr.bf16.mxu1 %v13265_v38  ;;  %13626 = vmatprep.subr.bf16.mxu0 %v13625_v25  ;;  %v3572_v4 = vld [vmem:[%s22909_s5 + $0xfe8] sm:$0xff]  ;;  %v13279_v38 = vpack.c.bf16 %v3563_v24, %v3559_v5  ;;  %v13639_v25 = vpack.c.bf16 %v3565_v63, %v3561_v58  ;;  %v13647_v24 = vpack.c.bf16 %v3581_v44, %v3577_v48  ;;  %v3589_v63 = vld [vmem:[%s22909_s5 + $0x1070] sm:$0xff] }
 0x3c0   :  { %v13281_v47 = vpack.c.bf16 %v3572_v4, %v3568_v2  ;;  %v13649_v58 = vpack.c.bf16 %v3590_v39, %v3586_v50  ;;  %v3592_v2 = vld [vmem:[%s22909_s5 + $0x1088] sm:$0xff]  ;;  %v3613_v50 = vld [vmem:[%s22909_s5 + $0x1130] sm:$0xff] }
 0x3c1   :  { %v13293_v16 = vpack.c.bf16 %v3596_v43, %v3592_v2  ;;  %v3616_v39 = vld [vmem:[%s22909_s5 + $0x1148] sm:$0xff]  ;;  %v3630_v2 = vld [vmem:[%s22909_s5 + $0x11b8] sm:$0xff] }
 0x3c2   :  { %13268 = vmatpush1.bf16.msra.mxu1 %v13267_v29  ;;  %13628 = vmatpush1.bf16.msra.mxu0 %v13627_v1  ;;  %v3576_v29 = vld [vmem:[%s22909_s5 + $0x1008] sm:$0xff] }
 0x3c3   :  { %13270 = vmatprep.subr.bf16.mxu1 %v13269_v34  ;;  %13630 = vmatprep.subr.bf16.mxu0 %v13629_v20  ;;  %v3580_v1 = vld [vmem:[%s22909_s5 + $0x1028] sm:$0xff]  ;;  %v13283_v34 = vpack.c.bf16 %v3571_v19, %v3567_v0  ;;  %v13643_v20 = vpack.c.bf16 %v3573_v21, %v3569_v10  ;;  %v3593_v0 = vld [vmem:[%s22909_s5 + $0x1090] sm:$0xff]  ;;  %v3602_v21 = vld [vmem:[%s22909_s5 + $0x10d8] sm:$0xff] }
 0x3c4   :  { %v13285_v56 = vpack.c.bf16 %v3580_v1, %v3576_v29  ;;  %v3604_v10 = vld [vmem:[%s22909_s5 + $0x10e8] sm:$0xff]  ;;  %v3606_v29 = vld [vmem:[%s22909_s5 + $0x10f8] sm:$0xff] }
 0x3c5   :  { %v13657_v7 = vpack.c.bf16 %v3606_v29, %v3602_v21  ;;  %v3631_v29 = vld [vmem:[%s22909_s5 + $0x11c0] sm:$0xff] }
 0x3c6   :  { %13272 = vmatpush1.bf16.msra.mxu1 %v13271_v23  ;;  %13632 = vmatpush1.bf16.msra.mxu0 %v13631_v52  ;;  %v3575_v52 = vld [vmem:[%s22909_s5 + $0x1000] sm:$0xff] }
 0x3c7   :  { %13274 = vmatprep.subr.bf16.mxu1 %v13273_v61  ;;  %13634 = vmatprep.subr.bf16.mxu0 %v13633_v49  ;;  %v3588_v61 = vld [vmem:[%s22909_s5 + $0x1068] sm:$0xff] }
 0x3ca   :  { %13276 = vmatpush1.bf16.msra.mxu1 %v13275_v30  ;;  %13636 = vmatpush1.bf16.msra.mxu0 %v13635_v37  ;;  %v13287_v30 = vpack.c.bf16 %v3579_v27, %v3575_v52  ;;  %v3614_v52 = vld [vmem:[%s22909_s5 + $0x1138] sm:$0xff] }
 0x3cb   :  { %13278 = vmatprep.subr.bf16.mxu1 %v13277_v11  ;;  %13638 = vmatprep.subr.bf16.mxu0 %v13637_v60  ;;  %v13289_v11 = vpack.c.bf16 %v3588_v61, %v3584_v59  ;;  %v3583_v60 = vld [vmem:[%s22909_s5 + $0x1040] sm:$0xff] }
 0x3cc   :  { %v13291_v4 = vpack.c.bf16 %v3587_v36, %v3583_v60  ;;  %v3607_v59 = vld [vmem:[%s22909_s5 + $0x1100] sm:$0xff]  ;;  %v3621_v36 = vld [vmem:[%s22909_s5 + $0x1170] sm:$0xff] }
 0x3cd   :  { %v3611_v61 = vld [vmem:[%s22909_s5 + $0x1120] sm:$0xff] }
 0x3ce   :  { %13280 = vmatpush1.bf16.msra.mxu1 %v13279_v38  ;;  %13640 = vmatpush1.bf16.msra.mxu0 %v13639_v25  ;;  %v3591_v38 = vld [vmem:[%s22909_s5 + $0x1080] sm:$0xff] }
 0x3cf   :  { %13282 = vmatprep.subr.bf16.mxu1 %v13281_v47  ;;  %13642 = vmatprep.subr.bf16.mxu0 %v13641_v18  ;;  %v3595_v25 = vld [vmem:[%s22909_s5 + $0x10a0] sm:$0xff]  ;;  %v3597_v47 = vld [vmem:[%s22909_s5 + $0x10b0] sm:$0xff]  ;;  %v3600_v18 = vld [vmem:[%s22909_s5 + $0x10c8] sm:$0xff] }
 0x3d0   :  { %v13295_v31 = vpack.c.bf16 %v3595_v25, %v3591_v38  ;;  %v13655_v33 = vpack.c.bf16 %v3597_v47, %v3593_v0  ;;  %v3629_v38 = vld [vmem:[%s22909_s5 + $0x11b0] sm:$0xff]  ;;  %v3632_v25 = vld [vmem:[%s22909_s5 + $0x11c8] sm:$0xff]  ;;  %v3638_v47 = vld [vmem:[%s22909_s5 + $0x11f8] sm:$0xff] }
 0x3d1   :  { %v3636_v0 = vld [vmem:[%s22909_s5 + $0x11e8] sm:$0xff] }
 0x3d2   :  { %13284 = vmatpush1.bf16.msra.mxu1 %v13283_v34  ;;  %13644 = vmatpush1.bf16.msra.mxu0 %v13643_v20  ;;  %v13297_v34 = vpack.c.bf16 %v3604_v10, %v3600_v18  ;;  %v3599_v20 = vld [vmem:[%s22909_s5 + $0x10c0] sm:$0xff]  ;;  %v13313_v21 = vpack.c.bf16 %v3636_v0, %v3632_v25 }
 0x3d3   :  { %13286 = vmatprep.subr.bf16.mxu1 %v13285_v56  ;;  %13646 = vmatprep.subr.bf16.mxu0 %v13645_v9  ;;  %v3603_v56 = vld [vmem:[%s22909_s5 + $0x10e0] sm:$0xff]  ;;  %v3601_v9 = vld [vmem:[%s22909_s5 + $0x10d0] sm:$0xff] }
 0x3d4   :  { %v13299_v27 = vpack.c.bf16 %v3603_v56, %v3599_v20  ;;  %v3640_v20 = vld [vmem:[%s22909_s5 + $0x1208] sm:$0xff] }
 0x3d5   :  { %v2947_v6 = vpop.permute.xlu0 %2946  ;;  %v3644_v56 = vld [vmem:[%s22909_s5 + $0x1228] sm:$0xff] }
 0x3d6   :  { %v2986_v1 = vmax.f32 %v2908_v28, %v2947_v6  ;;  %v3605_v28 = vld [vmem:[%s22909_s5 + $0x10f0] sm:$0xff] }
 0x3d7   :  { %v13659_v48 = vpack.c.bf16 %v3605_v28, %v3601_v9  ;;  %v3642_v9 = vld [vmem:[%s22909_s5 + $0x1218] sm:$0xff] }
 0x40e   :  { %v20667_v32 = vpop.permute.xlu1 %14750 }
 0x40f   :  { %v14753_v53 = vunpack.i.h.bf16 %v20667_v32  ;;  %v14752_v23 = vunpack.i.l.bf16 %v20667_v32 }
 0x411   :  { %v3033_v49 = vsel %vm3026_vm1, %v14743_v26, %v14752_v23  ;;  %v3034_v3 = vsel %vm3026_vm1, %v14752_v23, %v14753_v53  ;;  %v3610_v23 = vld [vmem:[%s22909_s5 + $0x1118] sm:$0xff] }
 0x412   :  { %v3057_v62 = vmax.f32 %v19674_v54, %v3033_v49  ;;  %v2945_v26 = vpop.permute.xlu1 %2944  ;;  %v3058_v35 = vmax.f32 %v20330_v42, %v3034_v3  ;;  %v3585_v54 = vld [vmem:[%s22909_s5 + $0x1050] sm:$0xff]  ;;  %v13661_v3 = vpack.c.bf16 %v3614_v52, %v3610_v23  ;;  %v3639_v23 = vld [vmem:[%s22909_s5 + $0x1200] sm:$0xff] }
 0x413   :  { %v2959_v37 = vsel %vm2948_vm0, %v2943_v51, %v2945_v26  ;;  %v2960_v5 = vsel %vm2948_vm0, %v2945_v26, %v2947_v6  ;;  %v13651_v12 = vpack.c.bf16 %v3589_v63, %v3585_v54  ;;  %v3608_v51 = vld [vmem:[%s22909_s5 + $0x1108] sm:$0xff]  ;;  %v3609_v49 = vld [vmem:[%s22909_s5 + $0x1110] sm:$0xff]  ;;  %v3622_v26 = vld [vmem:[%s22909_s5 + $0x1178] sm:$0xff] }
 0x414   :  { %v20723_v22 = vmax.f32 %v2906_v45, %v2959_v37  ;;  %v20727_v42 = vmax.f32 %v2907_v41, %v2960_v5  ;;  %4090 = vmatprep.mubr.f32.mxu1 %v3058_v35  ;;  %4516 = vmatprep.mubr.f32.mxu0 %v3058_v35  ;;  %v3594_v45 = vld [vmem:[%s22909_s5 + $0x1098] sm:$0xff]  ;;  %v13301_v44 = vpack.c.bf16 %v3612_v40, %v3608_v51  ;;  %v3620_v6 = vld [vmem:[%s22909_s5 + $0x1168] sm:$0xff]  ;;  %v3615_v5 = vld [vmem:[%s22909_s5 + $0x1140] sm:$0xff] }
 0x415   :  { %4091 = vmatmul.mubr.f32.vlgmr.msra.gmra.mrb[8].mxu1 %v3057_v62  ;;  %4517 = vmatmul.mubr.f32.vlgmr.msra.gmra.mrb[10].mxu0 %v3057_v62  ;;  %v13653_v19 = vpack.c.bf16 %v3598_v8, %v3594_v45  ;;  %v3618_v62 = vld [vmem:[%s22909_s5 + $0x1158] sm:$0xff]  ;;  %v13303_v35 = vpack.c.bf16 %v3611_v61, %v3607_v59  ;;  %v13305_v37 = vpack.c.bf16 %v3620_v6, %v3616_v39  ;;  %v3624_v54 = vld [vmem:[%s22909_s5 + $0x1188] sm:$0xff]  ;;  %v3643_v52 = vld [vmem:[%s22909_s5 + $0x1220] sm:$0xff] }
 0x416   :  { %3022 = vrot.lane.b32.xlu0 %v20727_v42, %s14941_s30  ;;  %v14754_v41 = vpack.i.bf16 %v20723_v22, %v20706_v57  ;;  %13288 = vmatpush1.bf16.msra.mxu1 %v13287_v30  ;;  %v13663_v30 = vpack.c.bf16 %v3613_v50, %v3609_v49  ;;  %v13665_v60 = vpack.c.bf16 %v3622_v26, %v3618_v62  ;;  %v3626_v63 = vld [vmem:[%s22909_s5 + $0x1198] sm:$0xff]  ;;  %v3648_v59 = vld [vmem:[%s22909_s5 + $0x1248] sm:$0xff]  ;;  %v3647_v62 = vld [vmem:[%s22909_s5 + $0x1240] sm:$0xff] }
 0x417   :  { %13648 = vmatpush1.bf16.msra.mxu0 %v13647_v24  ;;  %13290 = vmatprep.subr.bf16.mxu1 %v13289_v11  ;;  %v3619_v24 = vld [vmem:[%s22909_s5 + $0x1160] sm:$0xff]  ;;  %v3617_v11 = vld [vmem:[%s22909_s5 + $0x1150] sm:$0xff]  ;;  %v13317_v40 = vpack.c.bf16 %v3644_v56, %v3640_v20  ;;  %v3652_v61 = vld [vmem:[%s22909_s5 + $0x1268] sm:$0xff]  ;;  %v13319_v50 = vpack.c.bf16 %v3643_v52, %v3639_v23 }
 0x418   :  { %14755 = vrot.lane.b32.xlu1 %v14754_v41, %s14941_s30  ;;  %13650 = vmatprep.subr.bf16.mxu0 %v13649_v58  ;;  %v3628_v58 = vld [vmem:[%s22909_s5 + $0x11a8] sm:$0xff]  ;;  %v13307_v43 = vpack.c.bf16 %v3619_v24, %v3615_v5  ;;  %v13667_v45 = vpack.c.bf16 %v3621_v36, %v3617_v11  ;;  %v3623_v41 = vld [vmem:[%s22909_s5 + $0x1180] sm:$0xff]  ;;  %v3650_v49 = vld [vmem:[%s22909_s5 + $0x1258] sm:$0xff]  ;;  %v13321_v6 = vpack.c.bf16 %v3652_v61, %v3648_v59 }
 0x419   :  { %v13309_v8 = vpack.c.bf16 %v3628_v58, %v3624_v54  ;;  %v3651_v26 = vld [vmem:[%s22909_s5 + $0x1260] sm:$0xff]  ;;  %v3656_v5 = vld [vmem:[%s22909_s5 + $0x1288] sm:$0xff]  ;;  %v3658_v11 = vld [vmem:[%s22909_s5 + $0x1298] sm:$0xff] }
 0x41a   :  { %13292 = vmatpush1.bf16.msra.mxu1 %v13291_v4  ;;  %v3627_v4 = vld [vmem:[%s22909_s5 + $0x11a0] sm:$0xff]  ;;  %v3660_v24 = vld [vmem:[%s22909_s5 + $0x12a8] sm:$0xff]  ;;  %v13323_v36 = vpack.c.bf16 %v3651_v26, %v3647_v62 }
 0x41b   :  { %13652 = vmatpush1.bf16.msra.mxu0 %v13651_v12  ;;  %13294 = vmatprep.subr.bf16.mxu1 %v13293_v16  ;;  %v3625_v12 = vld [vmem:[%s22909_s5 + $0x1190] sm:$0xff]  ;;  %v13669_v16 = vpack.c.bf16 %v3630_v2, %v3626_v63  ;;  %v13311_v18 = vpack.c.bf16 %v3627_v4, %v3623_v41  ;;  %v13325_v58 = vpack.c.bf16 %v3660_v24, %v3656_v5  ;;  %v3655_v63 = vld [vmem:[%s22909_s5 + $0x1280] sm:$0xff]  ;;  %v3664_v41 = vld [vmem:[%s22909_s5 + $0x12c8] sm:$0xff] }
 0x41c   :  { %3024 = vrot.lane.b32.xlu1 %v2986_v1, %s14941_s30  ;;  %13654 = vmatprep.subr.bf16.mxu0 %v13653_v19  ;;  %v3634_v19 = vld [vmem:[%s22909_s5 + $0x11d8] sm:$0xff]  ;;  %v13671_v10 = vpack.c.bf16 %v3629_v38, %v3625_v12  ;;  %v3635_v1 = vld [vmem:[%s22909_s5 + $0x11e0] sm:$0xff]  ;;  %v3668_v4 = vld [vmem:[%s22909_s5 + $0x12e8] sm:$0xff]  ;;  %s22927_s30 = sld [smem:[#allocation7_spill]] }
 0x41d   :  { %v13315_v28 = vpack.c.bf16 %v3635_v1, %v3631_v29  ;;  %v3659_v2 = vld [vmem:[%s22909_s5 + $0x12a0] sm:$0xff]  ;;  %v3666_v12 = vld [vmem:[%s22909_s5 + $0x12d8] sm:$0xff]  ;;  %v13329_v0 = vpack.c.bf16 %v3668_v4, %v3664_v41  ;;  %v3672_v29 = vld [vmem:[%s22909_s5 + $0x1308] sm:$0xff] }
 0x41e   :  { %13296 = vmatpush1.bf16.msra.mxu1 %v13295_v31  ;;  %v3633_v31 = vld [vmem:[%s22909_s5 + $0x11d0] sm:$0xff]  ;;  %v13327_v38 = vpack.c.bf16 %v3659_v2, %v3655_v63  ;;  %v3676_v1 = vld [vmem:[%s22909_s5 + $0x1328] sm:$0xff] }
 0x41f   :  { %13656 = vmatpush1.bf16.msra.mxu0 %v13655_v33  ;;  %13298 = vmatprep.subr.bf16.mxu1 %v13297_v34  ;;  %v13673_v33 = vpack.c.bf16 %v3638_v47, %v3634_v19  ;;  %v3637_v34 = vld [vmem:[%s22909_s5 + $0x11f0] sm:$0xff]  ;;  %v3663_v19 = vld [vmem:[%s22909_s5 + $0x12c0] sm:$0xff]  ;;  %v13333_v56 = vpack.c.bf16 %v3676_v1, %v3672_v29  ;;  %v3680_v23 = vld [vmem:[%s22909_s5 + $0x1348] sm:$0xff] }
 0x420   :  { %13658 = vmatprep.subr.bf16.mxu0 %v13657_v7  ;;  %v3646_v7 = vld [vmem:[%s22909_s5 + $0x1238] sm:$0xff]  ;;  %v13675_v51 = vpack.c.bf16 %v3637_v34, %v3633_v31  ;;  %v3667_v47 = vld [vmem:[%s22909_s5 + $0x12e0] sm:$0xff]  ;;  %v3684_v52 = vld [vmem:[%s22909_s5 + $0x1368] sm:$0xff] }
 0x421   :  { %v3674_v31 = vld [vmem:[%s22909_s5 + $0x1318] sm:$0xff]  ;;  %v13331_v34 = vpack.c.bf16 %v3667_v47, %v3663_v19  ;;  %v13337_v61 = vpack.c.bf16 %v3684_v52, %v3680_v23  ;;  %v3688_v62 = vld [vmem:[%s22909_s5 + $0x1388] sm:$0xff] }
 0x422   :  { %13300 = vmatpush1.bf16.msra.mxu1 %v13299_v27  ;;  %v3641_v27 = vld [vmem:[%s22909_s5 + $0x1210] sm:$0xff]  ;;  %v3692_v26 = vld [vmem:[%s22909_s5 + $0x13a8] sm:$0xff] }
 0x423   :  { %13660 = vmatpush1.bf16.msra.mxu0 %v13659_v48  ;;  %13302 = vmatprep.subr.bf16.mxu1 %v13301_v44  ;;  %v13677_v48 = vpack.c.bf16 %v3646_v7, %v3642_v9  ;;  %v3645_v44 = vld [vmem:[%s22909_s5 + $0x1230] sm:$0xff]  ;;  %v3671_v9 = vld [vmem:[%s22909_s5 + $0x1300] sm:$0xff]  ;;  %v13341_v24 = vpack.c.bf16 %v3692_v26, %v3688_v62  ;;  %v3696_v63 = vld [vmem:[%s22909_s5 + $0x13c8] sm:$0xff] }
 0x424   :  { %13662 = vmatprep.subr.bf16.mxu0 %v13661_v3  ;;  %v3654_v3 = vld [vmem:[%s22909_s5 + $0x1278] sm:$0xff]  ;;  %v13679_v39 = vpack.c.bf16 %v3645_v44, %v3641_v27  ;;  %v3675_v7 = vld [vmem:[%s22909_s5 + $0x1320] sm:$0xff]  ;;  %v3700_v2 = vld [vmem:[%s22909_s5 + $0x13e8] sm:$0xff] }
 0x425   :  { %v3682_v27 = vld [vmem:[%s22909_s5 + $0x1358] sm:$0xff]  ;;  %v13335_v44 = vpack.c.bf16 %v3675_v7, %v3671_v9  ;;  %v13345_v4 = vpack.c.bf16 %v3700_v2, %v3696_v63  ;;  %v3704_v19 = vld [vmem:[%s22909_s5 + $0x1408] sm:$0xff]  ;;  %v3707_v9 = vld [vmem:[%s22909_s5 + $0x1420] sm:$0xff] }
 0x426   :  { %13304 = vmatpush1.bf16.msra.mxu1 %v13303_v35  ;;  %v3649_v35 = vld [vmem:[%s22909_s5 + $0x1250] sm:$0xff]  ;;  %v3708_v47 = vld [vmem:[%s22909_s5 + $0x1428] sm:$0xff] }
 0x427   :  { %13664 = vmatpush1.bf16.msra.mxu0 %v13663_v30  ;;  %13306 = vmatprep.subr.bf16.mxu1 %v13305_v37  ;;  %v13681_v30 = vpack.c.bf16 %v3654_v3, %v3650_v49  ;;  %v3653_v37 = vld [vmem:[%s22909_s5 + $0x1270] sm:$0xff]  ;;  %v3679_v49 = vld [vmem:[%s22909_s5 + $0x1340] sm:$0xff]  ;;  %v13349_v1 = vpack.c.bf16 %v3708_v47, %v3704_v19  ;;  %v3716_v52 = vld [vmem:[%s22909_s5 + $0x1468] sm:$0xff] }
 0x428   :  { %13666 = vmatprep.subr.bf16.mxu0 %v13665_v60  ;;  %v3662_v60 = vld [vmem:[%s22909_s5 + $0x12b8] sm:$0xff]  ;;  %v13683_v54 = vpack.c.bf16 %v3653_v37, %v3649_v35  ;;  %v3683_v3 = vld [vmem:[%s22909_s5 + $0x1360] sm:$0xff]  ;;  %v3705_v7 = vld [vmem:[%s22909_s5 + $0x1410] sm:$0xff] }
 0x429   :  { %v3690_v35 = vld [vmem:[%s22909_s5 + $0x1398] sm:$0xff]  ;;  %v13339_v37 = vpack.c.bf16 %v3683_v3, %v3679_v49  ;;  %v3711_v3 = vld [vmem:[%s22909_s5 + $0x1440] sm:$0xff]  ;;  %v3725_v63 = vld [vmem:[%s22909_s5 + $0x14b0] sm:$0xff] }
 0x42a   :  { %13308 = vmatpush1.bf16.msra.mxu1 %v13307_v43  ;;  %v3657_v43 = vld [vmem:[%s22909_s5 + $0x1290] sm:$0xff]  ;;  %v3728_v2 = vld [vmem:[%s22909_s5 + $0x14c8] sm:$0xff] }
 0x42b   :  { %13668 = vmatpush1.bf16.msra.mxu0 %v13667_v45  ;;  %13310 = vmatprep.subr.bf16.mxu1 %v13309_v8  ;;  %v13685_v45 = vpack.c.bf16 %v3662_v60, %v3658_v11  ;;  %v3661_v8 = vld [vmem:[%s22909_s5 + $0x12b0] sm:$0xff]  ;;  %v3687_v11 = vld [vmem:[%s22909_s5 + $0x1380] sm:$0xff]  ;;  %v3736_v47 = vld [vmem:[%s22909_s5 + $0x1508] sm:$0xff] }
 0x42c   :  { %13670 = vmatprep.subr.bf16.mxu0 %v13669_v16  ;;  %v3670_v16 = vld [vmem:[%s22909_s5 + $0x12f8] sm:$0xff]  ;;  %v13687_v25 = vpack.c.bf16 %v3661_v8, %v3657_v43  ;;  %v3691_v60 = vld [vmem:[%s22909_s5 + $0x13a0] sm:$0xff]  ;;  %v3733_v19 = vld [vmem:[%s22909_s5 + $0x14f0] sm:$0xff] }
 0x42d   :  { %v3698_v43 = vld [vmem:[%s22909_s5 + $0x13d8] sm:$0xff]  ;;  %v13343_v8 = vpack.c.bf16 %v3691_v60, %v3687_v11  ;;  %v3719_v11 = vld [vmem:[%s22909_s5 + $0x1480] sm:$0xff] }
 0x42e   :  { %13312 = vmatpush1.bf16.msra.mxu1 %v13311_v18  ;;  %v3665_v18 = vld [vmem:[%s22909_s5 + $0x12d0] sm:$0xff]  ;;  %v3723_v60 = vld [vmem:[%s22909_s5 + $0x14a0] sm:$0xff] }
 0x42f   :  { %13672 = vmatpush1.bf16.msra.mxu0 %v13671_v10  ;;  %13314 = vmatprep.subr.bf16.mxu1 %v13313_v21  ;;  %v13689_v10 = vpack.c.bf16 %v3670_v16, %v3666_v12  ;;  %v3669_v21 = vld [vmem:[%s22909_s5 + $0x12f0] sm:$0xff]  ;;  %v3695_v12 = vld [vmem:[%s22909_s5 + $0x13c0] sm:$0xff] }
 0x430   :  { %13674 = vmatprep.subr.bf16.mxu0 %v13673_v33  ;;  %v3678_v33 = vld [vmem:[%s22909_s5 + $0x1338] sm:$0xff]  ;;  %v13691_v20 = vpack.c.bf16 %v3669_v21, %v3665_v18  ;;  %v3699_v16 = vld [vmem:[%s22909_s5 + $0x13e0] sm:$0xff] }
 0x431   :  { %v3706_v18 = vld [vmem:[%s22909_s5 + $0x1418] sm:$0xff]  ;;  %v13347_v21 = vpack.c.bf16 %v3699_v16, %v3695_v12  ;;  %v3727_v12 = vld [vmem:[%s22909_s5 + $0x14c0] sm:$0xff] }
 0x432   :  { %13316 = vmatpush1.bf16.msra.mxu1 %v13315_v28  ;;  %v3673_v28 = vld [vmem:[%s22909_s5 + $0x1310] sm:$0xff]  ;;  %v3731_v16 = vld [vmem:[%s22909_s5 + $0x14e0] sm:$0xff] }
 0x433   :  { %13676 = vmatpush1.bf16.msra.mxu0 %v13675_v51  ;;  %13318 = vmatprep.subr.bf16.mxu1 %v13317_v40  ;;  %v13693_v51 = vpack.c.bf16 %v3678_v33, %v3674_v31  ;;  %v3677_v40 = vld [vmem:[%s22909_s5 + $0x1330] sm:$0xff] }
 0x434   :  { %13678 = vmatprep.subr.bf16.mxu0 %v13677_v48  ;;  %v3686_v48 = vld [vmem:[%s22909_s5 + $0x1378] sm:$0xff]  ;;  %v13695_v59 = vpack.c.bf16 %v3677_v40, %v3673_v28  ;;  %v3709_v28 = vld [vmem:[%s22909_s5 + $0x1430] sm:$0xff] }
 0x435   :  { %v13711_v49 = vpack.c.bf16 %v3709_v28, %v3705_v7  ;;  %v3737_v7 = vld [vmem:[%s22909_s5 + $0x1510] sm:$0xff] }
 0x436   :  { %13320 = vmatpush1.bf16.msra.mxu1 %v13319_v50  ;;  %v3681_v50 = vld [vmem:[%s22909_s5 + $0x1350] sm:$0xff] }
 0x437   :  { %13680 = vmatpush1.bf16.msra.mxu0 %v13679_v39  ;;  %13322 = vmatprep.subr.bf16.mxu1 %v13321_v6  ;;  %v13697_v39 = vpack.c.bf16 %v3686_v48, %v3682_v27  ;;  %v3685_v6 = vld [vmem:[%s22909_s5 + $0x1370] sm:$0xff]  ;;  %v3714_v27 = vld [vmem:[%s22909_s5 + $0x1458] sm:$0xff] }
 0x438   :  { %13682 = vmatprep.subr.bf16.mxu0 %v13681_v30  ;;  %v3694_v30 = vld [vmem:[%s22909_s5 + $0x13b8] sm:$0xff]  ;;  %v13699_v5 = vpack.c.bf16 %v3685_v6, %v3681_v50  ;;  %v3715_v50 = vld [vmem:[%s22909_s5 + $0x1460] sm:$0xff]  ;;  %v3720_v6 = vld [vmem:[%s22909_s5 + $0x1488] sm:$0xff] }
 0x439   :  { %v3718_v48 = vld [vmem:[%s22909_s5 + $0x1478] sm:$0xff]  ;;  %v3741_v28 = vld [vmem:[%s22909_s5 + $0x1530] sm:$0xff] }
 0x43a   :  { %13324 = vmatpush1.bf16.msra.mxu1 %v13323_v36  ;;  %v3689_v36 = vld [vmem:[%s22909_s5 + $0x1390] sm:$0xff] }
 0x43b   :  { %13684 = vmatpush1.bf16.msra.mxu0 %v13683_v54  ;;  %13326 = vmatprep.subr.bf16.mxu1 %v13325_v58  ;;  %v13701_v54 = vpack.c.bf16 %v3694_v30, %v3690_v35  ;;  %v3693_v58 = vld [vmem:[%s22909_s5 + $0x13b0] sm:$0xff]  ;;  %v13713_v35 = vpack.c.bf16 %v3718_v48, %v3714_v27  ;;  %v3724_v30 = vld [vmem:[%s22909_s5 + $0x14a8] sm:$0xff]  ;;  %v13727_v48 = vpack.c.bf16 %v3741_v28, %v3737_v7  ;;  %v3775_v28 = vld [vmem:[%s22909_s5 + $0x1640] sm:$0xff] }
 0x43c   :  { %13686 = vmatprep.subr.bf16.mxu0 %v13685_v45  ;;  %v3702_v45 = vld [vmem:[%s22909_s5 + $0x13f8] sm:$0xff]  ;;  %v13703_v41 = vpack.c.bf16 %v3693_v58, %v3689_v36  ;;  %v13357_v36 = vpack.c.bf16 %v3724_v30, %v3720_v6  ;;  %v3721_v58 = vld [vmem:[%s22909_s5 + $0x1490] sm:$0xff] }
 0x43e   :  { %13328 = vmatpush1.bf16.msra.mxu1 %v13327_v38  ;;  %v3697_v38 = vld [vmem:[%s22909_s5 + $0x13d0] sm:$0xff] }
 0x43f   :  { %13688 = vmatpush1.bf16.msra.mxu0 %v13687_v25  ;;  %13330 = vmatprep.subr.bf16.mxu1 %v13329_v0  ;;  %v13705_v25 = vpack.c.bf16 %v3702_v45, %v3698_v43  ;;  %v3701_v0 = vld [vmem:[%s22909_s5 + $0x13f0] sm:$0xff]  ;;  %v3732_v43 = vld [vmem:[%s22909_s5 + $0x14e8] sm:$0xff]  ;;  %v3730_v45 = vld [vmem:[%s22909_s5 + $0x14d8] sm:$0xff] }
 0x440   :  { %13690 = vmatprep.subr.bf16.mxu0 %v13689_v10  ;;  %v3710_v10 = vld [vmem:[%s22909_s5 + $0x1438] sm:$0xff]  ;;  %v13707_v29 = vpack.c.bf16 %v3701_v0, %v3697_v38  ;;  %v13361_v38 = vpack.c.bf16 %v3732_v43, %v3728_v2  ;;  %v3729_v0 = vld [vmem:[%s22909_s5 + $0x14d0] sm:$0xff]  ;;  %v3763_v2 = vld [vmem:[%s22909_s5 + $0x15e0] sm:$0xff] }
 0x441   :  { %v13709_v31 = vpack.c.bf16 %v3710_v10, %v3706_v18  ;;  %v3740_v18 = vld [vmem:[%s22909_s5 + $0x1528] sm:$0xff]  ;;  %v3738_v10 = vld [vmem:[%s22909_s5 + $0x1518] sm:$0xff] }
 0x442   :  { %13332 = vmatpush1.bf16.msra.mxu1 %v13331_v34  ;;  %v3703_v34 = vld [vmem:[%s22909_s5 + $0x1400] sm:$0xff] }
 0x443   :  { %13692 = vmatpush1.bf16.msra.mxu0 %v13691_v20  ;;  %13334 = vmatprep.subr.bf16.mxu1 %v13333_v56 }
 0x444   :  { %13694 = vmatprep.subr.bf16.mxu0 %v13693_v51  ;;  %v3712_v51 = vld [vmem:[%s22909_s5 + $0x1448] sm:$0xff] }
 0x445   :  { %v13353_v26 = vpack.c.bf16 %v3716_v52, %v3712_v51  ;;  %v3744_v51 = vld [vmem:[%s22909_s5 + $0x1548] sm:$0xff]  ;;  %v3750_v52 = vld [vmem:[%s22909_s5 + $0x1578] sm:$0xff] }
 0x446   :  { %13336 = vmatpush1.bf16.msra.mxu1 %v13335_v44 }
 0x447   :  { %13696 = vmatpush1.bf16.msra.mxu0 %v13695_v59  ;;  %13338 = vmatprep.subr.bf16.mxu1 %v13337_v61  ;;  %v13351_v61 = vpack.c.bf16 %v3707_v9, %v3703_v34  ;;  %v3739_v34 = vld [vmem:[%s22909_s5 + $0x1520] sm:$0xff] }
 0x448   :  { %13698 = vmatprep.subr.bf16.mxu0 %v13697_v39 }
 0x44a   :  { %13340 = vmatpush1.bf16.msra.mxu1 %v13339_v37  ;;  %v3722_v37 = vld [vmem:[%s22909_s5 + $0x1498] sm:$0xff] }
 0x44b   :  { %13700 = vmatpush1.bf16.msra.mxu0 %v13699_v5  ;;  %13342 = vmatprep.subr.bf16.mxu1 %v13341_v24  ;;  %v3726_v5 = vld [vmem:[%s22909_s5 + $0x14b8] sm:$0xff] }
 0x44c   :  { %13702 = vmatprep.subr.bf16.mxu0 %v13701_v54  ;;  %v13717_v54 = vpack.c.bf16 %v3726_v5, %v3722_v37  ;;  %v3753_v5 = vld [vmem:[%s22909_s5 + $0x1590] sm:$0xff] }
 0x44e   :  { %13344 = vmatpush1.bf16.msra.mxu1 %v13343_v8  ;;  %v3734_v8 = vld [vmem:[%s22909_s5 + $0x14f8] sm:$0xff] }
 0x44f   :  { %13704 = vmatpush1.bf16.msra.mxu0 %v13703_v41  ;;  %13346 = vmatprep.subr.bf16.mxu1 %v13345_v4  ;;  %v13359_v41 = vpack.c.bf16 %v3723_v60, %v3719_v11  ;;  %v13719_v4 = vpack.c.bf16 %v3725_v63, %v3721_v58  ;;  %v3764_v11 = vld [vmem:[%s22909_s5 + $0x15e8] sm:$0xff]  ;;  %v3762_v60 = vld [vmem:[%s22909_s5 + $0x15d8] sm:$0xff]  ;;  %v3759_v63 = vld [vmem:[%s22909_s5 + $0x15c0] sm:$0xff] }
 0x450   :  { %13706 = vmatprep.subr.bf16.mxu0 %v13705_v25  ;;  %v13721_v25 = vpack.c.bf16 %v3734_v8, %v3730_v45  ;;  %v3761_v8 = vld [vmem:[%s22909_s5 + $0x15d0] sm:$0xff] }
 0x452   :  { %13348 = vmatpush1.bf16.msra.mxu1 %v13347_v21  ;;  %v3742_v21 = vld [vmem:[%s22909_s5 + $0x1538] sm:$0xff] }
 0x453   :  { %13708 = vmatpush1.bf16.msra.mxu0 %v13707_v29  ;;  %13350 = vmatprep.subr.bf16.mxu1 %v13349_v1  ;;  %v13363_v29 = vpack.c.bf16 %v3731_v16, %v3727_v12  ;;  %v13723_v1 = vpack.c.bf16 %v3733_v19, %v3729_v0  ;;  %v13725_v9 = vpack.c.bf16 %v3742_v21, %v3738_v10  ;;  %v3772_v12 = vld [vmem:[%s22909_s5 + $0x1628] sm:$0xff]  ;;  %v3770_v16 = vld [vmem:[%s22909_s5 + $0x1618] sm:$0xff]  ;;  %v3767_v19 = vld [vmem:[%s22909_s5 + $0x1600] sm:$0xff] }
 0x454   :  { %13710 = vmatprep.subr.bf16.mxu0 %v13709_v31  ;;  %v3735_v31 = vld [vmem:[%s22909_s5 + $0x1500] sm:$0xff]  ;;  %v3769_v21 = vld [vmem:[%s22909_s5 + $0x1610] sm:$0xff] }
 0x455   :  { %v13367_v27 = vpack.c.bf16 %v3739_v34, %v3735_v31  ;;  %v3780_v31 = vld [vmem:[%s22909_s5 + $0x1668] sm:$0xff]  ;;  %v3778_v34 = vld [vmem:[%s22909_s5 + $0x1658] sm:$0xff] }
 0x488   :  { %v21122_v44 = vpop.permute.xlu0 %3022 }
 0x48a   :  { %v21088_v33 = vpop.permute.xlu1 %14755 }
 0x48b   :  { %v14758_v20 = vunpack.i.h.bf16 %v21088_v33  ;;  %v14757_v56 = vunpack.i.l.bf16 %v21088_v33  ;;  %v3787_v33 = vld [vmem:[%s22910_s6] sm:$0xf] }
 0x48d   :  { %v3035_v40 = vsel %vm3026_vm1, %v14753_v53, %v14757_v56  ;;  %v3036_v23 = vsel %vm3026_vm1, %v14757_v56, %v14758_v20  ;;  %v13365_v56 = vpack.c.bf16 %v3740_v18, %v3736_v47  ;;  %v3771_v47 = vld [vmem:[%s22909_s5 + $0x1620] sm:$0xff] }
 0x48e   :  { %v3059_v32 = vmax.f32 %v20334_v55, %v3035_v40  ;;  %v3025_v53 = vpop.permute.xlu1 %3024  ;;  %v3060_v59 = vmax.f32 %v20706_v57, %v3036_v23  ;;  %v3713_v55 = vld [vmem:[%s22909_s5 + $0x1450] sm:$0xff]  ;;  %v3748_v40 = vld [vmem:[%s22909_s5 + $0x1568] sm:$0xff]  ;;  %v3746_v23 = vld [vmem:[%s22909_s5 + $0x1558] sm:$0xff] }
 0x48f   :  { %v3038_v39 = vsel %vm3026_vm1, %v21122_v44, %v3025_v53  ;;  %v3717_v57 = vld [vmem:[%s22909_s5 + $0x1470] sm:$0xff]  ;;  %v3747_v53 = vld [vmem:[%s22909_s5 + $0x1560] sm:$0xff] }
 0x490   :  { %v3062_v62 = vmax.f32 %v20727_v42, %v3038_v39  ;;  %4161 = vmatprep.mubr.f32.mxu1 %v3060_v59  ;;  %4587 = vmatprep.mubr.f32.mxu0 %v3060_v59  ;;  %v13355_v42 = vpack.c.bf16 %v3715_v50, %v3711_v3  ;;  %v13715_v24 = vpack.c.bf16 %v3717_v57, %v3713_v55  ;;  %v3749_v3 = vld [vmem:[%s22909_s5 + $0x1570] sm:$0xff]  ;;  %v3752_v50 = vld [vmem:[%s22909_s5 + $0x1588] sm:$0xff]  ;;  %v3754_v55 = vld [vmem:[%s22909_s5 + $0x1598] sm:$0xff] }
 0x491   :  { %4162 = vmatmul.mubr.f32.vlgmr.msra.gmra.mrb[8].mxu1 %v3059_v32  ;;  %4588 = vmatmul.mubr.f32.vlgmr.msra.gmra.mrb[10].mxu0 %v3059_v32  ;;  %v3743_v32 = vld [vmem:[%s22909_s5 + $0x1540] sm:$0xff]  ;;  %v13369_v59 = vpack.c.bf16 %v3748_v40, %v3744_v51  ;;  %v3756_v39 = vld [vmem:[%s22909_s5 + $0x15a8] sm:$0xff]  ;;  %v3758_v57 = vld [vmem:[%s22909_s5 + $0x15b8] sm:$0xff] }
 0x492   :  { %13352 = vmatpush1.bf16.msra.mxu1 %v13351_v61  ;;  %13712 = vmatpush1.bf16.msra.mxu0 %v13711_v49  ;;  %v13729_v61 = vpack.c.bf16 %v3750_v52, %v3746_v23  ;;  %v3745_v49 = vld [vmem:[%s22909_s5 + $0x1550] sm:$0xff]  ;;  %v13371_v6 = vpack.c.bf16 %v3747_v53, %v3743_v32  ;;  %v13373_v30 = vpack.c.bf16 %v3756_v39, %v3752_v50  ;;  %v3779_v23 = vld [vmem:[%s22909_s5 + $0x1660] sm:$0xff]  ;;  %v3784_v53 = vld [vmem:[%s22909_s5 + $0x1688] sm:$0xff] }
 0x493   :  { %9393 = vmatprep.mubr.msk.f32.mxu1 %vm3809_vm2, %v3062_v62  ;;  %9394 = vmatprep.mubr.msk.f32.mxu0 %vm3809_vm2, %v3062_v62  ;;  %v13731_v62 = vpack.c.bf16 %v3749_v3, %v3745_v49  ;;  %v13733_v37 = vpack.c.bf16 %v3758_v57, %v3754_v55  ;;  %v3777_v52 = vld [vmem:[%s22909_s5 + $0x1650] sm:$0xff]  ;;  %v3783_v49 = vld [vmem:[%s22909_s5 + $0x1680] sm:$0xff]  ;;  %v3796_v39 = vrot.slane %v3787_v33, %v17550_v15 }
 0x494   :  { %13354 = vmatprep.subr.bf16.mxu1 %v13353_v26  ;;  %13714 = vmatprep.subr.bf16.mxu0 %v13713_v35  ;;  %v3751_v26 = vld [vmem:[%s22909_s5 + $0x1580] sm:$0xff]  ;;  %v3785_v3 = vld [vmem:[%s22909_s5 + $0x1690] sm:$0xff] }
 0x495   :  { %v3755_v35 = vld [vmem:[%s22909_s5 + $0x15a0] sm:$0xff] }
 0x496   :  { %13356 = vmatpush1.bf16.msra.mxu1 %v13355_v42  ;;  %13716 = vmatpush1.bf16.msra.mxu0 %v13715_v24  ;;  %v3757_v42 = vld [vmem:[%s22909_s5 + $0x15b0] sm:$0xff]  ;;  %v3760_v24 = vld [vmem:[%s22909_s5 + $0x15c8] sm:$0xff]  ;;  %v4709_v15 = vld [vmem:[%s22911_s7] sm:$0xff] }
 0x497   :  { %13358 = vmatprep.subr.bf16.mxu1 %v13357_v36  ;;  %13718 = vmatprep.subr.bf16.mxu0 %v13717_v54  ;;  %v3766_v36 = vld [vmem:[%s22909_s5 + $0x15f8] sm:$0xff]  ;;  %v13375_v54 = vpack.c.bf16 %v3755_v35, %v3751_v26  ;;  %v13735_v58 = vpack.c.bf16 %v3757_v42, %v3753_v5  ;;  %v13377_v43 = vpack.c.bf16 %v3764_v11, %v3760_v24  ;;  %v4727_v24 = vld [vmem:[%s22911_s7 + $0x90] sm:$0xff] }
 0x498   :  { %v13737_v45 = vpack.c.bf16 %v3766_v36, %v3762_v60  ;;  %v4728_v11 = vld [vmem:[%s22911_s7 + $0x98] sm:$0xff]  ;;  %v14942_v60 = vmov 0.0|0.0  }
 0x49a   :  { %13360 = vmatpush1.bf16.msra.mxu1 %v13359_v41  ;;  %13720 = vmatpush1.bf16.msra.mxu0 %v13719_v4  ;;  %v3765_v41 = vld [vmem:[%s22909_s5 + $0x15f0] sm:$0xff]  ;;  %v3768_v4 = vld [vmem:[%s22909_s5 + $0x1608] sm:$0xff] }
 0x49b   :  { %13362 = vmatprep.subr.bf16.mxu1 %v13361_v38  ;;  %13722 = vmatprep.subr.bf16.mxu0 %v13721_v25  ;;  %v3774_v38 = vld [vmem:[%s22909_s5 + $0x1638] sm:$0xff]  ;;  %v13379_v25 = vpack.c.bf16 %v3763_v2, %v3759_v63  ;;  %v13739_v0 = vpack.c.bf16 %v3765_v41, %v3761_v8  ;;  %v13381_v18 = vpack.c.bf16 %v3772_v12, %v3768_v4  ;;  %v4711_v63 = vld [vmem:[%s22911_s7 + $0x10] sm:$0xff] }
 0x49c   :  { %v13741_v10 = vpack.c.bf16 %v3774_v38, %v3770_v16  ;;  %v4712_v2 = vld [vmem:[%s22911_s7 + $0x18] sm:$0xff]  ;;  %v4713_v16 = vld [vmem:[%s22911_s7 + $0x20] sm:$0xff]  ;;  %v4714_v38 = vld [vmem:[%s22911_s7 + $0x28] sm:$0xff] }
 0x49d   :  { %v13755_v4 = vpack.c.bf16 %v4712_v2, %v4711_v63  ;;  %v14946_v63 = vmov 0  }
 0x49e   :  { %13364 = vmatpush1.bf16.msra.mxu1 %v13363_v29  ;;  %13724 = vmatpush1.bf16.msra.mxu0 %v13723_v1  ;;  %v3773_v29 = vld [vmem:[%s22909_s5 + $0x1630] sm:$0xff]  ;;  %v3776_v1 = vld [vmem:[%s22909_s5 + $0x1648] sm:$0xff] }
 0x49f   :  { %13366 = vmatprep.subr.bf16.mxu1 %v13365_v56  ;;  %13726 = vmatprep.subr.bf16.mxu0 %v13725_v9  ;;  %v3782_v56 = vld [vmem:[%s22909_s5 + $0x1678] sm:$0xff]  ;;  %v13383_v9 = vpack.c.bf16 %v3771_v47, %v3767_v19  ;;  %v13743_v7 = vpack.c.bf16 %v3773_v29, %v3769_v21  ;;  %v13385_v51 = vpack.c.bf16 %v3780_v31, %v3776_v1  ;;  %v4741_v19 = vld [vmem:[%s22911_s7 + $0x100] sm:$0xff]  ;;  %v4742_v47 = vld [vmem:[%s22911_s7 + $0x108] sm:$0xff] }
 0x4a0   :  { %v13745_v40 = vpack.c.bf16 %v3782_v56, %v3778_v34  ;;  %v13782_v21 = vpack.c.bf16 %v4742_v47, %v4741_v19  ;;  %v4743_v29 = vld [vmem:[%s22911_s7 + $0x110] sm:$0xff]  ;;  %v4716_v34 = vld [vmem:[%s22911_s7 + $0x38] sm:$0xff]  ;;  %14769 = vset.pattern.permute.xlu1 %v14946_v63  ;;  %14770 = vset.pattern.permute.xlu0 %v14946_v63 }
 0x4a1   :  { %v4715_v31 = vld [vmem:[%s22911_s7 + $0x30] sm:$0xff]  ;;  %v4744_v56 = vld [vmem:[%s22911_s7 + $0x118] sm:$0xff] }
 0x4a2   :  { %13368 = vmatpush1.bf16.msra.mxu1 %v13367_v27  ;;  %13728 = vmatpush1.bf16.msra.mxu0 %v13727_v48  ;;  %v3781_v27 = vld [vmem:[%s22909_s5 + $0x1670] sm:$0xff]  ;;  %v13387_v48 = vpack.c.bf16 %v3779_v23, %v3775_v28  ;;  %v13785_v28 = vpack.c.bf16 %v4744_v56, %v4743_v29  ;;  %v13763_v23 = vpack.c.bf16 %v4716_v34, %v4715_v31 }
 0x4a3   :  { %13370 = vmatprep.subr.bf16.mxu1 %v13369_v59  ;;  %13730 = vmatprep.subr.bf16.mxu0 %v13729_v61  ;;  %v13747_v32 = vpack.c.bf16 %v3781_v27, %v3777_v52  ;;  %v3786_v59 = vld [vmem:[%s22909_s5 + $0x1698] sm:$0xff]  ;;  %v3037_v61 = vsel %vm3026_vm1, %v14758_v20, %v21122_v44  ;;  %v3792_v20 = vrot.slane %v3787_v33, %v17544_v13  ;;  %v4725_v13 = vld [vmem:[%s22911_s7 + $0x80] sm:$0xff] }
 0x4a4   :  { %v3061_v50 = vmax.f32 %v20723_v22, %v3037_v61  ;;  %v3800_v44 = vrot.slane %v3787_v33, %v17547_v14  ;;  %v4726_v14 = vld [vmem:[%s22911_s7 + $0x88] sm:$0xff]  ;;  %v4717_v27 = vld [vmem:[%s22911_s7 + $0x40] sm:$0xff] }
 0x4a5   :  { %v13749_v42 = vpack.c.bf16 %v4726_v14, %v4725_v13  ;;  %v4723_v14 = vld [vmem:[%s22911_s7 + $0x70] sm:$0xff] }
 0x4a6   :  { %13372 = vmatpush1.bf16.msra.mxu1 %v13371_v6  ;;  %13732 = vmatpush1.bf16.msra.mxu0 %v13731_v62 }
 0x4a7   :  { %13374 = vmatprep.subr.bf16.mxu1 %v13373_v30  ;;  %13734 = vmatprep.subr.bf16.mxu0 %v13733_v37  ;;  %v3804_v30 = vrot.slane %v3787_v33, %v17553_v17  ;;  %v4710_v17 = vld [vmem:[%s22911_s7 + $0x8] sm:$0xff]  ;;  %v4737_v33 = vld [vmem:[%s22911_s7 + $0xe0] sm:$0xff] }
 0x4aa   :  { %13376 = vmatpush1.bf16.msra.mxu1 %v13375_v54  ;;  %13736 = vmatpush1.bf16.msra.mxu0 %v13735_v58  ;;  %v13751_v54 = vpack.c.bf16 %v4710_v17, %v4709_v15  ;;  %v13753_v58 = vpack.c.bf16 %v4728_v11, %v4727_v24  ;;  %v4724_v15 = vld [vmem:[%s22911_s7 + $0x78] sm:$0xff] }
 0x4ab   :  { %13378 = vmatprep.subr.bf16.mxu1 %v13377_v43  ;;  %13738 = vmatprep.subr.bf16.mxu0 %v13737_v45  ;;  %v4729_v43 = vld [vmem:[%s22911_s7 + $0xa0] sm:$0xff]  ;;  %v4730_v45 = vld [vmem:[%s22911_s7 + $0xa8] sm:$0xff]  ;;  %v13779_v17 = vpack.c.bf16 %v4724_v15, %v4723_v14 }
 0x4ac   :  { %v13757_v12 = vpack.c.bf16 %v4730_v45, %v4729_v43 }
 0x4ae   :  { %13380 = vmatpush1.bf16.msra.mxu1 %v13379_v25  ;;  %13740 = vmatpush1.bf16.msra.mxu0 %v13739_v0  ;;  %v4731_v25 = vld [vmem:[%s22911_s7 + $0xb0] sm:$0xff]  ;;  %v4732_v0 = vld [vmem:[%s22911_s7 + $0xb8] sm:$0xff] }
 0x4af   :  { %13382 = vmatprep.subr.bf16.mxu1 %v13381_v18  ;;  %13742 = vmatprep.subr.bf16.mxu0 %v13741_v10  ;;  %v13759_v10 = vpack.c.bf16 %v4714_v38, %v4713_v16  ;;  %v13761_v1 = vpack.c.bf16 %v4732_v0, %v4731_v25  ;;  %v4890_v38 = vld [vmem:[%s22927_s30] sm:$0xff] }
 0x4b2   :  { %13384 = vmatpush1.bf16.msra.mxu1 %v13383_v9  ;;  %13744 = vmatpush1.bf16.msra.mxu0 %v13743_v7  ;;  %v4733_v9 = vld [vmem:[%s22911_s7 + $0xc0] sm:$0xff]  ;;  %v4734_v7 = vld [vmem:[%s22911_s7 + $0xc8] sm:$0xff] }
 0x4b3   :  { %13386 = vmatprep.subr.bf16.mxu1 %v13385_v51  ;;  %13746 = vmatprep.subr.bf16.mxu0 %v13745_v40  ;;  %v4745_v51 = vld [vmem:[%s22911_s7 + $0x120] sm:$0xff]  ;;  %v4746_v40 = vld [vmem:[%s22911_s7 + $0x128] sm:$0xff]  ;;  %v13765_v52 = vpack.c.bf16 %v4734_v7, %v4733_v9 }
 0x4b4   :  { %v4906_v9 = vld [vmem:[%s22912_s8] sm:$0xff]  ;;  %v4907_v7 = vld [vmem:[%s22912_s8 + $0x8] sm:$0xff] }
 0x4b6   :  { %13388 = vmatpush1.bf16.msra.mxu1 %v13387_v48  ;;  %13748 = vmatpush1.bf16.msra.mxu0 %v13747_v32  ;;  %v4718_v48 = vld [vmem:[%s22911_s7 + $0x48] sm:$0xff]  ;;  %v4735_v32 = vld [vmem:[%s22911_s7 + $0xd0] sm:$0xff] }
 0x4b7   :  { %4208 = vmatprep.subr.mxu1 %v3784_v53  ;;  %4634 = vmatprep.subr.mxu0 %v3786_v59  ;;  %v4736_v53 = vld [vmem:[%s22911_s7 + $0xd8] sm:$0xff]  ;;  %v13788_v59 = vpack.c.bf16 %v4746_v40, %v4745_v51  ;;  %v13767_v61 = vpack.c.bf16 %v4718_v48, %v4717_v27  ;;  %v5149_v51 = vld [vmem:[%s22913_s9 + $0x20] sm:$0xff]  ;;  %v5150_v40 = vld [vmem:[%s22913_s9 + $0x28] sm:$0xff] }
 0x4ba   :  { %4209 = vmatpush1.msra.mxu1 %v3783_v49  ;;  %4635 = vmatpush1.msra.mxu0 %v3785_v3  ;;  %v13769_v49 = vpack.c.bf16 %v4736_v53, %v4735_v32  ;;  %v4719_v3 = vld [vmem:[%s22911_s7 + $0x50] sm:$0xff] }
 0x4bb   :  { %4233 = vmatmul.mubr.f32.vlgmr.msra.gmra.mrb[8].mxu1 %v3061_v50  ;;  %4659 = vmatmul.mubr.f32.vlgmr.msra.gmra.mrb[10].mxu0 %v3061_v50  ;;  %v4720_v50 = vld [vmem:[%s22911_s7 + $0x58] sm:$0xff]  ;;  %v9400_v32 = vld [vmem:[%s22912_s8 + $0x10] sm:$0xff] }
 0x4bc   :  { %13781 = vmatprep.subr.bf16.mxu0 %v14942_v60  ;;  %13750 = vmatprep.subr.bf16.mxu1 %v13749_v42  ;;  %v14945_v42 = vmov 0.0  }
 0x4bd   :  { %13752 = vmatpush3.bf16.msra.mxu1 %v13751_v54  ;;  %13783 = vmatpush3.bf16.msra.mxu0 %v13782_v21  ;;  %v5148_v21 = vld [vmem:[%s22913_s9 + $0x18] sm:$0xff] }
 0x4be   :  { %13754 = vmatprep.subr.bf16.mxu1 %v13753_v58  ;;  %13784 = vmatprep.subr.bf16.mxu0 %v14942_v60 }
 0x4bf   :  { %10519 = vmatprep.mubr.msk.f32.mxu0 %vm14944_vm3, %v14945_v42 }
 0x4c1   :  { %13756 = vmatpush3.bf16.msra.mxu1 %v13755_v4  ;;  %13786 = vmatpush3.bf16.msra.mxu0 %v13785_v28  ;;  %v13790_v28 = vpack.c.bf16 %v4907_v7, %v4906_v9 }
 0x4c2   :  { %13758 = vmatprep.subr.bf16.mxu1 %v13757_v12  ;;  %13787 = vmatprep.subr.bf16.mxu0 %v14942_v60 }
 0x4c5   :  { %13760 = vmatpush3.bf16.msra.mxu1 %v13759_v10  ;;  %13789 = vmatpush3.bf16.msra.mxu0 %v13788_v59  ;;  %v5147_v10 = vld [vmem:[%s22913_s9 + $0x10] sm:$0xff] }
 0x4c6   :  { %13762 = vmatprep.subr.bf16.mxu1 %v13761_v1  ;;  %13802 = vmatprep.subr.bf16.mxu0 %v14942_v60  ;;  %v21525_v56 = vpack.c.bf16 %v5148_v21, %v5147_v10 }
 0x4c9   :  { %13764 = vmatpush3.bf16.msra.mxu1 %v13763_v23  ;;  %v21545_v23 = vand.u32 127, %v1310_v46  ;;  %v9401_v46 = vld [vmem:[%s22912_s8 + $0x18] sm:$0xff] }
 0x4ca   :  { %13766 = vmatprep.subr.bf16.mxu1 %v13765_v52  ;;  %v21547_v52 = vpack.c.bf16 %v5150_v40, %v5149_v51 }
 0x4cd   :  { %13768 = vmatpush3.bf16.msra.mxu1 %v13767_v61  ;;  %v13794_v61 = vpack.c.bf16 %v9401_v46, %v9400_v32 }
 0x4ce   :  { %13770 = vmatprep.subr.bf16.mxu1 %v13769_v49  ;;  %v5151_v49 = vld [vmem:[%s22913_s9 + $0x30] sm:$0xff] }
 0x58e   :  { %v4234_v55 = vpop.f32.mrb[8].mxu1  ;;  %v4660_v57 = vpop.f32.mrb[10].mxu0 }
 0x58f   :  { %v21356_v6 = vadd.f32 %v4234_v55, %v3792_v20  ;;  %v21358_v62 = vadd.f32 %v4660_v57, %v3800_v44  ;;  %v4236_v22 = vpop.f32.mrb[9].mxu1  ;;  %v4662_v26 = vpop.f32.mrb[11].mxu0  ;;  %v4738_v20 = vld [vmem:[%s22911_s7 + $0xe8] sm:$0xff]  ;;  %v13771_v44 = vpack.c.bf16 %v4720_v50, %v4719_v3  ;;  %v4721_v55 = vld [vmem:[%s22911_s7 + $0x60] sm:$0xff]  ;;  %v5152_v3 = vld [vmem:[%s22913_s9 + $0x38] sm:$0xff] }
 0x590   :  { %v21360_v35 = vadd.f32 %v4236_v22, %v3796_v39  ;;  %v14653_v41 = vadd.f32 %v4662_v26, %v3804_v30  ;;  %v13773_v39 = vpack.c.bf16 %v4738_v20, %v4737_v33  ;;  %v4722_v57 = vld [vmem:[%s22911_s7 + $0x68] sm:$0xff]  ;;  %v4739_v26 = vld [vmem:[%s22911_s7 + $0xf0] sm:$0xff]  ;;  %v4740_v30 = vld [vmem:[%s22911_s7 + $0xf8] sm:$0xff]  ;;  %s14947_s7 = smov 48   ;;  %v21568_v50 = vpack.c.bf16 %v5152_v3, %v5151_v49 }
 0x591   :  { %v4665_v37 = vmax.f32 %v21356_v6, 0.0  ;;  %v4667_v5 = vmax.f32 %v21358_v62, 0.0  ;;  %13772 = vmatpush3.bf16.msra.mxu1 %v13771_v44  ;;  %v13775_v22 = vpack.c.bf16 %v4722_v57, %v4721_v55  ;;  %v13777_v13 = vpack.c.bf16 %v4740_v30, %v4739_v26  ;;  %v4891_v6 = vld [vmem:[%s22927_s30 + $0x8] sm:$0xf]  ;;  %v9404_v33 = vld [vmem:[%s22912_s8 + $0x20] sm:$0xff] }
 0x592   :  { %v4666_v36 = vmax.f32 %v21360_v35, 0.0  ;;  %v4668_v18 = vmax.f32 %v14653_v41, 0.0  ;;  %13774 = vmatprep.subr.bf16.mxu1 %v13773_v39  ;;  %v6631_v35 = vld [vmem:[%s22906_s2] sm:$0xff]  ;;  %v6632_v62 = vld [vmem:[%s22906_s2 + $0x8] sm:$0xff] }
 0x593   :  { %4677 = vrot.lane.b32.xlu1 %v4667_v5, %s14943_s19  ;;  %v9405_v20 = vld [vmem:[%s22912_s8 + $0x28] sm:$0xff] }
 0x594   :  { %v14759_v8 = vpack.i.bf16 %v4665_v37, %v4666_v36  ;;  %v13798_v44 = vpack.c.bf16 %v9405_v20, %v9404_v33  ;;  %v9410_v26 = vld [vmem:[%s22913_s9 + $0x48] sm:$0xff] }
 0x595   :  { %13776 = vmatpush3.bf16.msra.mxu1 %v13775_v22  ;;  %v9409_v22 = vld [vmem:[%s22913_s9 + $0x40] sm:$0xff] }
 0x596   :  { %14760 = vrot.lane.b32.xlu0 %v14759_v8, %s14943_s19  ;;  %13778 = vmatprep.subr.bf16.mxu1 %v13777_v13  ;;  %v21600_v14 = vpack.c.bf16 %v9410_v26, %v9409_v22 }
 0x599   :  { %13780 = vmatpush3.bf16.msra.mxu1 %v13779_v17  ;;  %v9411_v17 = vld [vmem:[%s22913_s9 + $0x50] sm:$0xff] }
 0x59a   :  { %4679 = vrot.lane.b32.xlu0 %v4668_v18, %s14943_s19  ;;  %13791 = vmatprep.subr.bf16.mxu1 %v13790_v28 }
 0x605   :  { %v4678_v58 = vpop.permute.xlu1 %4677 }
 0x608   :  { %v14761_v24 = vpop.permute.xlu0 %14760 }
 0x609   :  { %v14763_v11 = vunpack.i.h.bf16 %v14761_v24  ;;  %v14762_v54 = vunpack.i.l.bf16 %v14761_v24  ;;  %v9412_v24 = vld [vmem:[%s22913_s9 + $0x58] sm:$0xff] }
 0x60b   :  { %v4682_v2 = vsel %vm4681_vm4, %v14763_v11, %v14762_v54  ;;  %v4683_v43 = vsel %vm4681_vm4, %v14762_v54, %v4678_v58  ;;  %v21613_v11 = vpack.c.bf16 %v9412_v24, %v9411_v17  ;;  %v9413_v54 = vld [vmem:[%s22913_s9 + $0x60] sm:$0xff] }
 0x60c   :  { %v4680_v45 = vpop.permute.xlu0 %4679  ;;  %v4688_v8 = vmax.f32 %v4665_v37, %v4682_v2  ;;  %v4689_v41 = vmax.f32 %v4666_v36, %v4683_v43  ;;  %v5145_v37 = vld [vmem:[%s22913_s9] sm:$0xff]  ;;  %v9415_v2 = vld [vmem:[%s22913_s9 + $0x70] sm:$0xff]  ;;  %v9416_v43 = vld [vmem:[%s22913_s9 + $0x78] sm:$0xff] }
 0x60d   :  { %v4684_v4 = vsel %vm4681_vm4, %v4678_v58, %v4680_v45  ;;  %v9414_v58 = vld [vmem:[%s22913_s9 + $0x68] sm:$0xff]  ;;  %v21635_v45 = vpack.c.bf16 %v9416_v43, %v9415_v2 }
 0x60e   :  { %v4690_v12 = vmax.f32 %v4667_v5, %v4684_v4  ;;  %v14764_v16 = vpack.i.bf16 %v4688_v8, %v4689_v41  ;;  %v5146_v5 = vld [vmem:[%s22913_s9 + $0x8] sm:$0xff]  ;;  %v21625_v63 = vpack.c.bf16 %v9414_v58, %v9413_v54 }
 0x60f   :  { %v21516_v0 = vpack.c.bf16 %v5146_v5, %v5145_v37  ;;  %v9424_v37 = vld [vmem:[%s22913_s9 + $0xb0] sm:$0xff]  ;;  %v9425_v5 = vld [vmem:[%s22913_s9 + $0xb8] sm:$0xff] }
 0x610   :  { %4698 = vrot.lane.b32.xlu0 %v4690_v12, %s14947_s7  ;;  %14765 = vrot.lane.b32.xlu1 %v14764_v16, %s14947_s7  ;;  %v9421_v16 = vld [vmem:[%s22913_s9 + $0x98] sm:$0xff] }
 0x614   :  { %4895 = vperm.xlu1 %14769, %v4890_v38   ;;  %4898 = vperm.xlu0 %14770, %v4891_v6   ;;  %v9422_v6 = vld [vmem:[%s22913_s9 + $0xa0] sm:$0xff] }
 0x618   :  { %6634 = vperm.xlu1 %14769, %v6631_v35   ;;  %v9423_v35 = vld [vmem:[%s22913_s9 + $0xa8] sm:$0xff] }
 0x61c   :  { %6637 = vperm.xlu1 %14769, %v6632_v62   ;;  %v21669_v62 = vpack.c.bf16 %v9423_v35, %v9422_v6 }
 0x682   :  { %v4699_v36 = vpop.permute.xlu0 %4698  ;;  %v14766_v25 = vpop.permute.xlu1 %14765 }
 0x683   :  { %v4708_v19 = vmax.f32 %v4690_v12, %v4699_v36  ;;  %v14768_v47 = vunpack.i.h.bf16 %v14766_v25  ;;  %v14767_v18 = vunpack.i.l.bf16 %v14766_v25  ;;  %v9420_v12 = vld [vmem:[%s22913_s9 + $0x90] sm:$0xff] }
 0x684   :  { %v21657_v38 = vpack.c.bf16 %v9421_v16, %v9420_v12 }
 0x685   :  { %v4701_v29 = vsel %vm4700_vm5, %v14768_v47, %v14767_v18  ;;  %10520 = vmatmul.mubr.msk.f32.vlgmr.msra.gmra.mrb[12].mxu0 %vm4700_vm5, %v4708_v19  ;;  %v4702_v1 = vsel %vm4700_vm5, %v14767_v18, %v4699_v36  ;;  %v21679_v36 = vpack.c.bf16 %v9425_v5, %v9424_v37 }
 0x686   :  { %v4707_v31 = vmax.f32 %v4689_v41, %v4702_v1  ;;  %v4706_v34 = vmax.f32 %v4688_v8, %v4701_v29  ;;  %13804 = vmatpush3.bf16.msra.mxu0 %v21516_v0  ;;  %10559 = vmatprep.mubr.msk.f32.mxu0 %vm14944_vm3, %v14945_v42  ;;  %v9418_v8 = vld [vmem:[%s22913_s9 + $0x80] sm:$0xff]  ;;  %v9419_v41 = vld [vmem:[%s22913_s9 + $0x88] sm:$0xff] }
 0x687   :  { %13805 = vmatprep.subr.bf16.mxu0 %v14942_v60  ;;  %v21645_v4 = vpack.c.bf16 %v9419_v41, %v9418_v8 }
 0x688   :  { %4814 = vmatprep.mubr.f32.mxu1 %v4707_v31 }
 0x689   :  { %4815 = vmatmul.mubr.f32.vlgmr.msra.gmra.mrb[10].mxu1 %v4706_v34 }
 0x68a   :  { %13807 = vmatpush3.bf16.msra.mxu0 %v21525_v56  ;;  %13793 = vmatpush3.bf16.msra.mxu1 %v13790_v28 }
 0x68b   :  { %13808 = vmatprep.subr.bf16.mxu0 %v14942_v60  ;;  %13795 = vmatprep.subr.bf16.mxu1 %v13794_v61 }
 0x68e   :  { %13810 = vmatpush3.bf16.msra.mxu0 %v21547_v52 }
 0x68f   :  { %13811 = vmatprep.subr.bf16.mxu0 %v14942_v60 }
 0x692   :  { %13813 = vmatpush3.bf16.msra.mxu0 %v21568_v50 }
 0x693   :  { %v4896_v27 = vpop.permute.xlu1 %4895  ;;  %v4899_v48 = vpop.permute.xlu0 %4898  ;;  %13814 = vmatprep.subr.bf16.mxu0 %v14942_v60 }
 0x694   :  { %vm4900_vm6 = vcmp.eq.s32.totalorder %v4896_v27, %v21545_v23  ;;  %vm4901_vm7 = vcmp.eq.s32.totalorder %v4899_v48, %v21545_v23  ;;  %v21713_v48 = vld [vmem:[%s22914_s10] ss:$0 sm:$0xff] }
 0x695   :  { %v9396_v53 = vsel %vm4900_vm6, 1.0, %v14945_v42  ;;  %v9397_v59 = vsel %vm4901_vm7, 1.0, %v14945_v42 }
 0x696   :  { %10526 = vmatprep.mubr.msk.f32.mxu1 %vm3026_vm1, %v9396_v53 }
 0x697   :  { %10527 = vmatmul.mubr.msk.f32.vlgmr.msra.gmra.mrb[12].mxu1 %vm3026_vm1, %v9397_v59 }
 0x698   :  { %13797 = vmatpush3.bf16.msra.mxu1 %v13794_v61  ;;  %10533 = vmatprep.mubr.msk.f32.mxu1 %vm3026_vm1, %v9396_v53 }
 0x699   :  { %13799 = vmatprep.subr.bf16.mxu1 %v13798_v44 }
 0x69b   :  { %10534 = vmatmul.mubr.msk.f32.vlgmr.msra.gmra.mrb[14].mxu1 %vm3026_vm1, %v9397_v59 }
 0x69c   :  { %13801 = vmatpush3.bf16.msra.mxu1 %v13798_v44  ;;  %10540 = vmatprep.mubr.msk.f32.mxu1 %vm3026_vm1, %v9396_v53 }
 0x69d   :  { %13838 = vmatprep.subr.bf16.mxu1 %v14942_v60 }
 0x69f   :  { %10541 = vmatmul.mubr.msk.f32.vlgmr.msra.gmra.mrb[16].mxu1 %vm3026_vm1, %v9397_v59 }
 0x6a0   :  { %13840 = vmatpush3.bf16.msra.mxu1 %v21516_v0  ;;  %10616 = vmatprep.mubr.msk.f32.mxu1 %vm14944_vm3, %v14945_v42 }
 0x6a1   :  { %13841 = vmatprep.subr.bf16.mxu1 %v14942_v60 }
 0x6a4   :  { %13843 = vmatpush3.bf16.msra.mxu1 %v21525_v56 }
 0x6a5   :  { %13844 = vmatprep.subr.bf16.mxu1 %v14942_v60 }
 0x6a8   :  { %13846 = vmatpush3.bf16.msra.mxu1 %v21547_v52 }
 0x6a9   :  { %13847 = vmatprep.subr.bf16.mxu1 %v14942_v60 }
 0x6ac   :  { %13849 = vmatpush3.bf16.msra.mxu1 %v21568_v50 }
 0x6ad   :  { %13862 = vmatprep.subr.bf16.mxu1 %v14942_v60 }
 0x758   :  { %v4886_v39 = vpop.f32.mrb[12].mxu0 }
 0x759   :  { %v10521_v55 = vpop.f32.mrb[13].mxu0 }
 0x75c   :  { %v9885_v57 = vpop.f32.mrb[10].mxu1 }
 0x75d   :  { %v9886_v30 = vpop.f32.mrb[11].mxu1 }
 0x75e   :  { %v9887_v13 = vadd.f32 %v9886_v30, %v9885_v57 }
 0x760   :  { %v21602_v15 = vadd.f32 %v9887_v13, %v4886_v39 }
 0x762   :  { %10560 = vmatmul.mubr.msk.f32.vlgmr.msra.gmra.mrb[14].mxu0 %vm5153_vm8, %v21602_v15 }
 0x763   :  { %13816 = vmatpush3.bf16.msra.mxu0 %v21600_v14  ;;  %10578 = vmatprep.mubr.msk.f32.mxu0 %vm14944_vm3, %v14945_v42 }
 0x764   :  { %13817 = vmatprep.subr.bf16.mxu0 %v14942_v60 }
 0x767   :  { %13819 = vmatpush3.bf16.msra.mxu0 %v21613_v11 }
 0x768   :  { %13820 = vmatprep.subr.bf16.mxu0 %v14942_v60 }
 0x76a   :  { %v21696_v25 = vpop.f32.mrb[12].mxu1 }
 0x76b   :  { %13822 = vmatpush3.bf16.msra.mxu0 %v21625_v63  ;;  %v21698_v19 = vpop.f32.mrb[13].mxu1 }
 0x76c   :  { %13823 = vmatprep.subr.bf16.mxu0 %v14942_v60 }
 0x76e   :  { %v21700_v47 = vpop.f32.mrb[14].mxu1 }
 0x76f   :  { %13825 = vmatpush3.bf16.msra.mxu0 %v21635_v45  ;;  %v21702_v18 = vpop.f32.mrb[15].mxu1 }
 0x770   :  { %13826 = vmatprep.subr.bf16.mxu0 %v14942_v60 }
 0x772   :  { %10579 = vmatmul.mubr.msk.f32.vlgmr.msra.gmra.mrb[16].mxu0 %vm5153_vm8, %v21602_v15  ;;  %v21704_v10 = vpop.f32.mrb[16].mxu1 }
 0x773   :  { %13828 = vmatpush3.bf16.msra.mxu0 %v21645_v4  ;;  %10597 = vmatprep.mubr.msk.f32.mxu0 %vm14944_vm3, %v14945_v42  ;;  %v21706_v21 = vpop.f32.mrb[17].mxu1 }
 0x774   :  { %13829 = vmatprep.subr.bf16.mxu0 %v14942_v60 }
 0x777   :  { %13831 = vmatpush3.bf16.msra.mxu0 %v21657_v38 }
 0x778   :  { %13832 = vmatprep.subr.bf16.mxu0 %v14942_v60 }
 0x77b   :  { %13834 = vmatpush3.bf16.msra.mxu0 %v21669_v62 }
 0x77c   :  { %13835 = vmatprep.subr.bf16.mxu0 %v14942_v60 }
 0x77f   :  { %13837 = vmatpush3.bf16.msra.mxu0 %v21679_v36 }
 0x780   :  { %13850 = vmatprep.subr.bf16.mxu0 %v14942_v60 }
 0x782   :  { %10598 = vmatmul.mubr.msk.f32.vlgmr.msra.gmra.mrb[18].mxu0 %vm5153_vm8, %v21602_v15 }
 0x783   :  { %13852 = vmatpush3.bf16.msra.mxu0 %v21600_v14  ;;  %10635 = vmatprep.mubr.msk.f32.mxu0 %vm14944_vm3, %v14945_v42 }
 0x784   :  { %13853 = vmatprep.subr.bf16.mxu0 %v14942_v60 }
 0x787   :  { %13855 = vmatpush3.bf16.msra.mxu0 %v21613_v11 }
 0x788   :  { %13856 = vmatprep.subr.bf16.mxu0 %v14942_v60 }
 0x78b   :  { %13858 = vmatpush3.bf16.msra.mxu0 %v21625_v63 }
 0x78c   :  { %13859 = vmatprep.subr.bf16.mxu0 %v14942_v60 }
 0x78f   :  { %13861 = vmatpush3.bf16.msra.mxu0 %v21635_v45 }
 0x790   :  { %13874 = vmatprep.subr.bf16.mxu0 %v14942_v60 }
 0x835   :  { %v5223_v29 = vpop.f32.mrb[14].mxu0 }
 0x836   :  { %v5392_v1 = vadd.f32 %v5223_v29, %v21698_v19  ;;  %v10561_v31 = vpop.f32.mrb[15].mxu0 }
 0x838   :  { %v9428_v34 = vmul.f32 -1.442695, %v5392_v1 }
 0x83a   :  { %14772 = vpow2.f32 %v9428_v34 }
 0x844   :  { %v14773_v7 = vpop.eup %14772 }
 0x845   :  { %v5302_v9 = vpop.f32.mrb[16].mxu0  ;;  %v5396_v27 = vadd.f32 1.0, %v14773_v7 }
 0x846   :  { %v5399_v28 = vadd.f32 %v5302_v9, %v21702_v18  ;;  %v10580_v51 = vpop.f32.mrb[17].mxu0 }
 0x848   :  { %v9429_v40 = vmul.f32 -1.442695, %v5399_v28 }
 0x84a   :  { %14774 = vpow2.f32 %v9429_v40 }
 0x84b   :  { %14776 = vrcp.f32 %v5396_v27 }
 0x854   :  { %v14775_v32 = vpop.eup %14774 }
 0x855   :  { %v5403_v46 = vadd.f32 1.0, %v14775_v32  ;;  %v5388_v53 = vpop.f32.mrb[18].mxu0  ;;  %v14777_v49 = vpop.eup %14776 }
 0x856   :  { %v5389_v59 = vadd.f32 %v21713_v48, %v5388_v53  ;;  %v10599_v61 = vpop.f32.mrb[19].mxu0 }
 0x857   :  { %14778 = vrcp.f32 %v5403_v46 }
 0x858   :  { %v5406_v3 = vmul.f32 %v14777_v49, %v5389_v59 }
 0x85a   :  { %v5407_v33 = vadd.f32 %v5406_v3, %v21706_v21 }
 0x85c   :  { %14780 = vtanh.f32 %v5407_v33 }
 0x861   :  { %v14779_v20 = vpop.eup %14778 }
 0x862   :  { %v5409_v44 = vsub.f32 1.0, %v14779_v20  ;;  %v5411_v57 = vmul.f32 %v14779_v20, %v21602_v15 }
 0x866   :  { %v14781_v39 = vpop.eup %14780 }
 0x867   :  { %v5410_v55 = vmul.f32 %v14781_v39, %v5409_v44 }
 0x869   :  { %v5412_v22 = vadd.f32 %v5411_v57, %v5410_v55 }
 0x86b   :  { %10617 = vmatmul.mubr.msk.f32.vlgmr.msra.gmra.mrb[18].mxu1 %vm5153_vm8, %v5412_v22  ;;  %10636 = vmatmul.mubr.msk.f32.vlgmr.msra.gmra.mrb[20].mxu0 %vm5153_vm8, %v5412_v22  ;;  %v5654_v31 = vrot.slane %v5412_v22, 6 }
 0x86c   :  { %13864 = vmatpush3.bf16.msra.mxu1 %v21645_v4  ;;  %10654 = vmatprep.mubr.msk.f32.mxu1 %vm14944_vm3, %v14945_v42 }
 0x86d   :  { %13865 = vmatprep.subr.bf16.mxu1 %v14942_v60  ;;  %13876 = vmatpush3.bf16.msra.mxu0 %v21516_v0 }
 0x86e   :  { %13877 = vmatprep.subr.bf16.mxu0 %v14942_v60  ;;  %10673 = vmatprep.mubr.msk.f32.mxu0 %vm14944_vm3, %v14945_v42 }
 0x870   :  { %13867 = vmatpush3.bf16.msra.mxu1 %v21657_v38 }
 0x871   :  { %13868 = vmatprep.subr.bf16.mxu1 %v14942_v60  ;;  %13879 = vmatpush3.bf16.msra.mxu0 %v21525_v56 }
 0x872   :  { %13880 = vmatprep.subr.bf16.mxu0 %v14942_v60 }
 0x874   :  { %13870 = vmatpush3.bf16.msra.mxu1 %v21669_v62 }
 0x875   :  { %13871 = vmatprep.subr.bf16.mxu1 %v14942_v60  ;;  %13882 = vmatpush3.bf16.msra.mxu0 %v21547_v52 }
 0x876   :  { %13883 = vmatprep.subr.bf16.mxu0 %v14942_v60 }
 0x878   :  { %13873 = vmatpush3.bf16.msra.mxu1 %v21679_v36 }
 0x879   :  { %13886 = vmatprep.subr.bf16.mxu1 %v14942_v60  ;;  %13885 = vmatpush3.bf16.msra.mxu0 %v21568_v50 }
 0x87a   :  { %13898 = vmatprep.subr.bf16.mxu0 %v14942_v60 }
 0x87b   :  { %10655 = vmatmul.mubr.msk.f32.vlgmr.msra.gmra.mrb[20].mxu1 %vm5153_vm8, %v5412_v22 }
 0x87c   :  { %13888 = vmatpush3.bf16.msra.mxu1 %v21600_v14  ;;  %10692 = vmatprep.mubr.msk.f32.mxu1 %vm14944_vm3, %v14945_v42 }
 0x87d   :  { %13889 = vmatprep.subr.bf16.mxu1 %v14942_v60 }
 0x880   :  { %13891 = vmatpush3.bf16.msra.mxu1 %v21613_v11 }
 0x881   :  { %13892 = vmatprep.subr.bf16.mxu1 %v14942_v60 }
 0x884   :  { %13894 = vmatpush3.bf16.msra.mxu1 %v21625_v63 }
 0x885   :  { %13895 = vmatprep.subr.bf16.mxu1 %v14942_v60 }
 0x888   :  { %13897 = vmatpush3.bf16.msra.mxu1 %v21635_v45 }
 0x889   :  { %13910 = vmatprep.subr.bf16.mxu1 %v14942_v60 }
 0x93e   :  { %v5482_v26 = vpop.f32.mrb[18].mxu1  ;;  %v5552_v30 = vpop.f32.mrb[20].mxu0 }
 0x93f   :  { %v5627_v13 = vrot.slane %v5482_v26, 6  ;;  %v5637_v17 = vrot.slane %v5552_v30, 6  ;;  %v10618_v24 = vpop.f32.mrb[19].mxu1  ;;  %v10637_v54 = vpop.f32.mrb[21].mxu0 }
 0x941   :  { %v5629_v58 = vadd.f32 %v5627_v13, %v21698_v19  ;;  %v5639_v2 = vadd.f32 %v5637_v17, %v21702_v18 }
 0x943   :  { %v9433_v43 = vmul.f32 -1.442695, %v5629_v58  ;;  %v9434_v8 = vmul.f32 -1.442695, %v5639_v2 }
 0x945   :  { %14782 = vpow2.f32 %v9433_v43 }
 0x946   :  { %14784 = vpow2.f32 %v9434_v8 }
 0x94e   :  { %v5622_v41 = vpop.f32.mrb[20].mxu1 }
 0x94f   :  { %v14783_v12 = vpop.eup %14782  ;;  %v10656_v16 = vpop.f32.mrb[21].mxu1  ;;  %v5623_v5 = vadd.f32 %v21713_v48, %v5622_v41 }
 0x950   :  { %v14785_v6 = vpop.eup %14784  ;;  %v5633_v35 = vadd.f32 1.0, %v14783_v12 }
 0x951   :  { %v5643_v37 = vadd.f32 1.0, %v14785_v6  ;;  %v5647_v29 = vrot.slane %v5623_v5, 6 }
 0x952   :  { %14786 = vrcp.f32 %v5633_v35 }
 0x953   :  { %14788 = vrcp.f32 %v5643_v37 }
 0x95c   :  { %v14787_v1 = vpop.eup %14786 }
 0x95d   :  { %v14789_v34 = vpop.eup %14788  ;;  %v5649_v9 = vmul.f32 %v14787_v1, %v5647_v29 }
 0x95e   :  { %v5656_v7 = vmul.f32 %v14789_v34, %v5654_v31  ;;  %v5652_v51 = vsub.f32 1.0, %v14789_v34 }
 0x95f   :  { %v5650_v28 = vadd.f32 %v5649_v9, %v21706_v21 }
 0x961   :  { %14790 = vtanh.f32 %v5650_v28 }
 0x96b   :  { %v14791_v40 = vpop.eup %14790 }
 0x96c   :  { %v5653_v27 = vmul.f32 %v14791_v40, %v5652_v51 }
 0x96e   :  { %v5657_v32 = vadd.f32 %v5656_v7, %v5653_v27 }
 0x970   :  { %v5659_v46 = vrot.slane %v5657_v32, 2  ;;  %v5900_v2 = vrot.slane %v5657_v32, 6 }
 0x972   :  { %10674 = vmatmul.mubr.msk.f32.vlgmr.msra.gmra.mrb[22].mxu0 %vm5153_vm8, %v5659_v46  ;;  %10693 = vmatmul.mubr.msk.f32.vlgmr.msra.gmra.mrb[22].mxu1 %vm5153_vm8, %v5659_v46 }
 0x973   :  { %13900 = vmatpush3.bf16.msra.mxu0 %v21645_v4  ;;  %10711 = vmatprep.mubr.msk.f32.mxu0 %vm14944_vm3, %v14945_v42 }
 0x974   :  { %13901 = vmatprep.subr.bf16.mxu0 %v14942_v60  ;;  %13912 = vmatpush3.bf16.msra.mxu1 %v21516_v0 }
 0x975   :  { %13913 = vmatprep.subr.bf16.mxu1 %v14942_v60  ;;  %10730 = vmatprep.mubr.msk.f32.mxu1 %vm14944_vm3, %v14945_v42 }
 0x977   :  { %13903 = vmatpush3.bf16.msra.mxu0 %v21657_v38 }
 0x978   :  { %13904 = vmatprep.subr.bf16.mxu0 %v14942_v60  ;;  %13915 = vmatpush3.bf16.msra.mxu1 %v21525_v56 }
 0x979   :  { %13916 = vmatprep.subr.bf16.mxu1 %v14942_v60 }
 0x97b   :  { %13906 = vmatpush3.bf16.msra.mxu0 %v21669_v62 }
 0x97c   :  { %13907 = vmatprep.subr.bf16.mxu0 %v14942_v60  ;;  %13918 = vmatpush3.bf16.msra.mxu1 %v21547_v52 }
 0x97d   :  { %13919 = vmatprep.subr.bf16.mxu1 %v14942_v60 }
 0x97f   :  { %13909 = vmatpush3.bf16.msra.mxu0 %v21679_v36 }
 0x980   :  { %13922 = vmatprep.subr.bf16.mxu0 %v14942_v60  ;;  %13921 = vmatpush3.bf16.msra.mxu1 %v21568_v50 }
 0x981   :  { %13934 = vmatprep.subr.bf16.mxu1 %v14942_v60 }
 0x982   :  { %10712 = vmatmul.mubr.msk.f32.vlgmr.msra.gmra.mrb[24].mxu0 %vm5153_vm8, %v5659_v46 }
 0x983   :  { %13924 = vmatpush3.bf16.msra.mxu0 %v21600_v14  ;;  %10749 = vmatprep.mubr.msk.f32.mxu0 %vm14944_vm3, %v14945_v42 }
 0x984   :  { %13925 = vmatprep.subr.bf16.mxu0 %v14942_v60 }
 0x987   :  { %13927 = vmatpush3.bf16.msra.mxu0 %v21613_v11 }
 0x988   :  { %13928 = vmatprep.subr.bf16.mxu0 %v14942_v60 }
 0x98b   :  { %13930 = vmatpush3.bf16.msra.mxu0 %v21625_v63 }
 0x98c   :  { %13931 = vmatprep.subr.bf16.mxu0 %v14942_v60 }
 0x98f   :  { %13933 = vmatpush3.bf16.msra.mxu0 %v21635_v45 }
 0x990   :  { %13946 = vmatprep.subr.bf16.mxu0 %v14942_v60 }
 0xa45   :  { %v5728_v53 = vpop.f32.mrb[22].mxu0  ;;  %v5798_v59 = vpop.f32.mrb[22].mxu1 }
 0xa46   :  { %v5873_v61 = vrot.slane %v5728_v53, 4  ;;  %v5883_v49 = vrot.slane %v5798_v59, 4  ;;  %v10675_v3 = vpop.f32.mrb[23].mxu0  ;;  %v10694_v33 = vpop.f32.mrb[23].mxu1 }
 0xa48   :  { %v5875_v20 = vadd.f32 %v5873_v61, %v21698_v19  ;;  %v5885_v44 = vadd.f32 %v5883_v49, %v21702_v18 }
 0xa4a   :  { %v9438_v39 = vmul.f32 -1.442695, %v5875_v20  ;;  %v9439_v55 = vmul.f32 -1.442695, %v5885_v44 }
 0xa4c   :  { %14792 = vpow2.f32 %v9438_v39 }
 0xa4d   :  { %14794 = vpow2.f32 %v9439_v55 }
 0xa55   :  { %v5868_v57 = vpop.f32.mrb[24].mxu0 }
 0xa56   :  { %v14793_v22 = vpop.eup %14792  ;;  %v10713_v26 = vpop.f32.mrb[25].mxu0  ;;  %v5869_v24 = vadd.f32 %v21713_v48, %v5868_v57 }
 0xa57   :  { %v14795_v30 = vpop.eup %14794  ;;  %v5879_v13 = vadd.f32 1.0, %v14793_v22 }
 0xa58   :  { %v5889_v17 = vadd.f32 1.0, %v14795_v30  ;;  %v5893_v54 = vrot.slane %v5869_v24, 4 }
 0xa59   :  { %14796 = vrcp.f32 %v5879_v13 }
 0xa5a   :  { %14798 = vrcp.f32 %v5889_v17 }
 0xa63   :  { %v14797_v58 = vpop.eup %14796 }
 0xa64   :  { %v14799_v43 = vpop.eup %14798  ;;  %v5895_v8 = vmul.f32 %v14797_v58, %v5893_v54 }
 0xa65   :  { %v5902_v41 = vmul.f32 %v14799_v43, %v5900_v2  ;;  %v5898_v16 = vsub.f32 1.0, %v14799_v43 }
 0xa66   :  { %v5896_v12 = vadd.f32 %v5895_v8, %v21706_v21 }
 0xa68   :  { %14800 = vtanh.f32 %v5896_v12 }
 0xa72   :  { %v14801_v6 = vpop.eup %14800 }
 0xa73   :  { %v5899_v35 = vmul.f32 %v14801_v6, %v5898_v16 }
 0xa75   :  { %v5903_v37 = vadd.f32 %v5902_v41, %v5899_v35 }
 0xa77   :  { %v5905_v5 = vrot.slane %v5903_v37, 4  ;;  %v6146_v44 = vrot.slane %v5903_v37, 6 }
 0xa79   :  { %10731 = vmatmul.mubr.msk.f32.vlgmr.msra.gmra.mrb[24].mxu1 %vm5153_vm8, %v5905_v5  ;;  %10750 = vmatmul.mubr.msk.f32.vlgmr.msra.gmra.mrb[26].mxu0 %vm5153_vm8, %v5905_v5 }
 0xa7a   :  { %13936 = vmatpush3.bf16.msra.mxu1 %v21645_v4  ;;  %10768 = vmatprep.mubr.msk.f32.mxu1 %vm14944_vm3, %v14945_v42 }
 0xa7b   :  { %13937 = vmatprep.subr.bf16.mxu1 %v14942_v60  ;;  %13948 = vmatpush3.bf16.msra.mxu0 %v21516_v0 }
 0xa7c   :  { %13949 = vmatprep.subr.bf16.mxu0 %v14942_v60  ;;  %10787 = vmatprep.mubr.msk.f32.mxu0 %vm14944_vm3, %v14945_v42 }
 0xa7e   :  { %13939 = vmatpush3.bf16.msra.mxu1 %v21657_v38 }
 0xa7f   :  { %13940 = vmatprep.subr.bf16.mxu1 %v14942_v60  ;;  %13951 = vmatpush3.bf16.msra.mxu0 %v21525_v56 }
 0xa80   :  { %13952 = vmatprep.subr.bf16.mxu0 %v14942_v60 }
 0xa82   :  { %13942 = vmatpush3.bf16.msra.mxu1 %v21669_v62 }
 0xa83   :  { %13943 = vmatprep.subr.bf16.mxu1 %v14942_v60  ;;  %13954 = vmatpush3.bf16.msra.mxu0 %v21547_v52 }
 0xa84   :  { %13955 = vmatprep.subr.bf16.mxu0 %v14942_v60 }
 0xa86   :  { %13945 = vmatpush3.bf16.msra.mxu1 %v21679_v36 }
 0xa87   :  { %13958 = vmatprep.subr.bf16.mxu1 %v14942_v60  ;;  %13957 = vmatpush3.bf16.msra.mxu0 %v21568_v50 }
 0xa88   :  { %13970 = vmatprep.subr.bf16.mxu0 %v14942_v60 }
 0xa89   :  { %10769 = vmatmul.mubr.msk.f32.vlgmr.msra.gmra.mrb[26].mxu1 %vm5153_vm8, %v5905_v5  ;;  %v6635_v5 = vpop.permute.xlu1 %6634 }
 0xa8a   :  { %13960 = vmatpush3.bf16.msra.mxu1 %v21600_v14  ;;  %10806 = vmatprep.mubr.msk.f32.mxu1 %vm14944_vm3, %v14945_v42  ;;  %vm6639_vm9 = vcmp.eq.s32.totalorder %v6635_v5, %v21545_v23  ;;  %v6904_v5 = vld [vmem:[%s22916_s12 + $0x70] sm:$0xff] }
 0xa8b   :  { %13961 = vmatprep.subr.bf16.mxu1 %v14942_v60 }
 0xa8e   :  { %13963 = vmatpush3.bf16.msra.mxu1 %v21613_v11 }
 0xa8f   :  { %13964 = vmatprep.subr.bf16.mxu1 %v14942_v60 }
 0xa92   :  { %13966 = vmatpush3.bf16.msra.mxu1 %v21625_v63 }
 0xa93   :  { %13967 = vmatprep.subr.bf16.mxu1 %v14942_v60 }
 0xa96   :  { %13969 = vmatpush3.bf16.msra.mxu1 %v21635_v45 }
 0xa97   :  { %13982 = vmatprep.subr.bf16.mxu1 %v14942_v60 }
 0xb4c   :  { %v5974_v29 = vpop.f32.mrb[24].mxu1  ;;  %v6044_v1 = vpop.f32.mrb[26].mxu0 }
 0xb4d   :  { %v6119_v31 = vrot.slane %v5974_v29, 2  ;;  %v6129_v34 = vrot.slane %v6044_v1, 2  ;;  %v10732_v9 = vpop.f32.mrb[25].mxu1  ;;  %v10751_v7 = vpop.f32.mrb[27].mxu0 }
 0xb4e   :  { %v9463_v9 = vld [vmem:[%s22915_s11 + $0x20] sm:$0xff]  ;;  %v9464_v7 = vld [vmem:[%s22915_s11 + $0x28] sm:$0xff] }
 0xb4f   :  { %v6121_v28 = vadd.f32 %v6119_v31, %v21698_v19  ;;  %v6131_v51 = vadd.f32 %v6129_v34, %v21702_v18 }
 0xb51   :  { %v9443_v40 = vmul.f32 -1.442695, %v6121_v28  ;;  %v9444_v27 = vmul.f32 -1.442695, %v6131_v51  ;;  %v6638_v28 = vpop.permute.xlu1 %6637 }
 0xb52   :  { %vm6640_vm10 = vcmp.eq.s32.totalorder %v6638_v28, %v21545_v23  ;;  %v9459_v23 = vld [vmem:[%s22915_s11 + $0x10] sm:$0xff] }
 0xb53   :  { %14802 = vpow2.f32 %v9443_v40  ;;  %v14026_v40 = vpack.c.bf16 %v9464_v7, %v9463_v9 }
 0xb54   :  { %14804 = vpow2.f32 %v9444_v27  ;;  %v9455_v27 = vsel %vm6639_vm9, 1.0, %v14945_v42 }
 0xb5c   :  { %v6114_v32 = vpop.f32.mrb[26].mxu1 }
 0xb5d   :  { %v14803_v46 = vpop.eup %14802  ;;  %v10770_v53 = vpop.f32.mrb[27].mxu1  ;;  %v6115_v3 = vadd.f32 %v21713_v48, %v6114_v32  ;;  %v9456_v32 = vsel %vm6640_vm10, 1.0, %v14945_v42 }
 0xb5e   :  { %v14805_v59 = vpop.eup %14804  ;;  %v6125_v61 = vadd.f32 1.0, %v14803_v46  ;;  %v9467_v46 = vld [vmem:[%s22916_s12 + $0x80] sm:$0xff] }
 0xb5f   :  { %v6135_v49 = vadd.f32 1.0, %v14805_v59  ;;  %v6139_v33 = vrot.slane %v6115_v3, 2  ;;  %v9468_v59 = vld [vmem:[%s22916_s12 + $0x88] sm:$0xff] }
 0xb60   :  { %14806 = vrcp.f32 %v6125_v61  ;;  %v6892_v61 = vld [vmem:[%s22916_s12 + $0x10] sm:$0xff]  ;;  %v21936_v3 = vpack.c.bf16 %v9468_v59, %v9467_v46 }
 0xb61   :  { %14808 = vrcp.f32 %v6135_v49  ;;  %v6893_v49 = vld [vmem:[%s22916_s12 + $0x18] sm:$0xff] }
 0xb6a   :  { %v14807_v20 = vpop.eup %14806 }
 0xb6b   :  { %v14809_v19 = vpop.eup %14808  ;;  %v6141_v39 = vmul.f32 %v14807_v20, %v6139_v33  ;;  %v9469_v33 = vld [vmem:[%s22916_s12 + $0x90] sm:$0xff]  ;;  %v9470_v20 = vld [vmem:[%s22916_s12 + $0x98] sm:$0xff] }
 0xb6c   :  { %v6148_v18 = vmul.f32 %v14809_v19, %v6146_v44  ;;  %v6144_v57 = vsub.f32 1.0, %v14809_v19  ;;  %v21945_v44 = vpack.c.bf16 %v6893_v49, %v6892_v61  ;;  %v21949_v19 = vpack.c.bf16 %v9470_v20, %v9469_v33 }
 0xb6d   :  { %v6142_v55 = vadd.f32 %v6141_v39, %v21706_v21  ;;  %v6894_v39 = vld [vmem:[%s22916_s12 + $0x20] sm:$0xff] }
 0xb6f   :  { %14810 = vtanh.f32 %v6142_v55  ;;  %v9471_v55 = vld [vmem:[%s22916_s12 + $0xa0] sm:$0xff] }
 0xb79   :  { %v14811_v22 = vpop.eup %14810 }
 0xb7a   :  { %v6145_v26 = vmul.f32 %v14811_v22, %v6144_v57  ;;  %v9472_v57 = vld [vmem:[%s22916_s12 + $0xa8] sm:$0xff] }
 0xb7c   :  { %v6149_v30 = vadd.f32 %v6148_v18, %v6145_v26  ;;  %v6895_v18 = vld [vmem:[%s22916_s12 + $0x28] sm:$0xff]  ;;  %v21969_v26 = vpack.c.bf16 %v9472_v57, %v9471_v55 }
 0xb7d   :  { %v21965_v22 = vpack.c.bf16 %v6895_v18, %v6894_v39 }
 0xb7e   :  { %v6151_v13 = vrot.slane %v6149_v30, 6  ;;  %v6896_v30 = vld [vmem:[%s22916_s12 + $0x30] sm:$0xff] }
 0xb80   :  { %10788 = vmatmul.mubr.msk.f32.vlgmr.msra.gmra.mrb[28].mxu0 %vm5153_vm8, %v6151_v13  ;;  %10807 = vmatmul.mubr.msk.f32.vlgmr.msra.gmra.mrb[28].mxu1 %vm5153_vm8, %v6151_v13 }
 0xb81   :  { %13972 = vmatpush3.bf16.msra.mxu0 %v21645_v4  ;;  %10825 = vmatprep.mubr.msk.f32.mxu0 %vm14944_vm3, %v14945_v42 }
 0xb82   :  { %13973 = vmatprep.subr.bf16.mxu0 %v14942_v60  ;;  %13984 = vmatpush3.bf16.msra.mxu1 %v21516_v0  ;;  %v6645_v0 = vld [vmem:[%s22915_s11] sm:$0xff] }
 0xb83   :  { %13985 = vmatprep.subr.bf16.mxu1 %v14942_v60  ;;  %10844 = vmatprep.mubr.msk.f32.mxu1 %vm14944_vm3, %v14945_v42 }
 0xb85   :  { %13975 = vmatpush3.bf16.msra.mxu0 %v21657_v38 }
 0xb86   :  { %13976 = vmatprep.subr.bf16.mxu0 %v14942_v60  ;;  %13987 = vmatpush3.bf16.msra.mxu1 %v21525_v56  ;;  %v6646_v56 = vld [vmem:[%s22915_s11 + $0x8] sm:$0xff] }
 0xb87   :  { %13988 = vmatprep.subr.bf16.mxu1 %v14942_v60 }
 0xb89   :  { %13978 = vmatpush3.bf16.msra.mxu0 %v21669_v62 }
 0xb8a   :  { %13979 = vmatprep.subr.bf16.mxu0 %v14942_v60  ;;  %13990 = vmatpush3.bf16.msra.mxu1 %v21547_v52  ;;  %v14018_v52 = vpack.c.bf16 %v6646_v56, %v6645_v0  ;;  %v9473_v0 = vld [vmem:[%s22916_s12 + $0xb0] sm:$0xff]  ;;  %v9474_v56 = vld [vmem:[%s22916_s12 + $0xb8] sm:$0xff] }
 0xb8b   :  { %13991 = vmatprep.subr.bf16.mxu1 %v14942_v60 }
 0xb8d   :  { %13981 = vmatpush3.bf16.msra.mxu0 %v21679_v36 }
 0xb8e   :  { %13994 = vmatprep.subr.bf16.mxu0 %v14942_v60  ;;  %13993 = vmatpush3.bf16.msra.mxu1 %v21568_v50 }
 0xb8f   :  { %14006 = vmatprep.subr.bf16.mxu1 %v14942_v60 }
 0xb90   :  { %10826 = vmatmul.mubr.msk.f32.vlgmr.msra.gmra.mrb[30].mxu0 %vm5153_vm8, %v6151_v13 }
 0xb91   :  { %13996 = vmatpush3.bf16.msra.mxu0 %v21600_v14  ;;  %10863 = vmatprep.mubr.msk.f32.mxu0 %vm14944_vm3, %v14945_v42 }
 0xb92   :  { %13997 = vmatprep.subr.bf16.mxu0 %v14942_v60 }
 0xb95   :  { %13999 = vmatpush3.bf16.msra.mxu0 %v21613_v11 }
 0xb96   :  { %14000 = vmatprep.subr.bf16.mxu0 %v14942_v60 }
 0xb99   :  { %14002 = vmatpush3.bf16.msra.mxu0 %v21625_v63 }
 0xb9a   :  { %14003 = vmatprep.subr.bf16.mxu0 %v14942_v60 }
 0xb9d   :  { %14005 = vmatpush3.bf16.msra.mxu0 %v21635_v45 }
 0xb9e   :  { %14019 = vmatprep.subr.bf16.mxu0 %v14018_v52 }
 0xc53   :  { %v6220_v50 = vpop.f32.mrb[28].mxu0  ;;  %v6290_v14 = vpop.f32.mrb[28].mxu1 }
 0xc54   :  { %v6364_v11 = vadd.f32 %v21696_v25, %v6220_v50  ;;  %v6371_v63 = vadd.f32 %v21700_v47, %v6290_v14  ;;  %v10789_v21 = vpop.f32.mrb[29].mxu0  ;;  %v10808_v17 = vpop.f32.mrb[29].mxu1  ;;  %v21989_v50 = vpack.c.bf16 %v9474_v56, %v9473_v0  ;;  %v6898_v14 = vld [vmem:[%s22916_s12 + $0x40] sm:$0xff] }
 0xc55   :  { %v9476_v21 = vld [vmem:[%s22916_s12 + $0xc8] sm:$0xff] }
 0xc56   :  { %v9448_v24 = vmul.f32 -1.442695, %v6364_v11  ;;  %v9449_v45 = vmul.f32 -1.442695, %v6371_v63  ;;  %v6899_v11 = vld [vmem:[%s22916_s12 + $0x48] sm:$0xff]  ;;  %v9475_v63 = vld [vmem:[%s22916_s12 + $0xc0] sm:$0xff] }
 0xc57   :  { %v22005_v17 = vpack.c.bf16 %v6899_v11, %v6898_v14 }
 0xc58   :  { %14812 = vpow2.f32 %v9448_v24  ;;  %v22009_v24 = vpack.c.bf16 %v9476_v21, %v9475_v63 }
 0xc59   :  { %14814 = vpow2.f32 %v9449_v45  ;;  %v6900_v45 = vld [vmem:[%s22916_s12 + $0x50] sm:$0xff] }
 0xc62   :  { %v14813_v54 = vpop.eup %14812 }
 0xc63   :  { %v6368_v58 = vadd.f32 1.0, %v14813_v54  ;;  %v6360_v2 = vpop.f32.mrb[30].mxu0  ;;  %v14815_v8 = vpop.eup %14814  ;;  %v6901_v54 = vld [vmem:[%s22916_s12 + $0x58] sm:$0xff] }
 0xc64   :  { %v10827_v43 = vpop.f32.mrb[31].mxu0  ;;  %v6375_v41 = vadd.f32 1.0, %v14815_v8  ;;  %v6361_v12 = vadd.f32 %v21713_v48, %v6360_v2  ;;  %v9478_v2 = vld [vmem:[%s22916_s12 + $0xd8] sm:$0xff] }
 0xc65   :  { %14816 = vrcp.f32 %v6368_v58  ;;  %v9477_v58 = vld [vmem:[%s22916_s12 + $0xd0] sm:$0xff]  ;;  %v22025_v43 = vpack.c.bf16 %v6901_v54, %v6900_v45 }
 0xc66   :  { %14818 = vrcp.f32 %v6375_v41  ;;  %v22029_v8 = vpack.c.bf16 %v9478_v2, %v9477_v58  ;;  %v6902_v41 = vld [vmem:[%s22916_s12 + $0x60] sm:$0xff] }
 0xc6f   :  { %v14817_v16 = vpop.eup %14816 }
 0xc70   :  { %v6378_v6 = vmul.f32 %v14817_v16, %v6361_v12  ;;  %v14819_v37 = vpop.eup %14818  ;;  %v6903_v12 = vld [vmem:[%s22916_s12 + $0x68] sm:$0xff]  ;;  %v9479_v16 = vld [vmem:[%s22916_s12 + $0xe0] sm:$0xff] }
 0xc71   :  { %v6381_v29 = vsub.f32 1.0, %v14819_v37  ;;  %v6384_v34 = vmul.f32 %v14819_v37, %v6151_v13  ;;  %v6897_v13 = vld [vmem:[%s22916_s12 + $0x38] sm:$0xff] }
 0xc72   :  { %v6379_v35 = vadd.f32 %v21704_v10, %v6378_v6  ;;  %v9480_v6 = vld [vmem:[%s22916_s12 + $0xe8] sm:$0xff] }
 0xc73   :  { %v22049_v37 = vpack.c.bf16 %v9480_v6, %v9479_v16  ;;  %v9486_v6 = vld [vmem:[%s22916_s12 + $0x118] sm:$0xff] }
 0xc74   :  { %14820 = vtanh.f32 %v6379_v35  ;;  %v22045_v35 = vpack.c.bf16 %v6903_v12, %v6902_v41 }
 0xc7e   :  { %v14821_v1 = vpop.eup %14820 }
 0xc7f   :  { %v6382_v31 = vmul.f32 %v14821_v1, %v6381_v29  ;;  %v6905_v29 = vld [vmem:[%s22916_s12 + $0x78] sm:$0xff]  ;;  %v9481_v1 = vld [vmem:[%s22916_s12 + $0xf0] sm:$0xff] }
 0xc81   :  { %v21878_v51 = vadd.f32 %v6384_v34, %v6382_v31  ;;  %v9482_v31 = vld [vmem:[%s22916_s12 + $0xf8] sm:$0xff]  ;;  %v22065_v34 = vpack.c.bf16 %v6905_v29, %v6904_v5 }
 0xc82   :  { %v22069_v9 = vpack.c.bf16 %v9482_v31, %v9481_v1  ;;  %v9487_v1 = vld [vmem:[%s22916_s12 + $0x120] sm:$0xff] }
 0xc83   :  { %10845 = vmatmul.mubr.msk.f32.vlgmr.msra.gmra.mrb[30].mxu1 %vm5153_vm8, %v21878_v51  ;;  %10864 = vmatmul.mubr.msk.f32.vlgmr.msra.gmra.mrb[32].mxu0 %vm5153_vm8, %v21878_v51  ;;  %v6627_v56 = vrot.slane %v21878_v51, 6 }
 0xc84   :  { %14008 = vmatpush3.bf16.msra.mxu1 %v21645_v4  ;;  %14021 = vmatpush3.bf16.msra.mxu0 %v14018_v52  ;;  %v9460_v4 = vld [vmem:[%s22915_s11 + $0x18] sm:$0xff]  ;;  %v21985_v52 = vpack.c.bf16 %v6897_v13, %v6896_v30 }
 0xc85   :  { %10889 = vmatprep.mubr.msk.f32.mxu0 %vm3026_vm1, %v9455_v27  ;;  %14009 = vmatprep.subr.bf16.mxu1 %v14942_v60 }
 0xc86   :  { %14027 = vmatprep.subr.bf16.mxu0 %v14026_v40  ;;  %10882 = vmatprep.mubr.msk.f32.mxu1 %vm14944_vm3, %v14945_v42 }
 0xc87   :  { %10890 = vmatmul.mubr.msk.f32.vlgmr.msra.gmra.mrb[34].mxu0 %vm3026_vm1, %v9456_v32 }
 0xc88   :  { %14011 = vmatpush3.bf16.msra.mxu1 %v21657_v38  ;;  %14029 = vmatpush3.bf16.msra.mxu0 %v14026_v40  ;;  %v14022_v38 = vpack.c.bf16 %v9460_v4, %v9459_v23 }
 0xc89   :  { %10903 = vmatprep.mubr.msk.f32.mxu0 %vm3026_vm1, %v9455_v27  ;;  %14012 = vmatprep.subr.bf16.mxu1 %v14942_v60 }
 0xc8a   :  { %14054 = vmatprep.subr.bf16.mxu0 %v14942_v60 }
 0xc8b   :  { %10904 = vmatmul.mubr.msk.f32.vlgmr.msra.gmra.mrb[36].mxu0 %vm3026_vm1, %v9456_v32 }
 0xc8c   :  { %14014 = vmatpush3.bf16.msra.mxu1 %v21669_v62  ;;  %10973 = vmatprep.mubr.msk.f32.mxu0 %vm14944_vm3, %v14945_v42  ;;  %v6890_v62 = vld [vmem:[%s22916_s12] sm:$0xff] }
 0xc8d   :  { %14015 = vmatprep.subr.bf16.mxu1 %v14942_v60  ;;  %14056 = vmatpush3.bf16.msra.mxu0 %v21936_v3 }
 0xc8e   :  { %14057 = vmatprep.subr.bf16.mxu0 %v14942_v60 }
 0xc90   :  { %14017 = vmatpush3.bf16.msra.mxu1 %v21679_v36  ;;  %v6891_v36 = vld [vmem:[%s22916_s12 + $0x8] sm:$0xff] }
 0xc91   :  { %14023 = vmatprep.subr.bf16.mxu1 %v14022_v38  ;;  %v21925_v53 = vpack.c.bf16 %v6891_v36, %v6890_v62  ;;  %14059 = vmatpush3.bf16.msra.mxu0 %v21949_v19 }
 0xc92   :  { %14060 = vmatprep.subr.bf16.mxu0 %v14942_v60 }
 0xc93   :  { %10883 = vmatmul.mubr.msk.f32.vlgmr.msra.gmra.mrb[32].mxu1 %vm5153_vm8, %v21878_v51  ;;  %v9484_v51 = vld [vmem:[%s22916_s12 + $0x108] sm:$0xff] }
 0xc94   :  { %14025 = vmatpush3.bf16.msra.mxu1 %v14022_v38  ;;  %10896 = vmatprep.mubr.msk.f32.mxu1 %vm3026_vm1, %v9455_v27 }
 0xc95   :  { %14030 = vmatprep.subr.bf16.mxu1 %v14942_v60  ;;  %14062 = vmatpush3.bf16.msra.mxu0 %v21969_v26 }
 0xc96   :  { %14063 = vmatprep.subr.bf16.mxu0 %v14942_v60 }
 0xc97   :  { %10897 = vmatmul.mubr.msk.f32.vlgmr.msra.gmra.mrb[34].mxu1 %vm3026_vm1, %v9456_v32 }
 0xc98   :  { %10938 = vmatprep.mubr.msk.f32.mxu1 %vm14944_vm3, %v14945_v42  ;;  %14032 = vmatpush3.bf16.msra.mxu1 %v21925_v53 }
 0xc99   :  { %14033 = vmatprep.subr.bf16.mxu1 %v14942_v60  ;;  %14065 = vmatpush3.bf16.msra.mxu0 %v21989_v50 }
 0xc9a   :  { %14066 = vmatprep.subr.bf16.mxu0 %v14942_v60 }
 0xc9c   :  { %14035 = vmatpush3.bf16.msra.mxu1 %v21945_v44 }
 0xc9d   :  { %14036 = vmatprep.subr.bf16.mxu1 %v14942_v60  ;;  %14068 = vmatpush3.bf16.msra.mxu0 %v22009_v24 }
 0xc9e   :  { %14069 = vmatprep.subr.bf16.mxu0 %v14942_v60 }
 0xca0   :  { %14038 = vmatpush3.bf16.msra.mxu1 %v21965_v22 }
 0xca1   :  { %14039 = vmatprep.subr.bf16.mxu1 %v14942_v60  ;;  %14071 = vmatpush3.bf16.msra.mxu0 %v22029_v8 }
 0xca2   :  { %14072 = vmatprep.subr.bf16.mxu0 %v14942_v60 }
 0xca4   :  { %14041 = vmatpush3.bf16.msra.mxu1 %v21985_v52 }
 0xca5   :  { %14042 = vmatprep.subr.bf16.mxu1 %v14942_v60  ;;  %14074 = vmatpush3.bf16.msra.mxu0 %v22049_v37 }
 0xca6   :  { %14075 = vmatprep.subr.bf16.mxu0 %v14942_v60 }
 0xca8   :  { %14044 = vmatpush3.bf16.msra.mxu1 %v22005_v17 }
 0xca9   :  { %14045 = vmatprep.subr.bf16.mxu1 %v14942_v60  ;;  %14077 = vmatpush3.bf16.msra.mxu0 %v22069_v9 }
 0xcaa   :  { %14102 = vmatprep.subr.bf16.mxu0 %v14942_v60 }
 0xcac   :  { %14047 = vmatpush3.bf16.msra.mxu1 %v22025_v43 }
 0xcad   :  { %14048 = vmatprep.subr.bf16.mxu1 %v14942_v60 }
 0xcb0   :  { %14050 = vmatpush3.bf16.msra.mxu1 %v22045_v35 }
 0xcb1   :  { %14051 = vmatprep.subr.bf16.mxu1 %v14942_v60 }
 0xcb4   :  { %14053 = vmatpush3.bf16.msra.mxu1 %v22065_v34 }
 0xcb5   :  { %14078 = vmatprep.subr.bf16.mxu1 %v14942_v60 }
 0xd56   :  { %v6455_v7 = vpop.f32.mrb[30].mxu1  ;;  %v6525_v28 = vpop.f32.mrb[32].mxu0 }
 0xd57   :  { %v6600_v40 = vrot.slane %v6455_v7, 6  ;;  %v6610_v27 = vrot.slane %v6525_v28, 6  ;;  %v10846_v32 = vpop.f32.mrb[31].mxu1  ;;  %v10865_v23 = vpop.f32.mrb[33].mxu0  ;;  %v9489_v7 = vld [vmem:[%s22916_s12 + $0x130] sm:$0xff]  ;;  %v9490_v28 = vld [vmem:[%s22916_s12 + $0x138] sm:$0xff] }
 0xd58   :  { %v9492_v32 = vld [vmem:[%s22916_s12 + $0x148] sm:$0xff] }
 0xd59   :  { %v6602_v4 = vadd.f32 %v21696_v25, %v6600_v40  ;;  %v6612_v38 = vadd.f32 %v21700_v47, %v6610_v27  ;;  %v22142_v40 = vpack.c.bf16 %v9490_v28, %v9489_v7  ;;  %v9491_v27 = vld [vmem:[%s22916_s12 + $0x140] sm:$0xff] }
 0xd5a   :  { %v22078_v62 = vpop.f32.mrb[34].mxu0  ;;  %v22154_v23 = vpack.c.bf16 %v9492_v32, %v9491_v27 }
 0xd5b   :  { %v9453_v36 = vmul.f32 -1.442695, %v6602_v4  ;;  %v9454_v46 = vmul.f32 -1.442695, %v6612_v38  ;;  %v22080_v59 = vpop.f32.mrb[35].mxu0  ;;  %v9493_v4 = vld [vmem:[%s22916_s12 + $0x150] sm:$0xff] }
 0xd5c   :  { %v9494_v38 = vld [vmem:[%s22916_s12 + $0x158] sm:$0xff] }
 0xd5d   :  { %14822 = vpow2.f32 %v9453_v36  ;;  %v22166_v36 = vpack.c.bf16 %v9494_v38, %v9493_v4 }
 0xd5e   :  { %14824 = vpow2.f32 %v9454_v46  ;;  %v22082_v61 = vpop.f32.mrb[36].mxu0  ;;  %v9495_v46 = vld [vmem:[%s22916_s12 + $0x160] sm:$0xff] }
 0xd5f   :  { %v22084_v49 = vpop.f32.mrb[37].mxu0 }
 0xd66   :  { %v6595_v33 = vpop.f32.mrb[32].mxu1 }
 0xd67   :  { %v14823_v20 = vpop.eup %14822  ;;  %v10884_v39 = vpop.f32.mrb[33].mxu1  ;;  %v6596_v30 = vadd.f32 %v21713_v48, %v6595_v33  ;;  %v9483_v48 = vld [vmem:[%s22916_s12 + $0x100] sm:$0xff]  ;;  %v9496_v33 = vld [vmem:[%s22916_s12 + $0x168] sm:$0xff] }
 0xd68   :  { %v14825_v18 = vpop.eup %14824  ;;  %v6606_v55 = vadd.f32 1.0, %v14823_v20  ;;  %v22099_v12 = vpack.c.bf16 %v9484_v51, %v9483_v48  ;;  %v22178_v20 = vpack.c.bf16 %v9496_v33, %v9495_v46  ;;  %v9497_v39 = vld [vmem:[%s22916_s12 + $0x170] sm:$0xff] }
 0xd69   :  { %v6616_v25 = vadd.f32 1.0, %v14825_v18  ;;  %v6620_v13 = vrot.slane %v6596_v30, 6  ;;  %v9498_v18 = vld [vmem:[%s22916_s12 + $0x178] sm:$0xff] }
 0xd6a   :  { %14826 = vrcp.f32 %v6606_v55  ;;  %v22086_v47 = vpop.f32.mrb[34].mxu1  ;;  %v22190_v55 = vpack.c.bf16 %v9498_v18, %v9497_v39 }
 0xd6b   :  { %14828 = vrcp.f32 %v6616_v25  ;;  %v22088_v57 = vpop.f32.mrb[35].mxu1 }
 0xd74   :  { %v14827_v0 = vpop.eup %14826 }
 0xd75   :  { %v14829_v14 = vpop.eup %14828  ;;  %v6622_v11 = vmul.f32 %v14827_v0, %v6620_v13 }
 0xd76   :  { %v6629_v63 = vmul.f32 %v14829_v14, %v6627_v56  ;;  %v6625_v45 = vsub.f32 1.0, %v14829_v14 }
 0xd77   :  { %v6623_v21 = vadd.f32 %v21704_v10, %v6622_v11  ;;  %v9485_v10 = vld [vmem:[%s22916_s12 + $0x110] sm:$0xff] }
 0xd78   :  { %v22114_v29 = vpack.c.bf16 %v9486_v6, %v9485_v10 }
 0xd79   :  { %14830 = vtanh.f32 %v6623_v21 }
 0xd83   :  { %v14831_v54 = vpop.eup %14830 }
 0xd84   :  { %v6626_v58 = vmul.f32 %v14831_v54, %v6625_v45 }
 0xd86   :  { %v6630_v2 = vadd.f32 %v6629_v63, %v6626_v58  ;;  %v22223_v58 = vld [vmem:[%s22917_s13] ss:$0 sm:$0xff] }
 0xd88   :  { %v6885_v41 = vrot.slane %v6630_v2, 2 }
 0xd8a   :  { %6886 = vrot.lane.b32.xlu0 %v6885_v41, %s14948_s23 }
 0xdfc   :  { %v6887_v16 = vpop.permute.xlu0 %6886 }
 0xdfd   :  { %v22109_v5 = vsel %vm5153_vm8, %v21602_v15, %v6887_v16  ;;  %v9488_v15 = vld [vmem:[%s22916_s12 + $0x128] sm:$0xff] }
 0xdfe   :  { %10939 = vmatmul.mubr.f32.vlgmr.msra.gmra.mrb[36].mxu1 %v22109_v5  ;;  %10974 = vmatmul.mubr.f32.vlgmr.msra.gmra.mrb[38].mxu0 %v22109_v5  ;;  %v22130_v31 = vpack.c.bf16 %v9488_v15, %v9487_v1 }
 0xdff   :  { %14080 = vmatpush3.bf16.msra.mxu1 %v22099_v12  ;;  %11008 = vmatprep.mubr.msk.f32.mxu1 %vm14944_vm3, %v14945_v42 }
 0xe00   :  { %14081 = vmatprep.subr.bf16.mxu1 %v14942_v60  ;;  %14104 = vmatpush3.bf16.msra.mxu0 %v21925_v53 }
 0xe01   :  { %14105 = vmatprep.subr.bf16.mxu0 %v14942_v60  ;;  %11043 = vmatprep.mubr.msk.f32.mxu0 %vm14944_vm3, %v14945_v42 }
 0xe03   :  { %14083 = vmatpush3.bf16.msra.mxu1 %v22114_v29 }
 0xe04   :  { %14084 = vmatprep.subr.bf16.mxu1 %v14942_v60  ;;  %14107 = vmatpush3.bf16.msra.mxu0 %v21945_v44 }
 0xe05   :  { %14108 = vmatprep.subr.bf16.mxu0 %v14942_v60 }
 0xe07   :  { %14086 = vmatpush3.bf16.msra.mxu1 %v22130_v31 }
 0xe08   :  { %14087 = vmatprep.subr.bf16.mxu1 %v14942_v60  ;;  %14110 = vmatpush3.bf16.msra.mxu0 %v21965_v22 }
 0xe09   :  { %14111 = vmatprep.subr.bf16.mxu0 %v14942_v60 }
 0xe0b   :  { %14089 = vmatpush3.bf16.msra.mxu1 %v22142_v40 }
 0xe0c   :  { %14090 = vmatprep.subr.bf16.mxu1 %v14942_v60  ;;  %14113 = vmatpush3.bf16.msra.mxu0 %v21985_v52 }
 0xe0d   :  { %14114 = vmatprep.subr.bf16.mxu0 %v14942_v60 }
 0xe0f   :  { %14092 = vmatpush3.bf16.msra.mxu1 %v22154_v23 }
 0xe10   :  { %14093 = vmatprep.subr.bf16.mxu1 %v14942_v60  ;;  %14116 = vmatpush3.bf16.msra.mxu0 %v22005_v17 }
 0xe11   :  { %14117 = vmatprep.subr.bf16.mxu0 %v14942_v60 }
 0xe13   :  { %14095 = vmatpush3.bf16.msra.mxu1 %v22166_v36 }
 0xe14   :  { %14096 = vmatprep.subr.bf16.mxu1 %v14942_v60  ;;  %14119 = vmatpush3.bf16.msra.mxu0 %v22025_v43 }
 0xe15   :  { %14120 = vmatprep.subr.bf16.mxu0 %v14942_v60 }
 0xe17   :  { %14098 = vmatpush3.bf16.msra.mxu1 %v22178_v20 }
 0xe18   :  { %14099 = vmatprep.subr.bf16.mxu1 %v14942_v60  ;;  %14122 = vmatpush3.bf16.msra.mxu0 %v22045_v35 }
 0xe19   :  { %14123 = vmatprep.subr.bf16.mxu0 %v14942_v60 }
 0xe1b   :  { %14101 = vmatpush3.bf16.msra.mxu1 %v22190_v55 }
 0xe1c   :  { %14126 = vmatprep.subr.bf16.mxu1 %v14942_v60  ;;  %14125 = vmatpush3.bf16.msra.mxu0 %v22065_v34 }
 0xe1d   :  { %14150 = vmatprep.subr.bf16.mxu0 %v14942_v60 }
 0xe1e   :  { %11009 = vmatmul.mubr.f32.vlgmr.msra.gmra.mrb[38].mxu1 %v22109_v5 }
 0xe1f   :  { %14128 = vmatpush3.bf16.msra.mxu1 %v21936_v3  ;;  %11078 = vmatprep.mubr.msk.f32.mxu1 %vm14944_vm3, %v14945_v42 }
 0xe20   :  { %14129 = vmatprep.subr.bf16.mxu1 %v14942_v60 }
 0xe23   :  { %14131 = vmatpush3.bf16.msra.mxu1 %v21949_v19 }
 0xe24   :  { %14132 = vmatprep.subr.bf16.mxu1 %v14942_v60 }
 0xe27   :  { %14134 = vmatpush3.bf16.msra.mxu1 %v21969_v26 }
 0xe28   :  { %14135 = vmatprep.subr.bf16.mxu1 %v14942_v60 }
 0xe2b   :  { %14137 = vmatpush3.bf16.msra.mxu1 %v21989_v50 }
 0xe2c   :  { %14138 = vmatprep.subr.bf16.mxu1 %v14942_v60 }
 0xe2f   :  { %14140 = vmatpush3.bf16.msra.mxu1 %v22009_v24 }
 0xe30   :  { %14141 = vmatprep.subr.bf16.mxu1 %v14942_v60 }
 0xe33   :  { %14143 = vmatpush3.bf16.msra.mxu1 %v22029_v8 }
 0xe34   :  { %14144 = vmatprep.subr.bf16.mxu1 %v14942_v60 }
 0xe37   :  { %14146 = vmatpush3.bf16.msra.mxu1 %v22049_v37 }
 0xe38   :  { %14147 = vmatprep.subr.bf16.mxu1 %v14942_v60 }
 0xe3b   :  { %14149 = vmatpush3.bf16.msra.mxu1 %v22069_v9 }
 0xe3c   :  { %14174 = vmatprep.subr.bf16.mxu1 %v14942_v60 }
 0xed1   :  { %v6972_v25 = vpop.f32.mrb[36].mxu1  ;;  %v7059_v30 = vpop.f32.mrb[38].mxu0 }
 0xed2   :  { %v7157_v13 = vadd.f32 %v6972_v25, %v22080_v59  ;;  %v7164_v0 = vadd.f32 %v7059_v30, %v22088_v57  ;;  %v10940_v56 = vpop.f32.mrb[37].mxu1  ;;  %v10975_v14 = vpop.f32.mrb[39].mxu0 }
 0xed4   :  { %v9500_v11 = vmul.f32 -1.442695, %v7157_v13  ;;  %v9501_v63 = vmul.f32 -1.442695, %v7164_v0 }
 0xed6   :  { %14832 = vpow2.f32 %v9500_v11 }
 0xed7   :  { %14834 = vpow2.f32 %v9501_v63 }
 0xee0   :  { %v14833_v21 = vpop.eup %14832 }
 0xee1   :  { %v7161_v45 = vadd.f32 1.0, %v14833_v21  ;;  %v14835_v54 = vpop.eup %14834 }
 0xee2   :  { %v7168_v2 = vadd.f32 1.0, %v14835_v54 }
 0xee3   :  { %14836 = vrcp.f32 %v7161_v45 }
 0xee4   :  { %14838 = vrcp.f32 %v7168_v2 }
 0xeed   :  { %v14837_v16 = vpop.eup %14836 }
 0xeee   :  { %v14839_v1 = vpop.eup %14838 }
 0xeef   :  { %v7174_v15 = vsub.f32 1.0, %v14839_v1  ;;  %v7176_v27 = vmul.f32 %v14839_v1, %v22109_v5 }
 0xef1   :  { %v7153_v41 = vpop.f32.mrb[38].mxu1 }
 0xef2   :  { %v7154_v48 = vadd.f32 %v22223_v58, %v7153_v41  ;;  %v11010_v51 = vpop.f32.mrb[39].mxu1 }
 0xef4   :  { %v7171_v10 = vmul.f32 %v14837_v16, %v7154_v48 }
 0xef6   :  { %v7172_v6 = vadd.f32 %v7171_v10, %v22084_v49 }
 0xef8   :  { %14840 = vtanh.f32 %v7172_v6 }
 0xf02   :  { %v14841_v7 = vpop.eup %14840 }
 0xf03   :  { %v7175_v28 = vmul.f32 %v14841_v7, %v7174_v15 }
 0xf05   :  { %v22228_v32 = vadd.f32 %v7176_v27, %v7175_v28 }
 0xf07   :  { %7178 = vst [vmem:[#allocation2] sm:$0x3] %v22228_v32  ;;  %11044 = vmatmul.mubr.f32.vlgmr.msra.gmra.mrb[40].mxu0 %v22228_v32  ;;  %11079 = vmatmul.mubr.f32.vlgmr.msra.gmra.mrb[40].mxu1 %v22228_v32  ;;  %v7473_v63 = vrot.slane %v22228_v32, 6 }
 0xf08   :  { %14152 = vmatpush3.bf16.msra.mxu0 %v22099_v12  ;;  %11113 = vmatprep.mubr.msk.f32.mxu0 %vm14944_vm3, %v14945_v42 }
 0xf09   :  { %14153 = vmatprep.subr.bf16.mxu0 %v14942_v60  ;;  %14176 = vmatpush3.bf16.msra.mxu1 %v21925_v53 }
 0xf0a   :  { %14177 = vmatprep.subr.bf16.mxu1 %v14942_v60  ;;  %11148 = vmatprep.mubr.msk.f32.mxu1 %vm14944_vm3, %v14945_v42 }
 0xf0c   :  { %14155 = vmatpush3.bf16.msra.mxu0 %v22114_v29 }
 0xf0d   :  { %14156 = vmatprep.subr.bf16.mxu0 %v14942_v60  ;;  %14179 = vmatpush3.bf16.msra.mxu1 %v21945_v44 }
 0xf0e   :  { %14180 = vmatprep.subr.bf16.mxu1 %v14942_v60 }
 0xf10   :  { %14158 = vmatpush3.bf16.msra.mxu0 %v22130_v31 }
 0xf11   :  { %14159 = vmatprep.subr.bf16.mxu0 %v14942_v60  ;;  %14182 = vmatpush3.bf16.msra.mxu1 %v21965_v22 }
 0xf12   :  { %14183 = vmatprep.subr.bf16.mxu1 %v14942_v60 }
 0xf14   :  { %14161 = vmatpush3.bf16.msra.mxu0 %v22142_v40 }
 0xf15   :  { %14162 = vmatprep.subr.bf16.mxu0 %v14942_v60  ;;  %14185 = vmatpush3.bf16.msra.mxu1 %v21985_v52 }
 0xf16   :  { %14186 = vmatprep.subr.bf16.mxu1 %v14942_v60 }
 0xf18   :  { %14164 = vmatpush3.bf16.msra.mxu0 %v22154_v23 }
 0xf19   :  { %14165 = vmatprep.subr.bf16.mxu0 %v14942_v60  ;;  %14188 = vmatpush3.bf16.msra.mxu1 %v22005_v17 }
 0xf1a   :  { %14189 = vmatprep.subr.bf16.mxu1 %v14942_v60 }
 0xf1c   :  { %14167 = vmatpush3.bf16.msra.mxu0 %v22166_v36 }
 0xf1d   :  { %14168 = vmatprep.subr.bf16.mxu0 %v14942_v60  ;;  %14191 = vmatpush3.bf16.msra.mxu1 %v22025_v43 }
 0xf1e   :  { %14192 = vmatprep.subr.bf16.mxu1 %v14942_v60 }
 0xf20   :  { %14170 = vmatpush3.bf16.msra.mxu0 %v22178_v20 }
 0xf21   :  { %14171 = vmatprep.subr.bf16.mxu0 %v14942_v60  ;;  %14194 = vmatpush3.bf16.msra.mxu1 %v22045_v35 }
 0xf22   :  { %14195 = vmatprep.subr.bf16.mxu1 %v14942_v60 }
 0xf24   :  { %14173 = vmatpush3.bf16.msra.mxu0 %v22190_v55 }
 0xf25   :  { %14198 = vmatprep.subr.bf16.mxu0 %v14942_v60  ;;  %14197 = vmatpush3.bf16.msra.mxu1 %v22065_v34 }
 0xf26   :  { %14222 = vmatprep.subr.bf16.mxu1 %v14942_v60 }
 0xf27   :  { %11114 = vmatmul.mubr.f32.vlgmr.msra.gmra.mrb[42].mxu0 %v22228_v32 }
 0xf28   :  { %14200 = vmatpush3.bf16.msra.mxu0 %v21936_v3  ;;  %11183 = vmatprep.mubr.msk.f32.mxu0 %vm14944_vm3, %v14945_v42 }
 0xf29   :  { %14201 = vmatprep.subr.bf16.mxu0 %v14942_v60 }
 0xf2c   :  { %14203 = vmatpush3.bf16.msra.mxu0 %v21949_v19 }
 0xf2d   :  { %14204 = vmatprep.subr.bf16.mxu0 %v14942_v60 }
 0xf30   :  { %14206 = vmatpush3.bf16.msra.mxu0 %v21969_v26 }
 0xf31   :  { %14207 = vmatprep.subr.bf16.mxu0 %v14942_v60 }
 0xf34   :  { %14209 = vmatpush3.bf16.msra.mxu0 %v21989_v50 }
 0xf35   :  { %14210 = vmatprep.subr.bf16.mxu0 %v14942_v60 }
 0xf38   :  { %14212 = vmatpush3.bf16.msra.mxu0 %v22009_v24 }
 0xf39   :  { %14213 = vmatprep.subr.bf16.mxu0 %v14942_v60 }
 0xf3c   :  { %14215 = vmatpush3.bf16.msra.mxu0 %v22029_v8 }
 0xf3d   :  { %14216 = vmatprep.subr.bf16.mxu0 %v14942_v60 }
 0xf40   :  { %14218 = vmatpush3.bf16.msra.mxu0 %v22049_v37 }
 0xf41   :  { %14219 = vmatprep.subr.bf16.mxu0 %v14942_v60 }
 0xf44   :  { %14221 = vmatpush3.bf16.msra.mxu0 %v22069_v9 }
 0xf45   :  { %14246 = vmatprep.subr.bf16.mxu0 %v14942_v60 }
 0xfda   :  { %v7261_v5 = vpop.f32.mrb[40].mxu0  ;;  %v7347_v4 = vpop.f32.mrb[40].mxu1 }
 0xfdb   :  { %v7445_v38 = vrot.slane %v7261_v5, 6  ;;  %v7455_v46 = vrot.slane %v7347_v4, 6  ;;  %v11045_v33 = vpop.f32.mrb[41].mxu0  ;;  %v11080_v39 = vpop.f32.mrb[41].mxu1 }
 0xfdd   :  { %v7447_v18 = vadd.f32 %v7445_v38, %v22080_v59  ;;  %v7457_v25 = vadd.f32 %v7455_v46, %v22088_v57 }
 0xfdf   :  { %v9535_v30 = vmul.f32 -1.442695, %v7447_v18  ;;  %v9536_v13 = vmul.f32 -1.442695, %v7457_v25 }
 0xfe1   :  { %14842 = vpow2.f32 %v9536_v13 }
 0xfe2   :  { %14844 = vpow2.f32 %v9535_v30 }
 0xfeb   :  { %v14843_v0 = vpop.eup %14842 }
 0xfec   :  { %v14845_v56 = vpop.eup %14844  ;;  %v7461_v14 = vadd.f32 1.0, %v14843_v0 }
 0xfed   :  { %v7451_v11 = vadd.f32 1.0, %v14845_v56  ;;  %v9609_v56 = vld [vmem:[%s22916_s12 + $0x90] sm:$0xff] }
 0xfee   :  { %14846 = vrcp.f32 %v7461_v14  ;;  %v9610_v14 = vld [vmem:[%s22916_s12 + $0x98] sm:$0xff] }
 0xfef   :  { %14848 = vrcp.f32 %v7451_v11 }
 0xff8   :  { %v14847_v21 = vpop.eup %14846 }
 0xff9   :  { %v7475_v54 = vmul.f32 %v14847_v21, %v7473_v63  ;;  %v14849_v51 = vpop.eup %14848  ;;  %v7470_v6 = vsub.f32 1.0, %v14847_v21  ;;  %v22415_v63 = vpack.c.bf16 %v9610_v14, %v9609_v56  ;;  %v8084_v21 = vld [vmem:[%s22916_s12 + $0x20] sm:$0xff] }
 0xffa   :  { %v7440_v45 = vpop.f32.mrb[42].mxu0 }
 0xffb   :  { %v7441_v2 = vadd.f32 %v22223_v58, %v7440_v45  ;;  %v11115_v41 = vpop.f32.mrb[43].mxu0  ;;  %v8085_v45 = vld [vmem:[%s22916_s12 + $0x28] sm:$0xff] }
 0xffc   :  { %v9612_v41 = vld [vmem:[%s22916_s12 + $0xa8] sm:$0xff] }
 0xffd   :  { %v7465_v48 = vrot.slane %v7441_v2, 6  ;;  %v9611_v2 = vld [vmem:[%s22916_s12 + $0xa0] sm:$0xff] }
 0xfff   :  { %v7467_v16 = vmul.f32 %v14849_v51, %v7465_v48  ;;  %v22436_v48 = vpack.c.bf16 %v9612_v41, %v9611_v2  ;;  %v8086_v51 = vld [vmem:[%s22916_s12 + $0x30] sm:$0xff] }
0x1001   :  { %v7468_v10 = vadd.f32 %v7467_v16, %v22084_v49  ;;  %v8087_v16 = vld [vmem:[%s22916_s12 + $0x38] sm:$0xff] }
0x1003   :  { %14850 = vtanh.f32 %v7468_v10  ;;  %v22447_v10 = vpack.c.bf16 %v8087_v16, %v8086_v51 }
0x100d   :  { %v14851_v1 = vpop.eup %14850 }
0x100e   :  { %v7471_v15 = vmul.f32 %v14851_v1, %v7470_v6  ;;  %v9613_v6 = vld [vmem:[%s22916_s12 + $0xb0] sm:$0xff]  ;;  %v9614_v1 = vld [vmem:[%s22916_s12 + $0xb8] sm:$0xff] }
0x1010   :  { %v22293_v7 = vadd.f32 %v7475_v54, %v7471_v15  ;;  %v22428_v54 = vpack.c.bf16 %v8085_v45, %v8084_v21  ;;  %v22456_v15 = vpack.c.bf16 %v9614_v1, %v9613_v6 }
0x1012   :  { %7477 = vst [vmem:[#allocation2] sm:$0xc] %v22293_v7  ;;  %v7495_v28 = vrot.slane %v22293_v7, 2 }
0x1014   :  { %11149 = vmatmul.mubr.f32.vlgmr.msra.gmra.mrb[42].mxu1 %v7495_v28  ;;  %11184 = vmatmul.mubr.f32.vlgmr.msra.gmra.mrb[44].mxu0 %v7495_v28 }
0x1015   :  { %14224 = vmatpush3.bf16.msra.mxu1 %v22099_v12  ;;  %11218 = vmatprep.mubr.msk.f32.mxu1 %vm14944_vm3, %v14945_v42 }
0x1016   :  { %14225 = vmatprep.subr.bf16.mxu1 %v14942_v60  ;;  %14248 = vmatpush3.bf16.msra.mxu0 %v21925_v53 }
0x1017   :  { %14249 = vmatprep.subr.bf16.mxu0 %v14942_v60  ;;  %11253 = vmatprep.mubr.msk.f32.mxu0 %vm14944_vm3, %v14945_v42 }
0x1019   :  { %14227 = vmatpush3.bf16.msra.mxu1 %v22114_v29 }
0x101a   :  { %14228 = vmatprep.subr.bf16.mxu1 %v14942_v60  ;;  %14251 = vmatpush3.bf16.msra.mxu0 %v21945_v44 }
0x101b   :  { %14252 = vmatprep.subr.bf16.mxu0 %v14942_v60 }
0x101d   :  { %14230 = vmatpush3.bf16.msra.mxu1 %v22130_v31 }
0x101e   :  { %14231 = vmatprep.subr.bf16.mxu1 %v14942_v60  ;;  %14254 = vmatpush3.bf16.msra.mxu0 %v21965_v22 }
0x101f   :  { %14255 = vmatprep.subr.bf16.mxu0 %v14942_v60 }
0x1021   :  { %14233 = vmatpush3.bf16.msra.mxu1 %v22142_v40 }
0x1022   :  { %14234 = vmatprep.subr.bf16.mxu1 %v14942_v60  ;;  %14257 = vmatpush3.bf16.msra.mxu0 %v21985_v52 }
0x1023   :  { %14258 = vmatprep.subr.bf16.mxu0 %v14942_v60 }
0x1025   :  { %14236 = vmatpush3.bf16.msra.mxu1 %v22154_v23 }
0x1026   :  { %14237 = vmatprep.subr.bf16.mxu1 %v14942_v60  ;;  %14260 = vmatpush3.bf16.msra.mxu0 %v22005_v17 }
0x1027   :  { %14261 = vmatprep.subr.bf16.mxu0 %v14942_v60 }
0x1029   :  { %14239 = vmatpush3.bf16.msra.mxu1 %v22166_v36 }
0x102a   :  { %14240 = vmatprep.subr.bf16.mxu1 %v14942_v60  ;;  %14263 = vmatpush3.bf16.msra.mxu0 %v22025_v43 }
0x102b   :  { %14264 = vmatprep.subr.bf16.mxu0 %v14942_v60 }
0x102d   :  { %14242 = vmatpush3.bf16.msra.mxu1 %v22178_v20 }
0x102e   :  { %14243 = vmatprep.subr.bf16.mxu1 %v14942_v60  ;;  %14266 = vmatpush3.bf16.msra.mxu0 %v22045_v35 }
0x102f   :  { %14267 = vmatprep.subr.bf16.mxu0 %v14942_v60 }
0x1031   :  { %14245 = vmatpush3.bf16.msra.mxu1 %v22190_v55 }
0x1032   :  { %14270 = vmatprep.subr.bf16.mxu1 %v14942_v60  ;;  %14269 = vmatpush3.bf16.msra.mxu0 %v22065_v34  ;;  %v7774_v34 = vrot.slane %v22293_v7, 6  ;;  %v8088_v7 = vld [vmem:[%s22916_s12 + $0x40] sm:$0xff] }
0x1033   :  { %14294 = vmatprep.subr.bf16.mxu0 %v14942_v60 }
0x1034   :  { %11219 = vmatmul.mubr.f32.vlgmr.msra.gmra.mrb[44].mxu1 %v7495_v28  ;;  %v8089_v28 = vld [vmem:[%s22916_s12 + $0x48] sm:$0xff] }
0x1035   :  { %14272 = vmatpush3.bf16.msra.mxu1 %v21936_v3  ;;  %11288 = vmatprep.mubr.msk.f32.mxu1 %vm14944_vm3, %v14945_v42 }
0x1036   :  { %14273 = vmatprep.subr.bf16.mxu1 %v14942_v60 }
0x1039   :  { %14275 = vmatpush3.bf16.msra.mxu1 %v21949_v19 }
0x103a   :  { %14276 = vmatprep.subr.bf16.mxu1 %v14942_v60 }
0x103d   :  { %14278 = vmatpush3.bf16.msra.mxu1 %v21969_v26 }
0x103e   :  { %14279 = vmatprep.subr.bf16.mxu1 %v14942_v60 }
0x1041   :  { %14281 = vmatpush3.bf16.msra.mxu1 %v21989_v50 }
0x1042   :  { %14282 = vmatprep.subr.bf16.mxu1 %v14942_v60 }
0x1045   :  { %14284 = vmatpush3.bf16.msra.mxu1 %v22009_v24 }
0x1046   :  { %14285 = vmatprep.subr.bf16.mxu1 %v14942_v60 }
0x1049   :  { %14287 = vmatpush3.bf16.msra.mxu1 %v22029_v8 }
0x104a   :  { %14288 = vmatprep.subr.bf16.mxu1 %v14942_v60 }
0x104d   :  { %14290 = vmatpush3.bf16.msra.mxu1 %v22049_v37 }
0x104e   :  { %14291 = vmatprep.subr.bf16.mxu1 %v14942_v60 }
0x1051   :  { %14293 = vmatpush3.bf16.msra.mxu1 %v22069_v9 }
0x1052   :  { %14318 = vmatprep.subr.bf16.mxu1 %v14942_v60 }
0x10e7   :  { %v7563_v53 = vpop.f32.mrb[42].mxu1  ;;  %v7649_v3 = vpop.f32.mrb[44].mxu0 }
0x10e8   :  { %v7747_v44 = vrot.slane %v7563_v53, 4  ;;  %v7757_v19 = vrot.slane %v7649_v3, 4  ;;  %v11150_v22 = vpop.f32.mrb[43].mxu1  ;;  %v11185_v26 = vpop.f32.mrb[45].mxu0  ;;  %v22467_v53 = vpack.c.bf16 %v8089_v28, %v8088_v7  ;;  %v9615_v3 = vld [vmem:[%s22916_s12 + $0xc0] sm:$0xff] }
0x10e9   :  { %v8090_v22 = vld [vmem:[%s22916_s12 + $0x50] sm:$0xff]  ;;  %v8091_v26 = vld [vmem:[%s22916_s12 + $0x58] sm:$0xff] }
0x10ea   :  { %v7749_v52 = vadd.f32 %v7747_v44, %v22080_v59  ;;  %v7759_v50 = vadd.f32 %v7757_v19, %v22088_v57  ;;  %v9616_v44 = vld [vmem:[%s22916_s12 + $0xc8] sm:$0xff] }
0x10eb   :  { %v22476_v19 = vpack.c.bf16 %v9616_v44, %v9615_v3  ;;  %v9623_v44 = vld [vmem:[%s22916_s12 + $0x100] sm:$0xff] }
0x10ec   :  { %v9570_v17 = vmul.f32 -1.442695, %v7749_v52  ;;  %v9571_v24 = vmul.f32 -1.442695, %v7759_v50  ;;  %v9617_v52 = vld [vmem:[%s22916_s12 + $0xd0] sm:$0xff]  ;;  %v22488_v50 = vpack.c.bf16 %v8091_v26, %v8090_v22 }
0x10ee   :  { %14852 = vpow2.f32 %v9571_v24 }
0x10ef   :  { %14854 = vpow2.f32 %v9570_v17  ;;  %v9618_v17 = vld [vmem:[%s22916_s12 + $0xd8] sm:$0xff] }
0x10f0   :  { %v22495_v24 = vpack.c.bf16 %v9618_v17, %v9617_v52  ;;  %v9626_v52 = vld [vmem:[%s22916_s12 + $0x118] sm:$0xff] }
0x10f8   :  { %v14853_v43 = vpop.eup %14852 }
0x10f9   :  { %v14855_v8 = vpop.eup %14854  ;;  %v7763_v35 = vadd.f32 1.0, %v14853_v43  ;;  %v8092_v43 = vld [vmem:[%s22916_s12 + $0x60] sm:$0xff] }
0x10fa   :  { %v7753_v37 = vadd.f32 1.0, %v14855_v8  ;;  %v8093_v8 = vld [vmem:[%s22916_s12 + $0x68] sm:$0xff] }
0x10fb   :  { %14856 = vrcp.f32 %v7763_v35  ;;  %v9619_v35 = vld [vmem:[%s22916_s12 + $0xe0] sm:$0xff] }
0x10fc   :  { %14858 = vrcp.f32 %v7753_v37  ;;  %v9620_v37 = vld [vmem:[%s22916_s12 + $0xe8] sm:$0xff] }
0x1105   :  { %v14857_v9 = vpop.eup %14856 }
0x1106   :  { %v7776_v32 = vmul.f32 %v14857_v9, %v7774_v34  ;;  %v14859_v46 = vpop.eup %14858  ;;  %v7772_v18 = vsub.f32 1.0, %v14857_v9  ;;  %v22511_v34 = vpack.c.bf16 %v8093_v8, %v8092_v43  ;;  %v22515_v9 = vpack.c.bf16 %v9620_v37, %v9619_v35  ;;  %v9627_v43 = vld [vmem:[%s22916_s12 + $0x120] sm:$0xff]  ;;  %v9628_v8 = vld [vmem:[%s22916_s12 + $0x128] sm:$0xff]  ;;  %v9629_v37 = vld [vmem:[%s22916_s12 + $0x130] sm:$0xff] }
0x1107   :  { %v7742_v27 = vpop.f32.mrb[44].mxu1  ;;  %v22582_v35 = vpack.c.bf16 %v9628_v8, %v9627_v43 }
0x1108   :  { %v7743_v5 = vadd.f32 %v22223_v58, %v7742_v27  ;;  %v11220_v4 = vpop.f32.mrb[45].mxu1  ;;  %v8094_v27 = vld [vmem:[%s22916_s12 + $0x70] sm:$0xff] }
0x1109   :  { %v9622_v4 = vld [vmem:[%s22916_s12 + $0xf8] sm:$0xff] }
0x110a   :  { %v7767_v38 = vrot.slane %v7743_v5, 4  ;;  %v9621_v5 = vld [vmem:[%s22916_s12 + $0xf0] sm:$0xff] }
0x110c   :  { %v7769_v33 = vmul.f32 %v14859_v46, %v7767_v38  ;;  %v22535_v46 = vpack.c.bf16 %v9622_v4, %v9621_v5  ;;  %v9631_v5 = vld [vmem:[%s22916_s12 + $0x140] sm:$0xff]  ;;  %v9632_v4 = vld [vmem:[%s22916_s12 + $0x148] sm:$0xff] }
0x110e   :  { %v7770_v39 = vadd.f32 %v7769_v33, %v22084_v49 }
0x1110   :  { %14860 = vtanh.f32 %v7770_v39 }
0x111a   :  { %v14861_v25 = vpop.eup %14860 }
0x111b   :  { %v7773_v30 = vmul.f32 %v14861_v25, %v7772_v18 }
0x111d   :  { %v22356_v13 = vadd.f32 %v7776_v32, %v7773_v30  ;;  %v8095_v32 = vld [vmem:[%s22916_s12 + $0x78] sm:$0xff] }
0x111e   :  { %v22531_v38 = vpack.c.bf16 %v8095_v32, %v8094_v27  ;;  %v9630_v27 = vld [vmem:[%s22916_s12 + $0x138] sm:$0xff] }
0x111f   :  { %7778 = vst [vmem:[#allocation2] sm:$0x30] %v22356_v13  ;;  %v7796_v0 = vrot.slane %v22356_v13, 4  ;;  %v8075_v21 = vrot.slane %v22356_v13, 6  ;;  %v9624_v13 = vld [vmem:[%s22916_s12 + $0x108] sm:$0xff]  ;;  %v22594_v32 = vpack.c.bf16 %v9630_v27, %v9629_v37 }
0x1121   :  { %11254 = vmatmul.mubr.f32.vlgmr.msra.gmra.mrb[46].mxu0 %v7796_v0  ;;  %11289 = vmatmul.mubr.f32.vlgmr.msra.gmra.mrb[46].mxu1 %v7796_v0 }
0x1122   :  { %14296 = vmatpush3.bf16.msra.mxu0 %v22099_v12  ;;  %11323 = vmatprep.mubr.msk.f32.mxu0 %vm14944_vm3, %v14945_v42  ;;  %v8080_v12 = vld [vmem:[%s22916_s12] sm:$0xff] }
0x1123   :  { %14297 = vmatprep.subr.bf16.mxu0 %v14942_v60  ;;  %11358 = vmatprep.mubr.msk.f32.mxu1 %vm14944_vm3, %v14945_v42 }
0x1126   :  { %14299 = vmatpush3.bf16.msra.mxu0 %v22114_v29  ;;  %v8081_v29 = vld [vmem:[%s22916_s12 + $0x8] sm:$0xff] }
0x1127   :  { %14300 = vmatprep.subr.bf16.mxu0 %v14942_v60 }
0x112a   :  { %14302 = vmatpush3.bf16.msra.mxu0 %v22130_v31  ;;  %v9607_v31 = vld [vmem:[%s22916_s12 + $0x80] sm:$0xff] }
0x112b   :  { %14303 = vmatprep.subr.bf16.mxu0 %v14942_v60 }
0x112e   :  { %14305 = vmatpush3.bf16.msra.mxu0 %v22142_v40  ;;  %v22391_v40 = vpack.c.bf16 %v8081_v29, %v8080_v12 }
0x112f   :  { %14306 = vmatprep.subr.bf16.mxu0 %v14942_v60 }
0x1130   :  { %14320 = vmatpush3.bf16.msra.mxu1 %v22391_v40 }
0x1131   :  { %14321 = vmatprep.subr.bf16.mxu1 %v14942_v60 }
0x1132   :  { %14308 = vmatpush3.bf16.msra.mxu0 %v22154_v23  ;;  %v9608_v23 = vld [vmem:[%s22916_s12 + $0x88] sm:$0xff] }
0x1133   :  { %14309 = vmatprep.subr.bf16.mxu0 %v14942_v60 }
0x1136   :  { %14311 = vmatpush3.bf16.msra.mxu0 %v22166_v36  ;;  %v8082_v36 = vld [vmem:[%s22916_s12 + $0x10] sm:$0xff] }
0x1137   :  { %14312 = vmatprep.subr.bf16.mxu0 %v14942_v60 }
0x113a   :  { %14314 = vmatpush3.bf16.msra.mxu0 %v22178_v20  ;;  %v8083_v20 = vld [vmem:[%s22916_s12 + $0x18] sm:$0xff] }
0x113b   :  { %14315 = vmatprep.subr.bf16.mxu0 %v14942_v60  ;;  %v22411_v11 = vpack.c.bf16 %v8083_v20, %v8082_v36 }
0x113d   :  { %14323 = vmatpush3.bf16.msra.mxu1 %v22411_v11 }
0x113e   :  { %14317 = vmatpush3.bf16.msra.mxu0 %v22190_v55  ;;  %v22402_v55 = vpack.c.bf16 %v9608_v23, %v9607_v31  ;;  %14324 = vmatprep.subr.bf16.mxu1 %v14942_v60 }
0x113f   :  { %14342 = vmatprep.subr.bf16.mxu0 %v14942_v60 }
0x1141   :  { %11324 = vmatmul.mubr.f32.vlgmr.msra.gmra.mrb[48].mxu0 %v7796_v0  ;;  %14326 = vmatpush3.bf16.msra.mxu1 %v22428_v54 }
0x1142   :  { %11393 = vmatprep.mubr.msk.f32.mxu0 %vm14944_vm3, %v14945_v42  ;;  %14344 = vmatpush3.bf16.msra.mxu0 %v22402_v55 }
0x1143   :  { %14345 = vmatprep.subr.bf16.mxu0 %v14942_v60  ;;  %14327 = vmatprep.subr.bf16.mxu1 %v14942_v60 }
0x1145   :  { %14329 = vmatpush3.bf16.msra.mxu1 %v22447_v10 }
0x1146   :  { %14347 = vmatpush3.bf16.msra.mxu0 %v22415_v63  ;;  %14330 = vmatprep.subr.bf16.mxu1 %v14942_v60 }
0x1147   :  { %14348 = vmatprep.subr.bf16.mxu0 %v14942_v60 }
0x1149   :  { %14332 = vmatpush3.bf16.msra.mxu1 %v22467_v53 }
0x114a   :  { %14350 = vmatpush3.bf16.msra.mxu0 %v22436_v48  ;;  %14333 = vmatprep.subr.bf16.mxu1 %v14942_v60 }
0x114b   :  { %14351 = vmatprep.subr.bf16.mxu0 %v14942_v60 }
0x114d   :  { %14335 = vmatpush3.bf16.msra.mxu1 %v22488_v50 }
0x114e   :  { %14353 = vmatpush3.bf16.msra.mxu0 %v22456_v15  ;;  %14336 = vmatprep.subr.bf16.mxu1 %v14942_v60 }
0x114f   :  { %14354 = vmatprep.subr.bf16.mxu0 %v14942_v60 }
0x1151   :  { %14338 = vmatpush3.bf16.msra.mxu1 %v22511_v34 }
0x1152   :  { %14356 = vmatpush3.bf16.msra.mxu0 %v22476_v19  ;;  %14339 = vmatprep.subr.bf16.mxu1 %v14942_v60 }
0x1153   :  { %14357 = vmatprep.subr.bf16.mxu0 %v14942_v60 }
0x1155   :  { %14341 = vmatpush3.bf16.msra.mxu1 %v22531_v38 }
0x1156   :  { %14359 = vmatpush3.bf16.msra.mxu0 %v22495_v24  ;;  %14366 = vmatprep.subr.bf16.mxu1 %v14942_v60 }
0x1157   :  { %14360 = vmatprep.subr.bf16.mxu0 %v14942_v60 }
0x115a   :  { %14362 = vmatpush3.bf16.msra.mxu0 %v22515_v9 }
0x115b   :  { %14363 = vmatprep.subr.bf16.mxu0 %v14942_v60 }
0x115e   :  { %14365 = vmatpush3.bf16.msra.mxu0 %v22535_v46 }
0x115f   :  { %14390 = vmatprep.subr.bf16.mxu0 %v14942_v60 }
0x11f4   :  { %v7864_v33 = vpop.f32.mrb[46].mxu0  ;;  %v7950_v39 = vpop.f32.mrb[46].mxu1 }
0x11f5   :  { %v8048_v18 = vrot.slane %v7864_v33, 2  ;;  %v8058_v25 = vrot.slane %v7950_v39, 2  ;;  %v11255_v30 = vpop.f32.mrb[47].mxu0  ;;  %v11290_v0 = vpop.f32.mrb[47].mxu1  ;;  %v22606_v33 = vpack.c.bf16 %v9632_v4, %v9631_v5  ;;  %v9633_v39 = vld [vmem:[%s22916_s12 + $0x150] sm:$0xff] }
0x11f6   :  { %v9635_v30 = vld [vmem:[%s22916_s12 + $0x160] sm:$0xff]  ;;  %v9636_v0 = vld [vmem:[%s22916_s12 + $0x168] sm:$0xff] }
0x11f7   :  { %v8050_v12 = vadd.f32 %v8048_v18, %v22080_v59  ;;  %v8060_v29 = vadd.f32 %v8058_v25, %v22088_v57  ;;  %v9634_v18 = vld [vmem:[%s22916_s12 + $0x158] sm:$0xff] }
0x11f8   :  { %v22618_v25 = vpack.c.bf16 %v9634_v18, %v9633_v39 }
0x11f9   :  { %v9605_v31 = vmul.f32 -1.442695, %v8050_v12  ;;  %v9606_v23 = vmul.f32 -1.442695, %v8060_v29  ;;  %v22630_v12 = vpack.c.bf16 %v9636_v0, %v9635_v30  ;;  %v9637_v29 = vld [vmem:[%s22916_s12 + $0x170] sm:$0xff] }
0x11fb   :  { %14862 = vpow2.f32 %v9606_v23 }
0x11fc   :  { %14864 = vpow2.f32 %v9605_v31  ;;  %v9638_v31 = vld [vmem:[%s22916_s12 + $0x178] sm:$0xff] }
0x11fd   :  { %v22642_v23 = vpack.c.bf16 %v9638_v31, %v9637_v29 }
0x1205   :  { %v14863_v36 = vpop.eup %14862 }
0x1206   :  { %v14865_v20 = vpop.eup %14864  ;;  %v8064_v56 = vadd.f32 1.0, %v14863_v36 }
0x1207   :  { %v8054_v14 = vadd.f32 1.0, %v14865_v20 }
0x1208   :  { %14866 = vrcp.f32 %v8064_v56 }
0x1209   :  { %14868 = vrcp.f32 %v8054_v14 }
0x1212   :  { %v14867_v45 = vpop.eup %14866 }
0x1213   :  { %v8077_v41 = vmul.f32 %v14867_v45, %v8075_v21  ;;  %v14869_v57 = vpop.eup %14868  ;;  %v8073_v7 = vsub.f32 1.0, %v14867_v45 }
0x1214   :  { %v8043_v2 = vpop.f32.mrb[48].mxu0 }
0x1215   :  { %v8044_v51 = vadd.f32 %v22223_v58, %v8043_v2  ;;  %v11325_v59 = vpop.f32.mrb[49].mxu0  ;;  %v22553_v58 = vpack.c.bf16 %v9624_v13, %v9623_v44 }
0x1217   :  { %v8068_v16 = vrot.slane %v8044_v51, 2 }
0x1219   :  { %v8070_v6 = vmul.f32 %v14869_v57, %v8068_v16  ;;  %v22675_v57 = vld [vmem:[%s22917_s13] ss:$0 sm:$0xff] }
0x121b   :  { %v8071_v1 = vadd.f32 %v8070_v6, %v22084_v49  ;;  %v9625_v49 = vld [vmem:[%s22916_s12 + $0x110] sm:$0xff] }
0x121c   :  { %v22566_v17 = vpack.c.bf16 %v9626_v52, %v9625_v49 }
0x121d   :  { %14870 = vtanh.f32 %v8071_v1 }
0x1227   :  { %v14871_v28 = vpop.eup %14870 }
0x1228   :  { %v8074_v3 = vmul.f32 %v14871_v28, %v8073_v7 }
0x122a   :  { %v8078_v22 = vadd.f32 %v8077_v41, %v8074_v3 }
0x122c   :  { %8079 = vst [vmem:[#allocation2] sm:$0xc0] %v8078_v22  ;;  %v22555_v26 = vrot.slane %v8078_v22, 6 }
0x122e   :  { %11359 = vmatmul.mubr.f32.vlgmr.msra.gmra.mrb[48].mxu1 %v22555_v26  ;;  %11394 = vmatmul.mubr.f32.vlgmr.msra.gmra.mrb[50].mxu0 %v22555_v26 }
0x122f   :  { %14368 = vmatpush3.bf16.msra.mxu1 %v22553_v58  ;;  %11428 = vmatprep.mubr.msk.f32.mxu1 %vm14944_vm3, %v14945_v42 }
0x1230   :  { %14369 = vmatprep.subr.bf16.mxu1 %v14942_v60  ;;  %14392 = vmatpush3.bf16.msra.mxu0 %v22391_v40 }
0x1231   :  { %14393 = vmatprep.subr.bf16.mxu0 %v14942_v60  ;;  %11463 = vmatprep.mubr.msk.f32.mxu0 %vm14944_vm3, %v14945_v42 }
0x1233   :  { %14371 = vmatpush3.bf16.msra.mxu1 %v22566_v17 }
0x1234   :  { %14372 = vmatprep.subr.bf16.mxu1 %v14942_v60  ;;  %14395 = vmatpush3.bf16.msra.mxu0 %v22411_v11 }
0x1235   :  { %14396 = vmatprep.subr.bf16.mxu0 %v14942_v60 }
0x1237   :  { %14374 = vmatpush3.bf16.msra.mxu1 %v22582_v35 }
0x1238   :  { %14375 = vmatprep.subr.bf16.mxu1 %v14942_v60  ;;  %14398 = vmatpush3.bf16.msra.mxu0 %v22428_v54 }
0x1239   :  { %14399 = vmatprep.subr.bf16.mxu0 %v14942_v60 }
0x123b   :  { %14377 = vmatpush3.bf16.msra.mxu1 %v22594_v32 }
0x123c   :  { %14378 = vmatprep.subr.bf16.mxu1 %v14942_v60  ;;  %14401 = vmatpush3.bf16.msra.mxu0 %v22447_v10 }
0x123d   :  { %14402 = vmatprep.subr.bf16.mxu0 %v14942_v60 }
0x123f   :  { %14380 = vmatpush3.bf16.msra.mxu1 %v22606_v33 }
0x1240   :  { %14381 = vmatprep.subr.bf16.mxu1 %v14942_v60  ;;  %14404 = vmatpush3.bf16.msra.mxu0 %v22467_v53 }
0x1241   :  { %14405 = vmatprep.subr.bf16.mxu0 %v14942_v60 }
0x1243   :  { %14383 = vmatpush3.bf16.msra.mxu1 %v22618_v25 }
0x1244   :  { %14384 = vmatprep.subr.bf16.mxu1 %v14942_v60  ;;  %14407 = vmatpush3.bf16.msra.mxu0 %v22488_v50 }
0x1245   :  { %14408 = vmatprep.subr.bf16.mxu0 %v14942_v60 }
0x1247   :  { %14386 = vmatpush3.bf16.msra.mxu1 %v22630_v12 }
0x1248   :  { %14387 = vmatprep.subr.bf16.mxu1 %v14942_v60  ;;  %14410 = vmatpush3.bf16.msra.mxu0 %v22511_v34 }
0x1249   :  { %14411 = vmatprep.subr.bf16.mxu0 %v14942_v60 }
0x124b   :  { %14389 = vmatpush3.bf16.msra.mxu1 %v22642_v23 }
0x124c   :  { %14414 = vmatprep.subr.bf16.mxu1 %v14942_v60  ;;  %14413 = vmatpush3.bf16.msra.mxu0 %v22531_v38 }
0x124d   :  { %14438 = vmatprep.subr.bf16.mxu0 %v14942_v60 }
0x124e   :  { %11429 = vmatmul.mubr.f32.vlgmr.msra.gmra.mrb[50].mxu1 %v22555_v26 }
0x124f   :  { %14416 = vmatpush3.bf16.msra.mxu1 %v22402_v55  ;;  %11498 = vmatprep.mubr.msk.f32.mxu1 %vm14944_vm3, %v14945_v42 }
0x1250   :  { %14417 = vmatprep.subr.bf16.mxu1 %v14942_v60 }
0x1253   :  { %14419 = vmatpush3.bf16.msra.mxu1 %v22415_v63 }
0x1254   :  { %14420 = vmatprep.subr.bf16.mxu1 %v14942_v60 }
0x1257   :  { %14422 = vmatpush3.bf16.msra.mxu1 %v22436_v48 }
0x1258   :  { %14423 = vmatprep.subr.bf16.mxu1 %v14942_v60 }
0x125b   :  { %14425 = vmatpush3.bf16.msra.mxu1 %v22456_v15 }
0x125c   :  { %14426 = vmatprep.subr.bf16.mxu1 %v14942_v60 }
0x125f   :  { %14428 = vmatpush3.bf16.msra.mxu1 %v22476_v19 }
0x1260   :  { %14429 = vmatprep.subr.bf16.mxu1 %v14942_v60 }
0x1263   :  { %14431 = vmatpush3.bf16.msra.mxu1 %v22495_v24 }
0x1264   :  { %14432 = vmatprep.subr.bf16.mxu1 %v14942_v60 }
0x1267   :  { %14434 = vmatpush3.bf16.msra.mxu1 %v22515_v9 }
0x1268   :  { %14435 = vmatprep.subr.bf16.mxu1 %v14942_v60 }
0x126b   :  { %14437 = vmatpush3.bf16.msra.mxu1 %v22535_v46 }
0x126c   :  { %14462 = vmatprep.subr.bf16.mxu1 %v14942_v60 }
0x1301   :  { %v8165_v36 = vpop.f32.mrb[48].mxu1  ;;  %v8251_v20 = vpop.f32.mrb[50].mxu0 }
0x1302   :  { %v8348_v56 = vadd.f32 %v22078_v62, %v8165_v36  ;;  %v8355_v14 = vadd.f32 %v22086_v47, %v8251_v20  ;;  %v11360_v21 = vpop.f32.mrb[49].mxu1  ;;  %v11395_v45 = vpop.f32.mrb[51].mxu0 }
0x1304   :  { %v9640_v2 = vmul.f32 -1.442695, %v8348_v56  ;;  %v9641_v41 = vmul.f32 -1.442695, %v8355_v14 }
0x1306   :  { %14872 = vpow2.f32 %v9640_v2 }
0x1307   :  { %14874 = vpow2.f32 %v9641_v41 }
0x1310   :  { %v14873_v51 = vpop.eup %14872 }
0x1311   :  { %v8352_v59 = vadd.f32 1.0, %v14873_v51  ;;  %v14875_v16 = vpop.eup %14874 }
0x1312   :  { %v8359_v6 = vadd.f32 1.0, %v14875_v16 }
0x1313   :  { %14876 = vrcp.f32 %v8352_v59 }
0x1314   :  { %14878 = vrcp.f32 %v8359_v6 }
0x131d   :  { %v14877_v3 = vpop.eup %14876 }
0x131e   :  { %v14879_v22 = vpop.eup %14878 }
0x131f   :  { %v8365_v49 = vsub.f32 1.0, %v14879_v22  ;;  %v8367_v8 = vmul.f32 %v14879_v22, %v22555_v26 }
0x1321   :  { %v8344_v1 = vpop.f32.mrb[50].mxu1 }
0x1322   :  { %v8345_v7 = vadd.f32 %v22675_v57, %v8344_v1  ;;  %v11430_v28 = vpop.f32.mrb[51].mxu1 }
0x1324   :  { %v8362_v44 = vmul.f32 %v14877_v3, %v8345_v7 }
0x1326   :  { %v8363_v13 = vadd.f32 %v22082_v61, %v8362_v44 }
0x1328   :  { %14880 = vtanh.f32 %v8363_v13 }
0x1332   :  { %v14881_v52 = vpop.eup %14880 }
0x1333   :  { %v8366_v43 = vmul.f32 %v14881_v52, %v8365_v49 }
0x1335   :  { %v22680_v37 = vadd.f32 %v8367_v8, %v8366_v43 }
0x1337   :  { %8369 = vst [vmem:[#allocation2 + $0x8] sm:$0x3] %v22680_v37  ;;  %11464 = vmatmul.mubr.f32.vlgmr.msra.gmra.mrb[52].mxu0 %v22680_v37  ;;  %11499 = vmatmul.mubr.f32.vlgmr.msra.gmra.mrb[52].mxu1 %v22680_v37  ;;  %v8664_v21 = vrot.slane %v22680_v37, 6 }
0x1338   :  { %14440 = vmatpush3.bf16.msra.mxu0 %v22553_v58  ;;  %11533 = vmatprep.mubr.msk.f32.mxu0 %vm14944_vm3, %v14945_v42 }
0x1339   :  { %14441 = vmatprep.subr.bf16.mxu0 %v14942_v60  ;;  %14464 = vmatpush3.bf16.msra.mxu1 %v22391_v40 }
0x133a   :  { %14465 = vmatprep.subr.bf16.mxu1 %v14942_v60  ;;  %11568 = vmatprep.mubr.msk.f32.mxu1 %vm14944_vm3, %v14945_v42 }
0x133c   :  { %14443 = vmatpush3.bf16.msra.mxu0 %v22566_v17 }
0x133d   :  { %14444 = vmatprep.subr.bf16.mxu0 %v14942_v60  ;;  %14467 = vmatpush3.bf16.msra.mxu1 %v22411_v11 }
0x133e   :  { %14468 = vmatprep.subr.bf16.mxu1 %v14942_v60 }
0x1340   :  { %14446 = vmatpush3.bf16.msra.mxu0 %v22582_v35 }
0x1341   :  { %14447 = vmatprep.subr.bf16.mxu0 %v14942_v60  ;;  %14470 = vmatpush3.bf16.msra.mxu1 %v22428_v54 }
0x1342   :  { %14471 = vmatprep.subr.bf16.mxu1 %v14942_v60 }
0x1344   :  { %14449 = vmatpush3.bf16.msra.mxu0 %v22594_v32 }
0x1345   :  { %14450 = vmatprep.subr.bf16.mxu0 %v14942_v60  ;;  %14473 = vmatpush3.bf16.msra.mxu1 %v22447_v10 }
0x1346   :  { %14474 = vmatprep.subr.bf16.mxu1 %v14942_v60 }
0x1348   :  { %14452 = vmatpush3.bf16.msra.mxu0 %v22606_v33 }
0x1349   :  { %14453 = vmatprep.subr.bf16.mxu0 %v14942_v60  ;;  %14476 = vmatpush3.bf16.msra.mxu1 %v22467_v53 }
0x134a   :  { %14477 = vmatprep.subr.bf16.mxu1 %v14942_v60 }
0x134c   :  { %14455 = vmatpush3.bf16.msra.mxu0 %v22618_v25 }
0x134d   :  { %14456 = vmatprep.subr.bf16.mxu0 %v14942_v60  ;;  %14479 = vmatpush3.bf16.msra.mxu1 %v22488_v50 }
0x134e   :  { %14480 = vmatprep.subr.bf16.mxu1 %v14942_v60 }
0x1350   :  { %14458 = vmatpush3.bf16.msra.mxu0 %v22630_v12 }
0x1351   :  { %14459 = vmatprep.subr.bf16.mxu0 %v14942_v60  ;;  %14482 = vmatpush3.bf16.msra.mxu1 %v22511_v34 }
0x1352   :  { %14483 = vmatprep.subr.bf16.mxu1 %v14942_v60 }
0x1354   :  { %14461 = vmatpush3.bf16.msra.mxu0 %v22642_v23 }
0x1355   :  { %14486 = vmatprep.subr.bf16.mxu0 %v14942_v60  ;;  %14485 = vmatpush3.bf16.msra.mxu1 %v22531_v38 }
0x1356   :  { %14510 = vmatprep.subr.bf16.mxu1 %v14942_v60 }
0x1357   :  { %11534 = vmatmul.mubr.f32.vlgmr.msra.gmra.mrb[54].mxu0 %v22680_v37 }
0x1358   :  { %14488 = vmatpush3.bf16.msra.mxu0 %v22402_v55  ;;  %11603 = vmatprep.mubr.msk.f32.mxu0 %vm14944_vm3, %v14945_v42 }
0x1359   :  { %14489 = vmatprep.subr.bf16.mxu0 %v14942_v60 }
0x135c   :  { %14491 = vmatpush3.bf16.msra.mxu0 %v22415_v63 }
0x135d   :  { %14492 = vmatprep.subr.bf16.mxu0 %v14942_v60 }
0x1360   :  { %14494 = vmatpush3.bf16.msra.mxu0 %v22436_v48 }
0x1361   :  { %14495 = vmatprep.subr.bf16.mxu0 %v14942_v60 }
0x1364   :  { %14497 = vmatpush3.bf16.msra.mxu0 %v22456_v15 }
0x1365   :  { %14498 = vmatprep.subr.bf16.mxu0 %v14942_v60 }
0x1368   :  { %14500 = vmatpush3.bf16.msra.mxu0 %v22476_v19 }
0x1369   :  { %14501 = vmatprep.subr.bf16.mxu0 %v14942_v60 }
0x136c   :  { %14503 = vmatpush3.bf16.msra.mxu0 %v22495_v24 }
0x136d   :  { %14504 = vmatprep.subr.bf16.mxu0 %v14942_v60 }
0x1370   :  { %14506 = vmatpush3.bf16.msra.mxu0 %v22515_v9 }
0x1371   :  { %14507 = vmatprep.subr.bf16.mxu0 %v14942_v60 }
0x1374   :  { %14509 = vmatpush3.bf16.msra.mxu0 %v22535_v46 }
0x1375   :  { %14534 = vmatprep.subr.bf16.mxu0 %v14942_v60 }
0x140a   :  { %v8452_v26 = vpop.f32.mrb[52].mxu0  ;;  %v8538_v27 = vpop.f32.mrb[52].mxu1 }
0x140b   :  { %v8636_v5 = vrot.slane %v8452_v26, 6  ;;  %v8646_v4 = vrot.slane %v8538_v27, 6  ;;  %v11465_v39 = vpop.f32.mrb[53].mxu0  ;;  %v11500_v18 = vpop.f32.mrb[53].mxu1 }
0x140d   :  { %v8638_v30 = vadd.f32 %v22078_v62, %v8636_v5  ;;  %v8648_v0 = vadd.f32 %v22086_v47, %v8646_v4 }
0x140f   :  { %v9675_v29 = vmul.f32 -1.442695, %v8638_v30  ;;  %v9676_v31 = vmul.f32 -1.442695, %v8648_v0 }
0x1411   :  { %14882 = vpow2.f32 %v9676_v31  ;;  %v9281_v31 = vld [vmem:[%s22918_s14 + $0x38] sm:$0xff] }
0x1412   :  { %14884 = vpow2.f32 %v9675_v29  ;;  %v9272_v29 = vld [vmem:[#allocation2] sm:$0xff] }
0x141b   :  { %v14883_v36 = vpop.eup %14882 }
0x141c   :  { %v14885_v20 = vpop.eup %14884  ;;  %v8652_v56 = vadd.f32 1.0, %v14883_v36 }
0x141d   :  { %v8642_v14 = vadd.f32 1.0, %v14885_v20  ;;  %v9282_v20 = vld [vmem:[%s22918_s14 + $0x40] sm:$0xff] }
0x141e   :  { %14886 = vrcp.f32 %v8652_v56  ;;  %v9283_v56 = vld [vmem:[%s22918_s14 + $0x48] sm:$0xff] }
0x141f   :  { %14888 = vrcp.f32 %v8642_v14  ;;  %v14622_v14 = vpack.c.bf16 %v9283_v56, %v9282_v20 }
0x1428   :  { %v14887_v45 = vpop.eup %14886 }
0x1429   :  { %v8666_v41 = vmul.f32 %v14887_v45, %v8664_v21  ;;  %v14889_v6 = vpop.eup %14888  ;;  %v8661_v28 = vsub.f32 1.0, %v14887_v45  ;;  %v9284_v21 = vld [vmem:[%s22918_s14 + $0x50] sm:$0xff]  ;;  %v9285_v45 = vld [vmem:[%s22918_s14 + $0x58] sm:$0xff] }
0x142a   :  { %v8631_v2 = vpop.f32.mrb[54].mxu0 }
0x142b   :  { %v8632_v51 = vadd.f32 %v22675_v57, %v8631_v2  ;;  %v11535_v59 = vpop.f32.mrb[55].mxu0  ;;  %v14626_v2 = vpack.c.bf16 %v9285_v45, %v9284_v21 }
0x142d   :  { %v8656_v16 = vrot.slane %v8632_v51, 6  ;;  %v9287_v51 = vld [vmem:[%s22918_s14 + $0x68] sm:$0xff] }
0x142f   :  { %v8658_v1 = vmul.f32 %v14889_v6, %v8656_v16  ;;  %v9288_v16 = vld [vmem:[%s22918_s14 + $0x70] sm:$0xff]  ;;  %v9289_v6 = vld [vmem:[%s22918_s14 + $0x78] sm:$0xff] }
0x1431   :  { %v8659_v7 = vadd.f32 %v22082_v61, %v8658_v1  ;;  %v14634_v1 = vpack.c.bf16 %v9289_v6, %v9288_v16 }
0x1433   :  { %14890 = vtanh.f32 %v8659_v7 }
0x143d   :  { %v14891_v3 = vpop.eup %14890 }
0x143e   :  { %v8662_v44 = vmul.f32 %v14891_v3, %v8661_v28 }
0x1440   :  { %v22745_v13 = vadd.f32 %v8666_v41, %v8662_v44  ;;  %v9286_v41 = vld [vmem:[%s22918_s14 + $0x60] sm:$0xff] }
0x1441   :  { %v14630_v59 = vpack.c.bf16 %v9287_v51, %v9286_v41 }
0x1442   :  { %8668 = vst [vmem:[#allocation2 + $0x8] sm:$0xc] %v22745_v13  ;;  %v8686_v22 = vrot.slane %v22745_v13, 2 }
0x1444   :  { %11569 = vmatmul.mubr.f32.vlgmr.msra.gmra.mrb[54].mxu1 %v8686_v22  ;;  %11604 = vmatmul.mubr.f32.vlgmr.msra.gmra.mrb[56].mxu0 %v8686_v22 }
0x1445   :  { %14512 = vmatpush3.bf16.msra.mxu1 %v22553_v58  ;;  %11638 = vmatprep.mubr.msk.f32.mxu1 %vm14944_vm3, %v14945_v42 }
0x1446   :  { %14513 = vmatprep.subr.bf16.mxu1 %v14942_v60  ;;  %14536 = vmatpush3.bf16.msra.mxu0 %v22391_v40 }
0x1447   :  { %14537 = vmatprep.subr.bf16.mxu0 %v14942_v60  ;;  %11673 = vmatprep.mubr.msk.f32.mxu0 %vm14944_vm3, %v14945_v42 }
0x1449   :  { %14515 = vmatpush3.bf16.msra.mxu1 %v22566_v17 }
0x144a   :  { %14516 = vmatprep.subr.bf16.mxu1 %v14942_v60  ;;  %14539 = vmatpush3.bf16.msra.mxu0 %v22411_v11 }
0x144b   :  { %14540 = vmatprep.subr.bf16.mxu0 %v14942_v60 }
0x144d   :  { %14518 = vmatpush3.bf16.msra.mxu1 %v22582_v35 }
0x144e   :  { %14519 = vmatprep.subr.bf16.mxu1 %v14942_v60  ;;  %14542 = vmatpush3.bf16.msra.mxu0 %v22428_v54 }
0x144f   :  { %14543 = vmatprep.subr.bf16.mxu0 %v14942_v60 }
0x1451   :  { %14521 = vmatpush3.bf16.msra.mxu1 %v22594_v32 }
0x1452   :  { %14522 = vmatprep.subr.bf16.mxu1 %v14942_v60  ;;  %14545 = vmatpush3.bf16.msra.mxu0 %v22447_v10 }
0x1453   :  { %14546 = vmatprep.subr.bf16.mxu0 %v14942_v60 }
0x1455   :  { %14524 = vmatpush3.bf16.msra.mxu1 %v22606_v33 }
0x1456   :  { %14525 = vmatprep.subr.bf16.mxu1 %v14942_v60  ;;  %14548 = vmatpush3.bf16.msra.mxu0 %v22467_v53 }
0x1457   :  { %14549 = vmatprep.subr.bf16.mxu0 %v14942_v60 }
0x1459   :  { %14527 = vmatpush3.bf16.msra.mxu1 %v22618_v25 }
0x145a   :  { %14528 = vmatprep.subr.bf16.mxu1 %v14942_v60  ;;  %14551 = vmatpush3.bf16.msra.mxu0 %v22488_v50 }
0x145b   :  { %14552 = vmatprep.subr.bf16.mxu0 %v14942_v60 }
0x145d   :  { %14530 = vmatpush3.bf16.msra.mxu1 %v22630_v12 }
0x145e   :  { %14531 = vmatprep.subr.bf16.mxu1 %v14942_v60  ;;  %14554 = vmatpush3.bf16.msra.mxu0 %v22511_v34 }
0x145f   :  { %14555 = vmatprep.subr.bf16.mxu0 %v14942_v60 }
0x1461   :  { %14533 = vmatpush3.bf16.msra.mxu1 %v22642_v23 }
0x1462   :  { %14558 = vmatprep.subr.bf16.mxu1 %v14942_v60  ;;  %14557 = vmatpush3.bf16.msra.mxu0 %v22531_v38  ;;  %v8965_v38 = vrot.slane %v22745_v13, 6 }
0x1463   :  { %14582 = vmatprep.subr.bf16.mxu0 %v14942_v60 }
0x1464   :  { %11639 = vmatmul.mubr.f32.vlgmr.msra.gmra.mrb[56].mxu1 %v8686_v22 }
0x1465   :  { %14560 = vmatpush3.bf16.msra.mxu1 %v22402_v55  ;;  %11708 = vmatprep.mubr.msk.f32.mxu1 %vm14944_vm3, %v14945_v42 }
0x1466   :  { %14561 = vmatprep.subr.bf16.mxu1 %v14942_v60 }
0x1469   :  { %14563 = vmatpush3.bf16.msra.mxu1 %v22415_v63 }
0x146a   :  { %14564 = vmatprep.subr.bf16.mxu1 %v14942_v60 }
0x146d   :  { %14566 = vmatpush3.bf16.msra.mxu1 %v22436_v48 }
0x146e   :  { %14567 = vmatprep.subr.bf16.mxu1 %v14942_v60 }
0x1471   :  { %14569 = vmatpush3.bf16.msra.mxu1 %v22456_v15 }
0x1472   :  { %14570 = vmatprep.subr.bf16.mxu1 %v14942_v60 }
0x1475   :  { %14572 = vmatpush3.bf16.msra.mxu1 %v22476_v19 }
0x1476   :  { %14573 = vmatprep.subr.bf16.mxu1 %v14942_v60 }
0x1479   :  { %14575 = vmatpush3.bf16.msra.mxu1 %v22495_v24 }
0x147a   :  { %14576 = vmatprep.subr.bf16.mxu1 %v14942_v60 }
0x147d   :  { %14578 = vmatpush3.bf16.msra.mxu1 %v22515_v9 }
0x147e   :  { %14579 = vmatprep.subr.bf16.mxu1 %v14942_v60 }
0x1481   :  { %14581 = vmatpush3.bf16.msra.mxu1 %v22535_v46 }
0x1517   :  { %v8754_v40 = vpop.f32.mrb[54].mxu1  ;;  %v8840_v55 = vpop.f32.mrb[56].mxu0 }
0x1518   :  { %v8938_v11 = vrot.slane %v8754_v40, 4  ;;  %v8948_v63 = vrot.slane %v8840_v55, 4  ;;  %v11570_v54 = vpop.f32.mrb[55].mxu1  ;;  %v11605_v48 = vpop.f32.mrb[57].mxu0 }
0x151a   :  { %v8940_v10 = vadd.f32 %v22078_v62, %v8938_v11  ;;  %v8950_v15 = vadd.f32 %v22086_v47, %v8948_v63 }
0x151c   :  { %v9710_v53 = vmul.f32 -1.442695, %v8940_v10  ;;  %v9711_v19 = vmul.f32 -1.442695, %v8950_v15 }
0x151e   :  { %14892 = vpow2.f32 %v9711_v19 }
0x151f   :  { %14894 = vpow2.f32 %v9710_v53 }
0x1528   :  { %v14893_v50 = vpop.eup %14892 }
0x1529   :  { %v14895_v24 = vpop.eup %14894  ;;  %v8954_v34 = vadd.f32 1.0, %v14893_v50 }
0x152a   :  { %v8944_v9 = vadd.f32 1.0, %v14895_v24 }
0x152b   :  { %14896 = vrcp.f32 %v8954_v34 }
0x152c   :  { %14898 = vrcp.f32 %v8944_v9 }
0x1535   :  { %v14897_v46 = vpop.eup %14896 }
0x1536   :  { %v8967_v52 = vmul.f32 %v14897_v46, %v8965_v38  ;;  %v14899_v26 = vpop.eup %14898  ;;  %v8963_v4 = vsub.f32 1.0, %v14897_v46 }
0x1537   :  { %v8933_v49 = vpop.f32.mrb[56].mxu1 }
0x1538   :  { %v8934_v43 = vadd.f32 %v22675_v57, %v8933_v49  ;;  %v11640_v8 = vpop.f32.mrb[57].mxu1 }
0x153a   :  { %v8958_v37 = vrot.slane %v8934_v43, 4 }
0x153c   :  { %v8960_v27 = vmul.f32 %v14899_v26, %v8958_v37 }
0x153e   :  { %v8961_v5 = vadd.f32 %v22082_v61, %v8960_v27 }
0x1540   :  { %14900 = vtanh.f32 %v8961_v5 }
0x154a   :  { %v14901_v39 = vpop.eup %14900 }
0x154b   :  { %v8964_v18 = vmul.f32 %v14901_v39, %v8963_v4 }
0x154d   :  { %v22807_v30 = vadd.f32 %v8967_v52, %v8964_v18 }
0x154f   :  { %8969 = vst [vmem:[#allocation2 + $0x8] sm:$0x30] %v22807_v30  ;;  %v8987_v0 = vrot.slane %v22807_v30, 4  ;;  %v9266_v53 = vrot.slane %v22807_v30, 6 }
0x1551   :  { %11674 = vmatmul.mubr.f32.vlgmr.msra.gmra.mrb[58].mxu0 %v8987_v0  ;;  %11709 = vmatmul.mubr.f32.vlgmr.msra.gmra.mrb[58].mxu1 %v8987_v0 }
0x1552   :  { %14584 = vmatpush3.bf16.msra.mxu0 %v22553_v58  ;;  %11778 = vmatprep.mubr.f32.mxu1 %v9272_v29  ;;  %v9275_v58 = vld [vmem:[%s22918_s14 + $0x8] sm:$0xff] }
0x1553   :  { %14585 = vmatprep.subr.bf16.mxu0 %v14942_v60  ;;  %11743 = vmatprep.mubr.msk.f32.mxu0 %vm14944_vm3, %v14945_v42  ;;  %v9274_v42 = vld [vmem:[%s22918_s14] sm:$0xff] }
0x1556   :  { %14587 = vmatpush3.bf16.msra.mxu0 %v22566_v17  ;;  %v14606_v17 = vpack.c.bf16 %v9275_v58, %v9274_v42 }
0x1557   :  { %14588 = vmatprep.subr.bf16.mxu0 %v14942_v60 }
0x1558   :  { %14607 = vmatprep.subr.bf16.mxu1 %v14606_v17 }
0x1559   :  { %14609 = vmatpush3.bf16.msra.mxu1 %v14606_v17 }
0x155a   :  { %14590 = vmatpush3.bf16.msra.mxu0 %v22582_v35  ;;  %v9276_v35 = vld [vmem:[%s22918_s14 + $0x10] sm:$0xff] }
0x155b   :  { %14591 = vmatprep.subr.bf16.mxu0 %v14942_v60 }
0x155e   :  { %14593 = vmatpush3.bf16.msra.mxu0 %v22594_v32 }
0x155f   :  { %14594 = vmatprep.subr.bf16.mxu0 %v14942_v60 }
0x1562   :  { %14596 = vmatpush3.bf16.msra.mxu0 %v22606_v33  ;;  %v9278_v33 = vld [vmem:[%s22918_s14 + $0x20] sm:$0xff] }
0x1563   :  { %14597 = vmatprep.subr.bf16.mxu0 %v14942_v60 }
0x1566   :  { %14599 = vmatpush3.bf16.msra.mxu0 %v22618_v25  ;;  %v9279_v25 = vld [vmem:[%s22918_s14 + $0x28] sm:$0xff] }
0x1567   :  { %14600 = vmatprep.subr.bf16.mxu0 %v14942_v60 }
0x156a   :  { %14602 = vmatpush3.bf16.msra.mxu0 %v22630_v12  ;;  %v14614_v12 = vpack.c.bf16 %v9279_v25, %v9278_v33 }
0x156b   :  { %14603 = vmatprep.subr.bf16.mxu0 %v14942_v60  ;;  %v9277_v60 = vld [vmem:[%s22918_s14 + $0x18] sm:$0xff] }
0x156c   :  { %v14610_v32 = vpack.c.bf16 %v9277_v60, %v9276_v35 }
0x156e   :  { %14605 = vmatpush3.bf16.msra.mxu0 %v22642_v23  ;;  %14611 = vmatprep.subr.bf16.mxu1 %v14610_v32  ;;  %v9280_v23 = vld [vmem:[%s22918_s14 + $0x30] sm:$0xff]  ;;  %s14949_s14 = smov [#allocation3]  }
0x156f   :  { %14613 = vmatpush3.bf16.msra.mxu1 %v14610_v32  ;;  %v14618_v36 = vpack.c.bf16 %v9281_v31, %v9280_v23  ;;  %s9382_s11 = sshll.u32 %s14949_s14, 4  ;;  %s9383_s11 = int_to_ptr.vmem [resolvable:$true] %s9382_s11 }
0x1570   :  { %14615 = vmatprep.subr.bf16.mxu1 %v14614_v12  ;;  %s14915_s8 = scalar_lea.vmem %s9383_s11, 32  ;;  %p14920_p1 = scmp.lt.s32.totalorder %s9383_s11, %s9383_s11 }
0x1571   :  { %11744 = vmatmul.mubr.f32.vlgmr.msra.gmra.mrb[60].mxu0 %v8987_v0  ;;  %p14916_p0 = scmp.ne.s32.totalorder %s9383_s11, %s14915_s8  ;;  %p14921_p2 = scmp.lt.s32.totalorder %s14915_s8, %s14915_s8 }
0x1573   :  { %14617 = vmatpush3.bf16.msra.mxu1 %v14614_v12  ;;  %p14922_p3 = por %p14921_p2, %p14920_p1 }
0x1574   :  { %14619 = vmatprep.subr.bf16.mxu1 %v14618_v36 }
0x1575   :  { %p14923_p4 = pnand %p14922_p3, %p14916_p0 }
0x1577   :  { %14621 = vmatpush3.bf16.msra.mxu1 %v14618_v36 }
0x1578   :  { %14623 = vmatprep.subr.bf16.mxu1 %v14622_v14 }
0x157b   :  { %14625 = vmatpush3.bf16.msra.mxu1 %v14622_v14 }
0x157c   :  { %14627 = vmatprep.subr.bf16.mxu1 %v14626_v2 }
0x157f   :  { %14629 = vmatpush3.bf16.msra.mxu1 %v14626_v2 }
0x1580   :  { %14631 = vmatprep.subr.bf16.mxu1 %v14630_v59 }
0x1583   :  { %14633 = vmatpush3.bf16.msra.mxu1 %v14630_v59 }
0x1584   :  { %14635 = vmatprep.subr.bf16.mxu1 %v14634_v1 }
0x1587   :  { %14637 = vmatpush3.bf16.msra.mxu1 %v14634_v1 }
0x1624   :  { %v9055_v7 = vpop.f32.mrb[58].mxu0  ;;  %v9141_v28 = vpop.f32.mrb[58].mxu1 }
0x1625   :  { %v9239_v3 = vrot.slane %v9055_v7, 2  ;;  %v9249_v44 = vrot.slane %v9141_v28, 2  ;;  %v11675_v13 = vpop.f32.mrb[59].mxu0  ;;  %v11710_v22 = vpop.f32.mrb[59].mxu1 }
0x1627   :  { %v9241_v40 = vadd.f32 %v22078_v62, %v9239_v3  ;;  %v9251_v55 = vadd.f32 %v22086_v47, %v9249_v44 }
0x1629   :  { %v9745_v11 = vmul.f32 -1.442695, %v9241_v40  ;;  %v9746_v63 = vmul.f32 -1.442695, %v9251_v55 }
0x162b   :  { %14902 = vpow2.f32 %v9746_v63 }
0x162c   :  { %14904 = vpow2.f32 %v9745_v11 }
0x1635   :  { %v14903_v54 = vpop.eup %14902 }
0x1636   :  { %v14905_v48 = vpop.eup %14904  ;;  %v9255_v10 = vadd.f32 1.0, %v14903_v54 }
0x1637   :  { %v9245_v15 = vadd.f32 1.0, %v14905_v48 }
0x1638   :  { %14906 = vrcp.f32 %v9255_v10 }
0x1639   :  { %14908 = vrcp.f32 %v9245_v15 }
0x1642   :  { %v14907_v19 = vpop.eup %14906 }
0x1643   :  { %v9268_v50 = vmul.f32 %v14907_v19, %v9266_v53  ;;  %v14909_v47 = vpop.eup %14908  ;;  %v9264_v49 = vsub.f32 1.0, %v14907_v19 }
0x1644   :  { %v9234_v24 = vpop.f32.mrb[60].mxu0 }
0x1645   :  { %v9235_v34 = vadd.f32 %v22675_v57, %v9234_v24  ;;  %v11745_v62 = vpop.f32.mrb[61].mxu0 }
0x1647   :  { %v9259_v9 = vrot.slane %v9235_v34, 2 }
0x1649   :  { %v9261_v38 = vmul.f32 %v14909_v47, %v9259_v9 }
0x164b   :  { %v9262_v46 = vadd.f32 %v22082_v61, %v9261_v38 }
0x164d   :  { %14910 = vtanh.f32 %v9262_v46 }
0x1657   :  { %v14911_v52 = vpop.eup %14910 }
0x1658   :  { %v9265_v43 = vmul.f32 %v14911_v52, %v9264_v49 }
0x165a   :  { %v9269_v8 = vadd.f32 %v9268_v50, %v9265_v43 }
0x165c   :  { %9270 = vst [vmem:[#allocation2 + $0x8] sm:$0xc0] %v9269_v8  ;;  %9271 = vst [vmem:[#allocation3 - $0x6] sm:$0xc0] %v9269_v8 }
0x1663   :  { %v9273_v37 = vld [vmem:[#allocation2 + $0x8] sm:$0xff] }
0x1664   :  { %11779 = vmatmul.mubr.f32.vlgmr.msra.gmra.mrb[60].mxu1 %v9273_v37 }
0x1665   :  { %14926 = shalt.err (!%p14923_p4)
}
0x1666   :  { %s14927_s5 = scalar_lea.hbm %s22921_s17, 32 }
0x1667   :  { %p14928_p5 = scmp.ne.s32.totalorder %s22921_s17, %s14927_s5  ;;  %p14931_p6 = scmp.lt.u32.totalorder %s14927_s5, %s22921_s17 }
0x1669   :  { %p14933_p7 = pnand %p14931_p6, %p14928_p5 }
0x166b   :  { %14936 = shalt.err (!%p14933_p7)
}
0x166c   :  { %9385 = dma.vmem_to_hbm [thread:$0]  %s9383_s11, 32, %s22921_s17, [#allocation4]   ;;  %v9747_v61 = vld [vmem:[%s22919_s15] ss:$0 sm:$0xff] }
0x1737   :  { %v11780_v57 = vpop.f32.mrb[60].mxu1 }
0x1738   :  { %v9369_v26 = vadd.f32 %v11780_v57, %v9747_v61  ;;  %v9363_v27 = vpop.f32.mrb[61].mxu1 }
0x1739   :  { %v9364_v5 = vadd.f32 %v9747_v61, %v9363_v27 }
0x173a   :  { %9373 = vst.msk [vmem:[%s22920_s16 + $0x8] sm:$0xff] %vm3026_vm1, %v9369_v26 }
0x173b   :  { %9372 = vst.msk [vmem:[%s22920_s16] sm:$0xff] %vm3026_vm1, %v9364_v5 }
0x173c   :  { %14937 = dma.done.wait [#allocation4], 32  }
0x173d   :  { %14938 = vsyncadd [#allocation4], 4294967264 }
0x173e   :  { %9391 = vsyncpa [#allocation4], 1 }

</bundles_post_ra>
